<compile_context>
chip_gen: v6e
topology: v6e:2x2x1
jax: 0.10.0
libtpu: 0.0.40
codegen_flags: <defaults>
</compile_context>

<pallas_src>
import functools

import jax
import jax.numpy as jnp
import numpy as np
from jax.experimental import pallas as pl
from jax.experimental.pallas import tpu as pltpu

_EPS = 1e-5


def _round_up(n, m=128):
    return ((n + m - 1) // m) * m


def _derive_vmem_limit_bytes():
    """~75% of physical VMEM (v5e/v6e 128 MiB, v7x 64 MiB); safe fallback."""
    try:
        cap = int(pltpu.get_tpu_info().vmem_capacity_bytes)
    except Exception:
        cap = 64 * 1024 * 1024
    return max(32 * 1024 * 1024, (cap * 3) // 4)


def _bn(h, g, b, *, relu):
    """Training-mode BatchNorm over rows (N*H*W), f32 VPU math, two-pass var."""
    n = h.shape[0]
    mean = jnp.sum(h, axis=0, keepdims=True) * (1.0 / n)
    d = h - mean
    var = jnp.sum(d * d, axis=0, keepdims=True) * (1.0 / n)   # biased variance
    out = d * (g * jax.lax.rsqrt(var + _EPS)) + b              # rsqrt -> EUP
    return jnp.maximum(out, 0.0) if relu else out


def _shift_w(a, dx):
    """a: (N,H,W,C); result[n,h,w] = a[n,h,w+dx], zero-filled outside."""
    if dx == -1:
        return jnp.concatenate([jnp.zeros_like(a[:, :, :1]), a[:, :, :-1]], axis=2)
    if dx == 1:
        return jnp.concatenate([a[:, :, 1:], jnp.zeros_like(a[:, :, :1])], axis=2)
    return a


def _shift_h(a, dy):
    """a: (N,H,W,C); result[n,h,w] = a[n,h+dy,w], zero-filled outside."""
    if dy == -1:
        return jnp.concatenate([jnp.zeros_like(a[:, :1]), a[:, :-1]], axis=1)
    if dy == 1:
        return jnp.concatenate([a[:, 1:], jnp.zeros_like(a[:, :1])], axis=1)
    return a


def _bottleneck_kernel(x_ref, w1_ref, w2_ref, w3_ref,
                       g1_ref, b1_ref, g2_ref, b2_ref, g3_ref, b3_ref,
                       o_ref):
    # x_ref : (N, H, W, CP)   NHWC, channels zero-padded to CP (mult. of 128)
    # w1_ref: (CP, CW)        1x1 conv (in, out), compute dtype
    # w2_ref: (9, CW, CW)     3x3 conv taps (ky*3+kx, in, out), compute dtype
    # w3_ref: (CW, CP)        1x1 conv (in, out), compute dtype
    # g*/b* : (1,CW)/(1,CP)   BN gamma/beta, f32, zero in padded channels
    N, H, W, CP = x_ref.shape
    CW = w1_ref.shape[1]
    rows = N * H * W
    cdt = w1_ref.dtype                      # MXU operand dtype (bf16 or f32)

    # ---- conv1 (1x1) as one matmul; BN1 + ReLU in f32.
    x_in = x_ref[...].reshape(rows, CP).astype(cdt)   # consumed by the dot only
    h = jnp.dot(x_in, w1_ref[...], preferred_element_type=jnp.float32)
    h = _bn(h, g1_ref[...], b1_ref[...], relu=True)

    # ---- conv2 (3x3, pad=1, stride=1): nine accumulated K=CW matmuls.
    # The three horizontal shifts are built once; each tap only adds a cheap
    # vertical zero-fill shift.  No 9x im2col buffer is ever materialized.
    h4 = h.reshape(N, H, W, CW).astype(cdt)            # shifts in compute dtype
    hcols = [_shift_w(h4, -1), h4, _shift_w(h4, 1)]    # kx = 0, 1, 2
    acc = None
    for ky in range(3):
        for kx in range(3):
            tap = _shift_h(hcols[kx], ky - 1).reshape(rows, CW)
            p = jnp.dot(tap, w2_ref[ky * 3 + kx],
                        preferred_element_type=jnp.float32)
            acc = p if acc is None else acc + p
    h = _bn(acc, g2_ref[...], b2_ref[...], relu=True)

    # ---- conv3 (1x1) as one matmul; BN3 (no ReLU yet).
    h = jnp.dot(h.astype(cdt), w3_ref[...], preferred_element_type=jnp.float32)
    h = _bn(h, g3_ref[...], b3_ref[...], relu=False)

    # ---- residual add + ReLU.  Re-read x_ref here (downsample is None) so no
    #      rows x CP f32 copy stays live across the conv2 phase.
    identity = x_ref[...].reshape(rows, CP).astype(jnp.float32)
    out = jnp.maximum(h + identity, 0.0)
    o_ref[...] = out.reshape(N, H, W, CP).astype(o_ref.dtype)  # lane-dense store


@functools.partial(jax.jit, static_argnames=("compute_dtype",))
def bottleneck_pallas(x_nchw, w1, w2, w3, g1, b1, g2, b2, g3, b3,
                      compute_dtype=jnp.bfloat16):
    """Bottleneck forward (stride=1, groups=1, downsample=None).

    x_nchw: (N, Cin, H, W) f32.  w1: (Cin, width), w2: (3,3,width,width)
    [kh,kw,in,out], w3: (width, Cout), g*/b*: (1, C).  Returns (N, Cout, H, W).
    compute_dtype: MXU operand dtype — bf16 fast path (default) or f32
    bit-faithful path; accumulation and BN/ReLU math are f32 either way.
    """
    N, Cin, H, W = x_nchw.shape
    cin_w1, width = w1.shape
    width_w3, Cout = w3.shape
    assert cin_w1 == Cin and width_w3 == width
    assert Cin == Cout, "identity residual requires in_planes == planes * 4"

    CP = _round_up(Cin)     # padded I/O channels (lane-dense)
    CW = _round_up(width)   # padded bottleneck width (lane-dense)
    # TODO(synk): on v6e/v7x a real width of 64 pads to 128, half-filling the
    #   256-wide MXU output dim (~4x conv2 FLOP inflation on layer1 widths).

    # NCHW -> NHWC + channel pad (interface glue to match the PyTorch module).
    x = jnp.transpose(x_nchw, (0, 2, 3, 1))
    x = jnp.pad(x, ((0, 0), (0, 0), (0, 0), (0, CP - Cin)))

    # Zero-pad weights / BN params so padded channels stay exactly zero; cast
    # weights to the MXU operand dtype once here (not per tap in the kernel).
    w1p = jnp.pad(w1, ((0, CP - Cin), (0, CW - width))).astype(compute_dtype)
    w2p = jnp.pad(w2, ((0, 0), (0, 0), (0, CW - width), (0, CW - width)))
    w2p = w2p.reshape(9, CW, CW).astype(compute_dtype)      # (ky*3+kx, in, out)
    w3p = jnp.pad(w3, ((0, CW - width), (0, CP - Cout))).astype(compute_dtype)
    g1p = jnp.pad(g1, ((0, 0), (0, CW - width)))
    b1p = jnp.pad(b1, ((0, 0), (0, CW - width)))
    g2p = jnp.pad(g2, ((0, 0), (0, CW - width)))
    b2p = jnp.pad(b2, ((0, 0), (0, CW - width)))
    g3p = jnp.pad(g3, ((0, 0), (0, CP - Cout)))
    b3p = jnp.pad(b3, ((0, 0), (0, CP - Cout)))

    rows = N * H * W
    wbytes = np.dtype(compute_dtype).itemsize
    flops = 2 * rows * (CP * CW + 9 * CW * CW + CW * CP)
    bytes_accessed = (rows * CP * 4 * 2                               # x + out
                      + (CP * CW + 9 * CW * CW + CW * CP) * wbytes    # weights
                      + (4 * CW + 2 * CP) * 4)                        # BN params
    cost = pl.CostEstimate(flops=flops,
                           transcendentals=2 * CW + CP,   # 3 per-channel rsqrt
                           bytes_accessed=bytes_accessed)

    vmem = pl.BlockSpec(memory_space=pltpu.MemorySpace.VMEM)
    out_nhwc = pl.pallas_call(
        _bottleneck_kernel,
        out_shape=jax.ShapeDtypeStruct((N, H, W, CP), x_nchw.dtype),
        in_specs=[vmem] * 10,
        out_specs=vmem,
        compiler_params=pltpu.CompilerParams(
            vmem_limit_bytes=_derive_vmem_limit_bytes()),
        cost_estimate=cost,
    )(x, w1p, w2p, w3p, g1p, b1p, g2p, b2p, g3p, b3p)

    out_nhwc = out_nhwc[..., :Cout]
    return jnp.transpose(out_nhwc, (0, 3, 1, 2))


# ---------------------- pure-JAX reference (NCHW, like PyTorch) ------------
def _bn_ref(y, g, b):
    mean = jnp.mean(y, axis=(0, 2, 3), keepdims=True)
    var = jnp.mean((y - mean) ** 2, axis=(0, 2, 3), keepdims=True)
    return (y - mean) * (g.reshape(1, -1, 1, 1) * jax.lax.rsqrt(var + _EPS)) \
        + b.reshape(1, -1, 1, 1)


def bottleneck_ref(x, w1, w2, w3, g1, b1, g2, b2, g3, b3):
    dn = ('NCHW', 'OIHW', 'NCHW')
    w1_oihw = w1.T.reshape(w1.shape[1], w1.shape[0], 1, 1)
    w2_oihw = jnp.transpose(w2, (3, 2, 0, 1))
    w3_oihw = w3.T.reshape(w3.shape[1], w3.shape[0], 1, 1)

    h = jax.lax.conv_general_dilated(x, w1_oihw, (1, 1), 'VALID',
                                     dimension_numbers=dn)
    h = jnp.maximum(_bn_ref(h, g1.ravel(), b1.ravel()), 0.0)
    h = jax.lax.conv_general_dilated(h, w2_oihw, (1, 1), [(1, 1), (1, 1)],
                                     dimension_numbers=dn)
    h = jnp.maximum(_bn_ref(h, g2.ravel(), b2.ravel()), 0.0)
    h = jax.lax.conv_general_dilated(h, w3_oihw, (1, 1), 'VALID',
                                     dimension_numbers=dn)
    h = _bn_ref(h, g3.ravel(), b3.ravel())
    return jnp.maximum(h + x, 0.0)


if __name__ == "__main__":
    # Bottleneck(in_planes=16, planes=4): width = 4, out = planes*4 = 16,
    # stride=1, groups=1, downsample=None (so the identity add is valid).
    N, H, W = 2, 16, 16
    in_planes, planes = 16, 4
    width = planes            # planes * (64/64) * 1
    out_planes = planes * 4   # expansion = 4

    key = jax.random.PRNGKey(0)
    ks = jax.random.split(key, 10)
    x = jax.random.normal(ks[0], (N, in_planes, H, W), jnp.float32)

    w1 = 0.1 * jax.random.normal(ks[1], (in_planes, width), jnp.float32)
    w2 = 0.1 * jax.random.normal(ks[2], (3, 3, width, width), jnp.float32)
    w3 = 0.1 * jax.random.normal(ks[3], (width, out_planes), jnp.float32)
    g1 = 1.0 + 0.1 * jax.random.normal(ks[4], (1, width), jnp.float32)
    b1 = 0.1 * jax.random.normal(ks[5], (1, width), jnp.float32)
    g2 = 1.0 + 0.1 * jax.random.normal(ks[6], (1, width), jnp.float32)
    b2 = 0.1 * jax.random.normal(ks[7], (1, width), jnp.float32)
    g3 = 1.0 + 0.1 * jax.random.normal(ks[8], (1, out_planes), jnp.float32)
    b3 = 0.1 * jax.random.normal(ks[9], (1, out_planes), jnp.float32)

    ref = bottleneck_ref(x, w1, w2, w3, g1, b1, g2, b2, g3, b3)

    # f32 MXU path: bit-faithful check against the PyTorch-style reference.
    out_f32 = bottleneck_pallas(x, w1, w2, w3, g1, b1, g2, b2, g3, b3,
                                compute_dtype=jnp.float32)
    out_f32 = jax.block_until_ready(out_f32)
    np.testing.assert_allclose(np.asarray(out_f32), np.asarray(ref),
                               rtol=1e-4, atol=1e-4)

    # bf16 MXU path (default / fast): tolerance reflects bf16 operand rounding
    # amplified by three BatchNorm normalizations (f32 accumulation & BN math).
    out_bf16 = bottleneck_pallas(x, w1, w2, w3, g1, b1, g2, b2, g3, b3,
                                 compute_dtype=jnp.bfloat16)
    out_bf16 = jax.block_until_ready(out_bf16)
    np.testing.assert_allclose(np.asarray(out_bf16), np.asarray(ref),
                               rtol=1e-1, atol=1e-1)

    print("KERNEL_OK")
</pallas_src>

<mosaic_0001>
module attributes {stable_mosaic.version = 11 : i64} {
  func.func @_bottleneck_kernel(%arg0: memref<2x16x16x128xf32, #tpu.memory_space<vmem>>, %arg1: memref<128x128xf32, #tpu.memory_space<vmem>>, %arg2: memref<9x128x128xf32, #tpu.memory_space<vmem>>, %arg3: memref<128x128xf32, #tpu.memory_space<vmem>>, %arg4: memref<1x128xf32, #tpu.memory_space<vmem>>, %arg5: memref<1x128xf32, #tpu.memory_space<vmem>>, %arg6: memref<1x128xf32, #tpu.memory_space<vmem>>, %arg7: memref<1x128xf32, #tpu.memory_space<vmem>>, %arg8: memref<1x128xf32, #tpu.memory_space<vmem>>, %arg9: memref<1x128xf32, #tpu.memory_space<vmem>>, %arg10: memref<2x16x16x128xf32, #tpu.memory_space<vmem>>) attributes {dimension_semantics = [], scalar_prefetch = 0 : i64, scratch_operands = 0 : i64, tpu.core_type = #tpu.core_type<tc>} {
    %c0 = arith.constant 0 : index
    %c0_0 = arith.constant 0 : index
    %c0_1 = arith.constant 0 : index
    %c0_2 = arith.constant 0 : index
    %0 = vector.load %arg0[%c0, %c0_0, %c0_1, %c0_2] : memref<2x16x16x128xf32, #tpu.memory_space<vmem>>, vector<2x16x16x128xf32>
    %1 = vector.shape_cast %0 : vector<2x16x16x128xf32> to vector<512x128xf32>
    %c0_3 = arith.constant 0 : index
    %c0_4 = arith.constant 0 : index
    %2 = vector.load %arg1[%c0_3, %c0_4] : memref<128x128xf32, #tpu.memory_space<vmem>>, vector<128x128xf32>
    %cst = arith.constant dense<0.000000e+00> : vector<512x128xf32>
    %3 = tpu.matmul %1, %2, %cst {dimension_numbers = #tpu.dot_dimension_numbers<[1], [0], [0], [1], [0, 0, 1, 1], [], []>} : vector<512x128xf32>, vector<128x128xf32>, vector<512x128xf32> -> vector<512x128xf32>
    %c0_5 = arith.constant 0 : index
    %c0_6 = arith.constant 0 : index
    %4 = vector.load %arg4[%c0_5, %c0_6] : memref<1x128xf32, #tpu.memory_space<vmem>>, vector<1x128xf32>
    %c0_7 = arith.constant 0 : index
    %c0_8 = arith.constant 0 : index
    %5 = vector.load %arg5[%c0_7, %c0_8] : memref<1x128xf32, #tpu.memory_space<vmem>>, vector<1x128xf32>
    %cst_9 = arith.constant dense<0.000000e+00> : vector<128xf32>
    %6 = vector.multi_reduction <add>, %3, %cst_9 [0] : vector<512x128xf32> to vector<128xf32>
    %7 = vector.shape_cast %6 : vector<128xf32> to vector<1x128xf32>
    %cst_10 = arith.constant 0.001953125 : f32
    %8 = vector.broadcast %cst_10 : f32 to vector<1x128xf32>
    %9 = arith.mulf %7, %8 : vector<1x128xf32>
    %10 = vector.broadcast %9 : vector<1x128xf32> to vector<512x128xf32>
    %11 = arith.subf %3, %10 : vector<512x128xf32>
    %12 = arith.mulf %11, %11 : vector<512x128xf32>
    %cst_11 = arith.constant dense<0.000000e+00> : vector<128xf32>
    %13 = vector.multi_reduction <add>, %12, %cst_11 [0] : vector<512x128xf32> to vector<128xf32>
    %14 = vector.shape_cast %13 : vector<128xf32> to vector<1x128xf32>
    %cst_12 = arith.constant 0.001953125 : f32
    %15 = vector.broadcast %cst_12 : f32 to vector<1x128xf32>
    %16 = arith.mulf %14, %15 : vector<1x128xf32>
    %cst_13 = arith.constant 9.99999974E-6 : f32
    %17 = vector.broadcast %cst_13 : f32 to vector<1x128xf32>
    %18 = arith.addf %16, %17 : vector<1x128xf32>
    %19 = math.rsqrt %18 : vector<1x128xf32>
    %20 = arith.mulf %4, %19 : vector<1x128xf32>
    %21 = vector.broadcast %20 : vector<1x128xf32> to vector<512x128xf32>
    %22 = arith.mulf %11, %21 : vector<512x128xf32>
    %23 = vector.broadcast %5 : vector<1x128xf32> to vector<512x128xf32>
    %24 = arith.addf %22, %23 : vector<512x128xf32>
    %cst_14 = arith.constant 0.000000e+00 : f32
    %25 = vector.broadcast %cst_14 : f32 to vector<512x128xf32>
    %26 = arith.maximumf %24, %25 : vector<512x128xf32>
    %27 = vector.shape_cast %26 : vector<512x128xf32> to vector<2x16x16x128xf32>
    %cst_15 = arith.constant 0.000000e+00 : f32
    %28 = vector.broadcast %cst_15 : f32 to vector<2x16x1x128xf32>
    %29 = vector.extract_strided_slice %27 {offsets = [0, 0, 0, 0], sizes = [2, 16, 15, 128], strides = [1, 1, 1, 1]} : vector<2x16x16x128xf32> to vector<2x16x15x128xf32>
    %30 = tpu.concatenate %28, %29 in 2 : vector<2x16x1x128xf32>, vector<2x16x15x128xf32> -> vector<2x16x16x128xf32>
    %31 = vector.extract_strided_slice %27 {offsets = [0, 0, 1, 0], sizes = [2, 16, 15, 128], strides = [1, 1, 1, 1]} : vector<2x16x16x128xf32> to vector<2x16x15x128xf32>
    %cst_16 = arith.constant 0.000000e+00 : f32
    %32 = vector.broadcast %cst_16 : f32 to vector<2x16x1x128xf32>
    %33 = tpu.concatenate %31, %32 in 2 : vector<2x16x15x128xf32>, vector<2x16x1x128xf32> -> vector<2x16x16x128xf32>
    %cst_17 = arith.constant 0.000000e+00 : f32
    %34 = vector.broadcast %cst_17 : f32 to vector<2x1x16x128xf32>
    %35 = vector.extract_strided_slice %30 {offsets = [0, 0, 0, 0], sizes = [2, 15, 16, 128], strides = [1, 1, 1, 1]} : vector<2x16x16x128xf32> to vector<2x15x16x128xf32>
    %36 = tpu.concatenate %34, %35 in 1 : vector<2x1x16x128xf32>, vector<2x15x16x128xf32> -> vector<2x16x16x128xf32>
    %37 = vector.shape_cast %36 : vector<2x16x16x128xf32> to vector<512x128xf32>
    %c0_18 = arith.constant 0 : index
    %c0_19 = arith.constant 0 : index
    %c0_20 = arith.constant 0 : index
    %38 = vector.load %arg2[%c0_18, %c0_19, %c0_20] : memref<9x128x128xf32, #tpu.memory_space<vmem>>, vector<1x128x128xf32>
    %39 = vector.shape_cast %38 : vector<1x128x128xf32> to vector<128x128xf32>
    %cst_21 = arith.constant dense<0.000000e+00> : vector<512x128xf32>
    %40 = tpu.matmul %37, %39, %cst_21 {dimension_numbers = #tpu.dot_dimension_numbers<[1], [0], [0], [1], [0, 0, 1, 1], [], []>} : vector<512x128xf32>, vector<128x128xf32>, vector<512x128xf32> -> vector<512x128xf32>
    %cst_22 = arith.constant 0.000000e+00 : f32
    %41 = vector.broadcast %cst_22 : f32 to vector<2x1x16x128xf32>
    %42 = vector.extract_strided_slice %27 {offsets = [0, 0, 0, 0], sizes = [2, 15, 16, 128], strides = [1, 1, 1, 1]} : vector<2x16x16x128xf32> to vector<2x15x16x128xf32>
    %43 = tpu.concatenate %41, %42 in 1 : vector<2x1x16x128xf32>, vector<2x15x16x128xf32> -> vector<2x16x16x128xf32>
    %44 = vector.shape_cast %43 : vector<2x16x16x128xf32> to vector<512x128xf32>
    %c1 = arith.constant 1 : index
    %c0_23 = arith.constant 0 : index
    %c0_24 = arith.constant 0 : index
    %45 = vector.load %arg2[%c1, %c0_23, %c0_24] : memref<9x128x128xf32, #tpu.memory_space<vmem>>, vector<1x128x128xf32>
    %46 = vector.shape_cast %45 : vector<1x128x128xf32> to vector<128x128xf32>
    %cst_25 = arith.constant dense<0.000000e+00> : vector<512x128xf32>
    %47 = tpu.matmul %44, %46, %cst_25 {dimension_numbers = #tpu.dot_dimension_numbers<[1], [0], [0], [1], [0, 0, 1, 1], [], []>} : vector<512x128xf32>, vector<128x128xf32>, vector<512x128xf32> -> vector<512x128xf32>
    %48 = arith.addf %40, %47 : vector<512x128xf32>
    %cst_26 = arith.constant 0.000000e+00 : f32
    %49 = vector.broadcast %cst_26 : f32 to vector<2x1x16x128xf32>
    %50 = vector.extract_strided_slice %33 {offsets = [0, 0, 0, 0], sizes = [2, 15, 16, 128], strides = [1, 1, 1, 1]} : vector<2x16x16x128xf32> to vector<2x15x16x128xf32>
    %51 = tpu.concatenate %49, %50 in 1 : vector<2x1x16x128xf32>, vector<2x15x16x128xf32> -> vector<2x16x16x128xf32>
    %52 = vector.shape_cast %51 : vector<2x16x16x128xf32> to vector<512x128xf32>
    %c2 = arith.constant 2 : index
    %c0_27 = arith.constant 0 : index
    %c0_28 = arith.constant 0 : index
    %53 = vector.load %arg2[%c2, %c0_27, %c0_28] : memref<9x128x128xf32, #tpu.memory_space<vmem>>, vector<1x128x128xf32>
    %54 = vector.shape_cast %53 : vector<1x128x128xf32> to vector<128x128xf32>
    %cst_29 = arith.constant dense<0.000000e+00> : vector<512x128xf32>
    %55 = tpu.matmul %52, %54, %cst_29 {dimension_numbers = #tpu.dot_dimension_numbers<[1], [0], [0], [1], [0, 0, 1, 1], [], []>} : vector<512x128xf32>, vector<128x128xf32>, vector<512x128xf32> -> vector<512x128xf32>
    %56 = arith.addf %48, %55 : vector<512x128xf32>
    %57 = vector.shape_cast %30 : vector<2x16x16x128xf32> to vector<512x128xf32>
    %c3 = arith.constant 3 : index
    %c0_30 = arith.constant 0 : index
    %c0_31 = arith.constant 0 : index
    %58 = vector.load %arg2[%c3, %c0_30, %c0_31] : memref<9x128x128xf32, #tpu.memory_space<vmem>>, vector<1x128x128xf32>
    %59 = vector.shape_cast %58 : vector<1x128x128xf32> to vector<128x128xf32>
    %cst_32 = arith.constant dense<0.000000e+00> : vector<512x128xf32>
    %60 = tpu.matmul %57, %59, %cst_32 {dimension_numbers = #tpu.dot_dimension_numbers<[1], [0], [0], [1], [0, 0, 1, 1], [], []>} : vector<512x128xf32>, vector<128x128xf32>, vector<512x128xf32> -> vector<512x128xf32>
    %61 = arith.addf %56, %60 : vector<512x128xf32>
    %62 = vector.shape_cast %27 : vector<2x16x16x128xf32> to vector<512x128xf32>
    %c4 = arith.constant 4 : index
    %c0_33 = arith.constant 0 : index
    %c0_34 = arith.constant 0 : index
    %63 = vector.load %arg2[%c4, %c0_33, %c0_34] : memref<9x128x128xf32, #tpu.memory_space<vmem>>, vector<1x128x128xf32>
    %64 = vector.shape_cast %63 : vector<1x128x128xf32> to vector<128x128xf32>
    %cst_35 = arith.constant dense<0.000000e+00> : vector<512x128xf32>
    %65 = tpu.matmul %62, %64, %cst_35 {dimension_numbers = #tpu.dot_dimension_numbers<[1], [0], [0], [1], [0, 0, 1, 1], [], []>} : vector<512x128xf32>, vector<128x128xf32>, vector<512x128xf32> -> vector<512x128xf32>
    %66 = arith.addf %61, %65 : vector<512x128xf32>
    %67 = vector.shape_cast %33 : vector<2x16x16x128xf32> to vector<512x128xf32>
    %c5 = arith.constant 5 : index
    %c0_36 = arith.constant 0 : index
    %c0_37 = arith.constant 0 : index
    %68 = vector.load %arg2[%c5, %c0_36, %c0_37] : memref<9x128x128xf32, #tpu.memory_space<vmem>>, vector<1x128x128xf32>
    %69 = vector.shape_cast %68 : vector<1x128x128xf32> to vector<128x128xf32>
    %cst_38 = arith.constant dense<0.000000e+00> : vector<512x128xf32>
    %70 = tpu.matmul %67, %69, %cst_38 {dimension_numbers = #tpu.dot_dimension_numbers<[1], [0], [0], [1], [0, 0, 1, 1], [], []>} : vector<512x128xf32>, vector<128x128xf32>, vector<512x128xf32> -> vector<512x128xf32>
    %71 = arith.addf %66, %70 : vector<512x128xf32>
    %72 = vector.extract_strided_slice %30 {offsets = [0, 1, 0, 0], sizes = [2, 15, 16, 128], strides = [1, 1, 1, 1]} : vector<2x16x16x128xf32> to vector<2x15x16x128xf32>
    %cst_39 = arith.constant 0.000000e+00 : f32
    %73 = vector.broadcast %cst_39 : f32 to vector<2x1x16x128xf32>
    %74 = tpu.concatenate %72, %73 in 1 : vector<2x15x16x128xf32>, vector<2x1x16x128xf32> -> vector<2x16x16x128xf32>
    %75 = vector.shape_cast %74 : vector<2x16x16x128xf32> to vector<512x128xf32>
    %c6 = arith.constant 6 : index
    %c0_40 = arith.constant 0 : index
    %c0_41 = arith.constant 0 : index
    %76 = vector.load %arg2[%c6, %c0_40, %c0_41] : memref<9x128x128xf32, #tpu.memory_space<vmem>>, vector<1x128x128xf32>
    %77 = vector.shape_cast %76 : vector<1x128x128xf32> to vector<128x128xf32>
    %cst_42 = arith.constant dense<0.000000e+00> : vector<512x128xf32>
    %78 = tpu.matmul %75, %77, %cst_42 {dimension_numbers = #tpu.dot_dimension_numbers<[1], [0], [0], [1], [0, 0, 1, 1], [], []>} : vector<512x128xf32>, vector<128x128xf32>, vector<512x128xf32> -> vector<512x128xf32>
    %79 = arith.addf %71, %78 : vector<512x128xf32>
    %80 = vector.extract_strided_slice %27 {offsets = [0, 1, 0, 0], sizes = [2, 15, 16, 128], strides = [1, 1, 1, 1]} : vector<2x16x16x128xf32> to vector<2x15x16x128xf32>
    %cst_43 = arith.constant 0.000000e+00 : f32
    %81 = vector.broadcast %cst_43 : f32 to vector<2x1x16x128xf32>
    %82 = tpu.concatenate %80, %81 in 1 : vector<2x15x16x128xf32>, vector<2x1x16x128xf32> -> vector<2x16x16x128xf32>
    %83 = vector.shape_cast %82 : vector<2x16x16x128xf32> to vector<512x128xf32>
    %c7 = arith.constant 7 : index
    %c0_44 = arith.constant 0 : index
    %c0_45 = arith.constant 0 : index
    %84 = vector.load %arg2[%c7, %c0_44, %c0_45] : memref<9x128x128xf32, #tpu.memory_space<vmem>>, vector<1x128x128xf32>
    %85 = vector.shape_cast %84 : vector<1x128x128xf32> to vector<128x128xf32>
    %cst_46 = arith.constant dense<0.000000e+00> : vector<512x128xf32>
    %86 = tpu.matmul %83, %85, %cst_46 {dimension_numbers = #tpu.dot_dimension_numbers<[1], [0], [0], [1], [0, 0, 1, 1], [], []>} : vector<512x128xf32>, vector<128x128xf32>, vector<512x128xf32> -> vector<512x128xf32>
    %87 = arith.addf %79, %86 : vector<512x128xf32>
    %88 = vector.extract_strided_slice %33 {offsets = [0, 1, 0, 0], sizes = [2, 15, 16, 128], strides = [1, 1, 1, 1]} : vector<2x16x16x128xf32> to vector<2x15x16x128xf32>
    %cst_47 = arith.constant 0.000000e+00 : f32
    %89 = vector.broadcast %cst_47 : f32 to vector<2x1x16x128xf32>
    %90 = tpu.concatenate %88, %89 in 1 : vector<2x15x16x128xf32>, vector<2x1x16x128xf32> -> vector<2x16x16x128xf32>
    %91 = vector.shape_cast %90 : vector<2x16x16x128xf32> to vector<512x128xf32>
    %c8 = arith.constant 8 : index
    %c0_48 = arith.constant 0 : index
    %c0_49 = arith.constant 0 : index
    %92 = vector.load %arg2[%c8, %c0_48, %c0_49] : memref<9x128x128xf32, #tpu.memory_space<vmem>>, vector<1x128x128xf32>
    %93 = vector.shape_cast %92 : vector<1x128x128xf32> to vector<128x128xf32>
    %cst_50 = arith.constant dense<0.000000e+00> : vector<512x128xf32>
    %94 = tpu.matmul %91, %93, %cst_50 {dimension_numbers = #tpu.dot_dimension_numbers<[1], [0], [0], [1], [0, 0, 1, 1], [], []>} : vector<512x128xf32>, vector<128x128xf32>, vector<512x128xf32> -> vector<512x128xf32>
    %95 = arith.addf %87, %94 : vector<512x128xf32>
    %c0_51 = arith.constant 0 : index
    %c0_52 = arith.constant 0 : index
    %96 = vector.load %arg6[%c0_51, %c0_52] : memref<1x128xf32, #tpu.memory_space<vmem>>, vector<1x128xf32>
    %c0_53 = arith.constant 0 : index
    %c0_54 = arith.constant 0 : index
    %97 = vector.load %arg7[%c0_53, %c0_54] : memref<1x128xf32, #tpu.memory_space<vmem>>, vector<1x128xf32>
    %cst_55 = arith.constant dense<0.000000e+00> : vector<128xf32>
    %98 = vector.multi_reduction <add>, %95, %cst_55 [0] : vector<512x128xf32> to vector<128xf32>
    %99 = vector.shape_cast %98 : vector<128xf32> to vector<1x128xf32>
    %cst_56 = arith.constant 0.001953125 : f32
    %100 = vector.broadcast %cst_56 : f32 to vector<1x128xf32>
    %101 = arith.mulf %99, %100 : vector<1x128xf32>
    %102 = vector.broadcast %101 : vector<1x128xf32> to vector<512x128xf32>
    %103 = arith.subf %95, %102 : vector<512x128xf32>
    %104 = arith.mulf %103, %103 : vector<512x128xf32>
    %cst_57 = arith.constant dense<0.000000e+00> : vector<128xf32>
    %105 = vector.multi_reduction <add>, %104, %cst_57 [0] : vector<512x128xf32> to vector<128xf32>
    %106 = vector.shape_cast %105 : vector<128xf32> to vector<1x128xf32>
    %cst_58 = arith.constant 0.001953125 : f32
    %107 = vector.broadcast %cst_58 : f32 to vector<1x128xf32>
    %108 = arith.mulf %106, %107 : vector<1x128xf32>
    %cst_59 = arith.constant 9.99999974E-6 : f32
    %109 = vector.broadcast %cst_59 : f32 to vector<1x128xf32>
    %110 = arith.addf %108, %109 : vector<1x128xf32>
    %111 = math.rsqrt %110 : vector<1x128xf32>
    %112 = arith.mulf %96, %111 : vector<1x128xf32>
    %113 = vector.broadcast %112 : vector<1x128xf32> to vector<512x128xf32>
    %114 = arith.mulf %103, %113 : vector<512x128xf32>
    %115 = vector.broadcast %97 : vector<1x128xf32> to vector<512x128xf32>
    %116 = arith.addf %114, %115 : vector<512x128xf32>
    %cst_60 = arith.constant 0.000000e+00 : f32
    %117 = vector.broadcast %cst_60 : f32 to vector<512x128xf32>
    %118 = arith.maximumf %116, %117 : vector<512x128xf32>
    %c0_61 = arith.constant 0 : index
    %c0_62 = arith.constant 0 : index
    %119 = vector.load %arg3[%c0_61, %c0_62] : memref<128x128xf32, #tpu.memory_space<vmem>>, vector<128x128xf32>
    %cst_63 = arith.constant dense<0.000000e+00> : vector<512x128xf32>
    %120 = tpu.matmul %118, %119, %cst_63 {dimension_numbers = #tpu.dot_dimension_numbers<[1], [0], [0], [1], [0, 0, 1, 1], [], []>} : vector<512x128xf32>, vector<128x128xf32>, vector<512x128xf32> -> vector<512x128xf32>
    %c0_64 = arith.constant 0 : index
    %c0_65 = arith.constant 0 : index
    %121 = vector.load %arg8[%c0_64, %c0_65] : memref<1x128xf32, #tpu.memory_space<vmem>>, vector<1x128xf32>
    %c0_66 = arith.constant 0 : index
    %c0_67 = arith.constant 0 : index
    %122 = vector.load %arg9[%c0_66, %c0_67] : memref<1x128xf32, #tpu.memory_space<vmem>>, vector<1x128xf32>
    %cst_68 = arith.constant dense<0.000000e+00> : vector<128xf32>
    %123 = vector.multi_reduction <add>, %120, %cst_68 [0] : vector<512x128xf32> to vector<128xf32>
    %124 = vector.shape_cast %123 : vector<128xf32> to vector<1x128xf32>
    %cst_69 = arith.constant 0.001953125 : f32
    %125 = vector.broadcast %cst_69 : f32 to vector<1x128xf32>
    %126 = arith.mulf %124, %125 : vector<1x128xf32>
    %127 = vector.broadcast %126 : vector<1x128xf32> to vector<512x128xf32>
    %128 = arith.subf %120, %127 : vector<512x128xf32>
    %129 = arith.mulf %128, %128 : vector<512x128xf32>
    %cst_70 = arith.constant dense<0.000000e+00> : vector<128xf32>
    %130 = vector.multi_reduction <add>, %129, %cst_70 [0] : vector<512x128xf32> to vector<128xf32>
    %131 = vector.shape_cast %130 : vector<128xf32> to vector<1x128xf32>
    %cst_71 = arith.constant 0.001953125 : f32
    %132 = vector.broadcast %cst_71 : f32 to vector<1x128xf32>
    %133 = arith.mulf %131, %132 : vector<1x128xf32>
    %cst_72 = arith.constant 9.99999974E-6 : f32
    %134 = vector.broadcast %cst_72 : f32 to vector<1x128xf32>
    %135 = arith.addf %133, %134 : vector<1x128xf32>
    %136 = math.rsqrt %135 : vector<1x128xf32>
    %137 = arith.mulf %121, %136 : vector<1x128xf32>
    %138 = vector.broadcast %137 : vector<1x128xf32> to vector<512x128xf32>
    %139 = arith.mulf %128, %138 : vector<512x128xf32>
    %140 = vector.broadcast %122 : vector<1x128xf32> to vector<512x128xf32>
    %141 = arith.addf %139, %140 : vector<512x128xf32>
    %c0_73 = arith.constant 0 : index
    %c0_74 = arith.constant 0 : index
    %c0_75 = arith.constant 0 : index
    %c0_76 = arith.constant 0 : index
    %142 = vector.load %arg0[%c0_73, %c0_74, %c0_75, %c0_76] : memref<2x16x16x128xf32, #tpu.memory_space<vmem>>, vector<2x16x16x128xf32>
    %143 = vector.shape_cast %142 : vector<2x16x16x128xf32> to vector<512x128xf32>
    %144 = arith.addf %141, %143 : vector<512x128xf32>
    %cst_77 = arith.constant 0.000000e+00 : f32
    %145 = vector.broadcast %cst_77 : f32 to vector<512x128xf32>
    %146 = arith.maximumf %144, %145 : vector<512x128xf32>
    %147 = vector.shape_cast %146 : vector<512x128xf32> to vector<2x16x16x128xf32>
    %c0_78 = arith.constant 0 : index
    %c0_79 = arith.constant 0 : index
    %c0_80 = arith.constant 0 : index
    %c0_81 = arith.constant 0 : index
    %148 = vector.load %arg10[%c0_78, %c0_79, %c0_80, %c0_81] : memref<2x16x16x128xf32, #tpu.memory_space<vmem>>, vector<2x16x16x128xf32>
    tpu.vector_store %arg10[%c0_78, %c0_79, %c0_80, %c0_81], %147 {strides = array<i32>} : memref<2x16x16x128xf32, #tpu.memory_space<vmem>>, vector<2x16x16x128xf32>,
    return
  }
}

</mosaic_0001>

<bundles_post_ra>
// kernel: bottleneck_pallas.1
= control target key start
LH: loop header
LB: loop body
LE: loop exit
PB: predicated region body
PF: predicated region fallthrough
CT: control target
= control target key end

     0   :  { %vm1041_vm0 = vcmask 1040384   ;;  %vm1234_vm2 = vcmask 1046528   ;;  %s16445_s1 = inlined_call_operand.vmem [shape: f32[128,128], index: 1, kind: input, shape index: {}]   ;;  %s16446_s0 = inlined_call_operand.vmem [shape: f32[2,16,16,128], index: 0, kind: input, shape index: {}]   ;;  %s16447_s2 = inlined_call_operand.vmem [shape: f32[9,128,128], index: 2, kind: input, shape index: {}]   ;;  %s16448_s4 = inlined_call_operand.vmem [shape: f32[1,128], index: 4, kind: input, shape index: {}]   ;;  %s16449_s5 = inlined_call_operand.vmem [shape: f32[1,128], index: 5, kind: input, shape index: {}]   ;;  %s16450_s3 = inlined_call_operand.vmem [shape: f32[128,128], index: 3, kind: input, shape index: {}]   ;;  %s16451_s6 = inlined_call_operand.vmem [shape: f32[1,128], index: 6, kind: input, shape index: {}]   ;;  %s16452_s7 = inlined_call_operand.vmem [shape: f32[1,128], index: 7, kind: input, shape index: {}]   ;;  %s16453_s8 = inlined_call_operand.vmem [shape: f32[1,128], index: 8, kind: input, shape index: {}]   ;;  %s16454_s9 = inlined_call_operand.vmem [shape: f32[1,128], index: 9, kind: input, shape index: {}]   ;;  %s16455_s10 = inlined_call_operand.vmem [shape: f32[2,16,16,128], index: 10, kind: output, shape index: {}]  }
   0x1   :  { %v114_v0 = vld [vmem:[%s16445_s1 + $0x78] sm:$0xff]  ;;  %v113_v1 = vld [vmem:[%s16445_s1 + $0x70] sm:$0xff]  ;;  %v112_v2 = vld [vmem:[%s16445_s1 + $0x68] sm:$0xff] }
   0x2   :  { %8266 = vmatprep.subr.mxu0 %v114_v0  ;;  %9674 = vmatprep.subr.mxu1 %v114_v0  ;;  %v111_v3 = vld [vmem:[%s16445_s1 + $0x60] sm:$0xff]  ;;  %v110_v5 = vld [vmem:[%s16445_s1 + $0x58] sm:$0xff]  ;;  %v109_v6 = vld [vmem:[%s16445_s1 + $0x50] sm:$0xff] }
   0x3   :  { %8267 = vmatpush3.msra.mxu0 %v114_v0  ;;  %9690 = vmatpush3.msra.mxu1 %v114_v0  ;;  %v35_v4 = vld [vmem:[%s16446_s0] sm:$0xff]  ;;  %v108_v7 = vld [vmem:[%s16445_s1 + $0x48] sm:$0xff]  ;;  %v106_v9 = vld [vmem:[%s16445_s1 + $0x38] sm:$0xff] }
   0x4   :  { %8268 = vmatprep.subr.mxu0 %v113_v1  ;;  %9675 = vmatprep.subr.mxu1 %v113_v1  ;;  %v107_v8 = vld [vmem:[%s16445_s1 + $0x40] sm:$0xff]  ;;  %v105_v10 = vld [vmem:[%s16445_s1 + $0x30] sm:$0xff]  ;;  %v104_v11 = vld [vmem:[%s16445_s1 + $0x28] sm:$0xff] }
   0x5   :  { %8269 = vmatpush3.msra.mxu0 %v113_v1  ;;  %9691 = vmatpush3.msra.mxu1 %v113_v1  ;;  %v103_v12 = vld [vmem:[%s16445_s1 + $0x20] sm:$0xff]  ;;  %v102_v13 = vld [vmem:[%s16445_s1 + $0x18] sm:$0xff]  ;;  %v101_v14 = vld [vmem:[%s16445_s1 + $0x10] sm:$0xff] }
   0x6   :  { %8270 = vmatprep.subr.mxu0 %v112_v2  ;;  %9676 = vmatprep.subr.mxu1 %v112_v2  ;;  %v100_v15 = vld [vmem:[%s16445_s1 + $0x8] sm:$0xff]  ;;  %v99_v16 = vld [vmem:[%s16445_s1] sm:$0xff]  ;;  %v37_v18 = vld [vmem:[%s16446_s0 + $0x10] sm:$0xff] }
   0x7   :  { %8271 = vmatpush3.msra.mxu0 %v112_v2  ;;  %8298 = vmatprep.mubr.f32.mxu0 %v35_v4  ;;  %v36_v17 = vld [vmem:[%s16446_s0 + $0x8] sm:$0xff]  ;;  %v67_v19 = vld [vmem:[%s16446_s0 + $0x100] sm:$0xff]  ;;  %v69_v21 = vld [vmem:[%s16446_s0 + $0x110] sm:$0xff] }
   0x8   :  { %8272 = vmatprep.subr.mxu0 %v111_v3  ;;  %9692 = vmatpush3.msra.mxu1 %v112_v2  ;;  %v68_v20 = vld [vmem:[%s16446_s0 + $0x108] sm:$0xff]  ;;  %v38_v22 = vld [vmem:[%s16446_s0 + $0x18] sm:$0xff]  ;;  %v39_v23 = vld [vmem:[%s16446_s0 + $0x20] sm:$0xff] }
   0x9   :  { %8273 = vmatpush3.msra.mxu0 %v111_v3  ;;  %9677 = vmatprep.subr.mxu1 %v111_v3  ;;  %v70_v24 = vld [vmem:[%s16446_s0 + $0x118] sm:$0xff]  ;;  %v71_v25 = vld [vmem:[%s16446_s0 + $0x120] sm:$0xff]  ;;  %v40_v26 = vld [vmem:[%s16446_s0 + $0x28] sm:$0xff] }
   0xa   :  { %8274 = vmatprep.subr.mxu0 %v110_v5  ;;  %9693 = vmatpush3.msra.mxu1 %v111_v3  ;;  %v41_v27 = vld [vmem:[%s16446_s0 + $0x30] sm:$0xff]  ;;  %v72_v28 = vld [vmem:[%s16446_s0 + $0x128] sm:$0xff]  ;;  %v42_v30 = vld [vmem:[%s16446_s0 + $0x38] sm:$0xff] }
   0xb   :  { %8275 = vmatpush3.msra.mxu0 %v110_v5  ;;  %9678 = vmatprep.subr.mxu1 %v110_v5  ;;  %v73_v29 = vld [vmem:[%s16446_s0 + $0x130] sm:$0xff]  ;;  %v43_v31 = vld [vmem:[%s16446_s0 + $0x40] sm:$0xff]  ;;  %v74_v32 = vld [vmem:[%s16446_s0 + $0x138] sm:$0xff] }
   0xc   :  { %8276 = vmatprep.subr.mxu0 %v109_v6  ;;  %9694 = vmatpush3.msra.mxu1 %v110_v5  ;;  %v75_v33 = vld [vmem:[%s16446_s0 + $0x140] sm:$0xff]  ;;  %v44_v34 = vld [vmem:[%s16446_s0 + $0x48] sm:$0xff]  ;;  %v45_v35 = vld [vmem:[%s16446_s0 + $0x50] sm:$0xff] }
   0xd   :  { %8277 = vmatpush3.msra.mxu0 %v109_v6  ;;  %9679 = vmatprep.subr.mxu1 %v109_v6  ;;  %v76_v36 = vld [vmem:[%s16446_s0 + $0x148] sm:$0xff]  ;;  %v77_v37 = vld [vmem:[%s16446_s0 + $0x150] sm:$0xff]  ;;  %v46_v38 = vld [vmem:[%s16446_s0 + $0x58] sm:$0xff] }
   0xe   :  { %8278 = vmatprep.subr.mxu0 %v108_v7  ;;  %9695 = vmatpush3.msra.mxu1 %v109_v6  ;;  %v47_v39 = vld [vmem:[%s16446_s0 + $0x60] sm:$0xff]  ;;  %v78_v40 = vld [vmem:[%s16446_s0 + $0x158] sm:$0xff]  ;;  %v48_v42 = vld [vmem:[%s16446_s0 + $0x68] sm:$0xff] }
   0xf   :  { %8279 = vmatpush3.msra.mxu0 %v108_v7  ;;  %9680 = vmatprep.subr.mxu1 %v108_v7  ;;  %v79_v41 = vld [vmem:[%s16446_s0 + $0x160] sm:$0xff]  ;;  %v49_v43 = vld [vmem:[%s16446_s0 + $0x70] sm:$0xff]  ;;  %v80_v44 = vld [vmem:[%s16446_s0 + $0x168] sm:$0xff] }
  0x10   :  { %8280 = vmatprep.subr.mxu0 %v107_v8  ;;  %9696 = vmatpush3.msra.mxu1 %v108_v7  ;;  %v81_v45 = vld [vmem:[%s16446_s0 + $0x170] sm:$0xff]  ;;  %v50_v46 = vld [vmem:[%s16446_s0 + $0x78] sm:$0xff]  ;;  %v51_v47 = vld [vmem:[%s16446_s0 + $0x80] sm:$0xff] }
  0x11   :  { %8281 = vmatpush3.msra.mxu0 %v107_v8  ;;  %9681 = vmatprep.subr.mxu1 %v107_v8  ;;  %v82_v48 = vld [vmem:[%s16446_s0 + $0x178] sm:$0xff]  ;;  %v83_v49 = vld [vmem:[%s16446_s0 + $0x180] sm:$0xff]  ;;  %v52_v50 = vld [vmem:[%s16446_s0 + $0x88] sm:$0xff] }
  0x12   :  { %8282 = vmatprep.subr.mxu0 %v106_v9  ;;  %9697 = vmatpush3.msra.mxu1 %v107_v8  ;;  %v53_v51 = vld [vmem:[%s16446_s0 + $0x90] sm:$0xff]  ;;  %v84_v52 = vld [vmem:[%s16446_s0 + $0x188] sm:$0xff]  ;;  %v54_v54 = vld [vmem:[%s16446_s0 + $0x98] sm:$0xff] }
  0x13   :  { %8283 = vmatpush3.msra.mxu0 %v106_v9  ;;  %9682 = vmatprep.subr.mxu1 %v106_v9  ;;  %v85_v53 = vld [vmem:[%s16446_s0 + $0x190] sm:$0xff]  ;;  %v55_v55 = vld [vmem:[%s16446_s0 + $0xa0] sm:$0xff]  ;;  %v86_v56 = vld [vmem:[%s16446_s0 + $0x198] sm:$0xff] }
  0x14   :  { %8284 = vmatprep.subr.mxu0 %v105_v10  ;;  %9698 = vmatpush3.msra.mxu1 %v106_v9  ;;  %v87_v57 = vld [vmem:[%s16446_s0 + $0x1a0] sm:$0xff]  ;;  %v56_v58 = vld [vmem:[%s16446_s0 + $0xa8] sm:$0xff]  ;;  %v57_v59 = vld [vmem:[%s16446_s0 + $0xb0] sm:$0xff] }
  0x15   :  { %8285 = vmatpush3.msra.mxu0 %v105_v10  ;;  %9683 = vmatprep.subr.mxu1 %v105_v10  ;;  %v88_v60 = vld [vmem:[%s16446_s0 + $0x1a8] sm:$0xff]  ;;  %v89_v61 = vld [vmem:[%s16446_s0 + $0x1b0] sm:$0xff]  ;;  %v58_v62 = vld [vmem:[%s16446_s0 + $0xb8] sm:$0xff] }
  0x16   :  { %8286 = vmatprep.subr.mxu0 %v104_v11  ;;  %9699 = vmatpush3.msra.mxu1 %v105_v10  ;;  %v59_v63 = vld [vmem:[%s16446_s0 + $0xc0] sm:$0xff]  ;;  %v90_v0 = vld [vmem:[%s16446_s0 + $0x1b8] sm:$0xff]  ;;  %v60_v2 = vld [vmem:[%s16446_s0 + $0xc8] sm:$0xff] }
  0x17   :  { %8287 = vmatpush3.msra.mxu0 %v104_v11  ;;  %9684 = vmatprep.subr.mxu1 %v104_v11  ;;  %v91_v1 = vld [vmem:[%s16446_s0 + $0x1c0] sm:$0xff]  ;;  %v61_v3 = vld [vmem:[%s16446_s0 + $0xd0] sm:$0xff]  ;;  %v92_v4 = vld [vmem:[%s16446_s0 + $0x1c8] sm:$0xff] }
  0x18   :  { %8288 = vmatprep.subr.mxu0 %v103_v12  ;;  %9700 = vmatpush3.msra.mxu1 %v104_v11  ;;  %v93_v5 = vld [vmem:[%s16446_s0 + $0x1d0] sm:$0xff]  ;;  %v62_v6 = vld [vmem:[%s16446_s0 + $0xd8] sm:$0xff]  ;;  %v63_v7 = vld [vmem:[%s16446_s0 + $0xe0] sm:$0xff] }
  0x19   :  { %8289 = vmatpush3.msra.mxu0 %v103_v12  ;;  %9685 = vmatprep.subr.mxu1 %v103_v12  ;;  %v94_v8 = vld [vmem:[%s16446_s0 + $0x1d8] sm:$0xff]  ;;  %v95_v9 = vld [vmem:[%s16446_s0 + $0x1e0] sm:$0xff]  ;;  %v64_v10 = vld [vmem:[%s16446_s0 + $0xe8] sm:$0xff] }
  0x1a   :  { %8290 = vmatprep.subr.mxu0 %v102_v13  ;;  %9701 = vmatpush3.msra.mxu1 %v103_v12  ;;  %v65_v11 = vld [vmem:[%s16446_s0 + $0xf0] sm:$0xff]  ;;  %v96_v12 = vld [vmem:[%s16446_s0 + $0x1e8] sm:$0xff]  ;;  %vm11058_vm1 = vmneg %vm1041_vm0 }
  0x1b   :  { %8291 = vmatpush3.msra.mxu0 %v102_v13  ;;  %9686 = vmatprep.subr.mxu1 %v102_v13 }
  0x1c   :  { %8292 = vmatprep.subr.mxu0 %v101_v14  ;;  %9702 = vmatpush3.msra.mxu1 %v102_v13  ;;  %v97_v13 = vld [vmem:[%s16446_s0 + $0x1f0] sm:$0xff] }
  0x1d   :  { %8293 = vmatpush3.msra.mxu0 %v101_v14  ;;  %9687 = vmatprep.subr.mxu1 %v101_v14 }
  0x1e   :  { %8294 = vmatprep.subr.mxu0 %v100_v15  ;;  %9703 = vmatpush3.msra.mxu1 %v101_v14  ;;  %v66_v14 = vld [vmem:[%s16446_s0 + $0xf8] sm:$0xff] }
  0x1f   :  { %8295 = vmatpush3.msra.mxu0 %v100_v15  ;;  %9688 = vmatprep.subr.mxu1 %v100_v15 }
  0x20   :  { %8296 = vmatprep.subr.mxu0 %v99_v16  ;;  %9704 = vmatpush3.msra.mxu1 %v100_v15  ;;  %v98_v15 = vld [vmem:[%s16446_s0 + $0x1f8] sm:$0xff] }
  0x21   :  { %8297 = vmatpush3.msra.mxu0 %v99_v16  ;;  %9689 = vmatprep.subr.mxu1 %v99_v16 }
  0x22   :  { %8299 = vmatmul.mubr.f32.vlgmr.msra.gmra.mxu0 %v36_v17  ;;  %9705 = vmatpush3.msra.mxu1 %v99_v16 }
  0x23   :  { %8301 = vmatprep.mubr.f32.mxu0 %v37_v18  ;;  %8346 = vmatprep.mubr.f32.mxu1 %v67_v19 }
  0x24   :  { %8347 = vmatmul.mubr.f32.vlgmr.msra.gmra.mxu1 %v68_v20 }
  0x25   :  { %8349 = vmatprep.mubr.f32.mxu1 %v69_v21 }
  0x26   :  { %8302 = vmatmul.mubr.f32.gmra.mxu0 %v38_v22 }
  0x27   :  { %8304 = vmatprep.mubr.f32.mxu0 %v39_v23 }
  0x28   :  { %8350 = vmatmul.mubr.f32.gmra.mxu1 %v70_v24 }
  0x29   :  { %8352 = vmatprep.mubr.f32.mxu1 %v71_v25 }
  0x2a   :  { %8305 = vmatmul.mubr.f32.gmra.mxu0 %v40_v26 }
  0x2b   :  { %8307 = vmatprep.mubr.f32.mxu0 %v41_v27 }
  0x2c   :  { %8353 = vmatmul.mubr.f32.gmra.mxu1 %v72_v28 }
  0x2d   :  { %8355 = vmatprep.mubr.f32.mxu1 %v73_v29 }
  0x2e   :  { %8308 = vmatmul.mubr.f32.gmra.mxu0 %v42_v30 }
  0x2f   :  { %8310 = vmatprep.mubr.f32.mxu0 %v43_v31 }
  0x30   :  { %8356 = vmatmul.mubr.f32.gmra.mxu1 %v74_v32 }
  0x31   :  { %8358 = vmatprep.mubr.f32.mxu1 %v75_v33 }
  0x32   :  { %8311 = vmatmul.mubr.f32.gmra.mxu0 %v44_v34 }
  0x33   :  { %8313 = vmatprep.mubr.f32.mxu0 %v45_v35 }
  0x34   :  { %8359 = vmatmul.mubr.f32.gmra.mxu1 %v76_v36 }
  0x35   :  { %8361 = vmatprep.mubr.f32.mxu1 %v77_v37 }
  0x36   :  { %8314 = vmatmul.mubr.f32.gmra.mxu0 %v46_v38 }
  0x37   :  { %8316 = vmatprep.mubr.f32.mxu0 %v47_v39 }
  0x38   :  { %8362 = vmatmul.mubr.f32.gmra.mxu1 %v78_v40 }
  0x39   :  { %8364 = vmatprep.mubr.f32.mxu1 %v79_v41 }
  0x3a   :  { %8317 = vmatmul.mubr.f32.gmra.mxu0 %v48_v42 }
  0x3b   :  { %8319 = vmatprep.mubr.f32.mxu0 %v49_v43 }
  0x3c   :  { %8365 = vmatmul.mubr.f32.gmra.mxu1 %v80_v44 }
  0x3d   :  { %8367 = vmatprep.mubr.f32.mxu1 %v81_v45 }
  0x3e   :  { %8320 = vmatmul.mubr.f32.gmra.mxu0 %v50_v46 }
  0x3f   :  { %8322 = vmatprep.mubr.f32.mxu0 %v51_v47 }
  0x40   :  { %8368 = vmatmul.mubr.f32.gmra.mxu1 %v82_v48 }
  0x41   :  { %8370 = vmatprep.mubr.f32.mxu1 %v83_v49 }
  0x42   :  { %8323 = vmatmul.mubr.f32.gmra.mxu0 %v52_v50 }
  0x43   :  { %8325 = vmatprep.mubr.f32.mxu0 %v53_v51 }
  0x44   :  { %8371 = vmatmul.mubr.f32.gmra.mxu1 %v84_v52 }
  0x45   :  { %8373 = vmatprep.mubr.f32.mxu1 %v85_v53 }
  0x46   :  { %8326 = vmatmul.mubr.f32.gmra.mxu0 %v54_v54 }
  0x47   :  { %8328 = vmatprep.mubr.f32.mxu0 %v55_v55 }
  0x48   :  { %8374 = vmatmul.mubr.f32.gmra.mxu1 %v86_v56 }
  0x49   :  { %8376 = vmatprep.mubr.f32.mxu1 %v87_v57 }
  0x4a   :  { %8329 = vmatmul.mubr.f32.gmra.mxu0 %v56_v58 }
  0x4b   :  { %8331 = vmatprep.mubr.f32.mxu0 %v57_v59 }
  0x4c   :  { %8377 = vmatmul.mubr.f32.gmra.mxu1 %v88_v60 }
  0x4d   :  { %8379 = vmatprep.mubr.f32.mxu1 %v89_v61 }
  0x4e   :  { %8332 = vmatmul.mubr.f32.gmra.mxu0 %v58_v62 }
  0x4f   :  { %8334 = vmatprep.mubr.f32.mxu0 %v59_v63 }
  0x50   :  { %8380 = vmatmul.mubr.f32.gmra.mxu1 %v90_v0 }
  0x51   :  { %8382 = vmatprep.mubr.f32.mxu1 %v91_v1 }
  0x52   :  { %8335 = vmatmul.mubr.f32.gmra.mxu0 %v60_v2 }
  0x53   :  { %8337 = vmatprep.mubr.f32.mxu0 %v61_v3 }
  0x54   :  { %8383 = vmatmul.mubr.f32.gmra.mxu1 %v92_v4 }
  0x55   :  { %8385 = vmatprep.mubr.f32.mxu1 %v93_v5 }
  0x56   :  { %8338 = vmatmul.mubr.f32.gmra.mxu0 %v62_v6 }
  0x57   :  { %8340 = vmatprep.mubr.f32.mxu0 %v63_v7 }
  0x58   :  { %8386 = vmatmul.mubr.f32.gmra.mxu1 %v94_v8 }
  0x59   :  { %8388 = vmatprep.mubr.f32.mxu1 %v95_v9 }
  0x5a   :  { %8341 = vmatmul.mubr.f32.gmra.mxu0 %v64_v10 }
  0x5b   :  { %8343 = vmatprep.mubr.f32.mxu0 %v65_v11 }
  0x5c   :  { %8389 = vmatmul.mubr.f32.gmra.mxu1 %v96_v12 }
  0x5d   :  { %8391 = vmatprep.mubr.f32.mxu1 %v97_v13 }
  0x5e   :  { %8344 = vmatmul.mubr.f32.gmra.mxu0 %v66_v14 }
  0x60   :  { %8392 = vmatmul.mubr.f32.gmra.mxu1 %v98_v15 }
  0xe2   :  { %v10073_v16 = vpop.f32.mrf.mxu0 }
  0xe4   :  { %v10075_v17 = vpop.f32.mrf.mxu0  ;;  %v10086_v23 = vpop.f32.mrf.mxu1 }
  0xe5   :  { %v502_v19 = vadd.f32 %v10073_v16, %v10075_v17 }
  0xe6   :  { %v10077_v18 = vpop.f32.mrf.mxu0  ;;  %v10094_v28 = vpop.f32.mrf.mxu1 }
  0xe8   :  { %v10081_v20 = vpop.f32.mrf.mxu0  ;;  %v10102_v33 = vpop.f32.mrf.mxu1 }
  0xe9   :  { %v503_v21 = vadd.f32 %v502_v19, %v10081_v20 }
  0xea   :  { %v10084_v22 = vpop.f32.mrf.mxu0  ;;  %v10110_v38 = vpop.f32.mrf.mxu1 }
  0xeb   :  { %v504_v24 = vadd.f32 %v10077_v18, %v503_v21 }
  0xec   :  { %v10089_v25 = vpop.f32.mrf.mxu0  ;;  %v10118_v43 = vpop.f32.mrf.mxu1 }
  0xed   :  { %v505_v26 = vadd.f32 %v504_v24, %v10089_v25 }
  0xee   :  { %v10092_v27 = vpop.f32.mrf.mxu0  ;;  %v10126_v48 = vpop.f32.mrf.mxu1 }
  0xef   :  { %v506_v29 = vadd.f32 %v10084_v22, %v505_v26 }
  0xf0   :  { %v10097_v30 = vpop.f32.mrf.mxu0  ;;  %v10134_v53 = vpop.f32.mrf.mxu1 }
  0xf1   :  { %v507_v31 = vadd.f32 %v506_v29, %v10097_v30 }
  0xf2   :  { %v10100_v32 = vpop.f32.mrf.mxu0  ;;  %v10142_v58 = vpop.f32.mrf.mxu1 }
  0xf3   :  { %v508_v34 = vadd.f32 %v10092_v27, %v507_v31 }
  0xf4   :  { %v10105_v35 = vpop.f32.mrf.mxu0  ;;  %v10150_v63 = vpop.f32.mrf.mxu1 }
  0xf5   :  { %v509_v36 = vadd.f32 %v508_v34, %v10105_v35 }
  0xf6   :  { %v10108_v37 = vpop.f32.mrf.mxu0  ;;  %v10158_v4 = vpop.f32.mrf.mxu1 }
  0xf7   :  { %v510_v39 = vadd.f32 %v10100_v32, %v509_v36 }
  0xf8   :  { %v10113_v40 = vpop.f32.mrf.mxu0  ;;  %v10166_v9 = vpop.f32.mrf.mxu1 }
  0xf9   :  { %v511_v41 = vadd.f32 %v510_v39, %v10113_v40  ;;  %16869 = vst [vmem:[#allocation2_spill] sm:$0xff] %v10166_v9 }
  0xfa   :  { %v10116_v42 = vpop.f32.mrf.mxu0  ;;  %v10174_v14 = vpop.f32.mrf.mxu1 }
  0xfb   :  { %v512_v44 = vadd.f32 %v10108_v37, %v511_v41 }
  0xfc   :  { %v10121_v45 = vpop.f32.mrf.mxu0  ;;  %v10182_v26 = vpop.f32.mrf.mxu1 }
  0xfd   :  { %v513_v46 = vadd.f32 %v512_v44, %v10121_v45  ;;  %16870 = vst [vmem:[#allocation3_spill] sm:$0xff] %v10182_v26 }
  0xfe   :  { %v10124_v47 = vpop.f32.mrf.mxu0  ;;  %v10190_v39 = vpop.f32.mrf.mxu1 }
  0xff   :  { %v514_v49 = vadd.f32 %v10116_v42, %v513_v46 }
 0x100   :  { %v10129_v50 = vpop.f32.mrf.mxu0 }
 0x101   :  { %v515_v51 = vadd.f32 %v514_v49, %v10129_v50  ;;  %v10196_v49 = vpop.f32.mrf.mxu1 }
 0x102   :  { %v10132_v52 = vpop.f32.mrf.mxu0  ;;  %16871 = vst [vmem:[#allocation4_spill] sm:$0xff] %v10196_v49 }
 0x103   :  { %v516_v54 = vadd.f32 %v10124_v47, %v515_v51 }
 0x104   :  { %v10137_v55 = vpop.f32.mrf.mxu0 }
 0x105   :  { %v517_v56 = vadd.f32 %v516_v54, %v10137_v55 }
 0x106   :  { %v10140_v57 = vpop.f32.mrf.mxu0 }
 0x107   :  { %v518_v59 = vadd.f32 %v10132_v52, %v517_v56  ;;  %v10200_v56 = vpop.f32.mrf.mxu1 }
 0x108   :  { %v10145_v60 = vpop.f32.mrf.mxu0 }
 0x109   :  { %v519_v61 = vadd.f32 %v518_v59, %v10145_v60 }
 0x10a   :  { %v10148_v62 = vpop.f32.mrf.mxu0 }
 0x10b   :  { %v520_v0 = vadd.f32 %v10140_v57, %v519_v61 }
 0x10c   :  { %v10153_v1 = vpop.f32.mrf.mxu0 }
 0x10d   :  { %v521_v2 = vadd.f32 %v520_v0, %v10153_v1  ;;  %v10204_v0 = vpop.f32.mrf.mxu1 }
 0x10e   :  { %v10156_v3 = vpop.f32.mrf.mxu0  ;;  %16872 = vst [vmem:[#allocation5_spill] sm:$0xff] %v10204_v0 }
 0x10f   :  { %v522_v5 = vadd.f32 %v10148_v62, %v521_v2 }
 0x110   :  { %v10161_v6 = vpop.f32.mrf.mxu0 }
 0x111   :  { %v523_v7 = vadd.f32 %v522_v5, %v10161_v6 }
 0x112   :  { %v10164_v8 = vpop.f32.mrf.mxu0 }
 0x113   :  { %v524_v10 = vadd.f32 %v10156_v3, %v523_v7  ;;  %v10208_v7 = vpop.f32.mrf.mxu1 }
 0x114   :  { %v10169_v11 = vpop.f32.mrf.mxu0 }
 0x115   :  { %v525_v12 = vadd.f32 %v524_v10, %v10169_v11 }
 0x116   :  { %v10172_v13 = vpop.f32.mrf.mxu0 }
 0x117   :  { %v526_v15 = vadd.f32 %v10164_v8, %v525_v12 }
 0x118   :  { %v10177_v19 = vpop.f32.mrf.mxu0 }
 0x119   :  { %v527_v21 = vadd.f32 %v526_v15, %v10177_v19  ;;  %v10212_v15 = vpop.f32.mrf.mxu1 }
 0x11a   :  { %v10180_v24 = vpop.f32.mrf.mxu0  ;;  %16873 = vst [vmem:[#allocation6_spill] sm:$0xff] %v10212_v15 }
 0x11b   :  { %v528_v29 = vadd.f32 %v10172_v13, %v527_v21 }
 0x11c   :  { %v10185_v31 = vpop.f32.mrf.mxu0 }
 0x11d   :  { %v529_v34 = vadd.f32 %v528_v29, %v10185_v31 }
 0x11e   :  { %v10188_v36 = vpop.f32.mrf.mxu0 }
 0x11f   :  { %v530_v41 = vadd.f32 %v10180_v24, %v529_v34  ;;  %v10216_v34 = vpop.f32.mrf.mxu1 }
 0x120   :  { %v10193_v44 = vpop.f32.mrf.mxu0 }
 0x121   :  { %v531_v46 = vadd.f32 %v530_v41, %v10193_v44 }
 0x123   :  { %v532_v51 = vadd.f32 %v10188_v36, %v531_v46 }
 0x125   :  { %v533_v54 = vadd.f32 %v532_v51, %v10094_v28  ;;  %v10220_v51 = vpop.f32.mrf.mxu1 }
 0x127   :  { %v534_v59 = vadd.f32 %v10086_v23, %v533_v54 }
 0x129   :  { %v535_v61 = vadd.f32 %v534_v59, %v10110_v38 }
 0x12b   :  { %v536_v2 = vadd.f32 %v10102_v33, %v535_v61  ;;  %v10224_v61 = vpop.f32.mrf.mxu1 }
 0x12c   :  { %16874 = vst [vmem:[#allocation7_spill] sm:$0xff] %v10224_v61 }
 0x12d   :  { %v537_v5 = vadd.f32 %v536_v2, %v10126_v48 }
 0x12f   :  { %v538_v10 = vadd.f32 %v10118_v43, %v537_v5 }
 0x131   :  { %v539_v12 = vadd.f32 %v538_v10, %v10142_v58  ;;  %v10228_v10 = vpop.f32.mrf.mxu1 }
 0x132   :  { %16875 = vst [vmem:[#allocation8_spill] sm:$0xff] %v10228_v10 }
 0x133   :  { %v540_v21 = vadd.f32 %v10134_v53, %v539_v12 }
 0x135   :  { %v541_v29 = vadd.f32 %v540_v21, %v10158_v4 }
 0x137   :  { %v542_v41 = vadd.f32 %v10150_v63, %v541_v29  ;;  %v10232_v29 = vpop.f32.mrf.mxu1 }
 0x138   :  { %16876 = vst [vmem:[#allocation9_spill] sm:$0xff] %v10232_v29 }
 0x139   :  { %v543_v46 = vadd.f32 %v542_v41, %v10174_v14 }
 0x13b   :  { %v544_v54 = vadd.f32 %v10166_v9, %v543_v46  ;;  %v10236_v9 = vpop.f32.mrf.mxu1 }
 0x13c   :  { %16877 = vst [vmem:[#allocation10_spill] sm:$0xff] %v10236_v9 }
 0x13d   :  { %v545_v59 = vadd.f32 %v544_v54, %v10190_v39 }
 0x13f   :  { %v546_v2 = vadd.f32 %v10182_v26, %v545_v59  ;;  %v10240_v26 = vpop.f32.mrf.mxu1 }
 0x140   :  { %16878 = vst [vmem:[#allocation11_spill] sm:$0xff] %v10240_v26 }
 0x141   :  { %v547_v5 = vadd.f32 %v546_v2, %v10200_v56 }
 0x143   :  { %v548_v12 = vadd.f32 %v10196_v49, %v547_v5  ;;  %v10244_v49 = vpop.f32.mrf.mxu1 }
 0x144   :  { %16879 = vst [vmem:[#allocation12_spill] sm:$0xff] %v10244_v49 }
 0x145   :  { %v549_v21 = vadd.f32 %v548_v12, %v10208_v7 }
 0x147   :  { %v550_v41 = vadd.f32 %v10204_v0, %v549_v21  ;;  %v10248_v0 = vpop.f32.mrf.mxu1 }
 0x148   :  { %16880 = vst [vmem:[#allocation13_spill] sm:$0xff] %v10248_v0 }
 0x149   :  { %v551_v46 = vadd.f32 %v550_v41, %v10216_v34 }
 0x14b   :  { %v552_v54 = vadd.f32 %v10212_v15, %v551_v46  ;;  %v10252_v15 = vpop.f32.mrf.mxu1 }
 0x14d   :  { %v553_v59 = vadd.f32 %v552_v54, %v10224_v61  ;;  %v10255_v61 = vpop.f32.mrf.mxu1 }
 0x14f   :  { %v554_v2 = vadd.f32 %v10220_v51, %v553_v59 }
 0x151   :  { %v555_v5 = vadd.f32 %v554_v2, %v10232_v29  ;;  %v10258_v2 = vpop.f32.mrf.mxu1 }
 0x153   :  { %v556_v12 = vadd.f32 %v10228_v10, %v555_v5  ;;  %v10261_v10 = vpop.f32.mrf.mxu1 }
 0x155   :  { %v557_v21 = vadd.f32 %v556_v12, %v10240_v26 }
 0x157   :  { %v558_v41 = vadd.f32 %v10236_v9, %v557_v21 }
 0x159   :  { %v559_v46 = vadd.f32 %v558_v41, %v10248_v0 }
 0x15b   :  { %v560_v54 = vadd.f32 %v10244_v49, %v559_v46 }
 0x15d   :  { %v561_v59 = vadd.f32 %v560_v54, %v10255_v61 }
 0x15f   :  { %v562_v5 = vadd.f32 %v10252_v15, %v561_v59 }
 0x161   :  { %v563_v12 = vadd.f32 %v562_v5, %v10261_v10 }
 0x163   :  { %v564_v21 = vadd.f32 %v10258_v2, %v563_v12 }
 0x165   :  { %v565_v9 = vrot.slane %v564_v21, 4 }
 0x167   :  { %v566_v41 = vadd.f32 %v565_v9, %v564_v21 }
 0x169   :  { %v567_v0 = vrot.slane %v566_v41, 2 }
 0x16b   :  { %v568_v26 = vadd.f32 %v567_v0, %v566_v41 }
 0x16d   :  { %v569_v29 = vrot.slane %v568_v26, 1 }
 0x16f   :  { %v570_v46 = vadd.f32 %v569_v29, %v568_v26 }
 0x171   :  { %v10265_v49 = vmul.f32 0.001953125, %v570_v46 }
 0x173   :  { %v10269_v54 = vsub.f32 %v10075_v17, %v10265_v49  ;;  %v10273_v59 = vsub.f32 %v10073_v16, %v10265_v49  ;;  %v10277_v5 = vsub.f32 %v10081_v20, %v10265_v49  ;;  %v10285_v0 = vsub.f32 %v10077_v18, %v10265_v49 }
 0x174   :  { %v10289_v17 = vsub.f32 %v10089_v25, %v10265_v49  ;;  %v10295_v20 = vsub.f32 %v10084_v22, %v10265_v49  ;;  %v10301_v18 = vsub.f32 %v10097_v30, %v10265_v49  ;;  %v10307_v46 = vsub.f32 %v10092_v27, %v10265_v49 }
 0x175   :  { %v636_v9 = vmul.f32 %v10269_v54, %v10269_v54  ;;  %v637_v26 = vmul.f32 %v10273_v59, %v10273_v59  ;;  %v638_v16 = vmul.f32 %v10277_v5, %v10277_v5  ;;  %v639_v12 = vmul.f32 %v10285_v0, %v10285_v0 }
 0x176   :  { %v640_v25 = vmul.f32 %v10289_v17, %v10289_v17  ;;  %v641_v22 = vmul.f32 %v10295_v20, %v10295_v20  ;;  %v642_v30 = vmul.f32 %v10301_v18, %v10301_v18  ;;  %v643_v27 = vmul.f32 %v10307_v46, %v10307_v46 }
 0x177   :  { %v700_v29 = vadd.f32 %v637_v26, %v636_v9  ;;  %v10313_v26 = vsub.f32 %v10105_v35, %v10265_v49 }
 0x179   :  { %v701_v21 = vadd.f32 %v700_v29, %v638_v16  ;;  %v10319_v29 = vsub.f32 %v10100_v32, %v10265_v49  ;;  %v644_v35 = vmul.f32 %v10313_v26, %v10313_v26 }
 0x17b   :  { %v702_v41 = vadd.f32 %v701_v21, %v639_v12  ;;  %v10325_v21 = vsub.f32 %v10113_v40, %v10265_v49  ;;  %v645_v32 = vmul.f32 %v10319_v29, %v10319_v29 }
 0x17d   :  { %v703_v9 = vadd.f32 %v702_v41, %v640_v25  ;;  %v10331_v41 = vsub.f32 %v10108_v37, %v10265_v49  ;;  %v646_v40 = vmul.f32 %v10325_v21, %v10325_v21 }
 0x17f   :  { %v704_v16 = vadd.f32 %v703_v9, %v641_v22  ;;  %v10337_v9 = vsub.f32 %v10121_v45, %v10265_v49  ;;  %v647_v37 = vmul.f32 %v10331_v41, %v10331_v41 }
 0x181   :  { %v705_v12 = vadd.f32 %v704_v16, %v642_v30  ;;  %v10343_v16 = vsub.f32 %v10116_v42, %v10265_v49  ;;  %v648_v45 = vmul.f32 %v10337_v9, %v10337_v9 }
 0x183   :  { %v706_v25 = vadd.f32 %v705_v12, %v643_v27  ;;  %v10349_v12 = vsub.f32 %v10129_v50, %v10265_v49  ;;  %v649_v42 = vmul.f32 %v10343_v16, %v10343_v16 }
 0x185   :  { %v707_v22 = vadd.f32 %v706_v25, %v644_v35  ;;  %v10355_v25 = vsub.f32 %v10124_v47, %v10265_v49  ;;  %v650_v50 = vmul.f32 %v10349_v12, %v10349_v12 }
 0x187   :  { %v708_v30 = vadd.f32 %v707_v22, %v645_v32  ;;  %v10361_v22 = vsub.f32 %v10137_v55, %v10265_v49  ;;  %v651_v47 = vmul.f32 %v10355_v25, %v10355_v25 }
 0x189   :  { %v709_v27 = vadd.f32 %v708_v30, %v646_v40  ;;  %16881 = vst [vmem:[#allocation14_spill] sm:$0xff] %v10361_v22  ;;  %v10367_v30 = vsub.f32 %v10132_v52, %v10265_v49  ;;  %v652_v55 = vmul.f32 %v10361_v22, %v10361_v22 }
 0x18b   :  { %v710_v35 = vadd.f32 %v709_v27, %v647_v37  ;;  %16882 = vst [vmem:[#allocation15_spill] sm:$0xff] %v10367_v30  ;;  %v10373_v27 = vsub.f32 %v10145_v60, %v10265_v49  ;;  %v653_v52 = vmul.f32 %v10367_v30, %v10367_v30 }
 0x18d   :  { %v711_v32 = vadd.f32 %v710_v35, %v648_v45  ;;  %16883 = vst [vmem:[#allocation16_spill] sm:$0xff] %v10373_v27  ;;  %v10379_v35 = vsub.f32 %v10140_v57, %v10265_v49  ;;  %v654_v60 = vmul.f32 %v10373_v27, %v10373_v27  ;;  %v7065_v27 = vld [vmem:[%s16447_s2 + $0x148] sm:$0xff] }
 0x18f   :  { %v712_v40 = vadd.f32 %v711_v32, %v649_v42  ;;  %16884 = vst [vmem:[#allocation17_spill] sm:$0xff] %v10379_v35  ;;  %v10385_v32 = vsub.f32 %v10153_v1, %v10265_v49  ;;  %v655_v57 = vmul.f32 %v10379_v35, %v10379_v35 }
 0x191   :  { %v713_v37 = vadd.f32 %v712_v40, %v650_v50  ;;  %16885 = vst [vmem:[#allocation18_spill] sm:$0xff] %v10385_v32  ;;  %v10391_v40 = vsub.f32 %v10148_v62, %v10265_v49  ;;  %v656_v1 = vmul.f32 %v10385_v32, %v10385_v32 }
 0x193   :  { %v714_v45 = vadd.f32 %v713_v37, %v651_v47  ;;  %16886 = vst [vmem:[#allocation19_spill] sm:$0xff] %v10391_v40  ;;  %v10397_v37 = vsub.f32 %v10161_v6, %v10265_v49  ;;  %v657_v62 = vmul.f32 %v10391_v40, %v10391_v40 }
 0x195   :  { %v715_v42 = vadd.f32 %v714_v45, %v652_v55  ;;  %16887 = vst [vmem:[#allocation20_spill] sm:$0xff] %v10397_v37  ;;  %v10403_v45 = vsub.f32 %v10156_v3, %v10265_v49  ;;  %v658_v6 = vmul.f32 %v10397_v37, %v10397_v37 }
 0x197   :  { %v716_v50 = vadd.f32 %v715_v42, %v653_v52  ;;  %16888 = vst [vmem:[#allocation21_spill] sm:$0xff] %v10403_v45  ;;  %v10409_v42 = vsub.f32 %v10169_v11, %v10265_v49  ;;  %v659_v3 = vmul.f32 %v10403_v45, %v10403_v45  ;;  %v1442_v11 = vld [vmem:[%s16447_s2 + $0x78] sm:$0xff]  ;;  %v16905_v45 = vld [vmem:[#allocation10_spill] sm:$0xff] }
 0x198   :  { %8522 = vmatprep.subr.mxu0 %v1442_v11  ;;  %v10719_v37 = vsub.f32 %v16905_v45, %v10265_v49 }
 0x199   :  { %v717_v47 = vadd.f32 %v716_v50, %v654_v60  ;;  %16889 = vst [vmem:[#allocation22_spill] sm:$0xff] %v10409_v42  ;;  %v10415_v50 = vsub.f32 %v10164_v8, %v10265_v49  ;;  %v660_v8 = vmul.f32 %v10409_v42, %v10409_v42  ;;  %8523 = vmatpush3.msra.mxu0 %v1442_v11 }
 0x19a   :  { %v693_v32 = vmul.f32 %v10719_v37, %v10719_v37 }
 0x19b   :  { %v718_v55 = vadd.f32 %v717_v47, %v655_v57  ;;  %16890 = vst [vmem:[#allocation23_spill] sm:$0xff] %v10415_v50  ;;  %v6995_v47 = vld [vmem:[%s16447_s2 + $0xf8] sm:$0xff] }
 0x19c   :  { %8394 = vmatprep.subr.mxu1 %v6995_v47 }
 0x19d   :  { %v719_v52 = vadd.f32 %v718_v55, %v656_v1  ;;  %v10427_v1 = vsub.f32 %v10177_v19, %v10265_v49  ;;  %8395 = vmatpush3.msra.mxu1 %v6995_v47  ;;  %v10439_v19 = vsub.f32 %v10172_v13, %v10265_v49  ;;  %v10451_v13 = vsub.f32 %v10185_v31, %v10265_v49 }
 0x19e   :  { %v10463_v31 = vsub.f32 %v10180_v24, %v10265_v49  ;;  %v10475_v24 = vsub.f32 %v10193_v44, %v10265_v49  ;;  %v10487_v44 = vsub.f32 %v10188_v36, %v10265_v49  ;;  %v10499_v36 = vsub.f32 %v10094_v28, %v10265_v49 }
 0x19f   :  { %v720_v60 = vadd.f32 %v719_v52, %v657_v62  ;;  %16891 = vst [vmem:[#allocation24_spill] sm:$0xff] %v10427_v1  ;;  %v6994_v62 = vld [vmem:[%s16447_s2 + $0xf0] sm:$0xff]  ;;  %16892 = vst [vmem:[#allocation25_spill] sm:$0xff] %v10439_v19  ;;  %v662_v47 = vmul.f32 %v10427_v1, %v10427_v1  ;;  %v10511_v28 = vsub.f32 %v10086_v23, %v10265_v49 }
 0x1a0   :  { %v1441_v52 = vld [vmem:[%s16447_s2 + $0x70] sm:$0xff]  ;;  %8396 = vmatprep.subr.mxu1 %v6994_v62  ;;  %16893 = vst [vmem:[#allocation26_spill] sm:$0xff] %v10451_v13  ;;  %16894 = vst [vmem:[#allocation27_spill] sm:$0xff] %v10463_v31  ;;  %v10523_v23 = vsub.f32 %v10110_v38, %v10265_v49  ;;  %v10535_v38 = vsub.f32 %v10102_v33, %v10265_v49  ;;  %v10547_v33 = vsub.f32 %v10126_v48, %v10265_v49 }
 0x1a1   :  { %v721_v57 = vadd.f32 %v720_v60, %v658_v6  ;;  %v661_v6 = vmul.f32 %v10415_v50, %v10415_v50  ;;  %8524 = vmatprep.subr.mxu0 %v1441_v52  ;;  %8397 = vmatpush3.msra.mxu1 %v6994_v62  ;;  %v663_v62 = vmul.f32 %v10439_v19, %v10439_v19 }
 0x1a2   :  { %8525 = vmatpush3.msra.mxu0 %v1441_v52  ;;  %16895 = vst [vmem:[#allocation28_spill] sm:$0xff] %v10499_v36  ;;  %v10559_v48 = vsub.f32 %v10118_v43, %v10265_v49  ;;  %v10571_v43 = vsub.f32 %v10142_v58, %v10265_v49  ;;  %v10583_v58 = vsub.f32 %v10134_v53, %v10265_v49 }
 0x1a3   :  { %v722_v55 = vadd.f32 %v721_v57, %v659_v3  ;;  %v6993_v3 = vld [vmem:[%s16447_s2 + $0xe8] sm:$0xff]  ;;  %v10595_v53 = vsub.f32 %v10158_v4, %v10265_v49  ;;  %v10607_v4 = vsub.f32 %v10150_v63, %v10265_v49  ;;  %v16896_v63 = vld [vmem:[#allocation2_spill] sm:$0xff]  ;;  %v10692_v1 = vsub.f32 %v10220_v51, %v10265_v49 }
 0x1a4   :  { %v1440_v57 = vld [vmem:[%s16447_s2 + $0x68] sm:$0xff]  ;;  %8398 = vmatprep.subr.mxu1 %v6993_v3 }
 0x1a5   :  { %v723_v60 = vadd.f32 %v722_v55, %v660_v8  ;;  %8526 = vmatprep.subr.mxu0 %v1440_v57  ;;  %8399 = vmatpush3.msra.mxu1 %v6993_v3  ;;  %v6992_v8 = vld [vmem:[%s16447_s2 + $0xe0] sm:$0xff]  ;;  %v664_v3 = vmul.f32 %v10451_v13, %v10451_v13  ;;  %v689_v42 = vmul.f32 %v10692_v1, %v10692_v1 }
 0x1a6   :  { %8527 = vmatpush3.msra.mxu0 %v1440_v57  ;;  %v1439_v55 = vld [vmem:[%s16447_s2 + $0x60] sm:$0xff]  ;;  %8400 = vmatprep.subr.mxu1 %v6992_v8 }
 0x1a7   :  { %v724_v11 = vadd.f32 %v723_v60, %v661_v6  ;;  %8528 = vmatprep.subr.mxu0 %v1439_v55  ;;  %8401 = vmatpush3.msra.mxu1 %v6992_v8  ;;  %v6991_v6 = vld [vmem:[%s16447_s2 + $0xd8] sm:$0xff]  ;;  %v665_v8 = vmul.f32 %v10463_v31, %v10463_v31 }
 0x1a8   :  { %8529 = vmatpush3.msra.mxu0 %v1439_v55  ;;  %v1438_v60 = vld [vmem:[%s16447_s2 + $0x58] sm:$0xff]  ;;  %8402 = vmatprep.subr.mxu1 %v6991_v6 }
 0x1a9   :  { %v725_v52 = vadd.f32 %v724_v11, %v662_v47  ;;  %8530 = vmatprep.subr.mxu0 %v1438_v60  ;;  %8403 = vmatpush3.msra.mxu1 %v6991_v6  ;;  %v6990_v47 = vld [vmem:[%s16447_s2 + $0xd0] sm:$0xff]  ;;  %v666_v6 = vmul.f32 %v10475_v24, %v10475_v24 }
 0x1aa   :  { %8531 = vmatpush3.msra.mxu0 %v1438_v60  ;;  %v1437_v11 = vld [vmem:[%s16447_s2 + $0x50] sm:$0xff]  ;;  %8404 = vmatprep.subr.mxu1 %v6990_v47 }
 0x1ab   :  { %v726_v57 = vadd.f32 %v725_v52, %v663_v62  ;;  %8532 = vmatprep.subr.mxu0 %v1437_v11  ;;  %8405 = vmatpush3.msra.mxu1 %v6990_v47  ;;  %v6989_v62 = vld [vmem:[%s16447_s2 + $0xc8] sm:$0xff]  ;;  %v667_v47 = vmul.f32 %v10487_v44, %v10487_v44 }
 0x1ac   :  { %8533 = vmatpush3.msra.mxu0 %v1437_v11  ;;  %v1436_v52 = vld [vmem:[%s16447_s2 + $0x48] sm:$0xff]  ;;  %8406 = vmatprep.subr.mxu1 %v6989_v62 }
 0x1ad   :  { %v727_v55 = vadd.f32 %v726_v57, %v664_v3  ;;  %8534 = vmatprep.subr.mxu0 %v1436_v52  ;;  %8407 = vmatpush3.msra.mxu1 %v6989_v62  ;;  %v6988_v3 = vld [vmem:[%s16447_s2 + $0xc0] sm:$0xff]  ;;  %v668_v62 = vmul.f32 %v10499_v36, %v10499_v36  ;;  %v10644_v36 = vsub.f32 %v10200_v56, %v10265_v49 }
 0x1ae   :  { %8535 = vmatpush3.msra.mxu0 %v1436_v52  ;;  %v1435_v57 = vld [vmem:[%s16447_s2 + $0x40] sm:$0xff]  ;;  %8408 = vmatprep.subr.mxu1 %v6988_v3  ;;  %v10659_v56 = vsub.f32 %v10208_v7, %v10265_v49 }
 0x1af   :  { %v728_v60 = vadd.f32 %v727_v55, %v665_v8  ;;  %8536 = vmatprep.subr.mxu0 %v1435_v57  ;;  %8409 = vmatpush3.msra.mxu1 %v6988_v3  ;;  %v6987_v8 = vld [vmem:[%s16447_s2 + $0xb8] sm:$0xff]  ;;  %v669_v3 = vmul.f32 %v10511_v28, %v10511_v28 }
 0x1b0   :  { %8537 = vmatpush3.msra.mxu0 %v1435_v57  ;;  %v1434_v55 = vld [vmem:[%s16447_s2 + $0x38] sm:$0xff]  ;;  %8410 = vmatprep.subr.mxu1 %v6987_v8  ;;  %v684_v7 = vmul.f32 %v10659_v56, %v10659_v56 }
 0x1b1   :  { %v729_v11 = vadd.f32 %v728_v60, %v666_v6  ;;  %8538 = vmatprep.subr.mxu0 %v1434_v55  ;;  %8411 = vmatpush3.msra.mxu1 %v6987_v8  ;;  %v6986_v6 = vld [vmem:[%s16447_s2 + $0xb0] sm:$0xff]  ;;  %v670_v8 = vmul.f32 %v10523_v23, %v10523_v23 }
 0x1b2   :  { %8539 = vmatpush3.msra.mxu0 %v1434_v55  ;;  %v1433_v60 = vld [vmem:[%s16447_s2 + $0x30] sm:$0xff]  ;;  %8412 = vmatprep.subr.mxu1 %v6986_v6 }
 0x1b3   :  { %v730_v52 = vadd.f32 %v729_v11, %v667_v47  ;;  %8540 = vmatprep.subr.mxu0 %v1433_v60  ;;  %8413 = vmatpush3.msra.mxu1 %v6986_v6  ;;  %v6985_v47 = vld [vmem:[%s16447_s2 + $0xa8] sm:$0xff]  ;;  %v671_v6 = vmul.f32 %v10535_v38, %v10535_v38 }
 0x1b4   :  { %8541 = vmatpush3.msra.mxu0 %v1433_v60  ;;  %v1432_v11 = vld [vmem:[%s16447_s2 + $0x28] sm:$0xff]  ;;  %8414 = vmatprep.subr.mxu1 %v6985_v47 }
 0x1b5   :  { %v731_v57 = vadd.f32 %v730_v52, %v668_v62  ;;  %8542 = vmatprep.subr.mxu0 %v1432_v11  ;;  %8415 = vmatpush3.msra.mxu1 %v6985_v47  ;;  %v6984_v62 = vld [vmem:[%s16447_s2 + $0xa0] sm:$0xff]  ;;  %v672_v47 = vmul.f32 %v10547_v33, %v10547_v33 }
 0x1b6   :  { %8543 = vmatpush3.msra.mxu0 %v1432_v11  ;;  %v1431_v52 = vld [vmem:[%s16447_s2 + $0x20] sm:$0xff]  ;;  %8416 = vmatprep.subr.mxu1 %v6984_v62 }
 0x1b7   :  { %v732_v55 = vadd.f32 %v731_v57, %v669_v3  ;;  %8544 = vmatprep.subr.mxu0 %v1431_v52  ;;  %8417 = vmatpush3.msra.mxu1 %v6984_v62  ;;  %v6983_v3 = vld [vmem:[%s16447_s2 + $0x98] sm:$0xff]  ;;  %v673_v62 = vmul.f32 %v10559_v48, %v10559_v48 }
 0x1b8   :  { %8545 = vmatpush3.msra.mxu0 %v1431_v52  ;;  %v1430_v57 = vld [vmem:[%s16447_s2 + $0x18] sm:$0xff]  ;;  %8418 = vmatprep.subr.mxu1 %v6983_v3 }
 0x1b9   :  { %v733_v60 = vadd.f32 %v732_v55, %v670_v8  ;;  %8546 = vmatprep.subr.mxu0 %v1430_v57  ;;  %8419 = vmatpush3.msra.mxu1 %v6983_v3  ;;  %v6982_v8 = vld [vmem:[%s16447_s2 + $0x90] sm:$0xff]  ;;  %v674_v3 = vmul.f32 %v10571_v43, %v10571_v43 }
 0x1ba   :  { %8547 = vmatpush3.msra.mxu0 %v1430_v57  ;;  %v1429_v55 = vld [vmem:[%s16447_s2 + $0x10] sm:$0xff]  ;;  %8420 = vmatprep.subr.mxu1 %v6982_v8 }
 0x1bb   :  { %v734_v11 = vadd.f32 %v733_v60, %v671_v6  ;;  %8548 = vmatprep.subr.mxu0 %v1429_v55  ;;  %8421 = vmatpush3.msra.mxu1 %v6982_v8  ;;  %v6981_v6 = vld [vmem:[%s16447_s2 + $0x88] sm:$0xff]  ;;  %v675_v8 = vmul.f32 %v10583_v58, %v10583_v58 }
 0x1bc   :  { %8549 = vmatpush3.msra.mxu0 %v1429_v55  ;;  %v1428_v60 = vld [vmem:[%s16447_s2 + $0x8] sm:$0xff]  ;;  %8422 = vmatprep.subr.mxu1 %v6981_v6 }
 0x1bd   :  { %v735_v52 = vadd.f32 %v734_v11, %v672_v47  ;;  %8550 = vmatprep.subr.mxu0 %v1428_v60  ;;  %8423 = vmatpush3.msra.mxu1 %v6981_v6  ;;  %v6980_v47 = vld [vmem:[%s16447_s2 + $0x80] sm:$0xff]  ;;  %v676_v6 = vmul.f32 %v10595_v53, %v10595_v53 }
 0x1be   :  { %8551 = vmatpush3.msra.mxu0 %v1428_v60  ;;  %v1427_v11 = vld [vmem:[%s16447_s2] sm:$0xff]  ;;  %8424 = vmatprep.subr.mxu1 %v6980_v47 }
 0x1bf   :  { %v736_v57 = vadd.f32 %v735_v52, %v673_v62  ;;  %8552 = vmatprep.subr.mxu0 %v1427_v11  ;;  %8425 = vmatpush3.msra.mxu1 %v6980_v47  ;;  %v16468_v62 = vmov 0.0   ;;  %v10614_v52 = vsub.f32 %v10174_v14, %v10265_v49  ;;  %v7071_v47 = vld [vmem:[%s16447_s2 + $0x178] sm:$0xff] }
 0x1c0   :  { %8426 = vmatprep.mubr.f32.mxu1 %v16468_v62  ;;  %8553 = vmatpush3.msra.mxu0 %v1427_v11  ;;  %v10632_v11 = vsub.f32 %v10190_v39, %v10265_v49 }
 0x1c1   :  { %v737_v55 = vadd.f32 %v736_v57, %v674_v3  ;;  %8554 = vmatprep.mubr.f32.mxu0 %v16468_v62  ;;  %8427 = vmatmul.mubr.f32.vlgmr.msra.gmra.mxu1 %v16468_v62  ;;  %v10623_v3 = vsub.f32 %v16896_v63, %v10265_v49  ;;  %v677_v57 = vmul.f32 %v10607_v4, %v10607_v4  ;;  %v16897_v63 = vld [vmem:[#allocation3_spill] sm:$0xff] }
 0x1c2   :  { %8555 = vmatmul.mubr.f32.vlgmr.msra.gmra.mxu0 %v16468_v62  ;;  %8650 = vmatprep.subr.mxu1 %v7071_v47  ;;  %v10638_v62 = vsub.f32 %v16897_v63, %v10265_v49  ;;  %v680_v39 = vmul.f32 %v10632_v11, %v10632_v11 }
 0x1c3   :  { %v738_v60 = vadd.f32 %v737_v55, %v675_v8  ;;  %v678_v8 = vmul.f32 %v10614_v52, %v10614_v52  ;;  %8651 = vmatpush3.msra.mxu1 %v7071_v47 }
 0x1c4   :  { %v681_v63 = vmul.f32 %v10638_v62, %v10638_v62 }
 0x1c5   :  { %v739_v14 = vadd.f32 %v738_v60, %v676_v6  ;;  %v679_v6 = vmul.f32 %v10623_v3, %v10623_v3 }
 0x1c7   :  { %v740_v55 = vadd.f32 %v739_v14, %v677_v57  ;;  %v7070_v57 = vld [vmem:[%s16447_s2 + $0x170] sm:$0xff] }
 0x1c8   :  { %v16898_v14 = vld [vmem:[#allocation4_spill] sm:$0xff]  ;;  %8652 = vmatprep.subr.mxu1 %v7070_v57 }
 0x1c9   :  { %v741_v60 = vadd.f32 %v740_v55, %v678_v8  ;;  %v10653_v47 = vsub.f32 %v16898_v14, %v10265_v49  ;;  %8653 = vmatpush3.msra.mxu1 %v7070_v57  ;;  %v682_v55 = vmul.f32 %v10644_v36, %v10644_v36  ;;  %v7069_v57 = vld [vmem:[%s16447_s2 + $0x168] sm:$0xff] }
 0x1ca   :  { %8654 = vmatprep.subr.mxu1 %v7069_v57 }
 0x1cb   :  { %v742_v31 = vadd.f32 %v741_v60, %v679_v6  ;;  %v16899_v60 = vld [vmem:[#allocation5_spill] sm:$0xff]  ;;  %v683_v14 = vmul.f32 %v10653_v47, %v10653_v47  ;;  %8655 = vmatpush3.msra.mxu1 %v7069_v57 }
 0x1cc   :  { %v10665_v13 = vsub.f32 %v16899_v60, %v10265_v49 }
 0x1cd   :  { %v743_v8 = vadd.f32 %v742_v31, %v680_v39  ;;  %v10671_v31 = vsub.f32 %v10216_v34, %v10265_v49  ;;  %v16901_v34 = vld [vmem:[#allocation7_spill] sm:$0xff] }
 0x1ce   :  { %v685_v60 = vmul.f32 %v10665_v13, %v10665_v13 }
 0x1cf   :  { %v744_v6 = vadd.f32 %v743_v8, %v681_v63  ;;  %v16900_v63 = vld [vmem:[#allocation6_spill] sm:$0xff] }
 0x1d0   :  { %v10680_v8 = vsub.f32 %v16900_v63, %v10265_v49 }
 0x1d1   :  { %v745_v19 = vadd.f32 %v744_v6, %v682_v55  ;;  %v10686_v6 = vsub.f32 %v16901_v34, %v10265_v49 }
 0x1d2   :  { %v687_v63 = vmul.f32 %v10680_v8, %v10680_v8 }
 0x1d3   :  { %v746_v39 = vadd.f32 %v745_v19, %v683_v14  ;;  %v686_v19 = vmul.f32 %v10671_v31, %v10671_v31  ;;  %v688_v57 = vmul.f32 %v10686_v6, %v10686_v6 }
 0x1d5   :  { %v747_v55 = vadd.f32 %v746_v39, %v684_v7  ;;  %v16902_v7 = vld [vmem:[#allocation9_spill] sm:$0xff] }
 0x1d6   :  { %v10698_v39 = vsub.f32 %v16902_v7, %v10265_v49 }
 0x1d7   :  { %v748_v14 = vadd.f32 %v747_v55, %v685_v60  ;;  %v7068_v60 = vld [vmem:[%s16447_s2 + $0x160] sm:$0xff]  ;;  %v16903_v55 = vld [vmem:[#allocation8_spill] sm:$0xff] }
 0x1d8   :  { %v10707_v51 = vsub.f32 %v16903_v55, %v10265_v49  ;;  %8656 = vmatprep.subr.mxu1 %v7068_v60 }
 0x1d9   :  { %v749_v50 = vadd.f32 %v748_v14, %v686_v19  ;;  %8657 = vmatpush3.msra.mxu1 %v7068_v60  ;;  %v16904_v14 = vld [vmem:[#allocation11_spill] sm:$0xff] }
 0x1da   :  { %v10713_v7 = vsub.f32 %v16904_v14, %v10265_v49  ;;  %v691_v55 = vmul.f32 %v10707_v51, %v10707_v51 }
 0x1db   :  { %v750_v34 = vadd.f32 %v749_v50, %v687_v63  ;;  %v690_v50 = vmul.f32 %v10698_v39, %v10698_v39 }
 0x1dc   :  { %v692_v60 = vmul.f32 %v10713_v7, %v10713_v7 }
 0x1dd   :  { %v751_v19 = vadd.f32 %v750_v34, %v688_v57  ;;  %v16906_v57 = vld [vmem:[#allocation13_spill] sm:$0xff] }
 0x1de   :  { %v10725_v34 = vsub.f32 %v16906_v57, %v10265_v49  ;;  %v10746_v57 = vsub.f32 %v10252_v15, %v10265_v49 }
 0x1df   :  { %v752_v63 = vadd.f32 %v751_v19, %v689_v42  ;;  %v7067_v42 = vld [vmem:[%s16447_s2 + $0x158] sm:$0xff]  ;;  %v16907_v19 = vld [vmem:[#allocation12_spill] sm:$0xff] }
 0x1e0   :  { %v10734_v45 = vsub.f32 %v16907_v19, %v10265_v49  ;;  %8658 = vmatprep.subr.mxu1 %v7067_v42  ;;  %v697_v15 = vmul.f32 %v10746_v57, %v10746_v57 }
 0x1e1   :  { %v753_v40 = vadd.f32 %v752_v63, %v690_v50  ;;  %8659 = vmatpush3.msra.mxu1 %v7067_v42  ;;  %v10740_v63 = vsub.f32 %v10255_v61, %v10265_v49  ;;  %v7066_v42 = vld [vmem:[%s16447_s2 + $0x150] sm:$0xff] }
 0x1e2   :  { %v695_v19 = vmul.f32 %v10734_v45, %v10734_v45  ;;  %8660 = vmatprep.subr.mxu1 %v7066_v42 }
 0x1e3   :  { %v754_v14 = vadd.f32 %v753_v40, %v691_v55  ;;  %v694_v40 = vmul.f32 %v10725_v34, %v10725_v34  ;;  %8661 = vmatpush3.msra.mxu1 %v7066_v42 }
 0x1e4   :  { %8662 = vmatprep.subr.mxu1 %v7065_v27 }
 0x1e5   :  { %v755_v50 = vadd.f32 %v754_v14, %v692_v60  ;;  %v634_v60 = vsub.f32 %v10261_v10, %v10265_v49  ;;  %v696_v14 = vmul.f32 %v10740_v63, %v10740_v63  ;;  %8663 = vmatpush3.msra.mxu1 %v7065_v27  ;;  %v7062_v27 = vld [vmem:[%s16447_s2 + $0x130] sm:$0xff] }
 0x1e7   :  { %v756_v55 = vadd.f32 %v755_v50, %v693_v32  ;;  %v10759_v32 = vsub.f32 %v10258_v2, %v10265_v49 }
 0x1e9   :  { %v757_v35 = vadd.f32 %v756_v55, %v694_v40  ;;  %v698_v40 = vmul.f32 %v634_v60, %v634_v60  ;;  %v699_v55 = vmul.f32 %v10759_v32, %v10759_v32 }
 0x1eb   :  { %v758_v61 = vadd.f32 %v757_v35, %v695_v19 }
 0x1ed   :  { %v759_v50 = vadd.f32 %v758_v61, %v696_v14  ;;  %v7064_v14 = vld [vmem:[%s16447_s2 + $0x140] sm:$0xff] }
 0x1ee   :  { %8664 = vmatprep.subr.mxu1 %v7064_v14 }
 0x1ef   :  { %v760_v10 = vadd.f32 %v759_v50, %v697_v15  ;;  %8665 = vmatpush3.msra.mxu1 %v7064_v14  ;;  %v10791_v14 = vld [vmem:[%s16449_s5] ss:$0 sm:$0xff] }
 0x1f1   :  { %v761_v35 = vadd.f32 %v760_v10, %v698_v40  ;;  %v7063_v40 = vld [vmem:[%s16447_s2 + $0x138] sm:$0xff] }
 0x1f2   :  { %8666 = vmatprep.subr.mxu1 %v7063_v40 }
 0x1f3   :  { %v762_v19 = vadd.f32 %v761_v35, %v699_v55  ;;  %8667 = vmatpush3.msra.mxu1 %v7063_v40 }
 0x1f4   :  { %8668 = vmatprep.subr.mxu1 %v7062_v27 }
 0x1f5   :  { %v763_v30 = vrot.slane %v762_v19, 4  ;;  %8669 = vmatpush3.msra.mxu1 %v7062_v27  ;;  %v7117_v27 = vld [vmem:[%s16447_s2 + $0x1f8] sm:$0xff] }
 0x1f6   :  { %8778 = vmatprep.subr.mxu0 %v7117_v27 }
 0x1f7   :  { %v764_v49 = vadd.f32 %v763_v30, %v762_v19  ;;  %v774_v30 = vlaneseq  ;;  %8779 = vmatpush3.msra.mxu0 %v7117_v27 }
 0x1f9   :  { %v765_v2 = vrot.slane %v764_v49, 2  ;;  %v775_v10 = vshrl.u32 %v774_v30, 7 }
 0x1fb   :  { %v766_v22 = vadd.f32 %v765_v2, %v764_v49  ;;  %v10780_v55 = vsub.s32 0, %v775_v10  ;;  %v7061_v49 = vld [vmem:[%s16447_s2 + $0x128] sm:$0xff] }
 0x1fc   :  { %8670 = vmatprep.subr.mxu1 %v7061_v49 }
 0x1fd   :  { %v767_v61 = vrot.slane %v766_v22, 1  ;;  %16908 = vst [vmem:[#allocation2_spill] sm:$0xff] %v10780_v55  ;;  %8671 = vmatpush3.msra.mxu1 %v7061_v49 }
 0x1ff   :  { %v768_v42 = vadd.f32 %v767_v61, %v766_v22  ;;  %v500_v22 = vld [vmem:[%s16448_s4] sm:$0x1] }
 0x201   :  { %v769_v15 = vmul.f32 0.001953125, %v768_v42 }
 0x203   :  { %v770_v50 = vadd.f32 1e-05, %v769_v15  ;;  %v7060_v15 = vld [vmem:[%s16447_s2 + $0x120] sm:$0xff] }
 0x204   :  { %8672 = vmatprep.subr.mxu1 %v7060_v15 }
 0x205   :  { %9707 = vrsqrt.f32 %v770_v50  ;;  %8673 = vmatpush3.msra.mxu1 %v7060_v15  ;;  %v7059_v50 = vld [vmem:[%s16447_s2 + $0x118] sm:$0xff] }
 0x206   :  { %8674 = vmatprep.subr.mxu1 %v7059_v50 }
 0x207   :  { %8675 = vmatpush3.msra.mxu1 %v7059_v50 }
 0x212   :  { %v9708_v35 = vpop.eup %9707 }
 0x213   :  { %v772_v19 = vmul.f32 %v9708_v35, %v500_v22 }
 0x215   :  { %v10786_v2 = vrot.slane %v772_v19, %v10780_v55 }
 0x217   :  { %v841_v61 = vmul.f32 %v10786_v2, %v634_v60  ;;  %v809_v40 = vmul.f32 %v10786_v2, %v10475_v24  ;;  %v810_v60 = vmul.f32 %v10786_v2, %v10487_v44  ;;  %v812_v30 = vmul.f32 %v10786_v2, %v10511_v28 }
 0x218   :  { %v813_v10 = vmul.f32 %v10786_v2, %v10523_v23  ;;  %v814_v22 = vmul.f32 %v10786_v2, %v10535_v38  ;;  %v815_v35 = vmul.f32 %v10786_v2, %v10547_v33  ;;  %v816_v24 = vmul.f32 %v10786_v2, %v10559_v48  ;;  %v7116_v38 = vld [vmem:[%s16447_s2 + $0x1f0] sm:$0xff] }
 0x219   :  { %v10795_v42 = vadd.f32 %v10791_v14, %v841_v61  ;;  %v817_v44 = vmul.f32 %v10786_v2, %v10571_v43  ;;  %v818_v28 = vmul.f32 %v10786_v2, %v10583_v58  ;;  %v819_v19 = vmul.f32 %v10786_v2, %v10595_v53  ;;  %8780 = vmatprep.subr.mxu0 %v7116_v38 }
 0x21a   :  { %v820_v23 = vmul.f32 %v10786_v2, %v10607_v4  ;;  %v821_v33 = vmul.f32 %v10786_v2, %v10614_v52  ;;  %v822_v48 = vmul.f32 %v10786_v2, %v10623_v3  ;;  %v823_v43 = vmul.f32 %v10786_v2, %v10632_v11  ;;  %8781 = vmatpush3.msra.mxu0 %v7116_v38  ;;  %v7115_v3 = vld [vmem:[%s16447_s2 + $0x1e8] sm:$0xff] }
 0x21b   :  { %16909 = vst [vmem:[#allocation3_spill] sm:$0xff] %v10795_v42  ;;  %v824_v58 = vmul.f32 %v10786_v2, %v10638_v62  ;;  %v825_v53 = vmul.f32 %v10786_v2, %v10644_v36  ;;  %v826_v4 = vmul.f32 %v10786_v2, %v10653_v47  ;;  %v827_v49 = vmul.f32 %v10786_v2, %v10659_v56 }
 0x21c   :  { %v828_v52 = vmul.f32 %v10786_v2, %v10665_v13  ;;  %v829_v62 = vmul.f32 %v10786_v2, %v10671_v31  ;;  %v830_v36 = vmul.f32 %v10786_v2, %v10680_v8  ;;  %v831_v11 = vmul.f32 %v10786_v2, %v10686_v6  ;;  %8782 = vmatprep.subr.mxu0 %v7115_v3  ;;  %v7058_v13 = vld [vmem:[%s16447_s2 + $0x110] sm:$0xff] }
 0x21d   :  { %v832_v47 = vmul.f32 %v10786_v2, %v10692_v1  ;;  %v833_v56 = vmul.f32 %v10786_v2, %v10698_v39  ;;  %v834_v31 = vmul.f32 %v10786_v2, %v10707_v51  ;;  %v835_v8 = vmul.f32 %v10786_v2, %v10713_v7  ;;  %8676 = vmatprep.subr.mxu1 %v7058_v13  ;;  %v7114_v1 = vld [vmem:[%s16447_s2 + $0x1e0] sm:$0xff] }
 0x21e   :  { %v836_v6 = vmul.f32 %v10786_v2, %v10719_v37  ;;  %v837_v61 = vmul.f32 %v10786_v2, %v10725_v34  ;;  %v838_v39 = vmul.f32 %v10786_v2, %v10734_v45  ;;  %v839_v51 = vmul.f32 %v10786_v2, %v10740_v63  ;;  %8783 = vmatpush3.msra.mxu0 %v7115_v3  ;;  %v7113_v45 = vld [vmem:[%s16447_s2 + $0x1d8] sm:$0xff] }
 0x21f   :  { %v840_v7 = vmul.f32 %v10786_v2, %v10746_v57  ;;  %v842_v37 = vmul.f32 %v10786_v2, %v10759_v32  ;;  %v10883_v15 = vadd.f32 %v10791_v14, %v809_v40  ;;  %v10886_v50 = vadd.f32 %v10791_v14, %v810_v60  ;;  %8677 = vmatpush3.msra.mxu1 %v7058_v13 }
 0x220   :  { %v10889_v34 = vadd.f32 %v10791_v14, %v812_v30  ;;  %v10895_v63 = vadd.f32 %v10791_v14, %v813_v10  ;;  %v10898_v57 = vadd.f32 %v10791_v14, %v814_v22  ;;  %v10901_v32 = vadd.f32 %v10791_v14, %v815_v35  ;;  %8784 = vmatprep.subr.mxu0 %v7114_v1  ;;  %v7112_v22 = vld [vmem:[%s16447_s2 + $0x1d0] sm:$0xff] }
 0x221   :  { %16910 = vst [vmem:[#allocation4_spill] sm:$0xff] %v10883_v15  ;;  %16911 = vst [vmem:[#allocation5_spill] sm:$0xff] %v10886_v50  ;;  %v10904_v40 = vadd.f32 %v10791_v14, %v816_v24  ;;  %v10907_v60 = vadd.f32 %v10791_v14, %v817_v44  ;;  %v10910_v30 = vadd.f32 %v10791_v14, %v818_v28  ;;  %8785 = vmatpush3.msra.mxu0 %v7114_v1  ;;  %v7108_v1 = vld [vmem:[%s16447_s2 + $0x1b0] sm:$0xff] }
 0x222   :  { %v10913_v27 = vadd.f32 %v10791_v14, %v819_v19  ;;  %v10916_v10 = vadd.f32 %v10791_v14, %v820_v23  ;;  %v10922_v35 = vadd.f32 %v10791_v14, %v821_v33  ;;  %v10925_v24 = vadd.f32 %v10791_v14, %v822_v48  ;;  %8786 = vmatprep.subr.mxu0 %v7113_v45  ;;  %v7111_v48 = vld [vmem:[%s16447_s2 + $0x1c8] sm:$0xff] }
 0x223   :  { %v10928_v44 = vadd.f32 %v10791_v14, %v823_v43  ;;  %v10931_v28 = vadd.f32 %v10791_v14, %v824_v58  ;;  %v10934_v19 = vadd.f32 %v10791_v14, %v825_v53  ;;  %v10937_v23 = vadd.f32 %v10791_v14, %v826_v4  ;;  %8787 = vmatpush3.msra.mxu0 %v7113_v45 }
 0x224   :  { %v10940_v38 = vadd.f32 %v10791_v14, %v827_v49  ;;  %v10943_v33 = vadd.f32 %v10791_v14, %v828_v52  ;;  %v10949_v43 = vadd.f32 %v10791_v14, %v829_v62  ;;  %v10952_v58 = vadd.f32 %v10791_v14, %v830_v36  ;;  %8788 = vmatprep.subr.mxu0 %v7112_v22  ;;  %v7057_v49 = vld [vmem:[%s16447_s2 + $0x108] sm:$0xff] }
 0x225   :  { %v10955_v53 = vadd.f32 %v10791_v14, %v831_v11  ;;  %v10958_v4 = vadd.f32 %v10791_v14, %v832_v47  ;;  %v10964_v52 = vadd.f32 %v10791_v14, %v833_v56  ;;  %v10967_v3 = vadd.f32 %v10791_v14, %v834_v31  ;;  %8789 = vmatpush3.msra.mxu0 %v7112_v22  ;;  %v7110_v11 = vld [vmem:[%s16447_s2 + $0x1c0] sm:$0xff] }
 0x226   :  { %v10970_v62 = vadd.f32 %v10791_v14, %v835_v8  ;;  %v10973_v36 = vadd.f32 %v10791_v14, %v836_v6  ;;  %v10979_v47 = vadd.f32 %v10791_v14, %v837_v61  ;;  %v10982_v13 = vadd.f32 %v10791_v14, %v838_v39  ;;  %8790 = vmatprep.subr.mxu0 %v7111_v48  ;;  %v7109_v6 = vld [vmem:[%s16447_s2 + $0x1b8] sm:$0xff]  ;;  %v7107_v39 = vld [vmem:[%s16447_s2 + $0x1a8] sm:$0xff] }
 0x227   :  { %v10985_v56 = vadd.f32 %v10791_v14, %v839_v51  ;;  %v10988_v31 = vadd.f32 %v10791_v14, %v840_v7  ;;  %v10991_v8 = vadd.f32 %v10791_v14, %v842_v37  ;;  %8678 = vmatprep.subr.mxu1 %v7057_v49  ;;  %8791 = vmatpush3.msra.mxu0 %v7111_v48  ;;  %v7056_v51 = vld [vmem:[%s16447_s2 + $0x100] sm:$0xff] }
 0x228   :  { %8679 = vmatpush3.msra.mxu1 %v7057_v49  ;;  %8792 = vmatprep.subr.mxu0 %v7110_v11  ;;  %v780_v61 = vmul.f32 %v10786_v2, %v10273_v59  ;;  %v779_v7 = vmul.f32 %v10786_v2, %v10269_v54  ;;  %v7106_v59 = vld [vmem:[%s16447_s2 + $0x1a0] sm:$0xff]  ;;  %v781_v37 = vmul.f32 %v10786_v2, %v10277_v5  ;;  %v7105_v54 = vld [vmem:[%s16447_s2 + $0x198] sm:$0xff]  ;;  %v7104_v5 = vld [vmem:[%s16447_s2 + $0x190] sm:$0xff] }
 0x229   :  { %16912 = vst [vmem:[#allocation6_spill] sm:$0xff] %v10991_v8  ;;  %8793 = vmatpush3.msra.mxu0 %v7110_v11  ;;  %8680 = vmatprep.subr.mxu1 %v7056_v51  ;;  %v782_v45 = vmul.f32 %v10786_v2, %v10285_v0  ;;  %v783_v48 = vmul.f32 %v10786_v2, %v10289_v17  ;;  %v7103_v17 = vld [vmem:[%s16447_s2 + $0x188] sm:$0xff] }
 0x22a   :  { %8794 = vmatprep.subr.mxu0 %v7109_v6  ;;  %v850_v22 = vadd.f32 %v10791_v14, %v780_v61  ;;  %8681 = vmatpush3.msra.mxu1 %v7056_v51  ;;  %v784_v49 = vmul.f32 %v10786_v2, %v10295_v20  ;;  %v849_v0 = vadd.f32 %v10791_v14, %v779_v7  ;;  %v11040_v61 = vld [vmem:[%s16447_s2 + $0x278] sm:$0xff] }
 0x22b   :  { %8795 = vmatpush3.msra.mxu0 %v7109_v6  ;;  %v851_v11 = vadd.f32 %v10791_v14, %v781_v37  ;;  %v852_v6 = vadd.f32 %v10791_v14, %v782_v45  ;;  %v785_v20 = vmul.f32 %v10786_v2, %v10301_v18  ;;  %v853_v51 = vadd.f32 %v10791_v14, %v783_v48  ;;  %v7102_v18 = vld [vmem:[%s16447_s2 + $0x180] sm:$0xff] }
 0x22c   :  { %8796 = vmatprep.subr.mxu0 %v7108_v1  ;;  %v854_v7 = vadd.f32 %v10791_v14, %v784_v49  ;;  %8906 = vmatprep.subr.mxu1 %v11040_v61  ;;  %v11054_v45 = vmax.f32 %v849_v0, 0.0  ;;  %v788_v49 = vmul.f32 %v10786_v2, %v10319_v29 }
 0x22d   :  { %8797 = vmatpush3.msra.mxu0 %v7108_v1  ;;  %v11030_v1 = vmax.f32 %v850_v22, 0.0  ;;  %v11052_v37 = vmax.f32 %v852_v6, 0.0 }
 0x22e   :  { %8798 = vmatprep.subr.mxu0 %v7107_v39  ;;  %16915 = vst [vmem:[#allocation8_spill] sm:$0xff] %v11054_v45  ;;  %8429 = vmatprep.mubr.f32.mxu1 %v11054_v45  ;;  %v11066_v48 = vrot.slane %v11054_v45, 7  ;;  %v11075_v6 = vmax.f32 %v854_v7, 0.0  ;;  %v858_v7 = vadd.f32 %v10791_v14, %v788_v49  ;;  %v792_v49 = vmul.f32 %v10786_v2, %v10343_v16 }
 0x22f   :  { %8799 = vmatpush3.msra.mxu0 %v7107_v39  ;;  %16913 = vst [vmem:[#allocation7_spill] sm:$0xff] %v11030_v1  ;;  %v786_v39 = vmul.f32 %v10786_v2, %v10307_v46  ;;  %16914 = vst [vmem:[#allocation9_spill] sm:$0xff] %v11052_v37  ;;  %v1043_v22 = vrot.slane %v11030_v1, 7  ;;  %v16916_v46 = vmov 0  ;;  %8430 = vmatmul.mubr.f32.gmra.mxu1 %v11030_v1 }
 0x230   :  { %8800 = vmatprep.subr.mxu0 %v7106_v59  ;;  %v16917_v46 = vsel %vm11058_vm1, 4294967295, %v16916_v46  ;;  %16920 = vst [vmem:[#allocation13_spill] sm:$0xff] %v11075_v6  ;;  %8557 = vmatprep.mubr.msk.f32.mxu0 %vm11058_vm1, %v11066_v48  ;;  %v11126_v8 = vmax.f32 %v858_v7, 0.0  ;;  %v862_v7 = vadd.f32 %v10791_v14, %v792_v49 }
 0x231   :  { %8801 = vmatpush3.msra.mxu0 %v7106_v59  ;;  %v11050_v59 = vmax.f32 %v851_v11, 0.0  ;;  %16918 = vst [vmem:[#allocation11_spill] sm:$0xff] %v16917_v46  ;;  %v856_v0 = vadd.f32 %v10791_v14, %v786_v39  ;;  %v11072_v11 = vmax.f32 %v853_v51, 0.0  ;;  %v790_v39 = vmul.f32 %v10786_v2, %v10331_v41  ;;  %v7260_v46 = vld [vmem:[%s16447_s2 + $0x370] sm:$0xff] }
 0x232   :  { %8802 = vmatprep.subr.mxu0 %v7105_v54  ;;  %v1049_v41 = vrot.slane %v11075_v6, 7  ;;  %16927 = vst [vmem:[#allocation34_spill] sm:$0xff] %v11126_v8 }
 0x233   :  { %8803 = vmatpush3.msra.mxu0 %v7105_v54  ;;  %v787_v54 = vmul.f32 %v10786_v2, %v10313_v26  ;;  %16919 = vst [vmem:[#allocation10_spill] sm:$0xff] %v11072_v11  ;;  %8432 = vmatprep.mubr.f32.mxu1 %v11050_v59  ;;  %v11083_v26 = vsel %vm1041_vm0, %v11066_v48, %v1043_v22  ;;  %v11086_v29 = vrot.slane %v11050_v59, 7  ;;  %v11102_v22 = vmax.f32 %v856_v0, 0.0 }
 0x234   :  { %8804 = vmatprep.subr.mxu0 %v7104_v5  ;;  %8558 = vmatmul.mubr.f32.gmra.mxu0 %v11083_v26  ;;  %v11110_v55 = vrot.slane %v11072_v11, 7  ;;  %v860_v0 = vadd.f32 %v10791_v14, %v790_v39  ;;  %v794_v39 = vmul.f32 %v10786_v2, %v10355_v25  ;;  %v1055_v25 = vrot.slane %v11126_v8, 7 }
 0x235   :  { %8805 = vmatpush3.msra.mxu0 %v7104_v5  ;;  %v855_v5 = vadd.f32 %v10791_v14, %v785_v20  ;;  %16921 = vst [vmem:[#allocation12_spill] sm:$0xff] %v11086_v29  ;;  %v789_v20 = vmul.f32 %v10786_v2, %v10325_v21  ;;  %8560 = vmatprep.mubr.msk.f32.mxu0 %vm11058_vm1, %v11086_v29  ;;  %16923 = vst [vmem:[#allocation30_spill] sm:$0xff] %v11102_v22  ;;  %v1052_v16 = vrot.slane %v11102_v22, 7 }
 0x236   :  { %8806 = vmatprep.subr.mxu0 %v7103_v17  ;;  %v857_v51 = vadd.f32 %v10791_v14, %v787_v54  ;;  %8433 = vmatmul.mubr.f32.gmra.mxu1 %v11052_v37  ;;  %16925 = vst [vmem:[#allocation32_spill] sm:$0xff] %v11110_v55  ;;  %v791_v54 = vmul.f32 %v10786_v2, %v10337_v9  ;;  %v11150_v50 = vmax.f32 %v860_v0, 0.0 }
 0x237   :  { %8807 = vmatpush3.msra.mxu0 %v7103_v17  ;;  %v1046_v17 = vrot.slane %v11052_v37, 7  ;;  %8435 = vmatprep.mubr.f32.mxu1 %v11072_v11  ;;  %v11131_v9 = vsel %vm1041_vm0, %v11110_v55, %v1049_v41 }
 0x238   :  { %8808 = vmatprep.subr.mxu0 %v7102_v18  ;;  %16928 = vst [vmem:[#allocation35_spill] sm:$0xff] %v11131_v9  ;;  %16931 = vst [vmem:[#allocation38_spill] sm:$0xff] %v11150_v50 }
 0x239   :  { %8809 = vmatpush3.msra.mxu0 %v7102_v18  ;;  %v11099_v18 = vmax.f32 %v855_v5, 0.0  ;;  %v11107_v21 = vsel %vm1041_vm0, %v11086_v29, %v1046_v17  ;;  %v859_v5 = vadd.f32 %v10791_v14, %v789_v20  ;;  %v11123_v17 = vmax.f32 %v857_v51, 0.0 }
 0x23a   :  { %16924 = vst [vmem:[#allocation31_spill] sm:$0xff] %v11107_v21  ;;  %8561 = vmatmul.mubr.f32.gmra.mxu0 %v11107_v21  ;;  %8436 = vmatmul.mubr.f32.gmra.mxu1 %v11075_v6  ;;  %v793_v20 = vmul.f32 %v10786_v2, %v10349_v12  ;;  %v861_v51 = vadd.f32 %v10791_v14, %v791_v54  ;;  %v16934_v54 = vld [vmem:[#allocation14_spill] sm:$0xff] }
 0x23b   :  { %16922 = vst [vmem:[#allocation29_spill] sm:$0xff] %v11099_v18  ;;  %8563 = vmatprep.mubr.msk.f32.mxu0 %vm11058_vm1, %v11110_v55  ;;  %16926 = vst [vmem:[#allocation33_spill] sm:$0xff] %v11123_v17  ;;  %8438 = vmatprep.mubr.f32.mxu1 %v11099_v18  ;;  %v11134_v42 = vrot.slane %v11099_v18, 7  ;;  %v11147_v41 = vmax.f32 %v859_v5, 0.0  ;;  %v11158_v15 = vrot.slane %v11123_v17, 7  ;;  %v795_v49 = vmul.f32 %v10786_v2, %v16934_v54  ;;  %v16935_v5 = vld [vmem:[#allocation15_spill] sm:$0xff] }
 0x23c   :  { %v796_v0 = vmul.f32 %v10786_v2, %v16935_v5  ;;  %v1058_v5 = vrot.slane %v11150_v50, 7 }
 0x23d   :  { %16929 = vst [vmem:[#allocation36_spill] sm:$0xff] %v11134_v42  ;;  %16930 = vst [vmem:[#allocation37_spill] sm:$0xff] %v11147_v41  ;;  %v11155_v12 = vsel %vm1041_vm0, %v11134_v42, %v1052_v16  ;;  %v863_v16 = vadd.f32 %v10791_v14, %v793_v20  ;;  %v11179_v54 = vsel %vm1041_vm0, %v11158_v15, %v1055_v25  ;;  %v16940_v20 = vld [vmem:[#allocation16_spill] sm:$0xff] }
 0x23e   :  { %8564 = vmatmul.mubr.f32.gmra.mxu0 %v11131_v9  ;;  %8439 = vmatmul.mubr.f32.gmra.mxu1 %v11102_v22  ;;  %16932 = vst [vmem:[#allocation39_spill] sm:$0xff] %v11155_v12  ;;  %16933 = vst [vmem:[#allocation40_spill] sm:$0xff] %v11158_v15  ;;  %v11174_v9 = vmax.f32 %v862_v7, 0.0  ;;  %v865_v25 = vadd.f32 %v10791_v14, %v795_v49  ;;  %v16946_v49 = vld [vmem:[#allocation18_spill] sm:$0xff] }
 0x23f   :  { %8566 = vmatprep.mubr.msk.f32.mxu0 %vm11058_vm1, %v11134_v42  ;;  %8441 = vmatprep.mubr.f32.mxu1 %v11123_v17  ;;  %v864_v42 = vadd.f32 %v10791_v14, %v794_v39  ;;  %v11171_v17 = vmax.f32 %v861_v51, 0.0  ;;  %16938 = vst [vmem:[#allocation41_spill] sm:$0xff] %v11179_v54  ;;  %v797_v39 = vmul.f32 %v10786_v2, %v16940_v20  ;;  %v16941_v51 = vld [vmem:[#allocation17_spill] sm:$0xff] }
 0x240   :  { %16937 = vst [vmem:[#allocation15_spill] sm:$0xff] %v11174_v9  ;;  %v798_v7 = vmul.f32 %v10786_v2, %v16941_v51  ;;  %v1061_v51 = vrot.slane %v11174_v9, 7 }
 0x241   :  { %16936 = vst [vmem:[#allocation14_spill] sm:$0xff] %v11171_v17 }
 0x242   :  { %8567 = vmatmul.mubr.f32.gmra.mxu0 %v11155_v12  ;;  %8442 = vmatmul.mubr.f32.gmra.mxu1 %v11126_v8  ;;  %v11182_v12 = vrot.slane %v11147_v41, 7  ;;  %v11198_v8 = vmax.f32 %v864_v42, 0.0  ;;  %v16947_v42 = vld [vmem:[#allocation19_spill] sm:$0xff] }
 0x243   :  { %8569 = vmatprep.mubr.msk.f32.mxu0 %vm11058_vm1, %v11158_v15  ;;  %8444 = vmatprep.mubr.f32.mxu1 %v11147_v41  ;;  %v866_v15 = vadd.f32 %v10791_v14, %v796_v0  ;;  %v11195_v41 = vmax.f32 %v863_v16, 0.0  ;;  %v799_v0 = vmul.f32 %v10786_v2, %v16946_v49  ;;  %v800_v16 = vmul.f32 %v10786_v2, %v16947_v42 }
 0x244   :  { %16939 = vst [vmem:[#allocation42_spill] sm:$0xff] %v11182_v12  ;;  %16943 = vst [vmem:[#allocation17_spill] sm:$0xff] %v11198_v8  ;;  %v11203_v20 = vsel %vm1041_vm0, %v11182_v12, %v1058_v5  ;;  %v867_v5 = vadd.f32 %v10791_v14, %v797_v39  ;;  %v1064_v42 = vrot.slane %v11198_v8, 7  ;;  %v16952_v39 = vld [vmem:[#allocation20_spill] sm:$0xff] }
 0x245   :  { %16942 = vst [vmem:[#allocation16_spill] sm:$0xff] %v11195_v41  ;;  %16944 = vst [vmem:[#allocation43_spill] sm:$0xff] %v11203_v20 }
 0x246   :  { %8570 = vmatmul.mubr.f32.gmra.mxu0 %v11179_v54  ;;  %8445 = vmatmul.mubr.f32.gmra.mxu1 %v11150_v50  ;;  %v11206_v54 = vrot.slane %v11171_v17, 7  ;;  %v11222_v50 = vmax.f32 %v866_v15, 0.0  ;;  %v16953_v15 = vld [vmem:[#allocation21_spill] sm:$0xff] }
 0x247   :  { %8572 = vmatprep.mubr.msk.f32.mxu0 %vm11058_vm1, %v11182_v12  ;;  %8447 = vmatprep.mubr.f32.mxu1 %v11171_v17  ;;  %v868_v12 = vadd.f32 %v10791_v14, %v798_v7  ;;  %v11219_v17 = vmax.f32 %v865_v25, 0.0  ;;  %v801_v7 = vmul.f32 %v10786_v2, %v16952_v39  ;;  %v802_v25 = vmul.f32 %v10786_v2, %v16953_v15 }
 0x248   :  { %16945 = vst [vmem:[#allocation44_spill] sm:$0xff] %v11206_v54  ;;  %16949 = vst [vmem:[#allocation19_spill] sm:$0xff] %v11222_v50  ;;  %v11227_v49 = vsel %vm1041_vm0, %v11206_v54, %v1061_v51  ;;  %v869_v51 = vadd.f32 %v10791_v14, %v799_v0  ;;  %v1067_v15 = vrot.slane %v11222_v50, 7  ;;  %v16958_v0 = vld [vmem:[#allocation22_spill] sm:$0xff] }
 0x249   :  { %16948 = vst [vmem:[#allocation18_spill] sm:$0xff] %v11219_v17  ;;  %16950 = vst [vmem:[#allocation45_spill] sm:$0xff] %v11227_v49 }
 0x24a   :  { %8573 = vmatmul.mubr.f32.gmra.mxu0 %v11203_v20  ;;  %8448 = vmatmul.mubr.f32.gmra.mxu1 %v11174_v9  ;;  %v11230_v20 = vrot.slane %v11195_v41, 7  ;;  %v11246_v9 = vmax.f32 %v868_v12, 0.0  ;;  %v16959_v12 = vld [vmem:[#allocation23_spill] sm:$0xff] }
 0x24b   :  { %8575 = vmatprep.mubr.msk.f32.mxu0 %vm11058_vm1, %v11206_v54  ;;  %8450 = vmatprep.mubr.f32.mxu1 %v11195_v41  ;;  %v870_v54 = vadd.f32 %v10791_v14, %v800_v16  ;;  %v11243_v41 = vmax.f32 %v867_v5, 0.0  ;;  %v803_v16 = vmul.f32 %v10786_v2, %v16958_v0  ;;  %v804_v5 = vmul.f32 %v10786_v2, %v16959_v12 }
 0x24c   :  { %16951 = vst [vmem:[#allocation46_spill] sm:$0xff] %v11230_v20  ;;  %16955 = vst [vmem:[#allocation21_spill] sm:$0xff] %v11246_v9  ;;  %v11251_v39 = vsel %vm1041_vm0, %v11230_v20, %v1064_v42  ;;  %v871_v42 = vadd.f32 %v10791_v14, %v801_v7  ;;  %v1070_v12 = vrot.slane %v11246_v9, 7  ;;  %v16964_v7 = vld [vmem:[#allocation24_spill] sm:$0xff] }
 0x24d   :  { %16954 = vst [vmem:[#allocation20_spill] sm:$0xff] %v11243_v41  ;;  %16956 = vst [vmem:[#allocation47_spill] sm:$0xff] %v11251_v39 }
 0x24e   :  { %8576 = vmatmul.mubr.f32.gmra.mxu0 %v11227_v49  ;;  %8451 = vmatmul.mubr.f32.gmra.mxu1 %v11198_v8  ;;  %v11254_v49 = vrot.slane %v11219_v17, 7  ;;  %v11270_v8 = vmax.f32 %v870_v54, 0.0  ;;  %v16965_v54 = vld [vmem:[#allocation25_spill] sm:$0xff] }
 0x24f   :  { %8578 = vmatprep.mubr.msk.f32.mxu0 %vm11058_vm1, %v11230_v20  ;;  %8453 = vmatprep.mubr.f32.mxu1 %v11219_v17  ;;  %v872_v20 = vadd.f32 %v10791_v14, %v802_v25  ;;  %v11267_v17 = vmax.f32 %v869_v51, 0.0  ;;  %v805_v25 = vmul.f32 %v10786_v2, %v16964_v7  ;;  %v806_v51 = vmul.f32 %v10786_v2, %v16965_v54 }
 0x250   :  { %16957 = vst [vmem:[#allocation48_spill] sm:$0xff] %v11254_v49  ;;  %16961 = vst [vmem:[#allocation23_spill] sm:$0xff] %v11270_v8  ;;  %v11275_v0 = vsel %vm1041_vm0, %v11254_v49, %v1067_v15  ;;  %v873_v15 = vadd.f32 %v10791_v14, %v803_v16  ;;  %v1073_v54 = vrot.slane %v11270_v8, 7  ;;  %v16970_v16 = vld [vmem:[#allocation26_spill] sm:$0xff] }
 0x251   :  { %16960 = vst [vmem:[#allocation22_spill] sm:$0xff] %v11267_v17  ;;  %16962 = vst [vmem:[#allocation49_spill] sm:$0xff] %v11275_v0 }
 0x252   :  { %8579 = vmatmul.mubr.f32.gmra.mxu0 %v11251_v39  ;;  %8454 = vmatmul.mubr.f32.gmra.mxu1 %v11222_v50  ;;  %v11278_v39 = vrot.slane %v11243_v41, 7  ;;  %v11294_v50 = vmax.f32 %v872_v20, 0.0  ;;  %v16971_v20 = vld [vmem:[#allocation27_spill] sm:$0xff] }
 0x253   :  { %8581 = vmatprep.mubr.msk.f32.mxu0 %vm11058_vm1, %v11254_v49  ;;  %8456 = vmatprep.mubr.f32.mxu1 %v11243_v41  ;;  %v874_v49 = vadd.f32 %v10791_v14, %v804_v5  ;;  %v11291_v41 = vmax.f32 %v871_v42, 0.0  ;;  %v807_v5 = vmul.f32 %v10786_v2, %v16970_v16  ;;  %v808_v42 = vmul.f32 %v10786_v2, %v16971_v20 }
 0x254   :  { %16963 = vst [vmem:[#allocation50_spill] sm:$0xff] %v11278_v39  ;;  %16967 = vst [vmem:[#allocation25_spill] sm:$0xff] %v11294_v50  ;;  %v11299_v7 = vsel %vm1041_vm0, %v11278_v39, %v1070_v12  ;;  %v875_v12 = vadd.f32 %v10791_v14, %v805_v25  ;;  %v1076_v20 = vrot.slane %v11294_v50, 7 }
 0x255   :  { %16966 = vst [vmem:[#allocation24_spill] sm:$0xff] %v11291_v41  ;;  %16968 = vst [vmem:[#allocation51_spill] sm:$0xff] %v11299_v7  ;;  %v878_v25 = vadd.f32 %v10791_v14, %v808_v42 }
 0x256   :  { %8582 = vmatmul.mubr.f32.gmra.mxu0 %v11275_v0  ;;  %8457 = vmatmul.mubr.f32.gmra.mxu1 %v11246_v9  ;;  %v11302_v0 = vrot.slane %v11267_v17, 7  ;;  %v11318_v9 = vmax.f32 %v874_v49, 0.0  ;;  %v877_v49 = vadd.f32 %v10791_v14, %v807_v5  ;;  %v16980_v5 = vld [vmem:[#allocation28_spill] sm:$0xff] }
 0x257   :  { %8584 = vmatprep.mubr.msk.f32.mxu0 %vm11058_vm1, %v11278_v39  ;;  %8459 = vmatprep.mubr.f32.mxu1 %v11267_v17  ;;  %v876_v39 = vadd.f32 %v10791_v14, %v806_v51  ;;  %v11315_v17 = vmax.f32 %v873_v15, 0.0  ;;  %v11335_v51 = vmax.f32 %v875_v12, 0.0  ;;  %v11358_v12 = vmax.f32 %v878_v25, 0.0 }
 0x258   :  { %16969 = vst [vmem:[#allocation52_spill] sm:$0xff] %v11302_v0  ;;  %16973 = vst [vmem:[#allocation27_spill] sm:$0xff] %v11318_v9  ;;  %v11323_v16 = vsel %vm1041_vm0, %v11302_v0, %v1073_v54  ;;  %v11355_v42 = vmax.f32 %v877_v49, 0.0 }
 0x259   :  { %16972 = vst [vmem:[#allocation26_spill] sm:$0xff] %v11315_v17  ;;  %16974 = vst [vmem:[#allocation53_spill] sm:$0xff] %v11323_v16  ;;  %v11338_v15 = vmax.f32 %v876_v39, 0.0  ;;  %v811_v39 = vmul.f32 %v10786_v2, %v16980_v5  ;;  %v1085_v25 = vrot.slane %v11358_v12, 7  ;;  %v16989_v5 = vmov 0.0  }
 0x25a   :  { %8585 = vmatmul.mubr.f32.gmra.mxu0 %v11299_v7  ;;  %8460 = vmatmul.mubr.f32.gmra.mxu1 %v11270_v8  ;;  %v11326_v7 = vrot.slane %v11291_v41, 7  ;;  %16976 = vst [vmem:[#allocation55_spill] sm:$0xff] %v11335_v51  ;;  %16981 = vst [vmem:[#allocation28_spill] sm:$0xff] %v11355_v42  ;;  %v11381_v49 = vrot.slane %v11355_v42, 7 }
 0x25b   :  { %8587 = vmatprep.mubr.msk.f32.mxu0 %vm11058_vm1, %v11302_v0  ;;  %8462 = vmatprep.mubr.f32.mxu1 %v11291_v41  ;;  %16977 = vst [vmem:[#allocation56_spill] sm:$0xff] %v11338_v15  ;;  %v1079_v41 = vrot.slane %v11318_v9, 7  ;;  %16982 = vst [vmem:[#allocation59_spill] sm:$0xff] %v11358_v12  ;;  %v881_v2 = vadd.f32 %v10791_v14, %v811_v39  ;;  %v11390_v14 = vmax.f32 %v10889_v34, 0.0  ;;  %v11405_v34 = vmax.f32 %v10895_v63, 0.0 }
 0x25c   :  { %16975 = vst [vmem:[#allocation54_spill] sm:$0xff] %v11326_v7  ;;  %v11343_v54 = vsel %vm1041_vm0, %v11326_v7, %v1076_v20  ;;  %16986 = vst [vmem:[#allocation63_spill] sm:$0xff] %v11381_v49  ;;  %v11424_v63 = vmax.f32 %v10904_v40, 0.0  ;;  %v11444_v40 = vmax.f32 %v10910_v30, 0.0  ;;  %v11464_v30 = vmax.f32 %v10916_v10, 0.0 }
 0x25d   :  { %16978 = vst [vmem:[#allocation57_spill] sm:$0xff] %v11343_v54  ;;  %16987 = vst [vmem:[#allocation64_spill] sm:$0xff] %v11390_v14  ;;  %v11397_v39 = vmax.f32 %v881_v2, 0.0  ;;  %v11484_v10 = vmax.f32 %v10925_v24, 0.0  ;;  %v11504_v24 = vmax.f32 %v10931_v28, 0.0  ;;  %v11524_v28 = vmax.f32 %v10937_v23, 0.0 }
 0x25e   :  { %8588 = vmatmul.mubr.f32.gmra.mxu0 %v11323_v16  ;;  %8463 = vmatmul.mubr.f32.gmra.mxu1 %v11294_v50  ;;  %v11346_v16 = vrot.slane %v11315_v17, 7  ;;  %16991 = vst [vmem:[#allocation67_spill] sm:$0xff] %v11405_v34  ;;  %16994 = vst [vmem:[#allocation70_spill] sm:$0xff] %v11424_v63  ;;  %v11544_v23 = vmax.f32 %v10943_v33, 0.0  ;;  %v11564_v33 = vmax.f32 %v10952_v58, 0.0  ;;  %v11585_v58 = vmax.f32 %v10955_v53, 0.0 }
 0x25f   :  { %8590 = vmatprep.mubr.msk.f32.mxu0 %vm11058_vm1, %v11326_v7  ;;  %8465 = vmatprep.mubr.f32.mxu1 %v11315_v17  ;;  %v1082_v17 = vrot.slane %v11338_v15, 7  ;;  %v11412_v2 = vrot.slane %v11397_v39, 7  ;;  %16998 = vst [vmem:[#allocation74_spill] sm:$0xff] %v11444_v40  ;;  %17002 = vst [vmem:[#allocation78_spill] sm:$0xff] %v11464_v30  ;;  %v11606_v53 = vmax.f32 %v10964_v52, 0.0  ;;  %v11626_v52 = vmax.f32 %v10970_v62, 0.0 }
 0x260   :  { %16979 = vst [vmem:[#allocation58_spill] sm:$0xff] %v11346_v16  ;;  %v11363_v20 = vsel %vm1041_vm0, %v11346_v16, %v1079_v41  ;;  %17006 = vst [vmem:[#allocation82_spill] sm:$0xff] %v11484_v10  ;;  %v11646_v62 = vmax.f32 %v10979_v47, 0.0  ;;  %v11666_v47 = vmax.f32 %v10985_v56, 0.0 }
 0x261   :  { %16983 = vst [vmem:[#allocation60_spill] sm:$0xff] %v11363_v20  ;;  %17010 = vst [vmem:[#allocation86_spill] sm:$0xff] %v11504_v24 }
 0x262   :  { %8591 = vmatmul.mubr.f32.gmra.mxu0 %v11343_v54  ;;  %8466 = vmatmul.mubr.f32.gmra.mxu1 %v11318_v9  ;;  %v11366_v54 = vrot.slane %v11335_v51, 7  ;;  %17014 = vst [vmem:[#allocation90_spill] sm:$0xff] %v11524_v28  ;;  %17018 = vst [vmem:[#allocation94_spill] sm:$0xff] %v11544_v23 }
 0x263   :  { %8593 = vmatprep.mubr.msk.f32.mxu0 %vm11058_vm1, %v11346_v16  ;;  %8468 = vmatprep.mubr.f32.mxu1 %v11335_v51  ;;  %17022 = vst [vmem:[#allocation98_spill] sm:$0xff] %v11564_v33  ;;  %17025 = vst [vmem:[#allocation101_spill] sm:$0xff] %v11585_v58 }
 0x264   :  { %16984 = vst [vmem:[#allocation61_spill] sm:$0xff] %v11366_v54  ;;  %v11378_v41 = vsel %vm1041_vm0, %v11366_v54, %v1082_v17  ;;  %v11394_v17 = vsel %vm1041_vm0, %v11381_v49, %v1085_v25  ;;  %v11408_v25 = vmax.f32 %v10898_v57, 0.0  ;;  %17029 = vst [vmem:[#allocation105_spill] sm:$0xff] %v11606_v53 }
 0x265   :  { %16985 = vst [vmem:[#allocation62_spill] sm:$0xff] %v11378_v41  ;;  %16988 = vst [vmem:[#allocation65_spill] sm:$0xff] %v11394_v17 }
 0x266   :  { %8594 = vmatmul.mubr.f32.gmra.mxu0 %v11363_v20  ;;  %8469 = vmatmul.mubr.f32.gmra.mxu1 %v11338_v15  ;;  %16992 = vst [vmem:[#allocation68_spill] sm:$0xff] %v11408_v25  ;;  %17033 = vst [vmem:[#allocation109_spill] sm:$0xff] %v11626_v52 }
 0x267   :  { %8596 = vmatprep.mubr.msk.f32.mxu0 %vm11058_vm1, %v11366_v54  ;;  %8471 = vmatprep.mubr.f32.mxu1 %v11355_v42  ;;  %17037 = vst [vmem:[#allocation113_spill] sm:$0xff] %v11646_v62  ;;  %17041 = vst [vmem:[#allocation117_spill] sm:$0xff] %v11666_v47 }
 0x26a   :  { %8597 = vmatmul.mubr.f32.gmra.mxu0 %v11378_v41  ;;  %8472 = vmatmul.mubr.f32.gmra.mxu1 %v11358_v12 }
 0x26b   :  { %8599 = vmatprep.mubr.msk.f32.mxu0 %vm11058_vm1, %v11381_v49  ;;  %8474 = vmatprep.mubr.f32.mxu1 %v16989_v5 }
 0x26e   :  { %8600 = vmatmul.mubr.f32.gmra.mxu0 %v11394_v17  ;;  %8475 = vmatmul.mubr.f32.gmra.mxu1 %v16989_v5  ;;  %v1091_v17 = vrot.slane %v11390_v14, 7 }
 0x26f   :  { %8602 = vmatprep.mubr.f32.mxu0 %v16989_v5  ;;  %8477 = vmatprep.mubr.f32.mxu1 %v11397_v39 }
 0x270   :  { %v11429_v57 = vsel %vm1041_vm0, %v11412_v2, %v1091_v17 }
 0x271   :  { %16995 = vst [vmem:[#allocation71_spill] sm:$0xff] %v11429_v57 }
 0x272   :  { %8603 = vmatmul.mubr.f32.gmra.mxu0 %v16989_v5  ;;  %8478 = vmatmul.mubr.f32.gmra.mxu1 %v11390_v14 }
 0x273   :  { %8605 = vmatprep.mubr.msk.f32.mxu0 %vm11058_vm1, %v11412_v2  ;;  %8480 = vmatprep.mubr.f32.mxu1 %v11405_v34 }
 0x276   :  { %8606 = vmatmul.mubr.f32.gmra.mxu0 %v11429_v57  ;;  %8481 = vmatmul.mubr.f32.gmra.mxu1 %v11408_v25 }
 0x281   :  { %v8428_v41 = vpop.f32.mrf.mxu1 }
 0x282   :  { %v8556_v42 = vpop.f32.mrf.mxu0 }
 0x283   :  { %v11402_v12 = vadd.f32 %v8556_v42, %v8428_v41  ;;  %v11420_v42 = vmax.f32 %v10901_v32, 0.0  ;;  %v11432_v41 = vrot.slane %v11405_v34, 7  ;;  %v11440_v32 = vmax.f32 %v10907_v60, 0.0 }
 0x284   :  { %v1097_v34 = vrot.slane %v11424_v63, 7  ;;  %v11460_v60 = vmax.f32 %v10913_v27, 0.0  ;;  %v11480_v27 = vmax.f32 %v10922_v35, 0.0  ;;  %v11500_v35 = vmax.f32 %v10928_v44, 0.0 }
 0x285   :  { %16990 = vst [vmem:[#allocation66_spill] sm:$0xff] %v11402_v12  ;;  %16993 = vst [vmem:[#allocation69_spill] sm:$0xff] %v11420_v42  ;;  %v1094_v12 = vrot.slane %v11408_v25, 7  ;;  %8608 = vmatprep.mubr.msk.f32.mxu0 %vm11058_vm1, %v11432_v41  ;;  %8483 = vmatprep.mubr.f32.mxu1 %v11420_v42  ;;  %v11452_v57 = vrot.slane %v11420_v42, 7  ;;  %v1100_v42 = vrot.slane %v11444_v40, 7  ;;  %v11520_v44 = vmax.f32 %v10934_v19, 0.0 }
 0x286   :  { %16996 = vst [vmem:[#allocation72_spill] sm:$0xff] %v11432_v41  ;;  %16997 = vst [vmem:[#allocation73_spill] sm:$0xff] %v11440_v32  ;;  %8484 = vmatmul.mubr.f32.gmra.mxu1 %v11424_v63  ;;  %v11540_v19 = vmax.f32 %v10940_v38, 0.0  ;;  %v11560_v38 = vmax.f32 %v10949_v43, 0.0  ;;  %v11582_v43 = vld [vmem:[%s16447_s2 + $0x2f8] sm:$0xff] }
 0x287   :  { %v11449_v17 = vsel %vm1041_vm0, %v11432_v41, %v1094_v12  ;;  %17000 = vst [vmem:[#allocation76_spill] sm:$0xff] %v11452_v57  ;;  %17001 = vst [vmem:[#allocation77_spill] sm:$0xff] %v11460_v60  ;;  %8486 = vmatprep.mubr.f32.mxu1 %v11440_v32  ;;  %v11469_v12 = vsel %vm1041_vm0, %v11452_v57, %v1097_v34  ;;  %9034 = vmatprep.subr.mxu0 %v11582_v43 }
 0x288   :  { %16999 = vst [vmem:[#allocation75_spill] sm:$0xff] %v11449_v17  ;;  %8609 = vmatmul.mubr.f32.gmra.mxu0 %v11449_v17  ;;  %17003 = vst [vmem:[#allocation79_spill] sm:$0xff] %v11469_v12  ;;  %v11472_v17 = vrot.slane %v11440_v32, 7  ;;  %v1103_v32 = vrot.slane %v11464_v30, 7 }
 0x289   :  { %8611 = vmatprep.mubr.msk.f32.mxu0 %vm11058_vm1, %v11452_v57  ;;  %17005 = vst [vmem:[#allocation81_spill] sm:$0xff] %v11480_v27  ;;  %17009 = vst [vmem:[#allocation85_spill] sm:$0xff] %v11500_v35 }
 0x28a   :  { %17004 = vst [vmem:[#allocation80_spill] sm:$0xff] %v11472_v17  ;;  %8487 = vmatmul.mubr.f32.gmra.mxu1 %v11444_v40  ;;  %v11489_v34 = vsel %vm1041_vm0, %v11472_v17, %v1100_v42  ;;  %17013 = vst [vmem:[#allocation89_spill] sm:$0xff] %v11520_v44 }
 0x28b   :  { %8489 = vmatprep.mubr.f32.mxu1 %v11460_v60  ;;  %17007 = vst [vmem:[#allocation83_spill] sm:$0xff] %v11489_v34  ;;  %17017 = vst [vmem:[#allocation93_spill] sm:$0xff] %v11540_v19 }
 0x28c   :  { %8612 = vmatmul.mubr.f32.gmra.mxu0 %v11469_v12  ;;  %v11492_v12 = vrot.slane %v11460_v60, 7  ;;  %v1106_v60 = vrot.slane %v11484_v10, 7  ;;  %17021 = vst [vmem:[#allocation97_spill] sm:$0xff] %v11560_v38 }
 0x28d   :  { %8614 = vmatprep.mubr.msk.f32.mxu0 %vm11058_vm1, %v11472_v17 }
 0x28e   :  { %17008 = vst [vmem:[#allocation84_spill] sm:$0xff] %v11492_v12  ;;  %8490 = vmatmul.mubr.f32.gmra.mxu1 %v11464_v30  ;;  %v11509_v42 = vsel %vm1041_vm0, %v11492_v12, %v1103_v32 }
 0x28f   :  { %8492 = vmatprep.mubr.f32.mxu1 %v11480_v27  ;;  %17011 = vst [vmem:[#allocation87_spill] sm:$0xff] %v11509_v42 }
 0x290   :  { %8615 = vmatmul.mubr.f32.gmra.mxu0 %v11489_v34  ;;  %v11512_v34 = vrot.slane %v11480_v27, 7  ;;  %v1109_v27 = vrot.slane %v11504_v24, 7 }
 0x291   :  { %8617 = vmatprep.mubr.msk.f32.mxu0 %vm11058_vm1, %v11492_v12 }
 0x292   :  { %17012 = vst [vmem:[#allocation88_spill] sm:$0xff] %v11512_v34  ;;  %8493 = vmatmul.mubr.f32.gmra.mxu1 %v11484_v10  ;;  %v11529_v32 = vsel %vm1041_vm0, %v11512_v34, %v1106_v60 }
 0x293   :  { %8495 = vmatprep.mubr.f32.mxu1 %v11500_v35  ;;  %17015 = vst [vmem:[#allocation91_spill] sm:$0xff] %v11529_v32 }
 0x294   :  { %8618 = vmatmul.mubr.f32.gmra.mxu0 %v11509_v42  ;;  %v11532_v42 = vrot.slane %v11500_v35, 7  ;;  %v1112_v35 = vrot.slane %v11524_v28, 7 }
 0x295   :  { %8620 = vmatprep.mubr.msk.f32.mxu0 %vm11058_vm1, %v11512_v34 }
 0x296   :  { %17016 = vst [vmem:[#allocation92_spill] sm:$0xff] %v11532_v42  ;;  %8496 = vmatmul.mubr.f32.gmra.mxu1 %v11504_v24  ;;  %v11549_v60 = vsel %vm1041_vm0, %v11532_v42, %v1109_v27 }
 0x297   :  { %8498 = vmatprep.mubr.f32.mxu1 %v11520_v44  ;;  %17019 = vst [vmem:[#allocation95_spill] sm:$0xff] %v11549_v60 }
 0x298   :  { %8621 = vmatmul.mubr.f32.gmra.mxu0 %v11529_v32  ;;  %v11552_v32 = vrot.slane %v11520_v44, 7  ;;  %v1115_v44 = vrot.slane %v11544_v23, 7 }
 0x299   :  { %8623 = vmatprep.mubr.msk.f32.mxu0 %vm11058_vm1, %v11532_v42 }
 0x29a   :  { %17020 = vst [vmem:[#allocation96_spill] sm:$0xff] %v11552_v32  ;;  %8499 = vmatmul.mubr.f32.gmra.mxu1 %v11524_v28  ;;  %v11569_v27 = vsel %vm1041_vm0, %v11552_v32, %v1112_v35  ;;  %v11590_v35 = vmax.f32 %v10958_v4, 0.0  ;;  %v11610_v4 = vmax.f32 %v10967_v3, 0.0  ;;  %v11630_v3 = vmax.f32 %v10973_v36, 0.0 }
 0x29b   :  { %8501 = vmatprep.mubr.f32.mxu1 %v11540_v19  ;;  %17023 = vst [vmem:[#allocation99_spill] sm:$0xff] %v11569_v27  ;;  %v11650_v36 = vmax.f32 %v10982_v13, 0.0  ;;  %v11670_v13 = vmax.f32 %v10988_v31, 0.0  ;;  %v11692_v31 = vrot.slane %v11666_v47, 7 }
 0x29c   :  { %8624 = vmatmul.mubr.f32.gmra.mxu0 %v11549_v60  ;;  %v11572_v60 = vrot.slane %v11540_v19, 7  ;;  %17026 = vst [vmem:[#allocation102_spill] sm:$0xff] %v11590_v35  ;;  %v11598_v19 = vrot.slane %v11560_v38, 7  ;;  %17030 = vst [vmem:[#allocation106_spill] sm:$0xff] %v11610_v4 }
 0x29d   :  { %8626 = vmatprep.mubr.msk.f32.mxu0 %vm11058_vm1, %v11552_v32  ;;  %v1118_v32 = vrot.slane %v11564_v33, 7  ;;  %17034 = vst [vmem:[#allocation110_spill] sm:$0xff] %v11630_v3  ;;  %17038 = vst [vmem:[#allocation114_spill] sm:$0xff] %v11650_v36 }
 0x29e   :  { %17024 = vst [vmem:[#allocation100_spill] sm:$0xff] %v11572_v60  ;;  %8502 = vmatmul.mubr.f32.gmra.mxu1 %v11544_v23  ;;  %17028 = vst [vmem:[#allocation104_spill] sm:$0xff] %v11598_v19 }
 0x29f   :  { %8504 = vmatprep.mubr.f32.mxu1 %v11560_v38  ;;  %v1121_v38 = vrot.slane %v11590_v35, 7  ;;  %17042 = vst [vmem:[#allocation118_spill] sm:$0xff] %v11670_v13  ;;  %17046 = vst [vmem:[#allocation122_spill] sm:$0xff] %v11692_v31 }
 0x2a0   :  { %8627 = vmatmul.mubr.f32.gmra.mxu0 %v11569_v27  ;;  %v11595_v27 = vsel %vm1041_vm0, %v11572_v60, %v1115_v44  ;;  %v11615_v44 = vsel %vm1041_vm0, %v11598_v19, %v1118_v32 }
 0x2a1   :  { %8629 = vmatprep.mubr.msk.f32.mxu0 %vm11058_vm1, %v11572_v60  ;;  %17027 = vst [vmem:[#allocation103_spill] sm:$0xff] %v11595_v27  ;;  %17031 = vst [vmem:[#allocation107_spill] sm:$0xff] %v11615_v44 }
 0x2a2   :  { %8505 = vmatmul.mubr.f32.gmra.mxu1 %v11564_v33 }
 0x2a3   :  { %8507 = vmatprep.mubr.f32.mxu1 %v11585_v58 }
 0x2a4   :  { %8630 = vmatmul.mubr.f32.gmra.mxu0 %v11595_v27  ;;  %v11618_v27 = vrot.slane %v11585_v58, 7  ;;  %v1124_v58 = vrot.slane %v11610_v4, 7 }
 0x2a5   :  { %8632 = vmatprep.mubr.msk.f32.mxu0 %vm11058_vm1, %v11598_v19 }
 0x2a6   :  { %17032 = vst [vmem:[#allocation108_spill] sm:$0xff] %v11618_v27  ;;  %8508 = vmatmul.mubr.f32.gmra.mxu1 %v11590_v35  ;;  %v11635_v32 = vsel %vm1041_vm0, %v11618_v27, %v1121_v38 }
 0x2a7   :  { %8510 = vmatprep.mubr.f32.mxu1 %v11606_v53  ;;  %17035 = vst [vmem:[#allocation111_spill] sm:$0xff] %v11635_v32 }
 0x2a8   :  { %8633 = vmatmul.mubr.f32.gmra.mxu0 %v11615_v44  ;;  %v11638_v44 = vrot.slane %v11606_v53, 7  ;;  %v1127_v53 = vrot.slane %v11630_v3, 7 }
 0x2a9   :  { %8635 = vmatprep.mubr.msk.f32.mxu0 %vm11058_vm1, %v11618_v27 }
 0x2aa   :  { %17036 = vst [vmem:[#allocation112_spill] sm:$0xff] %v11638_v44  ;;  %8511 = vmatmul.mubr.f32.gmra.mxu1 %v11610_v4  ;;  %v11655_v38 = vsel %vm1041_vm0, %v11638_v44, %v1124_v58 }
 0x2ab   :  { %8513 = vmatprep.mubr.f32.mxu1 %v11626_v52  ;;  %17039 = vst [vmem:[#allocation115_spill] sm:$0xff] %v11655_v38 }
 0x2ac   :  { %8636 = vmatmul.mubr.f32.gmra.mxu0 %v11635_v32  ;;  %v11658_v32 = vrot.slane %v11626_v52, 7  ;;  %v1130_v52 = vrot.slane %v11650_v36, 7 }
 0x2ad   :  { %8638 = vmatprep.mubr.msk.f32.mxu0 %vm11058_vm1, %v11638_v44 }
 0x2ae   :  { %17040 = vst [vmem:[#allocation116_spill] sm:$0xff] %v11658_v32  ;;  %8514 = vmatmul.mubr.f32.gmra.mxu1 %v11630_v3  ;;  %v11675_v58 = vsel %vm1041_vm0, %v11658_v32, %v1127_v53  ;;  %v1133_v53 = vrot.slane %v11670_v13, 7 }
 0x2af   :  { %8516 = vmatprep.mubr.f32.mxu1 %v11646_v62  ;;  %17043 = vst [vmem:[#allocation119_spill] sm:$0xff] %v11675_v58 }
 0x2b0   :  { %8639 = vmatmul.mubr.f32.gmra.mxu0 %v11655_v38  ;;  %v11678_v38 = vrot.slane %v11646_v62, 7 }
 0x2b1   :  { %8641 = vmatprep.mubr.msk.f32.mxu0 %vm11058_vm1, %v11658_v32 }
 0x2b2   :  { %17044 = vst [vmem:[#allocation120_spill] sm:$0xff] %v11678_v38  ;;  %8517 = vmatmul.mubr.f32.gmra.mxu1 %v11650_v36  ;;  %v11689_v56 = vsel %vm1041_vm0, %v11678_v38, %v1130_v52  ;;  %v11702_v36 = vrot.slane %v11030_v1, 1  ;;  %v11706_v52 = vsel %vm1041_vm0, %v11692_v31, %v1133_v53  ;;  %v1238_v53 = vrot.slane %v11050_v59, 1 }
 0x2b3   :  { %8519 = vmatprep.mubr.f32.mxu1 %v11666_v47  ;;  %17045 = vst [vmem:[#allocation121_spill] sm:$0xff] %v11689_v56  ;;  %17047 = vst [vmem:[#allocation123_spill] sm:$0xff] %v11706_v52 }
 0x2b4   :  { %8642 = vmatmul.mubr.f32.gmra.mxu0 %v11675_v58  ;;  %v1235_v58 = vrot.slane %v11054_v45, 1  ;;  %v7196_v45 = vld [vmem:[%s16447_s2 + $0x270] sm:$0xff] }
 0x2b5   :  { %8644 = vmatprep.mubr.msk.f32.mxu0 %vm11058_vm1, %v11678_v38 }
 0x2b6   :  { %8520 = vmatmul.mubr.f32.gmra.mxu1 %v11670_v13  ;;  %v11719_v1 = vsel %vm1234_vm2, %v1235_v58, %v11702_v36  ;;  %v7194_v58 = vld [vmem:[%s16447_s2 + $0x260] sm:$0xff] }
 0x2b7   :  { %8682 = vmatprep.mubr.f32.mxu1 %v16989_v5 }
 0x2b8   :  { %8645 = vmatmul.mubr.f32.gmra.mxu0 %v11689_v56 }
 0x2b9   :  { %8647 = vmatprep.mubr.msk.f32.mxu0 %vm11058_vm1, %v11692_v31  ;;  %v11723_v31 = vrot.slane %v11052_v37, 1  ;;  %v1241_v37 = vrot.slane %v11072_v11, 1 }
 0x2ba   :  { %8683 = vmatmul.mubr.f32.vlgmr.msra.gmra.mxu1 %v16989_v5 }
 0x2bb   :  { %17048 = vst [vmem:[#allocation124_spill] sm:$0xff] %v11723_v31  ;;  %8907 = vmatpush3.msra.mxu1 %v11040_v61  ;;  %8685 = vmatprep.mubr.f32.mxu1 %v11719_v1  ;;  %v11741_v61 = vsel %vm1234_vm2, %v1238_v53, %v11723_v31  ;;  %v7192_v53 = vld [vmem:[%s16447_s2 + $0x250] sm:$0xff] }
 0x2bc   :  { %8648 = vmatmul.mubr.f32.gmra.mxu0 %v11706_v52  ;;  %8908 = vmatprep.subr.mxu1 %v7196_v45  ;;  %17049 = vst [vmem:[#allocation125_spill] sm:$0xff] %v11741_v61 }
 0x2bd   :  { %8810 = vmatprep.mubr.msk.f32.mxu0 %vm11058_vm1, %v11066_v48  ;;  %v7195_v48 = vld [vmem:[%s16447_s2 + $0x268] sm:$0xff]  ;;  %8909 = vmatpush3.msra.mxu1 %v7196_v45  ;;  %v7193_v45 = vld [vmem:[%s16447_s2 + $0x258] sm:$0xff] }
 0x2be   :  { %8686 = vmatmul.mubr.msk.f32.gmra.mxu1 %vm1234_vm2, %v11702_v36  ;;  %8910 = vmatprep.subr.mxu1 %v7195_v48 }
 0x2bf   :  { %8688 = vmatprep.mubr.f32.mxu1 %v11741_v61  ;;  %8911 = vmatpush3.msra.mxu1 %v7195_v48 }
 0x2c0   :  { %8811 = vmatmul.mubr.f32.vlgmr.msra.gmra.mxu0 %v11083_v26  ;;  %v11745_v26 = vrot.slane %v11075_v6, 1  ;;  %8912 = vmatprep.subr.mxu1 %v7194_v58  ;;  %v17054_v6 = vld [vmem:[#allocation36_spill] sm:$0xff] }
 0x2c1   :  { %8813 = vmatprep.mubr.msk.f32.mxu0 %vm11058_vm1, %v11086_v29  ;;  %8913 = vmatpush3.msra.mxu1 %v7194_v58  ;;  %v1244_v29 = vrot.slane %v11099_v18, 1  ;;  %v7191_v58 = vld [vmem:[%s16447_s2 + $0x248] sm:$0xff] }
 0x2c2   :  { %17050 = vst [vmem:[#allocation126_spill] sm:$0xff] %v11745_v26  ;;  %8689 = vmatmul.mubr.msk.f32.gmra.mxu1 %vm1234_vm2, %v11723_v31  ;;  %v11762_v48 = vsel %vm1234_vm2, %v1241_v37, %v11745_v26  ;;  %8914 = vmatprep.subr.mxu1 %v7193_v45  ;;  %v7190_v37 = vld [vmem:[%s16447_s2 + $0x240] sm:$0xff] }
 0x2c3   :  { %17051 = vst [vmem:[#allocation127_spill] sm:$0xff] %v11762_v48  ;;  %8691 = vmatprep.mubr.f32.mxu1 %v11762_v48  ;;  %8915 = vmatpush3.msra.mxu1 %v7193_v45 }
 0x2c4   :  { %8814 = vmatmul.mubr.f32.gmra.mxu0 %v11107_v21  ;;  %v11766_v21 = vrot.slane %v11102_v22, 1  ;;  %8916 = vmatprep.subr.mxu1 %v7192_v53  ;;  %v17056_v22 = vld [vmem:[#allocation33_spill] sm:$0xff] }
 0x2c5   :  { %8816 = vmatprep.mubr.msk.f32.mxu0 %vm11058_vm1, %v11110_v55  ;;  %v17053_v55 = vld [vmem:[#allocation35_spill] sm:$0xff]  ;;  %8917 = vmatpush3.msra.mxu1 %v7192_v53  ;;  %v1247_v18 = vrot.slane %v17056_v22, 1  ;;  %v7189_v53 = vld [vmem:[%s16447_s2 + $0x238] sm:$0xff] }
 0x2c6   :  { %17052 = vst [vmem:[#allocation128_spill] sm:$0xff] %v11766_v21  ;;  %8692 = vmatmul.mubr.msk.f32.gmra.mxu1 %vm1234_vm2, %v11745_v26  ;;  %v11783_v45 = vsel %vm1234_vm2, %v1244_v29, %v11766_v21  ;;  %8918 = vmatprep.subr.mxu1 %v7191_v58  ;;  %v17060_v26 = vld [vmem:[#allocation40_spill] sm:$0xff] }
 0x2c7   :  { %17055 = vst [vmem:[#allocation129_spill] sm:$0xff] %v11783_v45  ;;  %8694 = vmatprep.mubr.f32.mxu1 %v11783_v45  ;;  %8919 = vmatpush3.msra.mxu1 %v7191_v58  ;;  %v7188_v29 = vld [vmem:[%s16447_s2 + $0x230] sm:$0xff] }
 0x2c8   :  { %8817 = vmatmul.mubr.f32.gmra.mxu0 %v17053_v55  ;;  %v17057_v55 = vld [vmem:[#allocation34_spill] sm:$0xff]  ;;  %8920 = vmatprep.subr.mxu1 %v7190_v37 }
 0x2c9   :  { %8819 = vmatprep.mubr.msk.f32.mxu0 %vm11058_vm1, %v17054_v6  ;;  %v11787_v48 = vrot.slane %v17057_v55, 1  ;;  %v17059_v6 = vld [vmem:[#allocation39_spill] sm:$0xff]  ;;  %8921 = vmatpush3.msra.mxu1 %v7190_v37  ;;  %v17062_v55 = vld [vmem:[#allocation37_spill] sm:$0xff] }
 0x2ca   :  { %8695 = vmatmul.mubr.msk.f32.gmra.mxu1 %vm1234_vm2, %v11766_v21  ;;  %v1250_v22 = vrot.slane %v17062_v55, 1  ;;  %8922 = vmatprep.subr.mxu1 %v7189_v53  ;;  %v7187_v37 = vld [vmem:[%s16447_s2 + $0x228] sm:$0xff]  ;;  %v17066_v21 = vld [vmem:[#allocation42_spill] sm:$0xff] }
 0x2cb   :  { %17058 = vst [vmem:[#allocation130_spill] sm:$0xff] %v11787_v48  ;;  %v11804_v58 = vsel %vm1234_vm2, %v1247_v18, %v11787_v48  ;;  %8923 = vmatpush3.msra.mxu1 %v7189_v53  ;;  %v7186_v18 = vld [vmem:[%s16447_s2 + $0x220] sm:$0xff]  ;;  %9035 = vmatpush3.msra.mxu0 %v11582_v43 }
 0x2cc   :  { %8820 = vmatmul.mubr.f32.gmra.mxu0 %v17059_v6  ;;  %17061 = vst [vmem:[#allocation131_spill] sm:$0xff] %v11804_v58  ;;  %v17063_v6 = vld [vmem:[#allocation38_spill] sm:$0xff]  ;;  %8697 = vmatprep.mubr.f32.mxu1 %v11804_v58 }
 0x2cd   :  { %8822 = vmatprep.mubr.msk.f32.mxu0 %vm11058_vm1, %v17060_v26  ;;  %v11808_v45 = vrot.slane %v17063_v6, 1  ;;  %v17065_v26 = vld [vmem:[#allocation41_spill] sm:$0xff]  ;;  %8924 = vmatprep.subr.mxu1 %v7188_v29  ;;  %v17068_v6 = vld [vmem:[#allocation14_spill] sm:$0xff] }
 0x2ce   :  { %8925 = vmatpush3.msra.mxu1 %v7188_v29  ;;  %v1253_v55 = vrot.slane %v17068_v6, 1  ;;  %v7185_v29 = vld [vmem:[%s16447_s2 + $0x218] sm:$0xff]  ;;  %v7210_v43 = vld [vmem:[%s16447_s2 + $0x2e0] sm:$0xff] }
 0x2cf   :  { %17064 = vst [vmem:[#allocation132_spill] sm:$0xff] %v11808_v45  ;;  %8698 = vmatmul.mubr.msk.f32.gmra.mxu1 %vm1234_vm2, %v11787_v48  ;;  %v11825_v53 = vsel %vm1234_vm2, %v1250_v22, %v11808_v45  ;;  %8926 = vmatprep.subr.mxu1 %v7187_v37  ;;  %v17072_v48 = vld [vmem:[#allocation44_spill] sm:$0xff] }
 0x2d0   :  { %8823 = vmatmul.mubr.f32.gmra.mxu0 %v17065_v26  ;;  %17067 = vst [vmem:[#allocation133_spill] sm:$0xff] %v11825_v53  ;;  %v17069_v26 = vld [vmem:[#allocation15_spill] sm:$0xff]  ;;  %8700 = vmatprep.mubr.f32.mxu1 %v11825_v53  ;;  %v7184_v22 = vld [vmem:[%s16447_s2 + $0x210] sm:$0xff] }
 0x2d1   :  { %8825 = vmatprep.mubr.msk.f32.mxu0 %vm11058_vm1, %v17066_v21  ;;  %v11829_v58 = vrot.slane %v17069_v26, 1  ;;  %8927 = vmatpush3.msra.mxu1 %v7187_v37  ;;  %v17071_v21 = vld [vmem:[#allocation43_spill] sm:$0xff]  ;;  %v17074_v26 = vld [vmem:[#allocation16_spill] sm:$0xff] }
 0x2d2   :  { %8928 = vmatprep.subr.mxu1 %v7186_v18  ;;  %v1256_v6 = vrot.slane %v17074_v26, 1  ;;  %v17081_v26 = vld [vmem:[#allocation19_spill] sm:$0xff] }
 0x2d3   :  { %17070 = vst [vmem:[#allocation134_spill] sm:$0xff] %v11829_v58  ;;  %8929 = vmatpush3.msra.mxu1 %v7186_v18  ;;  %v11846_v37 = vsel %vm1234_vm2, %v1253_v55, %v11829_v58  ;;  %v7212_v18 = vld [vmem:[%s16447_s2 + $0x2f0] sm:$0xff]  ;;  %v7211_v55 = vld [vmem:[%s16447_s2 + $0x2e8] sm:$0xff] }
 0x2d4   :  { %8826 = vmatmul.mubr.f32.gmra.mxu0 %v17071_v21  ;;  %8701 = vmatmul.mubr.msk.f32.gmra.mxu1 %vm1234_vm2, %v11808_v45  ;;  %17073 = vst [vmem:[#allocation135_spill] sm:$0xff] %v11846_v37  ;;  %v17075_v21 = vld [vmem:[#allocation17_spill] sm:$0xff]  ;;  %v17078_v45 = vld [vmem:[#allocation46_spill] sm:$0xff] }
 0x2d5   :  { %8828 = vmatprep.mubr.msk.f32.mxu0 %vm11058_vm1, %v17072_v48  ;;  %v11850_v53 = vrot.slane %v17075_v21, 1  ;;  %8930 = vmatprep.subr.mxu1 %v7185_v29  ;;  %v17077_v48 = vld [vmem:[#allocation45_spill] sm:$0xff]  ;;  %v17080_v21 = vld [vmem:[#allocation18_spill] sm:$0xff] }
 0x2d6   :  { %8703 = vmatprep.mubr.f32.mxu1 %v11846_v37  ;;  %8931 = vmatpush3.msra.mxu1 %v7185_v29  ;;  %v11872_v37 = vrot.slane %v17081_v26, 1  ;;  %v17086_v26 = vld [vmem:[#allocation20_spill] sm:$0xff] }
 0x2d7   :  { %17076 = vst [vmem:[#allocation136_spill] sm:$0xff] %v11850_v53  ;;  %8932 = vmatprep.subr.mxu1 %v7184_v22  ;;  %v11868_v29 = vsel %vm1234_vm2, %v1256_v6, %v11850_v53  ;;  %9036 = vmatprep.subr.mxu0 %v7212_v18  ;;  %v7183_v6 = vld [vmem:[%s16447_s2 + $0x208] sm:$0xff] }
 0x2d8   :  { %8829 = vmatmul.mubr.f32.gmra.mxu0 %v17077_v48  ;;  %8704 = vmatmul.mubr.msk.f32.gmra.mxu1 %vm1234_vm2, %v11829_v58  ;;  %17079 = vst [vmem:[#allocation137_spill] sm:$0xff] %v11868_v29  ;;  %v1259_v48 = vrot.slane %v17080_v21, 1  ;;  %17082 = vst [vmem:[#allocation138_spill] sm:$0xff] %v11872_v37  ;;  %v17084_v58 = vld [vmem:[#allocation48_spill] sm:$0xff]  ;;  %v1262_v21 = vrot.slane %v17086_v26, 1 }
 0x2d9   :  { %8831 = vmatprep.mubr.msk.f32.mxu0 %vm11058_vm1, %v17078_v45  ;;  %8706 = vmatprep.mubr.f32.mxu1 %v11868_v29  ;;  %v17083_v45 = vld [vmem:[#allocation47_spill] sm:$0xff] }
 0x2da   :  { %9037 = vmatpush3.msra.mxu0 %v7212_v18  ;;  %v11889_v18 = vsel %vm1234_vm2, %v1259_v48, %v11872_v37  ;;  %8933 = vmatpush3.msra.mxu1 %v7184_v22  ;;  %v7208_v48 = vld [vmem:[%s16447_s2 + $0x2d0] sm:$0xff] }
 0x2db   :  { %9038 = vmatprep.subr.mxu0 %v7211_v55  ;;  %17085 = vst [vmem:[#allocation139_spill] sm:$0xff] %v11889_v18  ;;  %8934 = vmatprep.subr.mxu1 %v7183_v6 }
 0x2dc   :  { %8832 = vmatmul.mubr.f32.gmra.mxu0 %v17083_v45  ;;  %8707 = vmatmul.mubr.msk.f32.gmra.mxu1 %vm1234_vm2, %v11850_v53  ;;  %v17087_v45 = vld [vmem:[#allocation21_spill] sm:$0xff]  ;;  %v17090_v53 = vld [vmem:[#allocation50_spill] sm:$0xff] }
 0x2dd   :  { %8834 = vmatprep.mubr.msk.f32.mxu0 %vm11058_vm1, %v17084_v58  ;;  %9039 = vmatpush3.msra.mxu0 %v7211_v55  ;;  %v11893_v29 = vrot.slane %v17087_v45, 1  ;;  %v7209_v55 = vld [vmem:[%s16447_s2 + $0x2d8] sm:$0xff]  ;;  %v17092_v45 = vld [vmem:[#allocation22_spill] sm:$0xff] }
 0x2de   :  { %9040 = vmatprep.subr.mxu0 %v7210_v43  ;;  %8709 = vmatprep.mubr.f32.mxu1 %v11889_v18  ;;  %v17089_v58 = vld [vmem:[#allocation49_spill] sm:$0xff]  ;;  %v1265_v26 = vrot.slane %v17092_v45, 1  ;;  %v11932_v45 = vrot.slane %v11294_v50, 1  ;;  %v11956_v50 = vrot.slane %v11318_v9, 1  ;;  %v1274_v9 = vrot.slane %v11335_v51, 1 }
 0x2df   :  { %17088 = vst [vmem:[#allocation140_spill] sm:$0xff] %v11893_v29  ;;  %9041 = vmatpush3.msra.mxu0 %v7210_v43  ;;  %v11910_v22 = vsel %vm1234_vm2, %v1262_v21, %v11893_v29  ;;  %v7207_v43 = vld [vmem:[%s16447_s2 + $0x2c8] sm:$0xff]  ;;  %8935 = vmatpush3.msra.mxu1 %v7183_v6  ;;  %v17100_v6 = vld [vmem:[#allocation26_spill] sm:$0xff] }
 0x2e0   :  { %8835 = vmatmul.mubr.f32.gmra.mxu0 %v17089_v58  ;;  %8710 = vmatmul.mubr.msk.f32.gmra.mxu1 %vm1234_vm2, %v11872_v37  ;;  %17091 = vst [vmem:[#allocation141_spill] sm:$0xff] %v11910_v22  ;;  %v11914_v58 = vrot.slane %v11270_v8, 1  ;;  %17097 = vst [vmem:[#allocation144_spill] sm:$0xff] %v11932_v45 }
 0x2e1   :  { %8837 = vmatprep.mubr.msk.f32.mxu0 %vm11058_vm1, %v17090_v53  ;;  %9042 = vmatprep.subr.mxu0 %v7209_v55  ;;  %v17094_v53 = vld [vmem:[#allocation51_spill] sm:$0xff]  ;;  %17101 = vst [vmem:[#allocation146_spill] sm:$0xff] %v11956_v50 }
 0x2e2   :  { %17093 = vst [vmem:[#allocation142_spill] sm:$0xff] %v11914_v58  ;;  %8712 = vmatprep.mubr.f32.mxu1 %v11910_v22  ;;  %9043 = vmatpush3.msra.mxu0 %v7209_v55  ;;  %v11928_v21 = vsel %vm1234_vm2, %v1265_v26, %v11914_v58  ;;  %v17096_v55 = vld [vmem:[#allocation24_spill] sm:$0xff]  ;;  %v7205_v26 = vld [vmem:[%s16447_s2 + $0x2b8] sm:$0xff] }
 0x2e3   :  { %9044 = vmatprep.subr.mxu0 %v7208_v48  ;;  %17095 = vst [vmem:[#allocation143_spill] sm:$0xff] %v11928_v21  ;;  %v1268_v8 = vrot.slane %v17096_v55, 1  ;;  %v17102_v55 = vld [vmem:[#allocation57_spill] sm:$0xff] }
 0x2e4   :  { %8838 = vmatmul.mubr.f32.gmra.mxu0 %v17094_v53  ;;  %8713 = vmatmul.mubr.msk.f32.gmra.mxu1 %vm1234_vm2, %v11893_v29  ;;  %v7206_v53 = vld [vmem:[%s16447_s2 + $0x2c0] sm:$0xff] }
 0x2e5   :  { %8840 = vmatprep.mubr.msk.f32.mxu0 %vm11058_vm1, %v11302_v0  ;;  %9045 = vmatpush3.msra.mxu0 %v7208_v48  ;;  %v17098_v48 = vld [vmem:[#allocation53_spill] sm:$0xff]  ;;  %v7182_v0 = vld [vmem:[%s16447_s2 + $0x200] sm:$0xff] }
 0x2e6   :  { %9046 = vmatprep.subr.mxu0 %v7207_v43  ;;  %8715 = vmatprep.mubr.f32.mxu1 %v11928_v21 }
 0x2e7   :  { %9047 = vmatpush3.msra.mxu0 %v7207_v43  ;;  %v11952_v43 = vsel %vm1234_vm2, %v1268_v8, %v11932_v45  ;;  %8936 = vmatprep.subr.mxu1 %v7182_v0  ;;  %v7203_v8 = vld [vmem:[%s16447_s2 + $0x2a8] sm:$0xff] }
 0x2e8   :  { %8841 = vmatmul.mubr.f32.gmra.mxu0 %v17098_v48  ;;  %9048 = vmatprep.subr.mxu0 %v7206_v53  ;;  %17099 = vst [vmem:[#allocation145_spill] sm:$0xff] %v11952_v43  ;;  %v1271_v48 = vrot.slane %v17100_v6, 1 }
 0x2e9   :  { %8843 = vmatprep.mubr.msk.f32.mxu0 %vm11058_vm1, %v11326_v7  ;;  %8716 = vmatmul.mubr.msk.f32.gmra.mxu1 %vm1234_vm2, %v11914_v58  ;;  %v7204_v7 = vld [vmem:[%s16447_s2 + $0x2b0] sm:$0xff] }
 0x2ea   :  { %9049 = vmatpush3.msra.mxu0 %v7206_v53  ;;  %8718 = vmatprep.mubr.f32.mxu1 %v11952_v43  ;;  %v11973_v53 = vsel %vm1234_vm2, %v1271_v48, %v11956_v50  ;;  %v11990_v48 = vld [vmem:[%s16447_s2 + $0x378] sm:$0xff] }
 0x2eb   :  { %9050 = vmatprep.subr.mxu0 %v7205_v26  ;;  %17103 = vst [vmem:[#allocation147_spill] sm:$0xff] %v11973_v53  ;;  %8937 = vmatpush3.msra.mxu1 %v7182_v0 }
 0x2ec   :  { %8844 = vmatmul.mubr.f32.gmra.mxu0 %v17102_v55  ;;  %v11977_v55 = vrot.slane %v11338_v15, 1  ;;  %v17107_v15 = vld [vmem:[#allocation59_spill] sm:$0xff]  ;;  %9162 = vmatprep.subr.mxu1 %v11990_v48 }
 0x2ed   :  { %8846 = vmatprep.mubr.msk.f32.mxu0 %vm11058_vm1, %v11346_v16  ;;  %9051 = vmatpush3.msra.mxu0 %v7205_v26  ;;  %v7202_v26 = vld [vmem:[%s16447_s2 + $0x2a0] sm:$0xff]  ;;  %v17106_v16 = vld [vmem:[#allocation28_spill] sm:$0xff]  ;;  %v12000_v51 = vrot.slane %v17107_v15, 1  ;;  %v12045_v15 = vrot.slane %v11390_v14, 1  ;;  %v17120_v14 = vld [vmem:[#allocation67_spill] sm:$0xff] }
 0x2ee   :  { %8719 = vmatmul.mubr.msk.f32.gmra.mxu1 %vm1234_vm2, %v11932_v45  ;;  %17104 = vst [vmem:[#allocation148_spill] sm:$0xff] %v11977_v55  ;;  %9052 = vmatprep.subr.mxu0 %v7204_v7 }
 0x2ef   :  { %8721 = vmatprep.mubr.f32.mxu1 %v11973_v53  ;;  %9053 = vmatpush3.msra.mxu0 %v7204_v7  ;;  %v11996_v7 = vsel %vm1234_vm2, %v1274_v9, %v11977_v55  ;;  %17108 = vst [vmem:[#allocation150_spill] sm:$0xff] %v12000_v51  ;;  %v17111_v53 = vld [vmem:[#allocation5_spill] sm:$0xff]  ;;  %17117 = vst [vmem:[#allocation153_spill] sm:$0xff] %v12045_v15 }
 0x2f0   :  { %8847 = vmatmul.mubr.f32.gmra.mxu0 %v11363_v20  ;;  %9054 = vmatprep.subr.mxu0 %v7203_v8  ;;  %17105 = vst [vmem:[#allocation149_spill] sm:$0xff] %v11996_v7  ;;  %v1277_v20 = vrot.slane %v17106_v16, 1  ;;  %v12006_v45 = vmax.f32 %v17111_v53, 0.0  ;;  %v7201_v9 = vld [vmem:[%s16447_s2 + $0x298] sm:$0xff] }
 0x2f1   :  { %8849 = vmatprep.mubr.msk.f32.mxu0 %vm11058_vm1, %v11366_v54  ;;  %9055 = vmatpush3.msra.mxu0 %v7203_v8  ;;  %v17109_v54 = vld [vmem:[#allocation4_spill] sm:$0xff] }
 0x2f2   :  { %8722 = vmatmul.mubr.msk.f32.gmra.mxu1 %vm1234_vm2, %v11956_v50  ;;  %9056 = vmatprep.subr.mxu0 %v7202_v26  ;;  %v12003_v8 = vmax.f32 %v17109_v54, 0.0  ;;  %17112 = vst [vmem:[#allocation5_spill] sm:$0xff] %v12006_v45  ;;  %v17113_v50 = vld [vmem:[#allocation62_spill] sm:$0xff]  ;;  %v7200_v54 = vld [vmem:[%s16447_s2 + $0x290] sm:$0xff]  ;;  %v12024_v0 = vsel %vm1234_vm2, %v1277_v20, %v12000_v51 }
 0x2f3   :  { %8724 = vmatprep.mubr.f32.mxu1 %v11996_v7  ;;  %9057 = vmatpush3.msra.mxu0 %v7202_v26  ;;  %17114 = vst [vmem:[#allocation151_spill] sm:$0xff] %v12024_v0  ;;  %v7199_v26 = vld [vmem:[%s16447_s2 + $0x288] sm:$0xff]  ;;  %v7198_v20 = vld [vmem:[%s16447_s2 + $0x280] sm:$0xff] }
 0x2f4   :  { %17110 = vst [vmem:[#allocation4_spill] sm:$0xff] %v12003_v8  ;;  %8850 = vmatmul.mubr.f32.gmra.mxu0 %v17113_v50  ;;  %9058 = vmatprep.subr.mxu0 %v7201_v9  ;;  %v12028_v53 = vrot.slane %v12003_v8, 7  ;;  %v17116_v50 = vld [vmem:[#allocation65_spill] sm:$0xff] }
 0x2f5   :  { %8852 = vmatprep.mubr.msk.f32.mxu0 %vm11058_vm1, %v11381_v49  ;;  %v1088_v49 = vrot.slane %v12006_v45, 7  ;;  %9059 = vmatpush3.msra.mxu0 %v7201_v9  ;;  %v1283_v9 = vrot.slane %v11397_v39, 1 }
 0x2f6   :  { %8725 = vmatmul.mubr.msk.f32.gmra.mxu1 %vm1234_vm2, %v11977_v55  ;;  %17115 = vst [vmem:[#allocation152_spill] sm:$0xff] %v12028_v53  ;;  %9060 = vmatprep.subr.mxu0 %v7200_v54 }
 0x2f7   :  { %8727 = vmatprep.mubr.f32.mxu1 %v12024_v0  ;;  %9061 = vmatpush3.msra.mxu0 %v7200_v54  ;;  %v12059_v54 = vsel %vm1234_vm2, %v1283_v9, %v12045_v15 }
 0x2f8   :  { %8853 = vmatmul.mubr.f32.gmra.mxu0 %v17116_v50  ;;  %9062 = vmatprep.subr.mxu0 %v7199_v26  ;;  %v12049_v50 = vsel %vm1041_vm0, %v12028_v53, %v1088_v49  ;;  %17119 = vst [vmem:[#allocation155_spill] sm:$0xff] %v12059_v54  ;;  %v1286_v49 = vrot.slane %v17120_v14, 1  ;;  %v12082_v14 = vrot.slane %v11424_v63, 1 }
 0x2f9   :  { %8855 = vmatprep.mubr.msk.f32.mxu0 %vm11058_vm1, %v12028_v53  ;;  %17118 = vst [vmem:[#allocation154_spill] sm:$0xff] %v12049_v50  ;;  %9063 = vmatpush3.msra.mxu0 %v7199_v26  ;;  %v12063_v53 = vrot.slane %v11408_v25, 1  ;;  %v12066_v26 = vpop.f32.mrf.mxu1 }
 0x2fa   :  { %8728 = vmatmul.mubr.msk.f32.gmra.mxu1 %vm1234_vm2, %v12000_v51  ;;  %9064 = vmatprep.subr.mxu0 %v7198_v20  ;;  %17122 = vst [vmem:[#allocation157_spill] sm:$0xff] %v12066_v26  ;;  %17127 = vst [vmem:[#allocation159_spill] sm:$0xff] %v12082_v14 }
 0x2fb   :  { %8730 = vmatprep.mubr.f32.mxu1 %v16989_v5  ;;  %9065 = vmatpush3.msra.mxu0 %v7198_v20  ;;  %17121 = vst [vmem:[#allocation156_spill] sm:$0xff] %v12063_v53  ;;  %v8431_v20 = vpop.f32.mrf.mxu1  ;;  %v12078_v9 = vsel %vm1234_vm2, %v1286_v49, %v12063_v53 }
 0x2fc   :  { %8856 = vmatmul.mubr.f32.gmra.mxu0 %v12049_v50  ;;  %v17123_v50 = vld [vmem:[#allocation71_spill] sm:$0xff]  ;;  %17125 = vst [vmem:[#allocation158_spill] sm:$0xff] %v12078_v9 }
 0x2fd   :  { %8858 = vmatprep.mubr.msk.f32.mxu0 %vm11058_vm1, %v11412_v2  ;;  %v12072_v2 = vpop.f32.mrf.mxu0 }
 0x2fe   :  { %8731 = vmatmul.mubr.f32.gmra.mxu1 %v16989_v5  ;;  %17124 = vst [vmem:[#allocation71_spill] sm:$0xff] %v12072_v2  ;;  %v17126_v5 = vld [vmem:[#allocation69_spill] sm:$0xff] }
 0x2ff   :  { %8733 = vmatprep.mubr.f32.mxu1 %v12059_v54  ;;  %v1289_v25 = vrot.slane %v17126_v5, 1  ;;  %v8559_v26 = vpop.f32.mrf.mxu0  ;;  %v17131_v5 = vld [vmem:[#allocation73_spill] sm:$0xff]  ;;  %v12099_v54 = vrot.slane %v11444_v40, 1 }
 0x300   :  { %8859 = vmatmul.mubr.f32.gmra.mxu0 %v17123_v50  ;;  %v1536_v50 = vpop.f32.mrf.mxu1  ;;  %v12086_v2 = vadd.f32 %v8559_v26, %v8431_v20 }
 0x301   :  { %8861 = vmatprep.mubr.msk.f32.mxu0 %vm11058_vm1, %v11432_v41  ;;  %v17128_v41 = vld [vmem:[#allocation75_spill] sm:$0xff]  ;;  %v1921_v49 = vpop.f32.mrf.mxu0  ;;  %v12095_v63 = vsel %vm1234_vm2, %v1289_v25, %v12082_v14  ;;  %17132 = vst [vmem:[#allocation162_spill] sm:$0xff] %v12099_v54 }
 0x302   :  { %8734 = vmatmul.mubr.msk.f32.gmra.mxu1 %vm1234_vm2, %v12045_v15  ;;  %17129 = vst [vmem:[#allocation160_spill] sm:$0xff] %v12086_v2  ;;  %v8434_v15 = vpop.f32.mrf.mxu1  ;;  %17130 = vst [vmem:[#allocation161_spill] sm:$0xff] %v12095_v63  ;;  %v12101_v26 = vadd.f32 %v1921_v49, %v1536_v50  ;;  %v17136_v49 = vld [vmem:[#allocation77_spill] sm:$0xff] }
 0x303   :  { %8736 = vmatprep.mubr.f32.mxu1 %v12078_v9  ;;  %v1292_v9 = vrot.slane %v17131_v5, 1  ;;  %v1295_v40 = vrot.slane %v17136_v49, 1  ;;  %v12118_v5 = vrot.slane %v11464_v30, 1  ;;  %v12137_v49 = vrot.slane %v11484_v10, 1 }
 0x304   :  { %8862 = vmatmul.mubr.f32.gmra.mxu0 %v17128_v41  ;;  %v1546_v20 = vpop.f32.mrf.mxu1  ;;  %v17133_v41 = vld [vmem:[#allocation79_spill] sm:$0xff] }
 0x305   :  { %8864 = vmatprep.mubr.msk.f32.mxu0 %vm11058_vm1, %v11452_v57  ;;  %v8562_v57 = vpop.f32.mrf.mxu0  ;;  %v12114_v50 = vsel %vm1234_vm2, %v1292_v9, %v12099_v54  ;;  %17137 = vst [vmem:[#allocation165_spill] sm:$0xff] %v12118_v5  ;;  %17142 = vst [vmem:[#allocation168_spill] sm:$0xff] %v12137_v49 }
 0x306   :  { %8737 = vmatmul.mubr.msk.f32.gmra.mxu1 %vm1234_vm2, %v12063_v53  ;;  %v12105_v2 = vadd.f32 %v8562_v57, %v8434_v15  ;;  %v8437_v25 = vpop.f32.mrf.mxu1  ;;  %17135 = vst [vmem:[#allocation164_spill] sm:$0xff] %v12114_v50 }
 0x307   :  { %8739 = vmatprep.mubr.f32.mxu1 %v12095_v63  ;;  %v1931_v53 = vpop.f32.mrf.mxu0 }
 0x308   :  { %8865 = vmatmul.mubr.f32.gmra.mxu0 %v17133_v41  ;;  %17134 = vst [vmem:[#allocation163_spill] sm:$0xff] %v12105_v2  ;;  %v12120_v15 = vadd.f32 %v1931_v53, %v1546_v20  ;;  %v1556_v57 = vpop.f32.mrf.mxu1  ;;  %v17138_v41 = vld [vmem:[#allocation83_spill] sm:$0xff]  ;;  %v12133_v53 = vsel %vm1234_vm2, %v1295_v40, %v12118_v5  ;;  %v17141_v20 = vld [vmem:[#allocation81_spill] sm:$0xff] }
 0x309   :  { %8867 = vmatprep.mubr.msk.f32.mxu0 %vm11058_vm1, %v11472_v17  ;;  %v8565_v17 = vpop.f32.mrf.mxu0  ;;  %17140 = vst [vmem:[#allocation167_spill] sm:$0xff] %v12133_v53  ;;  %v1298_v30 = vrot.slane %v17141_v20, 1  ;;  %v12156_v20 = vrot.slane %v11504_v24, 1 }
 0x30a   :  { %8740 = vmatmul.mubr.msk.f32.gmra.mxu1 %vm1234_vm2, %v12082_v14  ;;  %v12124_v2 = vadd.f32 %v8565_v17, %v8437_v25  ;;  %v8440_v9 = vpop.f32.mrf.mxu1 }
 0x30b   :  { %8742 = vmatprep.mubr.f32.mxu1 %v12114_v50  ;;  %v1941_v14 = vpop.f32.mrf.mxu0  ;;  %17147 = vst [vmem:[#allocation171_spill] sm:$0xff] %v12156_v20 }
 0x30c   :  { %8868 = vmatmul.mubr.f32.gmra.mxu0 %v17138_v41  ;;  %17139 = vst [vmem:[#allocation166_spill] sm:$0xff] %v12124_v2  ;;  %v12139_v17 = vadd.f32 %v1941_v14, %v1556_v57  ;;  %v1566_v25 = vpop.f32.mrf.mxu1  ;;  %v17143_v41 = vld [vmem:[#allocation87_spill] sm:$0xff]  ;;  %v12152_v14 = vsel %vm1234_vm2, %v1298_v30, %v12137_v49  ;;  %v17146_v57 = vld [vmem:[#allocation85_spill] sm:$0xff] }
 0x30d   :  { %8870 = vmatprep.mubr.msk.f32.mxu0 %vm11058_vm1, %v11492_v12  ;;  %v8568_v12 = vpop.f32.mrf.mxu0  ;;  %17145 = vst [vmem:[#allocation170_spill] sm:$0xff] %v12152_v14  ;;  %v1301_v10 = vrot.slane %v17146_v57, 1  ;;  %v12175_v57 = vrot.slane %v11524_v28, 1 }
 0x30e   :  { %8743 = vmatmul.mubr.msk.f32.gmra.mxu1 %vm1234_vm2, %v12099_v54  ;;  %v12143_v2 = vadd.f32 %v8568_v12, %v8440_v9  ;;  %v8443_v40 = vpop.f32.mrf.mxu1 }
 0x30f   :  { %8745 = vmatprep.mubr.f32.mxu1 %v12133_v53  ;;  %v1951_v54 = vpop.f32.mrf.mxu0  ;;  %17152 = vst [vmem:[#allocation174_spill] sm:$0xff] %v12175_v57 }
 0x310   :  { %8871 = vmatmul.mubr.f32.gmra.mxu0 %v17143_v41  ;;  %17144 = vst [vmem:[#allocation169_spill] sm:$0xff] %v12143_v2  ;;  %v12158_v12 = vadd.f32 %v1951_v54, %v1566_v25  ;;  %v1576_v9 = vpop.f32.mrf.mxu1  ;;  %v17148_v41 = vld [vmem:[#allocation91_spill] sm:$0xff]  ;;  %v12171_v54 = vsel %vm1234_vm2, %v1301_v10, %v12156_v20  ;;  %v17151_v25 = vld [vmem:[#allocation89_spill] sm:$0xff] }
 0x311   :  { %8873 = vmatprep.mubr.msk.f32.mxu0 %vm11058_vm1, %v11512_v34  ;;  %v8571_v34 = vpop.f32.mrf.mxu0  ;;  %17150 = vst [vmem:[#allocation173_spill] sm:$0xff] %v12171_v54  ;;  %v1304_v24 = vrot.slane %v17151_v25, 1  ;;  %v12194_v25 = vrot.slane %v11544_v23, 1 }
 0x312   :  { %8746 = vmatmul.mubr.msk.f32.gmra.mxu1 %vm1234_vm2, %v12118_v5  ;;  %v12162_v2 = vadd.f32 %v8571_v34, %v8443_v40  ;;  %v8446_v30 = vpop.f32.mrf.mxu1 }
 0x313   :  { %8748 = vmatprep.mubr.f32.mxu1 %v12152_v14  ;;  %v1961_v5 = vpop.f32.mrf.mxu0  ;;  %17158 = vst [vmem:[#allocation177_spill] sm:$0xff] %v12194_v25 }
 0x314   :  { %8874 = vmatmul.mubr.f32.gmra.mxu0 %v17148_v41  ;;  %17149 = vst [vmem:[#allocation172_spill] sm:$0xff] %v12162_v2  ;;  %v12177_v34 = vadd.f32 %v1961_v5, %v1576_v9  ;;  %v1586_v40 = vpop.f32.mrf.mxu1  ;;  %v17153_v41 = vld [vmem:[#allocation95_spill] sm:$0xff]  ;;  %v12190_v5 = vsel %vm1234_vm2, %v1304_v24, %v12175_v57  ;;  %v17157_v9 = vld [vmem:[#allocation93_spill] sm:$0xff] }
 0x315   :  { %8876 = vmatprep.mubr.msk.f32.mxu0 %vm11058_vm1, %v11532_v42  ;;  %v8574_v42 = vpop.f32.mrf.mxu0  ;;  %17156 = vst [vmem:[#allocation176_spill] sm:$0xff] %v12190_v5  ;;  %v1307_v28 = vrot.slane %v17157_v9, 1  ;;  %v12213_v9 = vrot.slane %v11564_v33, 1 }
 0x316   :  { %8749 = vmatmul.mubr.msk.f32.gmra.mxu1 %vm1234_vm2, %v12137_v49  ;;  %v12181_v2 = vadd.f32 %v8574_v42, %v8446_v30  ;;  %v17155_v49 = vld [vmem:[#allocation96_spill] sm:$0xff]  ;;  %v8449_v10 = vpop.f32.mrf.mxu1 }
 0x317   :  { %8751 = vmatprep.mubr.f32.mxu1 %v12171_v54  ;;  %v1971_v14 = vpop.f32.mrf.mxu0  ;;  %17163 = vst [vmem:[#allocation180_spill] sm:$0xff] %v12213_v9 }
 0x318   :  { %8877 = vmatmul.mubr.f32.gmra.mxu0 %v17153_v41  ;;  %17154 = vst [vmem:[#allocation175_spill] sm:$0xff] %v12181_v2  ;;  %v12196_v42 = vadd.f32 %v1971_v14, %v1586_v40  ;;  %v1596_v30 = vpop.f32.mrf.mxu1  ;;  %v17159_v41 = vld [vmem:[#allocation99_spill] sm:$0xff]  ;;  %v12209_v14 = vsel %vm1234_vm2, %v1307_v28, %v12194_v25  ;;  %v17162_v40 = vld [vmem:[#allocation97_spill] sm:$0xff] }
 0x319   :  { %8879 = vmatprep.mubr.msk.f32.mxu0 %vm11058_vm1, %v17155_v49  ;;  %v8577_v49 = vpop.f32.mrf.mxu0  ;;  %17161 = vst [vmem:[#allocation179_spill] sm:$0xff] %v12209_v14  ;;  %v1310_v23 = vrot.slane %v17162_v40, 1  ;;  %v12227_v28 = vld [vmem:[%s16447_s2 + $0x3f8] sm:$0xff] }
 0x31a   :  { %8752 = vmatmul.mubr.msk.f32.gmra.mxu1 %vm1234_vm2, %v12156_v20  ;;  %v12200_v2 = vadd.f32 %v8577_v49, %v8449_v10  ;;  %v8452_v24 = vpop.f32.mrf.mxu1  ;;  %9290 = vmatprep.subr.mxu0 %v12227_v28 }
 0x31b   :  { %8754 = vmatprep.mubr.f32.mxu1 %v12190_v5  ;;  %v1981_v20 = vpop.f32.mrf.mxu0 }
 0x31c   :  { %8880 = vmatmul.mubr.f32.gmra.mxu0 %v17159_v41  ;;  %17160 = vst [vmem:[#allocation178_spill] sm:$0xff] %v12200_v2  ;;  %v12215_v49 = vadd.f32 %v1981_v20, %v1596_v30  ;;  %v1606_v10 = vpop.f32.mrf.mxu1  ;;  %v17164_v41 = vld [vmem:[#allocation103_spill] sm:$0xff]  ;;  %v12233_v30 = vsel %vm1234_vm2, %v1310_v23, %v12213_v9 }
 0x31d   :  { %8882 = vmatprep.mubr.msk.f32.mxu0 %vm11058_vm1, %v11572_v60  ;;  %v8580_v60 = vpop.f32.mrf.mxu0  ;;  %17166 = vst [vmem:[#allocation182_spill] sm:$0xff] %v12233_v30 }
 0x31e   :  { %8755 = vmatmul.mubr.msk.f32.gmra.mxu1 %vm1234_vm2, %v12175_v57  ;;  %v12219_v2 = vadd.f32 %v8580_v60, %v8452_v24  ;;  %v8455_v33 = vpop.f32.mrf.mxu1  ;;  %v17167_v60 = vld [vmem:[#allocation101_spill] sm:$0xff] }
 0x31f   :  { %8757 = vmatprep.mubr.f32.mxu1 %v12209_v14  ;;  %v1991_v20 = vpop.f32.mrf.mxu0  ;;  %v1313_v24 = vrot.slane %v17167_v60, 1  ;;  %v17169_v14 = vld [vmem:[#allocation107_spill] sm:$0xff] }
 0x320   :  { %8883 = vmatmul.mubr.f32.gmra.mxu0 %v17164_v41  ;;  %17165 = vst [vmem:[#allocation181_spill] sm:$0xff] %v12219_v2  ;;  %v12237_v41 = vrot.slane %v11590_v35, 1  ;;  %v1616_v40 = vpop.f32.mrf.mxu1 }
 0x321   :  { %8885 = vmatprep.mubr.msk.f32.mxu0 %vm11058_vm1, %v11598_v19  ;;  %v12240_v19 = vadd.f32 %v1991_v20, %v1606_v10  ;;  %v8583_v2 = vpop.f32.mrf.mxu0  ;;  %v17172_v20 = vld [vmem:[#allocation105_spill] sm:$0xff] }
 0x322   :  { %8758 = vmatmul.mubr.msk.f32.gmra.mxu1 %vm1234_vm2, %v12194_v25  ;;  %17168 = vst [vmem:[#allocation183_spill] sm:$0xff] %v12237_v41  ;;  %v12244_v25 = vadd.f32 %v8583_v2, %v8455_v33  ;;  %v8458_v23 = vpop.f32.mrf.mxu1  ;;  %v12253_v10 = vsel %vm1234_vm2, %v1313_v24, %v12237_v41  ;;  %v1316_v35 = vrot.slane %v17172_v20, 1  ;;  %v12276_v20 = vrot.slane %v11630_v3, 1  ;;  %v17182_v3 = vld [vmem:[#allocation114_spill] sm:$0xff] }
 0x323   :  { %8760 = vmatprep.mubr.f32.mxu1 %v12233_v30  ;;  %v2001_v60 = vpop.f32.mrf.mxu0  ;;  %17171 = vst [vmem:[#allocation185_spill] sm:$0xff] %v12253_v10  ;;  %v12257_v30 = vrot.slane %v11610_v4, 1 }
 0x324   :  { %8886 = vmatmul.mubr.f32.gmra.mxu0 %v17169_v14  ;;  %17170 = vst [vmem:[#allocation184_spill] sm:$0xff] %v12244_v25  ;;  %v12259_v33 = vadd.f32 %v2001_v60, %v1616_v40  ;;  %v1626_v2 = vpop.f32.mrf.mxu1  ;;  %v17174_v14 = vld [vmem:[#allocation111_spill] sm:$0xff]  ;;  %v17177_v60 = vld [vmem:[#allocation109_spill] sm:$0xff]  ;;  %17178 = vst [vmem:[#allocation189_spill] sm:$0xff] %v12276_v20 }
 0x325   :  { %8888 = vmatprep.mubr.msk.f32.mxu0 %vm11058_vm1, %v11618_v27  ;;  %17173 = vst [vmem:[#allocation186_spill] sm:$0xff] %v12257_v30  ;;  %v8586_v27 = vpop.f32.mrf.mxu0  ;;  %v12272_v40 = vsel %vm1234_vm2, %v1316_v35, %v12257_v30  ;;  %v1319_v4 = vrot.slane %v17177_v60, 1  ;;  %v12295_v60 = vrot.slane %v17182_v3, 1  ;;  %v12314_v3 = vrot.slane %v11670_v13, 1 }
 0x326   :  { %8761 = vmatmul.mubr.msk.f32.gmra.mxu1 %vm1234_vm2, %v12213_v9  ;;  %v12263_v25 = vadd.f32 %v8586_v27, %v8458_v23  ;;  %v8461_v24 = vpop.f32.mrf.mxu1  ;;  %17176 = vst [vmem:[#allocation188_spill] sm:$0xff] %v12272_v40 }
 0x327   :  { %8763 = vmatprep.mubr.f32.mxu1 %v12253_v10  ;;  %v2011_v9 = vpop.f32.mrf.mxu0  ;;  %17183 = vst [vmem:[#allocation192_spill] sm:$0xff] %v12295_v60  ;;  %17187 = vst [vmem:[#allocation195_spill] sm:$0xff] %v12314_v3 }
 0x328   :  { %8889 = vmatmul.mubr.f32.gmra.mxu0 %v17174_v14  ;;  %17175 = vst [vmem:[#allocation187_spill] sm:$0xff] %v12263_v25  ;;  %v12278_v27 = vadd.f32 %v2011_v9, %v1626_v2  ;;  %v1636_v23 = vpop.f32.mrf.mxu1  ;;  %v17179_v14 = vld [vmem:[#allocation115_spill] sm:$0xff]  ;;  %v12291_v9 = vsel %vm1234_vm2, %v1319_v4, %v12276_v20  ;;  %v1322_v2 = vrot.slane %v11646_v62, 1 }
 0x329   :  { %8891 = vmatprep.mubr.msk.f32.mxu0 %vm11058_vm1, %v11638_v44  ;;  %v8589_v44 = vpop.f32.mrf.mxu0  ;;  %17181 = vst [vmem:[#allocation191_spill] sm:$0xff] %v12291_v9 }
 0x32a   :  { %8764 = vmatmul.mubr.msk.f32.gmra.mxu1 %vm1234_vm2, %v12237_v41  ;;  %v12282_v25 = vadd.f32 %v8589_v44, %v8461_v24  ;;  %v8464_v35 = vpop.f32.mrf.mxu1 }
 0x32b   :  { %8766 = vmatprep.mubr.f32.mxu1 %v12272_v40  ;;  %v2021_v41 = vpop.f32.mrf.mxu0 }
 0x32c   :  { %8892 = vmatmul.mubr.f32.gmra.mxu0 %v17179_v14  ;;  %17180 = vst [vmem:[#allocation190_spill] sm:$0xff] %v12282_v25  ;;  %v12297_v44 = vadd.f32 %v2021_v41, %v1636_v23  ;;  %v1646_v24 = vpop.f32.mrf.mxu1  ;;  %v17184_v14 = vld [vmem:[#allocation119_spill] sm:$0xff]  ;;  %v12310_v41 = vsel %vm1234_vm2, %v1322_v2, %v12295_v60  ;;  %v1325_v23 = vrot.slane %v11666_v47, 1  ;;  %v17191_v47 = vld [vmem:[#allocation122_spill] sm:$0xff] }
 0x32d   :  { %8894 = vmatprep.mubr.msk.f32.mxu0 %vm11058_vm1, %v11658_v32  ;;  %v8592_v32 = vpop.f32.mrf.mxu0  ;;  %17186 = vst [vmem:[#allocation194_spill] sm:$0xff] %v12310_v41 }
 0x32e   :  { %8767 = vmatmul.mubr.msk.f32.gmra.mxu1 %vm1234_vm2, %v12257_v30  ;;  %v12301_v25 = vadd.f32 %v8592_v32, %v8464_v35  ;;  %v8467_v4 = vpop.f32.mrf.mxu1  ;;  %v17188_v32 = vld [vmem:[#allocation3_spill] sm:$0xff] }
 0x32f   :  { %8769 = vmatprep.mubr.f32.mxu1 %v12291_v9  ;;  %v2031_v30 = vpop.f32.mrf.mxu0  ;;  %v12317_v35 = vmax.f32 %v17188_v32, 0.0 }
 0x330   :  { %8895 = vmatmul.mubr.f32.gmra.mxu0 %v17184_v14  ;;  %17185 = vst [vmem:[#allocation193_spill] sm:$0xff] %v12301_v25  ;;  %v17190_v14 = vld [vmem:[#allocation6_spill] sm:$0xff] }
 0x331   :  { %8897 = vmatprep.mubr.msk.f32.mxu0 %vm11058_vm1, %v11678_v38  ;;  %17189 = vst [vmem:[#allocation3_spill] sm:$0xff] %v12317_v35  ;;  %v12320_v62 = vmax.f32 %v17190_v14, 0.0  ;;  %v12322_v38 = vadd.f32 %v2031_v30, %v1646_v24  ;;  %v8595_v25 = vpop.f32.mrf.mxu0  ;;  %v12335_v14 = vsel %vm1234_vm2, %v1325_v23, %v12314_v3 }
 0x332   :  { %8770 = vmatmul.mubr.msk.f32.gmra.mxu1 %vm1234_vm2, %v12276_v20  ;;  %v1656_v20 = vpop.f32.mrf.mxu1  ;;  %v12326_v2 = vadd.f32 %v8595_v25, %v8467_v4  ;;  %17192 = vst [vmem:[#allocation6_spill] sm:$0xff] %v12335_v14  ;;  %v12341_v25 = vrot.slane %v12317_v35, 7 }
 0x333   :  { %8772 = vmatprep.mubr.f32.mxu1 %v12310_v41  ;;  %v2041_v32 = vpop.f32.mrf.mxu0  ;;  %v1136_v24 = vrot.slane %v12320_v62, 7 }
 0x334   :  { %8898 = vmatmul.mubr.f32.gmra.mxu0 %v11689_v56  ;;  %v8470_v13 = vpop.f32.mrf.mxu1  ;;  %v12337_v30 = vadd.f32 %v2041_v32, %v1656_v20  ;;  %17194 = vst [vmem:[#allocation197_spill] sm:$0xff] %v12341_v25 }
 0x335   :  { %8900 = vmatprep.mubr.msk.f32.mxu0 %vm11058_vm1, %v17191_v47  ;;  %v8598_v47 = vpop.f32.mrf.mxu0 }
 0x336   :  { %8773 = vmatmul.mubr.msk.f32.gmra.mxu1 %vm1234_vm2, %v12295_v60  ;;  %17193 = vst [vmem:[#allocation196_spill] sm:$0xff] %v12337_v30  ;;  %v1666_v4 = vpop.f32.mrf.mxu1  ;;  %v12345_v56 = vadd.f32 %v8598_v47, %v8470_v13  ;;  %v12357_v30 = vsel %vm1041_vm0, %v12341_v25, %v1136_v24  ;;  %v7259_v24 = vld [vmem:[%s16447_s2 + $0x368] sm:$0xff] }
 0x337   :  { %8775 = vmatprep.mubr.f32.mxu1 %v12335_v14  ;;  %v2051_v20 = vpop.f32.mrf.mxu0  ;;  %v17196_v14 = vld [vmem:[#allocation8_spill] sm:$0xff] }
 0x338   :  { %8901 = vmatmul.mubr.f32.gmra.mxu0 %v11706_v52  ;;  %v8473_v23 = vpop.f32.mrf.mxu1  ;;  %v12352_v32 = vadd.f32 %v2051_v20, %v1666_v4  ;;  %17197 = vst [vmem:[#allocation8_spill] sm:$0xff] %v12357_v30 }
 0x339   :  { %8903 = vmatprep.mubr.msk.f32.mxu0 %vm11058_vm1, %v12341_v25  ;;  %v8601_v47 = vpop.f32.mrf.mxu0  ;;  %v17203_v25 = vld [vmem:[#allocation13_spill] sm:$0xff] }
 0x33a   :  { %8776 = vmatmul.mubr.msk.f32.gmra.mxu1 %vm1234_vm2, %v12314_v3  ;;  %17195 = vst [vmem:[#allocation198_spill] sm:$0xff] %v12352_v32  ;;  %v1676_v52 = vpop.f32.mrf.mxu1  ;;  %v12360_v13 = vadd.f32 %v8601_v47, %v8473_v23  ;;  %v17198_v32 = vld [vmem:[#allocation7_spill] sm:$0xff] }
 0x33b   :  { %8938 = vmatprep.mubr.f32.mxu1 %v17196_v14  ;;  %v2061_v20 = vpop.f32.mrf.mxu0 }
 0x33c   :  { %8904 = vmatmul.mubr.f32.gmra.mxu0 %v12357_v30  ;;  %v8476_v4 = vpop.f32.mrf.mxu1  ;;  %v12367_v14 = vadd.f32 %v2061_v20, %v1676_v52  ;;  %v7258_v52 = vld [vmem:[%s16447_s2 + $0x360] sm:$0xff]  ;;  %v17199_v20 = vld [vmem:[#allocation9_spill] sm:$0xff] }
 0x33d   :  { %9066 = vmatprep.mubr.f32.mxu0 %v11719_v1  ;;  %v8604_v1 = vpop.f32.mrf.mxu0 }
 0x33e   :  { %8939 = vmatmul.mubr.f32.vlgmr.msra.gmra.mxu1 %v17198_v32  ;;  %v1686_v23 = vpop.f32.mrf.mxu1  ;;  %v12376_v47 = vadd.f32 %v8604_v1, %v8476_v4 }
 0x33f   :  { %9163 = vmatpush3.msra.mxu1 %v11990_v48  ;;  %8941 = vmatprep.mubr.f32.mxu1 %v11050_v59  ;;  %v2071_v32 = vpop.f32.mrf.mxu0 }
 0x340   :  { %9067 = vmatmul.mubr.msk.f32.vlgmr.msra.gmra.mxu0 %vm1234_vm2, %v11702_v36  ;;  %9164 = vmatprep.subr.mxu1 %v7260_v46  ;;  %v8479_v48 = vpop.f32.mrf.mxu1  ;;  %v12383_v30 = vadd.f32 %v2071_v32, %v1686_v23  ;;  %v7257_v36 = vld [vmem:[%s16447_s2 + $0x358] sm:$0xff]  ;;  %v7256_v23 = vld [vmem:[%s16447_s2 + $0x350] sm:$0xff] }
 0x341   :  { %9069 = vmatprep.mubr.f32.mxu0 %v11741_v61  ;;  %9165 = vmatpush3.msra.mxu1 %v7260_v46  ;;  %v8607_v46 = vpop.f32.mrf.mxu0  ;;  %v17202_v61 = vld [vmem:[#allocation127_spill] sm:$0xff] }
 0x342   :  { %8942 = vmatmul.mubr.f32.gmra.mxu1 %v17199_v20  ;;  %9166 = vmatprep.subr.mxu1 %v7259_v24  ;;  %17200 = vst [vmem:[#allocation7_spill] sm:$0xff] %v12383_v30  ;;  %v1696_v4 = vpop.f32.mrf.mxu1  ;;  %v12391_v1 = vadd.f32 %v8607_v46, %v8479_v48  ;;  %v17205_v30 = vld [vmem:[#allocation29_spill] sm:$0xff]  ;;  %v7255_v48 = vld [vmem:[%s16447_s2 + $0x348] sm:$0xff] }
 0x343   :  { %8944 = vmatprep.mubr.f32.mxu1 %v11072_v11  ;;  %9167 = vmatpush3.msra.mxu1 %v7259_v24  ;;  %v2081_v32 = vpop.f32.mrf.mxu0 }
 0x344   :  { %9070 = vmatmul.mubr.msk.f32.gmra.mxu0 %vm1234_vm2, %v11723_v31  ;;  %9168 = vmatprep.subr.mxu1 %v7258_v52  ;;  %17201 = vst [vmem:[#allocation9_spill] sm:$0xff] %v12391_v1  ;;  %v8482_v24 = vpop.f32.mrf.mxu1  ;;  %v12398_v11 = vadd.f32 %v2081_v32, %v1696_v4  ;;  %v17208_v1 = vld [vmem:[#allocation129_spill] sm:$0xff]  ;;  %v7254_v4 = vld [vmem:[%s16447_s2 + $0x340] sm:$0xff] }
 0x345   :  { %9072 = vmatprep.mubr.f32.mxu0 %v17202_v61  ;;  %9169 = vmatpush3.msra.mxu1 %v7258_v52  ;;  %v17206_v61 = vld [vmem:[#allocation126_spill] sm:$0xff] }
 0x346   :  { %8945 = vmatmul.mubr.f32.gmra.mxu1 %v17203_v25  ;;  %9170 = vmatprep.subr.mxu1 %v7257_v36  ;;  %17204 = vst [vmem:[#allocation199_spill] sm:$0xff] %v12398_v11  ;;  %v1706_v46 = vpop.f32.mrf.mxu1  ;;  %v17211_v25 = vld [vmem:[#allocation33_spill] sm:$0xff] }
 0x347   :  { %8947 = vmatprep.mubr.f32.mxu1 %v17205_v30  ;;  %9171 = vmatpush3.msra.mxu1 %v7257_v36  ;;  %v17209_v30 = vld [vmem:[#allocation30_spill] sm:$0xff] }
 0x348   :  { %v8610_v52 = vpop.f32.mrf.mxu0  ;;  %9073 = vmatmul.mubr.msk.f32.gmra.mxu0 %vm1234_vm2, %v17206_v61  ;;  %9172 = vmatprep.subr.mxu1 %v7256_v23  ;;  %v8485_v36 = vpop.f32.mrf.mxu1 }
 0x349   :  { %v12406_v31 = vadd.f32 %v8610_v52, %v8482_v24  ;;  %9075 = vmatprep.mubr.f32.mxu0 %v17208_v1  ;;  %9173 = vmatpush3.msra.mxu1 %v7256_v23  ;;  %v7253_v24 = vld [vmem:[%s16447_s2 + $0x338] sm:$0xff]  ;;  %v17212_v1 = vld [vmem:[#allocation128_spill] sm:$0xff] }
 0x34a   :  { %v2091_v32 = vpop.f32.mrf.mxu0  ;;  %8948 = vmatmul.mubr.f32.gmra.mxu1 %v17209_v30  ;;  %9174 = vmatprep.subr.mxu1 %v7255_v48  ;;  %v1716_v52 = vpop.f32.mrf.mxu1  ;;  %v17217_v30 = vld [vmem:[#allocation37_spill] sm:$0xff] }
 0x34b   :  { %17207 = vst [vmem:[#allocation200_spill] sm:$0xff] %v12406_v31  ;;  %v12413_v11 = vadd.f32 %v2091_v32, %v1706_v46  ;;  %8950 = vmatprep.mubr.f32.mxu1 %v17211_v25  ;;  %9175 = vmatpush3.msra.mxu1 %v7255_v48  ;;  %v17214_v31 = vld [vmem:[#allocation131_spill] sm:$0xff]  ;;  %v7252_v46 = vld [vmem:[%s16447_s2 + $0x330] sm:$0xff]  ;;  %v17215_v25 = vld [vmem:[#allocation34_spill] sm:$0xff] }
 0x34c   :  { %v8613_v23 = vpop.f32.mrf.mxu0  ;;  %9076 = vmatmul.mubr.msk.f32.gmra.mxu0 %vm1234_vm2, %v17212_v1  ;;  %9176 = vmatprep.subr.mxu1 %v7254_v4  ;;  %v8488_v48 = vpop.f32.mrf.mxu1 }
 0x34d   :  { %17210 = vst [vmem:[#allocation201_spill] sm:$0xff] %v12413_v11  ;;  %v12421_v61 = vadd.f32 %v8613_v23, %v8485_v36  ;;  %9078 = vmatprep.mubr.f32.mxu0 %v17214_v31  ;;  %9177 = vmatpush3.msra.mxu1 %v7254_v4  ;;  %v7251_v36 = vld [vmem:[%s16447_s2 + $0x328] sm:$0xff]  ;;  %v17218_v31 = vld [vmem:[#allocation130_spill] sm:$0xff] }
 0x34e   :  { %v2101_v32 = vpop.f32.mrf.mxu0  ;;  %8951 = vmatmul.mubr.f32.gmra.mxu1 %v17215_v25  ;;  %9178 = vmatprep.subr.mxu1 %v7253_v24  ;;  %v1726_v23 = vpop.f32.mrf.mxu1  ;;  %v17223_v25 = vld [vmem:[#allocation14_spill] sm:$0xff] }
 0x34f   :  { %17213 = vst [vmem:[#allocation202_spill] sm:$0xff] %v12421_v61  ;;  %v12428_v11 = vadd.f32 %v2101_v32, %v1716_v52  ;;  %8953 = vmatprep.mubr.f32.mxu1 %v17217_v30  ;;  %9179 = vmatpush3.msra.mxu1 %v7253_v24  ;;  %v17220_v61 = vld [vmem:[#allocation133_spill] sm:$0xff]  ;;  %v7250_v52 = vld [vmem:[%s16447_s2 + $0x320] sm:$0xff] }
 0x350   :  { %v8616_v4 = vpop.f32.mrf.mxu0  ;;  %9079 = vmatmul.mubr.msk.f32.gmra.mxu0 %vm1234_vm2, %v17218_v31  ;;  %9180 = vmatprep.subr.mxu1 %v7252_v46  ;;  %v8491_v24 = vpop.f32.mrf.mxu1  ;;  %v17221_v30 = vld [vmem:[#allocation38_spill] sm:$0xff] }
 0x351   :  { %17216 = vst [vmem:[#allocation203_spill] sm:$0xff] %v12428_v11  ;;  %v12436_v1 = vadd.f32 %v8616_v4, %v8488_v48  ;;  %9081 = vmatprep.mubr.f32.mxu0 %v17220_v61  ;;  %9181 = vmatpush3.msra.mxu1 %v7252_v46  ;;  %v7249_v48 = vld [vmem:[%s16447_s2 + $0x318] sm:$0xff]  ;;  %v17224_v61 = vld [vmem:[#allocation132_spill] sm:$0xff] }
 0x352   :  { %v2111_v32 = vpop.f32.mrf.mxu0  ;;  %8954 = vmatmul.mubr.f32.gmra.mxu1 %v17221_v30  ;;  %9182 = vmatprep.subr.mxu1 %v7251_v36  ;;  %v1736_v4 = vpop.f32.mrf.mxu1  ;;  %v17229_v30 = vld [vmem:[#allocation16_spill] sm:$0xff] }
 0x353   :  { %17219 = vst [vmem:[#allocation204_spill] sm:$0xff] %v12436_v1  ;;  %v12443_v11 = vadd.f32 %v2111_v32, %v1726_v23  ;;  %8956 = vmatprep.mubr.f32.mxu1 %v17223_v25  ;;  %9183 = vmatpush3.msra.mxu1 %v7251_v36  ;;  %v17226_v1 = vld [vmem:[#allocation135_spill] sm:$0xff]  ;;  %v7248_v23 = vld [vmem:[%s16447_s2 + $0x310] sm:$0xff] }
 0x354   :  { %v8619_v46 = vpop.f32.mrf.mxu0  ;;  %9082 = vmatmul.mubr.msk.f32.gmra.mxu0 %vm1234_vm2, %v17224_v61  ;;  %9184 = vmatprep.subr.mxu1 %v7250_v52  ;;  %v8494_v36 = vpop.f32.mrf.mxu1  ;;  %v17227_v25 = vld [vmem:[#allocation15_spill] sm:$0xff] }
 0x355   :  { %17222 = vst [vmem:[#allocation205_spill] sm:$0xff] %v12443_v11  ;;  %v12451_v31 = vadd.f32 %v8619_v46, %v8491_v24  ;;  %9084 = vmatprep.mubr.f32.mxu0 %v17226_v1  ;;  %9185 = vmatpush3.msra.mxu1 %v7250_v52  ;;  %v7336_v24 = vld [vmem:[%s16447_s2 + $0x3f0] sm:$0xff]  ;;  %v17230_v1 = vld [vmem:[#allocation134_spill] sm:$0xff] }
 0x356   :  { %v2121_v32 = vpop.f32.mrf.mxu0  ;;  %8957 = vmatmul.mubr.f32.gmra.mxu1 %v17227_v25  ;;  %9186 = vmatprep.subr.mxu1 %v7249_v48  ;;  %v1746_v46 = vpop.f32.mrf.mxu1  ;;  %v17234_v25 = vld [vmem:[#allocation18_spill] sm:$0xff] }
 0x357   :  { %17225 = vst [vmem:[#allocation206_spill] sm:$0xff] %v12451_v31  ;;  %v12458_v11 = vadd.f32 %v2121_v32, %v1736_v4  ;;  %8959 = vmatprep.mubr.f32.mxu1 %v17229_v30  ;;  %9187 = vmatpush3.msra.mxu1 %v7249_v48  ;;  %v17231_v31 = vld [vmem:[#allocation137_spill] sm:$0xff]  ;;  %v7335_v48 = vld [vmem:[%s16447_s2 + $0x3e8] sm:$0xff] }
 0x358   :  { %v8622_v52 = vpop.f32.mrf.mxu0  ;;  %9085 = vmatmul.mubr.msk.f32.gmra.mxu0 %vm1234_vm2, %v17230_v1  ;;  %9188 = vmatprep.subr.mxu1 %v7248_v23  ;;  %v8497_v4 = vpop.f32.mrf.mxu1  ;;  %v17232_v30 = vld [vmem:[#allocation17_spill] sm:$0xff] }
 0x359   :  { %17228 = vst [vmem:[#allocation207_spill] sm:$0xff] %v12458_v11  ;;  %v12466_v61 = vadd.f32 %v8622_v52, %v8494_v36  ;;  %9087 = vmatprep.mubr.f32.mxu0 %v17231_v31  ;;  %9291 = vmatpush3.msra.mxu0 %v12227_v28  ;;  %v7334_v36 = vld [vmem:[%s16447_s2 + $0x3e0] sm:$0xff]  ;;  %v17235_v31 = vld [vmem:[#allocation136_spill] sm:$0xff] }
 0x35a   :  { %v2131_v32 = vpop.f32.mrf.mxu0  ;;  %8960 = vmatmul.mubr.f32.gmra.mxu1 %v17232_v30  ;;  %9292 = vmatprep.subr.mxu0 %v7336_v24  ;;  %v1756_v52 = vpop.f32.mrf.mxu1  ;;  %v17238_v30 = vld [vmem:[#allocation20_spill] sm:$0xff] }
 0x35b   :  { %v12474_v11 = vadd.f32 %v2131_v32, %v1746_v46  ;;  %8962 = vmatprep.mubr.f32.mxu1 %v17234_v25  ;;  %9293 = vmatpush3.msra.mxu0 %v7336_v24  ;;  %v7247_v46 = vld [vmem:[%s16447_s2 + $0x308] sm:$0xff] }
 0x35c   :  { %v8625_v28 = vpop.f32.mrf.mxu0  ;;  %9088 = vmatmul.mubr.msk.f32.gmra.mxu0 %vm1234_vm2, %v17235_v31  ;;  %9294 = vmatprep.subr.mxu0 %v7335_v48  ;;  %v8500_v24 = vpop.f32.mrf.mxu1  ;;  %v17236_v25 = vld [vmem:[#allocation19_spill] sm:$0xff]  ;;  %v17239_v31 = vld [vmem:[#allocation21_spill] sm:$0xff] }
 0x35d   :  { %17233 = vst [vmem:[#allocation208_spill] sm:$0xff] %v12474_v11  ;;  %v12482_v1 = vadd.f32 %v8625_v28, %v8497_v4  ;;  %9090 = vmatprep.mubr.f32.mxu0 %v11889_v18  ;;  %9295 = vmatpush3.msra.mxu0 %v7335_v48  ;;  %v7333_v4 = vld [vmem:[%s16447_s2 + $0x3d8] sm:$0xff] }
 0x35e   :  { %v2141_v32 = vpop.f32.mrf.mxu0  ;;  %8963 = vmatmul.mubr.f32.gmra.mxu1 %v17236_v25  ;;  %9296 = vmatprep.subr.mxu0 %v7334_v36  ;;  %v1766_v28 = vpop.f32.mrf.mxu1 }
 0x35f   :  { %v12489_v11 = vadd.f32 %v2141_v32, %v1756_v52  ;;  %8965 = vmatprep.mubr.f32.mxu1 %v17238_v30  ;;  %9189 = vmatpush3.msra.mxu1 %v7248_v23  ;;  %v7332_v52 = vld [vmem:[%s16447_s2 + $0x3d0] sm:$0xff] }
 0x360   :  { %v8628_v48 = vpop.f32.mrf.mxu0  ;;  %9091 = vmatmul.mubr.msk.f32.gmra.mxu0 %vm1234_vm2, %v11872_v37  ;;  %9190 = vmatprep.subr.mxu1 %v7247_v46  ;;  %v8503_v23 = vpop.f32.mrf.mxu1  ;;  %v17242_v37 = vld [vmem:[#allocation23_spill] sm:$0xff] }
 0x361   :  { %17237 = vst [vmem:[#allocation19_spill] sm:$0xff] %v12489_v11  ;;  %v12497_v18 = vadd.f32 %v8628_v48, %v8500_v24  ;;  %9093 = vmatprep.mubr.f32.mxu0 %v11910_v22  ;;  %9297 = vmatpush3.msra.mxu0 %v7334_v36  ;;  %v17241_v11 = vld [vmem:[#allocation22_spill] sm:$0xff]  ;;  %v7331_v24 = vld [vmem:[%s16447_s2 + $0x3c8] sm:$0xff] }
 0x362   :  { %v2151_v32 = vpop.f32.mrf.mxu0  ;;  %8966 = vmatmul.mubr.f32.gmra.mxu1 %v17239_v31  ;;  %9298 = vmatprep.subr.mxu0 %v7333_v4  ;;  %v1776_v48 = vpop.f32.mrf.mxu1 }
 0x363   :  { %v12504_v30 = vadd.f32 %v2151_v32, %v1766_v28  ;;  %8968 = vmatprep.mubr.f32.mxu1 %v17241_v11  ;;  %9299 = vmatpush3.msra.mxu0 %v7333_v4  ;;  %v7330_v4 = vld [vmem:[%s16447_s2 + $0x3c0] sm:$0xff] }
 0x364   :  { %v8631_v36 = vpop.f32.mrf.mxu0  ;;  %9094 = vmatmul.mubr.msk.f32.gmra.mxu0 %vm1234_vm2, %v11893_v29  ;;  %9300 = vmatprep.subr.mxu0 %v7332_v52  ;;  %v8506_v28 = vpop.f32.mrf.mxu1 }
 0x365   :  { %17240 = vst [vmem:[#allocation21_spill] sm:$0xff] %v12504_v30  ;;  %v12512_v22 = vadd.f32 %v8631_v36, %v8503_v23  ;;  %9096 = vmatprep.mubr.f32.mxu0 %v11928_v21  ;;  %9301 = vmatpush3.msra.mxu0 %v7332_v52  ;;  %v17243_v30 = vld [vmem:[#allocation24_spill] sm:$0xff]  ;;  %v7329_v52 = vld [vmem:[%s16447_s2 + $0x3b8] sm:$0xff] }
 0x366   :  { %v2161_v32 = vpop.f32.mrf.mxu0  ;;  %8969 = vmatmul.mubr.f32.gmra.mxu1 %v17242_v37  ;;  %9302 = vmatprep.subr.mxu0 %v7331_v24  ;;  %v1786_v29 = vpop.f32.mrf.mxu1  ;;  %v17245_v21 = vld [vmem:[#allocation25_spill] sm:$0xff] }
 0x367   :  { %v12519_v11 = vadd.f32 %v2161_v32, %v1776_v48  ;;  %8971 = vmatprep.mubr.f32.mxu1 %v17243_v30  ;;  %9303 = vmatpush3.msra.mxu0 %v7331_v24  ;;  %v7246_v48 = vld [vmem:[%s16447_s2 + $0x300] sm:$0xff]  ;;  %v17248_v30 = vld [vmem:[#allocation147_spill] sm:$0xff] }
 0x368   :  { %v8634_v23 = vpop.f32.mrf.mxu0  ;;  %9097 = vmatmul.mubr.msk.f32.gmra.mxu0 %vm1234_vm2, %v11914_v58  ;;  %9191 = vmatpush3.msra.mxu1 %v7247_v46  ;;  %v8509_v24 = vpop.f32.mrf.mxu1  ;;  %v7328_v46 = vld [vmem:[%s16447_s2 + $0x3b0] sm:$0xff] }
 0x369   :  { %v12527_v36 = vadd.f32 %v8634_v23, %v8506_v28  ;;  %9099 = vmatprep.mubr.f32.mxu0 %v11952_v43  ;;  %9304 = vmatprep.subr.mxu0 %v7330_v4  ;;  %v17247_v43 = vld [vmem:[#allocation144_spill] sm:$0xff] }
 0x36a   :  { %v2171_v32 = vpop.f32.mrf.mxu0  ;;  %8972 = vmatmul.mubr.f32.gmra.mxu1 %v17245_v21  ;;  %9305 = vmatpush3.msra.mxu0 %v7330_v4  ;;  %v1796_v28 = vpop.f32.mrf.mxu1  ;;  %v17251_v21 = vld [vmem:[#allocation55_spill] sm:$0xff] }
 0x36b   :  { %17244 = vst [vmem:[#allocation23_spill] sm:$0xff] %v12527_v36  ;;  %v12534_v58 = vadd.f32 %v2171_v32, %v1786_v29  ;;  %8974 = vmatprep.mubr.f32.mxu1 %v17100_v6  ;;  %9306 = vmatprep.subr.mxu0 %v7329_v52  ;;  %v7327_v29 = vld [vmem:[%s16447_s2 + $0x3a8] sm:$0xff] }
 0x36c   :  { %v8637_v23 = vpop.f32.mrf.mxu0  ;;  %9100 = vmatmul.mubr.msk.f32.gmra.mxu0 %vm1234_vm2, %v17247_v43  ;;  %9192 = vmatprep.subr.mxu1 %v7246_v48  ;;  %v8512_v4 = vpop.f32.mrf.mxu1  ;;  %v17249_v6 = vld [vmem:[#allocation27_spill] sm:$0xff] }
 0x36d   :  { %17246 = vst [vmem:[#allocation209_spill] sm:$0xff] %v12534_v58  ;;  %v12542_v36 = vadd.f32 %v8637_v23, %v8509_v24  ;;  %9102 = vmatprep.mubr.f32.mxu0 %v17248_v30  ;;  %9307 = vmatpush3.msra.mxu0 %v7329_v52  ;;  %v7326_v24 = vld [vmem:[%s16447_s2 + $0x3a0] sm:$0xff] }
 0x36e   :  { %v2181_v32 = vpop.f32.mrf.mxu0  ;;  %8975 = vmatmul.mubr.f32.gmra.mxu1 %v17249_v6  ;;  %9308 = vmatprep.subr.mxu0 %v7328_v46  ;;  %v1806_v23 = vpop.f32.mrf.mxu1  ;;  %v17252_v30 = vld [vmem:[#allocation146_spill] sm:$0xff] }
 0x36f   :  { %v12549_v58 = vadd.f32 %v2181_v32, %v1796_v28  ;;  %8977 = vmatprep.mubr.f32.mxu1 %v17251_v21  ;;  %9309 = vmatpush3.msra.mxu0 %v7328_v46  ;;  %v12563_v28 = vld [vmem:[%s16447_s2 + $0x478] sm:$0xff]  ;;  %v17253_v21 = vld [vmem:[#allocation56_spill] sm:$0xff] }
 0x370   :  { %v8640_v52 = vpop.f32.mrf.mxu0  ;;  %9103 = vmatmul.mubr.msk.f32.gmra.mxu0 %vm1234_vm2, %v17252_v30  ;;  %9310 = vmatprep.subr.mxu0 %v7327_v29  ;;  %v8515_v46 = vpop.f32.mrf.mxu1  ;;  %v12576_v30 = vrot.slane %v12006_v45, 1 }
 0x371   :  { %17250 = vst [vmem:[#allocation27_spill] sm:$0xff] %v12549_v58  ;;  %v12557_v43 = vadd.f32 %v8640_v52, %v8512_v4  ;;  %9105 = vmatprep.mubr.f32.mxu0 %v11996_v7  ;;  %9311 = vmatpush3.msra.mxu0 %v7327_v29  ;;  %v7325_v4 = vld [vmem:[%s16447_s2 + $0x398] sm:$0xff]  ;;  %v1280_v7 = vrot.slane %v12003_v8, 1 }
 0x372   :  { %v2191_v32 = vpop.f32.mrf.mxu0  ;;  %8978 = vmatmul.mubr.f32.gmra.mxu1 %v17253_v21  ;;  %9312 = vmatprep.subr.mxu0 %v7326_v24  ;;  %v1816_v29 = vpop.f32.mrf.mxu1  ;;  %17255 = vst [vmem:[#allocation211_spill] sm:$0xff] %v12576_v30  ;;  %v17271_v21 = vld [vmem:[#allocation68_spill] sm:$0xff] }
 0x373   :  { %v12566_v58 = vadd.f32 %v2191_v32, %v1806_v23  ;;  %8980 = vmatprep.mubr.f32.mxu1 %v17106_v16  ;;  %9193 = vmatpush3.msra.mxu1 %v7246_v48  ;;  %v7324_v48 = vld [vmem:[%s16447_s2 + $0x390] sm:$0xff] }
 0x374   :  { %v8643_v52 = vpop.f32.mrf.mxu0  ;;  %9106 = vmatmul.mubr.msk.f32.gmra.mxu0 %vm1234_vm2, %v11977_v55  ;;  %9418 = vmatprep.subr.mxu1 %v12563_v28  ;;  %v8518_v32 = vpop.f32.mrf.mxu1 }
 0x375   :  { %17254 = vst [vmem:[#allocation210_spill] sm:$0xff] %v12566_v58  ;;  %v12579_v23 = vadd.f32 %v8643_v52, %v8515_v46  ;;  %9108 = vmatprep.mubr.f32.mxu0 %v12024_v0  ;;  %9313 = vmatpush3.msra.mxu0 %v7326_v24  ;;  %v17257_v58 = vld [vmem:[#allocation59_spill] sm:$0xff]  ;;  %v12596_v0 = vsel %vm1234_vm2, %v1280_v7, %v12576_v30 }
 0x376   :  { %v2201_v16 = vpop.f32.mrf.mxu0  ;;  %8981 = vmatmul.mubr.f32.gmra.mxu1 %v17257_v58  ;;  %9314 = vmatprep.subr.mxu0 %v7325_v4  ;;  %v7323_v46 = vld [vmem:[%s16447_s2 + $0x388] sm:$0xff]  ;;  %v1826_v52 = vpop.f32.mrf.mxu1  ;;  %17259 = vst [vmem:[#allocation214_spill] sm:$0xff] %v12596_v0 }
 0x377   :  { %17256 = vst [vmem:[#allocation212_spill] sm:$0xff] %v12579_v23  ;;  %v12586_v55 = vadd.f32 %v2201_v16, %v1816_v29  ;;  %8983 = vmatprep.mubr.f32.mxu1 %v12003_v8  ;;  %9315 = vmatpush3.msra.mxu0 %v7325_v4  ;;  %v7322_v16 = vld [vmem:[%s16447_s2 + $0x380] sm:$0xff] }
 0x378   :  { %v8646_v24 = vpop.f32.mrf.mxu0  ;;  %9109 = vmatmul.mubr.msk.f32.gmra.mxu0 %vm1234_vm2, %v12000_v51  ;;  %9316 = vmatprep.subr.mxu0 %v7324_v48  ;;  %v8521_v4 = vpop.f32.mrf.mxu1 }
 0x379   :  { %17258 = vst [vmem:[#allocation213_spill] sm:$0xff] %v12586_v55  ;;  %v12598_v58 = vadd.f32 %v8646_v24, %v8518_v32  ;;  %9111 = vmatprep.mubr.f32.mxu0 %v12596_v0  ;;  %9317 = vmatpush3.msra.mxu0 %v7324_v48  ;;  %v17263_v24 = vld [vmem:[#allocation155_spill] sm:$0xff] }
 0x37a   :  { %v2211_v29 = vpop.f32.mrf.mxu0  ;;  %8984 = vmatmul.mubr.f32.gmra.mxu1 %v12006_v45  ;;  %9318 = vmatprep.subr.mxu0 %v7323_v46  ;;  %v1836_v7 = vpop.f32.mrf.mxu1  ;;  %v17264_v45 = vld [vmem:[#allocation64_spill] sm:$0xff]  ;;  %v17268_v55 = vld [vmem:[#allocation67_spill] sm:$0xff] }
 0x37b   :  { %17260 = vst [vmem:[#allocation215_spill] sm:$0xff] %v12598_v58  ;;  %v12605_v51 = vadd.f32 %v2211_v29, %v1826_v52  ;;  %8986 = vmatprep.mubr.f32.mxu1 %v11397_v39  ;;  %9319 = vmatpush3.msra.mxu0 %v7323_v46  ;;  %v17265_v52 = vld [vmem:[#allocation157_spill] sm:$0xff]  ;;  %v17266_v29 = vld [vmem:[#allocation71_spill] sm:$0xff]  ;;  %v17267_v46 = vld [vmem:[#allocation66_spill] sm:$0xff] }
 0x37c   :  { %v8649_v32 = vpop.f32.mrf.mxu0  ;;  %9112 = vmatmul.mubr.msk.f32.gmra.mxu0 %vm1234_vm2, %v12576_v30  ;;  %9320 = vmatprep.subr.mxu0 %v7322_v16  ;;  %v8684_v58 = vpop.f32.mrf.mxu1 }
 0x37d   :  { %17261 = vst [vmem:[#allocation216_spill] sm:$0xff] %v12605_v51  ;;  %v12610_v48 = vadd.f32 %v8649_v32, %v8521_v4  ;;  %9114 = vmatprep.mubr.f32.mxu0 %v17263_v24  ;;  %9321 = vmatpush3.msra.mxu0 %v7322_v16  ;;  %v1912_v51 = vadd.f32 %v17266_v29, %v17265_v52  ;;  %v17269_v4 = vld [vmem:[#allocation153_spill] sm:$0xff]  ;;  %v17270_v24 = vld [vmem:[#allocation158_spill] sm:$0xff] }
 0x37e   :  { %v2221_v0 = vpop.f32.mrf.mxu0  ;;  %8987 = vmatmul.mubr.f32.gmra.mxu1 %v17264_v45  ;;  %v2633_v8 = vadd.f32 %v8684_v58, %v17267_v46  ;;  %v2313_v30 = vpop.f32.mrf.mxu1  ;;  %v17274_v58 = vld [vmem:[#allocation69_spill] sm:$0xff] }
 0x37f   :  { %17262 = vst [vmem:[#allocation217_spill] sm:$0xff] %v12610_v48  ;;  %v12616_v39 = vadd.f32 %v2221_v0, %v1836_v7  ;;  %8989 = vmatprep.mubr.f32.mxu1 %v17268_v55  ;;  %v2632_v32 = vadd.f32 %v2313_v30, %v1912_v51  ;;  %v17272_v0 = vld [vmem:[#allocation160_spill] sm:$0xff] }
 0x380   :  { %v8812_v23 = vpop.f32.mrf.mxu0  ;;  %9115 = vmatmul.mubr.msk.f32.gmra.mxu0 %vm1234_vm2, %v17269_v4  ;;  %v8687_v45 = vpop.f32.mrf.mxu1  ;;  %v17275_v55 = vld [vmem:[#allocation156_spill] sm:$0xff]  ;;  %v17276_v4 = vld [vmem:[#allocation70_spill] sm:$0xff] }
 0x381   :  { %v12622_v16 = vadd.f32 %v8812_v23, %v2633_v8  ;;  %9117 = vmatprep.mubr.f32.mxu0 %v17270_v24  ;;  %v2635_v7 = vadd.f32 %v8687_v45, %v17272_v0  ;;  %v17277_v45 = vld [vmem:[#allocation163_spill] sm:$0xff]  ;;  %v17279_v0 = vld [vmem:[#allocation73_spill] sm:$0xff] }
 0x382   :  { %v2779_v48 = vpop.f32.mrf.mxu0  ;;  %8990 = vmatmul.mubr.f32.gmra.mxu1 %v17271_v21  ;;  %v2323_v29 = vpop.f32.mrf.mxu1 }
 0x383   :  { %v12627_v52 = vadd.f32 %v2779_v48, %v2632_v32  ;;  %8992 = vmatprep.mubr.f32.mxu1 %v17274_v58  ;;  %v2634_v51 = vadd.f32 %v2323_v29, %v12101_v26 }
 0x384   :  { %v8815_v46 = vpop.f32.mrf.mxu0  ;;  %9118 = vmatmul.mubr.msk.f32.gmra.mxu0 %vm1234_vm2, %v17275_v55  ;;  %v8690_v30 = vpop.f32.mrf.mxu1 }
 0x385   :  { %17273 = vst [vmem:[#allocation155_spill] sm:$0xff] %v12627_v52  ;;  %v12633_v8 = vadd.f32 %v8815_v46, %v2635_v7  ;;  %9120 = vmatprep.mubr.f32.mxu0 %v12095_v63  ;;  %v2637_v48 = vadd.f32 %v8690_v30, %v17277_v45  ;;  %v17280_v52 = vld [vmem:[#allocation159_spill] sm:$0xff]  ;;  %v17281_v63 = vld [vmem:[#allocation74_spill] sm:$0xff]  ;;  %v17284_v45 = vld [vmem:[#allocation77_spill] sm:$0xff] }
 0x386   :  { %v2789_v23 = vpop.f32.mrf.mxu0  ;;  %8993 = vmatmul.mubr.f32.gmra.mxu1 %v17276_v4  ;;  %v2333_v24 = vpop.f32.mrf.mxu1  ;;  %v17282_v30 = vld [vmem:[#allocation166_spill] sm:$0xff] }
 0x387   :  { %v12638_v32 = vadd.f32 %v2789_v23, %v2634_v51  ;;  %8995 = vmatprep.mubr.f32.mxu1 %v17279_v0  ;;  %v2636_v26 = vadd.f32 %v2333_v24, %v12120_v15 }
 0x388   :  { %v8818_v58 = vpop.f32.mrf.mxu0  ;;  %9121 = vmatmul.mubr.msk.f32.gmra.mxu0 %vm1234_vm2, %v17280_v52  ;;  %v8693_v29 = vpop.f32.mrf.mxu1 }
 0x389   :  { %17278 = vst [vmem:[#allocation64_spill] sm:$0xff] %v12638_v32  ;;  %v12644_v7 = vadd.f32 %v8818_v58, %v2637_v48  ;;  %9123 = vmatprep.mubr.f32.mxu0 %v12114_v50  ;;  %v2639_v51 = vadd.f32 %v8693_v29, %v17282_v30  ;;  %v17285_v32 = vld [vmem:[#allocation162_spill] sm:$0xff]  ;;  %v17287_v29 = vld [vmem:[#allocation169_spill] sm:$0xff] }
 0x38a   :  { %v2799_v46 = vpop.f32.mrf.mxu0  ;;  %8996 = vmatmul.mubr.f32.gmra.mxu1 %v17281_v63  ;;  %v2343_v55 = vpop.f32.mrf.mxu1  ;;  %v17286_v50 = vld [vmem:[#allocation78_spill] sm:$0xff]  ;;  %v17289_v30 = vld [vmem:[#allocation81_spill] sm:$0xff] }
 0x38b   :  { %v12649_v23 = vadd.f32 %v2799_v46, %v2636_v26  ;;  %8998 = vmatprep.mubr.f32.mxu1 %v17284_v45  ;;  %v2638_v15 = vadd.f32 %v2343_v55, %v12139_v17 }
 0x38c   :  { %v8821_v0 = vpop.f32.mrf.mxu0  ;;  %9124 = vmatmul.mubr.msk.f32.gmra.mxu0 %vm1234_vm2, %v17285_v32  ;;  %v8696_v58 = vpop.f32.mrf.mxu1  ;;  %v17292_v32 = vld [vmem:[#allocation82_spill] sm:$0xff] }
 0x38d   :  { %17283 = vst [vmem:[#allocation157_spill] sm:$0xff] %v12649_v23  ;;  %v12655_v24 = vadd.f32 %v8821_v0, %v2639_v51  ;;  %9126 = vmatprep.mubr.f32.mxu0 %v12133_v53  ;;  %v2641_v26 = vadd.f32 %v8696_v58, %v17287_v29  ;;  %v17290_v23 = vld [vmem:[#allocation165_spill] sm:$0xff]  ;;  %v17291_v0 = vld [vmem:[#allocation170_spill] sm:$0xff]  ;;  %v17293_v58 = vld [vmem:[#allocation172_spill] sm:$0xff] }
 0x38e   :  { %v2809_v48 = vpop.f32.mrf.mxu0  ;;  %8999 = vmatmul.mubr.f32.gmra.mxu1 %v17286_v50  ;;  %v2353_v52 = vpop.f32.mrf.mxu1  ;;  %v17295_v29 = vld [vmem:[#allocation85_spill] sm:$0xff]  ;;  %v17296_v50 = vld [vmem:[#allocation168_spill] sm:$0xff] }
 0x38f   :  { %v12660_v46 = vadd.f32 %v2809_v48, %v2638_v15  ;;  %9001 = vmatprep.mubr.f32.mxu1 %v17289_v30  ;;  %v2640_v55 = vadd.f32 %v2353_v52, %v12158_v12 }
 0x390   :  { %v8824_v45 = vpop.f32.mrf.mxu0  ;;  %9127 = vmatmul.mubr.msk.f32.gmra.mxu0 %vm1234_vm2, %v17290_v23  ;;  %v8699_v51 = vpop.f32.mrf.mxu1 }
 0x391   :  { %17288 = vst [vmem:[#allocation71_spill] sm:$0xff] %v12660_v46  ;;  %v12666_v17 = vadd.f32 %v8824_v45, %v2641_v26  ;;  %9129 = vmatprep.mubr.f32.mxu0 %v17291_v0  ;;  %v2643_v15 = vadd.f32 %v8699_v51, %v17293_v58  ;;  %v17297_v0 = vld [vmem:[#allocation86_spill] sm:$0xff]  ;;  %v17298_v51 = vld [vmem:[#allocation175_spill] sm:$0xff]  ;;  %v17299_v58 = vld [vmem:[#allocation89_spill] sm:$0xff] }
 0x392   :  { %v2819_v53 = vpop.f32.mrf.mxu0  ;;  %9002 = vmatmul.mubr.f32.gmra.mxu1 %v17292_v32  ;;  %v2363_v30 = vpop.f32.mrf.mxu1 }
 0x393   :  { %v12671_v48 = vadd.f32 %v2819_v53, %v2640_v55  ;;  %9004 = vmatprep.mubr.f32.mxu1 %v17295_v29  ;;  %v2642_v12 = vadd.f32 %v2363_v30, %v12177_v34 }
 0x394   :  { %v8827_v46 = vpop.f32.mrf.mxu0  ;;  %9130 = vmatmul.mubr.msk.f32.gmra.mxu0 %vm1234_vm2, %v17296_v50  ;;  %v8702_v45 = vpop.f32.mrf.mxu1 }
 0x395   :  { %17294 = vst [vmem:[#allocation66_spill] sm:$0xff] %v12671_v48  ;;  %v12677_v52 = vadd.f32 %v8827_v46, %v2643_v15  ;;  %9132 = vmatprep.mubr.f32.mxu0 %v12171_v54  ;;  %v2645_v53 = vadd.f32 %v8702_v45, %v17298_v51  ;;  %v17300_v48 = vld [vmem:[#allocation171_spill] sm:$0xff]  ;;  %v17301_v54 = vld [vmem:[#allocation90_spill] sm:$0xff]  ;;  %v17304_v51 = vld [vmem:[#allocation93_spill] sm:$0xff] }
 0x396   :  { %v2829_v26 = vpop.f32.mrf.mxu0  ;;  %9005 = vmatmul.mubr.f32.gmra.mxu1 %v17297_v0  ;;  %v2373_v23 = vpop.f32.mrf.mxu1  ;;  %v17302_v45 = vld [vmem:[#allocation178_spill] sm:$0xff] }
 0x397   :  { %v12682_v55 = vadd.f32 %v2829_v26, %v2642_v12  ;;  %9007 = vmatprep.mubr.f32.mxu1 %v17299_v58  ;;  %v2644_v34 = vadd.f32 %v2373_v23, %v12196_v42 }
 0x398   :  { %v8830_v29 = vpop.f32.mrf.mxu0  ;;  %9133 = vmatmul.mubr.msk.f32.gmra.mxu0 %vm1234_vm2, %v17300_v48  ;;  %v8705_v30 = vpop.f32.mrf.mxu1  ;;  %v17306_v48 = vld [vmem:[#allocation94_spill] sm:$0xff] }
 0x399   :  { %v12688_v46 = vadd.f32 %v8830_v29, %v2645_v53  ;;  %9135 = vmatprep.mubr.f32.mxu0 %v12190_v5  ;;  %v2647_v12 = vadd.f32 %v8705_v30, %v17302_v45  ;;  %v17305_v29 = vld [vmem:[#allocation179_spill] sm:$0xff]  ;;  %v17307_v30 = vld [vmem:[#allocation181_spill] sm:$0xff] }
 0x39a   :  { %v2839_v15 = vpop.f32.mrf.mxu0  ;;  %9008 = vmatmul.mubr.f32.gmra.mxu1 %v17301_v54  ;;  %v2383_v50 = vpop.f32.mrf.mxu1  ;;  %v17309_v45 = vld [vmem:[#allocation97_spill] sm:$0xff] }
 0x39b   :  { %v12693_v26 = vadd.f32 %v2839_v15, %v2644_v34  ;;  %9010 = vmatprep.mubr.f32.mxu1 %v17304_v51  ;;  %v2646_v42 = vadd.f32 %v2383_v50, %v12215_v49  ;;  %v17310_v54 = vld [vmem:[#allocation177_spill] sm:$0xff] }
 0x39c   :  { %v8833_v58 = vpop.f32.mrf.mxu0  ;;  %9136 = vmatmul.mubr.msk.f32.gmra.mxu0 %vm1234_vm2, %v12175_v57  ;;  %v8708_v53 = vpop.f32.mrf.mxu1  ;;  %v17312_v57 = vld [vmem:[#allocation98_spill] sm:$0xff] }
 0x39d   :  { %17303 = vst [vmem:[#allocation153_spill] sm:$0xff] %v12693_v26  ;;  %v12699_v23 = vadd.f32 %v8833_v58, %v2647_v12  ;;  %9138 = vmatprep.mubr.f32.mxu0 %v17305_v29  ;;  %v2649_v34 = vadd.f32 %v8708_v53, %v17307_v30  ;;  %v17311_v58 = vld [vmem:[#allocation182_spill] sm:$0xff]  ;;  %v17313_v53 = vld [vmem:[#allocation184_spill] sm:$0xff]  ;;  %v17315_v30 = vld [vmem:[#allocation101_spill] sm:$0xff] }
 0x39e   :  { %v2849_v5 = vpop.f32.mrf.mxu0  ;;  %9011 = vmatmul.mubr.f32.gmra.mxu1 %v17306_v48  ;;  %v2393_v51 = vpop.f32.mrf.mxu1  ;;  %v17316_v48 = vld [vmem:[#allocation180_spill] sm:$0xff] }
 0x39f   :  { %v12704_v15 = vadd.f32 %v2849_v5, %v2646_v42  ;;  %9013 = vmatprep.mubr.f32.mxu1 %v17309_v45  ;;  %v2648_v50 = vadd.f32 %v2393_v51, %v12240_v19 }
 0x3a0   :  { %v8836_v26 = vpop.f32.mrf.mxu0  ;;  %9139 = vmatmul.mubr.msk.f32.gmra.mxu0 %vm1234_vm2, %v17310_v54  ;;  %v8711_v12 = vpop.f32.mrf.mxu1 }
 0x3a1   :  { %17308 = vst [vmem:[#allocation68_spill] sm:$0xff] %v12704_v15  ;;  %v12710_v49 = vadd.f32 %v8836_v26, %v2649_v34  ;;  %9141 = vmatprep.mubr.f32.mxu0 %v17311_v58  ;;  %v2651_v5 = vadd.f32 %v8711_v12, %v17313_v53  ;;  %v17317_v58 = vld [vmem:[#allocation102_spill] sm:$0xff]  ;;  %v17318_v12 = vld [vmem:[#allocation187_spill] sm:$0xff]  ;;  %v17320_v53 = vld [vmem:[#allocation105_spill] sm:$0xff] }
 0x3a2   :  { %v2859_v29 = vpop.f32.mrf.mxu0  ;;  %9014 = vmatmul.mubr.f32.gmra.mxu1 %v17312_v57  ;;  %v2403_v45 = vpop.f32.mrf.mxu1 }
 0x3a3   :  { %v12715_v42 = vadd.f32 %v2859_v29, %v2648_v50  ;;  %9016 = vmatprep.mubr.f32.mxu1 %v17315_v30  ;;  %v2650_v19 = vadd.f32 %v2403_v45, %v12259_v33 }
 0x3a4   :  { %v8839_v15 = vpop.f32.mrf.mxu0  ;;  %9142 = vmatmul.mubr.msk.f32.gmra.mxu0 %vm1234_vm2, %v17316_v48  ;;  %v8714_v51 = vpop.f32.mrf.mxu1 }
 0x3a5   :  { %17314 = vst [vmem:[#allocation160_spill] sm:$0xff] %v12715_v42  ;;  %v12721_v26 = vadd.f32 %v8839_v15, %v2651_v5  ;;  %9144 = vmatprep.mubr.f32.mxu0 %v12253_v10  ;;  %v2653_v29 = vadd.f32 %v8714_v51, %v17318_v12  ;;  %v17321_v42 = vld [vmem:[#allocation183_spill] sm:$0xff]  ;;  %v17322_v10 = vld [vmem:[#allocation106_spill] sm:$0xff]  ;;  %v17325_v12 = vld [vmem:[#allocation109_spill] sm:$0xff] }
 0x3a6   :  { %v2869_v34 = vpop.f32.mrf.mxu0  ;;  %9017 = vmatmul.mubr.f32.gmra.mxu1 %v17317_v58  ;;  %v2413_v54 = vpop.f32.mrf.mxu1  ;;  %v17323_v51 = vld [vmem:[#allocation190_spill] sm:$0xff] }
 0x3a7   :  { %v12726_v50 = vadd.f32 %v2869_v34, %v2650_v19  ;;  %9019 = vmatprep.mubr.f32.mxu1 %v17320_v53  ;;  %v2652_v33 = vadd.f32 %v2413_v54, %v12278_v27 }
 0x3a8   :  { %v8842_v30 = vpop.f32.mrf.mxu0  ;;  %9145 = vmatmul.mubr.msk.f32.gmra.mxu0 %vm1234_vm2, %v17321_v42 }
 0x3a9   :  { %17319 = vst [vmem:[#allocation70_spill] sm:$0xff] %v12726_v50  ;;  %v12732_v15 = vadd.f32 %v8842_v30, %v2653_v29  ;;  %9147 = vmatprep.mubr.f32.mxu0 %v12272_v40  ;;  %v8717_v45 = vpop.f32.mrf.mxu1  ;;  %v17326_v50 = vld [vmem:[#allocation186_spill] sm:$0xff] }
 0x3aa   :  { %v2879_v5 = vpop.f32.mrf.mxu0  ;;  %9020 = vmatmul.mubr.f32.gmra.mxu1 %v17322_v10  ;;  %v2655_v19 = vadd.f32 %v8717_v45, %v17323_v51  ;;  %v17327_v40 = vld [vmem:[#allocation110_spill] sm:$0xff]  ;;  %v17328_v45 = vld [vmem:[#allocation193_spill] sm:$0xff] }
 0x3ab   :  { %v12737_v34 = vadd.f32 %v2879_v5, %v2652_v33  ;;  %9022 = vmatprep.mubr.f32.mxu1 %v17325_v12  ;;  %v2423_v48 = vpop.f32.mrf.mxu1  ;;  %v17329_v51 = vld [vmem:[#allocation113_spill] sm:$0xff] }
 0x3ac   :  { %v8845_v53 = vpop.f32.mrf.mxu0  ;;  %9148 = vmatmul.mubr.msk.f32.gmra.mxu0 %vm1234_vm2, %v17326_v50  ;;  %v2654_v54 = vadd.f32 %v2423_v48, %v12297_v44 }
 0x3ad   :  { %17324 = vst [vmem:[#allocation163_spill] sm:$0xff] %v12737_v34  ;;  %v12743_v27 = vadd.f32 %v8845_v53, %v2655_v19  ;;  %9150 = vmatprep.mubr.f32.mxu0 %v12291_v9  ;;  %v17330_v34 = vld [vmem:[#allocation189_spill] sm:$0xff]  ;;  %v17331_v9 = vld [vmem:[#allocation114_spill] sm:$0xff] }
 0x3ae   :  { %v8720_v30 = vpop.f32.mrf.mxu1  ;;  %v2889_v29 = vpop.f32.mrf.mxu0  ;;  %9023 = vmatmul.mubr.f32.gmra.mxu1 %v17327_v40 }
 0x3af   :  { %v2657_v33 = vadd.f32 %v8720_v30, %v17328_v45  ;;  %v12748_v5 = vadd.f32 %v2889_v29, %v2654_v54  ;;  %9025 = vmatprep.mubr.f32.mxu1 %v17329_v51  ;;  %v17333_v29 = vld [vmem:[#allocation117_spill] sm:$0xff] }
 0x3b0   :  { %v2433_v42 = vpop.f32.mrf.mxu1  ;;  %v8848_v12 = vpop.f32.mrf.mxu0  ;;  %9151 = vmatmul.mubr.msk.f32.gmra.mxu0 %vm1234_vm2, %v17330_v34  ;;  %v17336_v34 = vld [vmem:[#allocation6_spill] sm:$0xff] }
 0x3b1   :  { %v2656_v44 = vadd.f32 %v2433_v42, %v12322_v38  ;;  %v12754_v48 = vadd.f32 %v8848_v12, %v2657_v33  ;;  %9153 = vmatprep.mubr.f32.mxu0 %v12310_v41  ;;  %v1328_v38 = vrot.slane %v12317_v35, 1  ;;  %v12766_v42 = vrot.slane %v12320_v62, 1  ;;  %v17335_v12 = vld [vmem:[#allocation196_spill] sm:$0xff] }
 0x3b2   :  { %v8723_v53 = vpop.f32.mrf.mxu1  ;;  %v2899_v19 = vpop.f32.mrf.mxu0  ;;  %9026 = vmatmul.mubr.f32.gmra.mxu1 %v17331_v9 }
 0x3b3   :  { %v2659_v54 = vadd.f32 %v8723_v53, %v12326_v2  ;;  %v12759_v30 = vadd.f32 %v2899_v19, %v2656_v44  ;;  %9028 = vmatprep.mubr.f32.mxu1 %v17333_v29  ;;  %17334 = vst [vmem:[#allocation166_spill] sm:$0xff] %v12766_v42  ;;  %v17337_v53 = vld [vmem:[#allocation118_spill] sm:$0xff] }
 0x3b4   :  { %v2443_v45 = vpop.f32.mrf.mxu1  ;;  %v8851_v50 = vpop.f32.mrf.mxu0  ;;  %9154 = vmatmul.mubr.msk.f32.gmra.mxu0 %vm1234_vm2, %v12295_v60 }
 0x3b5   :  { %17332 = vst [vmem:[#allocation74_spill] sm:$0xff] %v12759_v30  ;;  %v2658_v33 = vadd.f32 %v2443_v45, %v17335_v12  ;;  %v12769_v41 = vadd.f32 %v8851_v50, %v2659_v54  ;;  %9156 = vmatprep.mubr.f32.mxu0 %v17336_v34  ;;  %v12781_v50 = vsel %vm1234_vm2, %v1328_v38, %v12766_v42  ;;  %v17339_v54 = vld [vmem:[#allocation198_spill] sm:$0xff]  ;;  %v17340_v34 = vld [vmem:[#allocation12_spill] sm:$0xff] }
 0x3b6   :  { %v8726_v2 = vpop.f32.mrf.mxu1  ;;  %v2909_v44 = vpop.f32.mrf.mxu0  ;;  %9029 = vmatmul.mubr.f32.gmra.mxu1 %v17337_v53  ;;  %17338 = vst [vmem:[#allocation169_spill] sm:$0xff] %v12781_v50 }
 0x3b7   :  { %v2661_v19 = vadd.f32 %v8726_v2, %v12345_v56  ;;  %v12774_v29 = vadd.f32 %v2909_v44, %v2658_v33  ;;  %9031 = vmatprep.mubr.f32.mxu1 %v12317_v35 }
 0x3b8   :  { %v2453_v60 = vpop.f32.mrf.mxu1  ;;  %v8854_v30 = vpop.f32.mrf.mxu0  ;;  %9157 = vmatmul.mubr.msk.f32.gmra.mxu0 %vm1234_vm2, %v12314_v3 }
 0x3b9   :  { %v2660_v45 = vadd.f32 %v2453_v60, %v17339_v54  ;;  %v12784_v12 = vadd.f32 %v8854_v30, %v2661_v19  ;;  %9159 = vmatprep.mubr.f32.mxu0 %v12781_v50  ;;  %v17350_v50 = vld [vmem:[#allocation36_spill] sm:$0xff] }
 0x3ba   :  { %v8729_v56 = vpop.f32.mrf.mxu1  ;;  %v2919_v33 = vpop.f32.mrf.mxu0  ;;  %9032 = vmatmul.mubr.f32.gmra.mxu1 %v12320_v62 }
 0x3bb   :  { %v2663_v2 = vadd.f32 %v8729_v56, %v12360_v13  ;;  %v12789_v44 = vadd.f32 %v2919_v33, %v2660_v45  ;;  %9194 = vmatprep.mubr.msk.f32.mxu1 %vm11058_vm1, %v17340_v34  ;;  %v7352_v13 = vld [vmem:[%s16447_s2 + $0x470] sm:$0xff]  ;;  %v17342_v45 = vld [vmem:[#allocation31_spill] sm:$0xff] }
 0x3bc   :  { %v2463_v38 = vpop.f32.mrf.mxu1  ;;  %v8857_v35 = vpop.f32.mrf.mxu0  ;;  %9160 = vmatmul.mubr.msk.f32.gmra.mxu0 %vm1234_vm2, %v12766_v42  ;;  %v17343_v33 = vld [vmem:[#allocation32_spill] sm:$0xff] }
 0x3bd   :  { %v2662_v60 = vadd.f32 %v2463_v38, %v12367_v14  ;;  %v12797_v30 = vadd.f32 %v8857_v35, %v2663_v2  ;;  %9322 = vmatprep.mubr.f32.mxu0 %v11050_v59  ;;  %v7351_v59 = vld [vmem:[%s16447_s2 + $0x468] sm:$0xff] }
 0x3be   :  { %v8732_v19 = vpop.f32.mrf.mxu1  ;;  %v2929_v54 = vpop.f32.mrf.mxu0  ;;  %9195 = vmatmul.mubr.f32.vlgmr.msra.gmra.mxu1 %v17342_v45  ;;  %v17344_v2 = vld [vmem:[#allocation7_spill] sm:$0xff] }
 0x3bf   :  { %v2665_v34 = vadd.f32 %v8732_v19, %v12376_v47  ;;  %v12805_v56 = vadd.f32 %v2929_v54, %v2662_v60  ;;  %9419 = vmatpush3.msra.mxu1 %v12563_v28  ;;  %9197 = vmatprep.mubr.msk.f32.mxu1 %vm11058_vm1, %v17343_v33  ;;  %v17346_v60 = vld [vmem:[#allocation10_spill] sm:$0xff]  ;;  %v17347_v45 = vld [vmem:[#allocation35_spill] sm:$0xff]  ;;  %v17348_v33 = vld [vmem:[#allocation9_spill] sm:$0xff] }
 0x3c0   :  { %v2473_v35 = vpop.f32.mrf.mxu1  ;;  %v8860_v14 = vpop.f32.mrf.mxu0  ;;  %9323 = vmatmul.mubr.f32.vlgmr.msra.gmra.mxu0 %v17199_v20  ;;  %9420 = vmatprep.subr.mxu1 %v7352_v13  ;;  %v7350_v28 = vld [vmem:[%s16447_s2 + $0x460] sm:$0xff] }
 0x3c1   :  { %v2664_v38 = vadd.f32 %v2473_v35, %v17344_v2  ;;  %v12816_v47 = vadd.f32 %v8860_v14, %v2665_v34  ;;  %9325 = vmatprep.mubr.f32.mxu0 %v17346_v60  ;;  %9421 = vmatpush3.msra.mxu1 %v7352_v13  ;;  %v7349_v13 = vld [vmem:[%s16447_s2 + $0x458] sm:$0xff]  ;;  %v17352_v2 = vld [vmem:[#allocation199_spill] sm:$0xff] }
 0x3c2   :  { %v8735_v19 = vpop.f32.mrf.mxu1  ;;  %v2939_v54 = vpop.f32.mrf.mxu0  ;;  %9198 = vmatmul.mubr.f32.gmra.mxu1 %v17347_v45  ;;  %9422 = vmatprep.subr.mxu1 %v7351_v59  ;;  %v17351_v14 = vld [vmem:[#allocation13_spill] sm:$0xff] }
 0x3c3   :  { %17345 = vst [vmem:[#allocation82_spill] sm:$0xff] %v12816_v47  ;;  %v2667_v42 = vadd.f32 %v8735_v19, %v17348_v33  ;;  %v12824_v20 = vadd.f32 %v2939_v54, %v2664_v38  ;;  %9200 = vmatprep.mubr.msk.f32.mxu1 %vm11058_vm1, %v17350_v50  ;;  %9423 = vmatpush3.msra.mxu1 %v7351_v59  ;;  %v17354_v38 = vld [vmem:[#allocation29_spill] sm:$0xff]  ;;  %v7348_v50 = vld [vmem:[%s16447_s2 + $0x450] sm:$0xff]  ;;  %v17355_v54 = vld [vmem:[#allocation39_spill] sm:$0xff] }
 0x3c4   :  { %v2483_v34 = vpop.f32.mrf.mxu1  ;;  %v8863_v35 = vpop.f32.mrf.mxu0  ;;  %9326 = vmatmul.mubr.f32.gmra.mxu0 %v17351_v14  ;;  %9424 = vmatprep.subr.mxu1 %v7350_v28  ;;  %v17356_v33 = vld [vmem:[#allocation200_spill] sm:$0xff] }
 0x3c5   :  { %17349 = vst [vmem:[#allocation172_spill] sm:$0xff] %v12824_v20  ;;  %v2666_v60 = vadd.f32 %v2483_v34, %v17352_v2  ;;  %v12834_v45 = vadd.f32 %v8863_v35, %v2667_v42  ;;  %9328 = vmatprep.mubr.f32.mxu0 %v17354_v38  ;;  %9425 = vmatpush3.msra.mxu1 %v7350_v28  ;;  %v17358_v47 = vld [vmem:[#allocation40_spill] sm:$0xff]  ;;  %v7347_v42 = vld [vmem:[%s16447_s2 + $0x448] sm:$0xff]  ;;  %v17359_v35 = vld [vmem:[#allocation30_spill] sm:$0xff] }
 0x3c6   :  { %v8738_v59 = vpop.f32.mrf.mxu1  ;;  %v2949_v19 = vpop.f32.mrf.mxu0  ;;  %9201 = vmatmul.mubr.f32.gmra.mxu1 %v17355_v54  ;;  %9426 = vmatprep.subr.mxu1 %v7349_v13  ;;  %v17360_v2 = vld [vmem:[#allocation201_spill] sm:$0xff] }
 0x3c7   :  { %17353 = vst [vmem:[#allocation86_spill] sm:$0xff] %v12834_v45  ;;  %v2669_v20 = vadd.f32 %v8738_v59, %v17356_v33  ;;  %v12842_v14 = vadd.f32 %v2949_v19, %v2666_v60  ;;  %9203 = vmatprep.mubr.msk.f32.mxu1 %vm11058_vm1, %v17358_v47  ;;  %9427 = vmatpush3.msra.mxu1 %v7349_v13  ;;  %v17362_v60 = vld [vmem:[#allocation33_spill] sm:$0xff]  ;;  %v7346_v47 = vld [vmem:[%s16447_s2 + $0x440] sm:$0xff] }
 0x3c8   :  { %v2493_v28 = vpop.f32.mrf.mxu1  ;;  %v8866_v34 = vpop.f32.mrf.mxu0  ;;  %9329 = vmatmul.mubr.f32.gmra.mxu0 %v17359_v35  ;;  %9428 = vmatprep.subr.mxu1 %v7348_v50  ;;  %v17363_v19 = vld [vmem:[#allocation41_spill] sm:$0xff]  ;;  %v17364_v33 = vld [vmem:[#allocation202_spill] sm:$0xff] }
 0x3c9   :  { %17357 = vst [vmem:[#allocation175_spill] sm:$0xff] %v12842_v14  ;;  %v2668_v38 = vadd.f32 %v2493_v28, %v17360_v2  ;;  %v12852_v54 = vadd.f32 %v8866_v34, %v2669_v20  ;;  %9331 = vmatprep.mubr.f32.mxu0 %v17362_v60  ;;  %9429 = vmatpush3.msra.mxu1 %v7348_v50  ;;  %v17366_v45 = vld [vmem:[#allocation42_spill] sm:$0xff]  ;;  %v7345_v20 = vld [vmem:[%s16447_s2 + $0x438] sm:$0xff]  ;;  %v17368_v2 = vld [vmem:[#allocation203_spill] sm:$0xff] }
 0x3ca   :  { %v8741_v13 = vpop.f32.mrf.mxu1  ;;  %v2959_v59 = vpop.f32.mrf.mxu0  ;;  %9204 = vmatmul.mubr.f32.gmra.mxu1 %v17363_v19  ;;  %9430 = vmatprep.subr.mxu1 %v7347_v42  ;;  %v17367_v34 = vld [vmem:[#allocation34_spill] sm:$0xff] }
 0x3cb   :  { %17361 = vst [vmem:[#allocation178_spill] sm:$0xff] %v12852_v54  ;;  %v2671_v14 = vadd.f32 %v8741_v13, %v17364_v33  ;;  %v12860_v35 = vadd.f32 %v2959_v59, %v2668_v38  ;;  %9206 = vmatprep.mubr.msk.f32.mxu1 %vm11058_vm1, %v17366_v45  ;;  %9431 = vmatpush3.msra.mxu1 %v7347_v42  ;;  %v17370_v38 = vld [vmem:[#allocation37_spill] sm:$0xff]  ;;  %v7344_v45 = vld [vmem:[%s16447_s2 + $0x430] sm:$0xff]  ;;  %v17371_v59 = vld [vmem:[#allocation43_spill] sm:$0xff] }
 0x3cc   :  { %v2503_v50 = vpop.f32.mrf.mxu1  ;;  %v8869_v28 = vpop.f32.mrf.mxu0  ;;  %9332 = vmatmul.mubr.f32.gmra.mxu0 %v17367_v34  ;;  %9432 = vmatprep.subr.mxu1 %v7346_v47  ;;  %v17372_v33 = vld [vmem:[#allocation204_spill] sm:$0xff] }
 0x3cd   :  { %17365 = vst [vmem:[#allocation181_spill] sm:$0xff] %v12860_v35  ;;  %v2670_v60 = vadd.f32 %v2503_v50, %v17368_v2  ;;  %v12870_v19 = vadd.f32 %v8869_v28, %v2671_v14  ;;  %9334 = vmatprep.mubr.f32.mxu0 %v17370_v38  ;;  %9433 = vmatpush3.msra.mxu1 %v7346_v47  ;;  %v17374_v54 = vld [vmem:[#allocation44_spill] sm:$0xff]  ;;  %v7343_v14 = vld [vmem:[%s16447_s2 + $0x428] sm:$0xff]  ;;  %v17375_v28 = vld [vmem:[#allocation38_spill] sm:$0xff] }
 0x3ce   :  { %v8744_v42 = vpop.f32.mrf.mxu1  ;;  %v2969_v13 = vpop.f32.mrf.mxu0  ;;  %9207 = vmatmul.mubr.f32.gmra.mxu1 %v17371_v59  ;;  %9434 = vmatprep.subr.mxu1 %v7345_v20  ;;  %v17376_v2 = vld [vmem:[#allocation205_spill] sm:$0xff] }
 0x3cf   :  { %17369 = vst [vmem:[#allocation98_spill] sm:$0xff] %v12870_v19  ;;  %v2673_v35 = vadd.f32 %v8744_v42, %v17372_v33  ;;  %v12878_v34 = vadd.f32 %v2969_v13, %v2670_v60  ;;  %9209 = vmatprep.mubr.msk.f32.mxu1 %vm11058_vm1, %v17374_v54  ;;  %9435 = vmatpush3.msra.mxu1 %v7345_v20  ;;  %v17377_v60 = vld [vmem:[#allocation14_spill] sm:$0xff]  ;;  %v17378_v13 = vld [vmem:[#allocation45_spill] sm:$0xff] }
 0x3d0   :  { %v2513_v47 = vpop.f32.mrf.mxu1  ;;  %v8872_v50 = vpop.f32.mrf.mxu0  ;;  %9335 = vmatmul.mubr.f32.gmra.mxu0 %v17375_v28  ;;  %9436 = vmatprep.subr.mxu1 %v7344_v45  ;;  %v7342_v54 = vld [vmem:[%s16447_s2 + $0x420] sm:$0xff] }
 0x3d1   :  { %17373 = vst [vmem:[#allocation184_spill] sm:$0xff] %v12878_v34  ;;  %v2672_v38 = vadd.f32 %v2513_v47, %v17376_v2  ;;  %v12888_v59 = vadd.f32 %v8872_v50, %v2673_v35  ;;  %9337 = vmatprep.mubr.f32.mxu0 %v17377_v60  ;;  %9437 = vmatpush3.msra.mxu1 %v7344_v45  ;;  %v17379_v33 = vld [vmem:[#allocation206_spill] sm:$0xff]  ;;  %v7341_v35 = vld [vmem:[%s16447_s2 + $0x418] sm:$0xff]  ;;  %v17382_v50 = vld [vmem:[#allocation15_spill] sm:$0xff] }
 0x3d2   :  { %v8747_v20 = vpop.f32.mrf.mxu1  ;;  %v2979_v42 = vpop.f32.mrf.mxu0  ;;  %9210 = vmatmul.mubr.f32.gmra.mxu1 %v17378_v13  ;;  %9438 = vmatprep.subr.mxu1 %v7343_v14  ;;  %v17381_v19 = vld [vmem:[#allocation46_spill] sm:$0xff]  ;;  %v17383_v2 = vld [vmem:[#allocation207_spill] sm:$0xff] }
 0x3d3   :  { %v2675_v34 = vadd.f32 %v8747_v20, %v17379_v33  ;;  %v12896_v28 = vadd.f32 %v2979_v42, %v2672_v38  ;;  %9212 = vmatprep.mubr.msk.f32.mxu1 %vm11058_vm1, %v17381_v19  ;;  %9439 = vmatpush3.msra.mxu1 %v7343_v14  ;;  %v17384_v38 = vld [vmem:[#allocation16_spill] sm:$0xff]  ;;  %v17385_v42 = vld [vmem:[#allocation47_spill] sm:$0xff] }
 0x3d4   :  { %v2523_v45 = vpop.f32.mrf.mxu1  ;;  %v8875_v47 = vpop.f32.mrf.mxu0  ;;  %9338 = vmatmul.mubr.f32.gmra.mxu0 %v17382_v50  ;;  %9440 = vmatprep.subr.mxu1 %v7342_v54  ;;  %v7340_v19 = vld [vmem:[%s16447_s2 + $0x410] sm:$0xff] }
 0x3d5   :  { %17380 = vst [vmem:[#allocation102_spill] sm:$0xff] %v12896_v28  ;;  %v2674_v60 = vadd.f32 %v2523_v45, %v17383_v2  ;;  %v12906_v13 = vadd.f32 %v8875_v47, %v2675_v34  ;;  %9340 = vmatprep.mubr.f32.mxu0 %v17384_v38  ;;  %9441 = vmatpush3.msra.mxu1 %v7342_v54  ;;  %v17387_v28 = vld [vmem:[#allocation48_spill] sm:$0xff]  ;;  %v7339_v34 = vld [vmem:[%s16447_s2 + $0x408] sm:$0xff]  ;;  %v17388_v47 = vld [vmem:[#allocation17_spill] sm:$0xff] }
 0x3d6   :  { %v8750_v14 = vpop.f32.mrf.mxu1  ;;  %v2989_v20 = vpop.f32.mrf.mxu0  ;;  %9213 = vmatmul.mubr.f32.gmra.mxu1 %v17385_v42  ;;  %9442 = vmatprep.subr.mxu1 %v7341_v35  ;;  %v17389_v2 = vld [vmem:[#allocation208_spill] sm:$0xff] }
 0x3d7   :  { %v2677_v33 = vadd.f32 %v8750_v14, %v12466_v61  ;;  %v12914_v50 = vadd.f32 %v2989_v20, %v2674_v60  ;;  %9215 = vmatprep.mubr.msk.f32.mxu1 %vm11058_vm1, %v17387_v28  ;;  %9443 = vmatpush3.msra.mxu1 %v7341_v35  ;;  %v17390_v61 = vld [vmem:[#allocation18_spill] sm:$0xff]  ;;  %v17391_v14 = vld [vmem:[#allocation49_spill] sm:$0xff] }
 0x3d8   :  { %v2533_v54 = vpop.f32.mrf.mxu1  ;;  %v8878_v45 = vpop.f32.mrf.mxu0  ;;  %9341 = vmatmul.mubr.f32.gmra.mxu0 %v17388_v47  ;;  %9444 = vmatprep.subr.mxu1 %v7340_v19  ;;  %v7338_v28 = vld [vmem:[%s16447_s2 + $0x400] sm:$0xff] }
 0x3d9   :  { %17386 = vst [vmem:[#allocation187_spill] sm:$0xff] %v12914_v50  ;;  %v2676_v38 = vadd.f32 %v2533_v54, %v17389_v2  ;;  %v12924_v42 = vadd.f32 %v8878_v45, %v2677_v33  ;;  %9343 = vmatprep.mubr.f32.mxu0 %v17390_v61  ;;  %9445 = vmatpush3.msra.mxu1 %v7340_v19  ;;  %v17392_v50 = vld [vmem:[#allocation50_spill] sm:$0xff]  ;;  %v17393_v54 = vld [vmem:[#allocation19_spill] sm:$0xff]  ;;  %v17394_v61 = vld [vmem:[#allocation20_spill] sm:$0xff] }
 0x3da   :  { %v8753_v35 = vpop.f32.mrf.mxu1  ;;  %v2999_v60 = vpop.f32.mrf.mxu0  ;;  %9216 = vmatmul.mubr.f32.gmra.mxu1 %v17391_v14  ;;  %9446 = vmatprep.subr.mxu1 %v7339_v34 }
 0x3db   :  { %v2679_v20 = vadd.f32 %v8753_v35, %v12482_v1  ;;  %v12932_v47 = vadd.f32 %v2999_v60, %v2676_v38  ;;  %9218 = vmatprep.mubr.msk.f32.mxu1 %vm11058_vm1, %v17392_v50  ;;  %9447 = vmatpush3.msra.mxu1 %v7339_v34  ;;  %v17395_v35 = vld [vmem:[#allocation51_spill] sm:$0xff]  ;;  %v17396_v34 = vld [vmem:[#allocation52_spill] sm:$0xff] }
 0x3dc   :  { %v2543_v33 = vpop.f32.mrf.mxu1  ;;  %v8881_v19 = vpop.f32.mrf.mxu0  ;;  %9344 = vmatmul.mubr.f32.gmra.mxu0 %v17236_v25  ;;  %9448 = vmatprep.subr.mxu1 %v7338_v28 }
 0x3dd   :  { %v2678_v45 = vadd.f32 %v2543_v33, %v17393_v54  ;;  %v12939_v2 = vadd.f32 %v8881_v19, %v2679_v20  ;;  %9346 = vmatprep.mubr.f32.mxu0 %v17394_v61  ;;  %9449 = vmatpush3.msra.mxu1 %v7338_v28  ;;  %v17397_v20 = vld [vmem:[#allocation21_spill] sm:$0xff]  ;;  %v17398_v28 = vld [vmem:[#allocation22_spill] sm:$0xff] }
 0x3de   :  { %v8756_v1 = vpop.f32.mrf.mxu1  ;;  %v3009_v38 = vpop.f32.mrf.mxu0  ;;  %9219 = vmatmul.mubr.f32.gmra.mxu1 %v17395_v35  ;;  %v17399_v35 = vld [vmem:[#allocation53_spill] sm:$0xff] }
 0x3df   :  { %v2681_v60 = vadd.f32 %v8756_v1, %v12497_v18  ;;  %v12944_v50 = vadd.f32 %v3009_v38, %v2678_v45  ;;  %9221 = vmatprep.mubr.msk.f32.mxu1 %vm11058_vm1, %v17396_v34  ;;  %v17400_v1 = vld [vmem:[#allocation54_spill] sm:$0xff] }
 0x3e0   :  { %v2553_v25 = vpop.f32.mrf.mxu1  ;;  %v8884_v14 = vpop.f32.mrf.mxu0  ;;  %9347 = vmatmul.mubr.f32.gmra.mxu0 %v17239_v31 }
 0x3e1   :  { %v2680_v33 = vadd.f32 %v2553_v25, %v17397_v20  ;;  %v12951_v19 = vadd.f32 %v8884_v14, %v2681_v60  ;;  %9349 = vmatprep.mubr.f32.mxu0 %v17398_v28  ;;  %v17402_v25 = vld [vmem:[#allocation24_spill] sm:$0xff]  ;;  %v17403_v28 = vld [vmem:[#allocation57_spill] sm:$0xff] }
 0x3e2   :  { %v8759_v54 = vpop.f32.mrf.mxu1  ;;  %v3019_v61 = vpop.f32.mrf.mxu0  ;;  %9222 = vmatmul.mubr.f32.gmra.mxu1 %v17399_v35 }
 0x3e3   :  { %v2683_v18 = vadd.f32 %v8759_v54, %v12512_v22  ;;  %v12956_v45 = vadd.f32 %v3019_v61, %v2680_v33  ;;  %9224 = vmatprep.mubr.msk.f32.mxu1 %vm11058_vm1, %v17400_v1  ;;  %v17404_v22 = vld [vmem:[#allocation23_spill] sm:$0xff]  ;;  %v17405_v61 = vld [vmem:[#allocation58_spill] sm:$0xff]  ;;  %v17406_v1 = vld [vmem:[#allocation25_spill] sm:$0xff] }
 0x3e4   :  { %v2563_v38 = vpop.f32.mrf.mxu1  ;;  %v8887_v31 = vpop.f32.mrf.mxu0  ;;  %9350 = vmatmul.mubr.f32.gmra.mxu0 %v17242_v37 }
 0x3e5   :  { %v2682_v60 = vadd.f32 %v2563_v38, %v12519_v11  ;;  %v12963_v34 = vadd.f32 %v8887_v31, %v2683_v18  ;;  %9352 = vmatprep.mubr.f32.mxu0 %v17402_v25  ;;  %v17407_v11 = vld [vmem:[#allocation209_spill] sm:$0xff]  ;;  %v17408_v31 = vld [vmem:[#allocation26_spill] sm:$0xff] }
 0x3e6   :  { %v8762_v14 = vpop.f32.mrf.mxu1  ;;  %v3029_v20 = vpop.f32.mrf.mxu0  ;;  %9225 = vmatmul.mubr.f32.gmra.mxu1 %v17403_v28 }
 0x3e7   :  { %17401 = vst [vmem:[#allocation106_spill] sm:$0xff] %v12963_v34  ;;  %v2685_v33 = vadd.f32 %v8762_v14, %v17404_v22  ;;  %v12968_v54 = vadd.f32 %v3029_v20, %v2682_v60  ;;  %9227 = vmatprep.mubr.msk.f32.mxu1 %vm11058_vm1, %v17405_v61  ;;  %v17409_v34 = vld [vmem:[#allocation60_spill] sm:$0xff]  ;;  %v17411_v20 = vld [vmem:[#allocation61_spill] sm:$0xff] }
 0x3e8   :  { %v2573_v35 = vpop.f32.mrf.mxu1  ;;  %v8890_v37 = vpop.f32.mrf.mxu0  ;;  %9353 = vmatmul.mubr.f32.gmra.mxu0 %v17406_v1  ;;  %v17414_v1 = vld [vmem:[#allocation55_spill] sm:$0xff] }
 0x3e9   :  { %v2684_v18 = vadd.f32 %v2573_v35, %v17407_v11  ;;  %v12975_v38 = vadd.f32 %v8890_v37, %v2685_v33  ;;  %9355 = vmatprep.mubr.f32.mxu0 %v17408_v31  ;;  %v17412_v33 = vld [vmem:[#allocation27_spill] sm:$0xff]  ;;  %v17415_v31 = vld [vmem:[#allocation62_spill] sm:$0xff] }
 0x3ea   :  { %v8765_v25 = vpop.f32.mrf.mxu1  ;;  %v3039_v28 = vpop.f32.mrf.mxu0  ;;  %9228 = vmatmul.mubr.f32.gmra.mxu1 %v17409_v34 }
 0x3eb   :  { %v2687_v60 = vadd.f32 %v8765_v25, %v12542_v36  ;;  %v12980_v14 = vadd.f32 %v3039_v28, %v2684_v18  ;;  %9230 = vmatprep.mubr.msk.f32.mxu1 %vm11058_vm1, %v17411_v20  ;;  %v17417_v25 = vld [vmem:[#allocation63_spill] sm:$0xff]  ;;  %v17418_v20 = vld [vmem:[#allocation56_spill] sm:$0xff] }
 0x3ec   :  { %v2583_v22 = vpop.f32.mrf.mxu1  ;;  %v8893_v61 = vpop.f32.mrf.mxu0  ;;  %9356 = vmatmul.mubr.f32.gmra.mxu0 %v17249_v6 }
 0x3ed   :  { %17410 = vst [vmem:[#allocation190_spill] sm:$0xff] %v12980_v14  ;;  %v2686_v35 = vadd.f32 %v2583_v22, %v17412_v33  ;;  %v12987_v37 = vadd.f32 %v8893_v61, %v2687_v60  ;;  %9358 = vmatprep.mubr.f32.mxu0 %v17414_v1  ;;  %v17419_v60 = vld [vmem:[#allocation210_spill] sm:$0xff]  ;;  %v17421_v33 = vld [vmem:[#allocation28_spill] sm:$0xff]  ;;  %v17432_v14 = vld [vmem:[#allocation5_spill] sm:$0xff] }
 0x3ee   :  { %v8768_v11 = vpop.f32.mrf.mxu1  ;;  %v3049_v34 = vpop.f32.mrf.mxu0  ;;  %9231 = vmatmul.mubr.f32.gmra.mxu1 %v17415_v31 }
 0x3ef   :  { %17413 = vst [vmem:[#allocation110_spill] sm:$0xff] %v12987_v37  ;;  %v2689_v36 = vadd.f32 %v8768_v11, %v12557_v43  ;;  %v12992_v18 = vadd.f32 %v3049_v34, %v2686_v35  ;;  %9233 = vmatprep.mubr.msk.f32.mxu1 %vm11058_vm1, %v17417_v25  ;;  %v17422_v37 = vld [vmem:[#allocation65_spill] sm:$0xff]  ;;  %v17423_v43 = vld [vmem:[#allocation212_spill] sm:$0xff] }
 0x3f0   :  { %v2593_v28 = vpop.f32.mrf.mxu1  ;;  %v8896_v6 = vpop.f32.mrf.mxu0  ;;  %9359 = vmatmul.mubr.f32.gmra.mxu0 %v17418_v20  ;;  %v17425_v34 = vld [vmem:[#allocation152_spill] sm:$0xff] }
 0x3f1   :  { %17416 = vst [vmem:[#allocation193_spill] sm:$0xff] %v12992_v18  ;;  %v2688_v22 = vadd.f32 %v2593_v28, %v17419_v60  ;;  %v12999_v61 = vadd.f32 %v8896_v6, %v2689_v36  ;;  %9361 = vmatprep.mubr.f32.mxu0 %v17421_v33  ;;  %v17426_v18 = vld [vmem:[#allocation59_spill] sm:$0xff]  ;;  %v17427_v36 = vld [vmem:[#allocation213_spill] sm:$0xff]  ;;  %v17428_v60 = vld [vmem:[#allocation4_spill] sm:$0xff] }
 0x3f2   :  { %v8771_v1 = vpop.f32.mrf.mxu1  ;;  %v3059_v31 = vpop.f32.mrf.mxu0  ;;  %9234 = vmatmul.mubr.f32.gmra.mxu1 %v17422_v37 }
 0x3f3   :  { %17420 = vst [vmem:[#allocation113_spill] sm:$0xff] %v12999_v61  ;;  %v2691_v35 = vadd.f32 %v8771_v1, %v17423_v43  ;;  %v13004_v11 = vadd.f32 %v3059_v31, %v2688_v22  ;;  %9236 = vmatprep.mubr.msk.f32.mxu1 %vm11058_vm1, %v17425_v34  ;;  %v17429_v61 = vld [vmem:[#allocation154_spill] sm:$0xff]  ;;  %v17430_v22 = vld [vmem:[#allocation215_spill] sm:$0xff]  ;;  %v17431_v43 = vmov 0.0  }
 0x3f4   :  { %v2603_v25 = vpop.f32.mrf.mxu1  ;;  %v8899_v20 = vpop.f32.mrf.mxu0  ;;  %9362 = vmatmul.mubr.f32.gmra.mxu0 %v17426_v18  ;;  %v17433_v18 = vld [vmem:[#allocation216_spill] sm:$0xff] }
 0x3f5   :  { %17424 = vst [vmem:[#allocation114_spill] sm:$0xff] %v13004_v11  ;;  %v2690_v28 = vadd.f32 %v2603_v25, %v17427_v36  ;;  %v13011_v6 = vadd.f32 %v8899_v20, %v2691_v35  ;;  %9364 = vmatprep.mubr.f32.mxu0 %v17428_v60 }
 0x3f6   :  { %v8774_v33 = vpop.f32.mrf.mxu1  ;;  %v3069_v37 = vpop.f32.mrf.mxu0  ;;  %9237 = vmatmul.mubr.f32.gmra.mxu1 %v17429_v61  ;;  %v17435_v61 = vld [vmem:[#allocation217_spill] sm:$0xff] }
 0x3f7   :  { %v2693_v1 = vadd.f32 %v8774_v33, %v17430_v22  ;;  %v13016_v31 = vadd.f32 %v3069_v37, %v2690_v28  ;;  %9239 = vmatprep.mubr.f32.mxu1 %v17431_v43  ;;  %v17436_v33 = vld [vmem:[#allocation72_spill] sm:$0xff] }
 0x3f8   :  { %v2613_v34 = vpop.f32.mrf.mxu1  ;;  %v8902_v11 = vpop.f32.mrf.mxu0  ;;  %9365 = vmatmul.mubr.f32.gmra.mxu0 %v17432_v14 }
 0x3f9   :  { %v2692_v25 = vadd.f32 %v2613_v34, %v17433_v18  ;;  %v13021_v35 = vadd.f32 %v8902_v11, %v2693_v1  ;;  %9367 = vmatprep.mubr.f32.mxu0 %v17431_v43  ;;  %v17437_v1 = vld [vmem:[#allocation67_spill] sm:$0xff] }
 0x3fa   :  { %v8777_v20 = vpop.f32.mrf.mxu1  ;;  %v3079_v36 = vpop.f32.mrf.mxu0  ;;  %9240 = vmatmul.mubr.f32.gmra.mxu1 %v17431_v43 }
 0x3fb   :  { %17434 = vst [vmem:[#allocation196_spill] sm:$0xff] %v13021_v35  ;;  %v2695_v60 = vadd.f32 %v8777_v20, %v17435_v61  ;;  %v13026_v28 = vadd.f32 %v3079_v36, %v2692_v25  ;;  %9242 = vmatprep.mubr.msk.f32.mxu1 %vm11058_vm1, %v17436_v33  ;;  %v17438_v35 = vld [vmem:[#allocation75_spill] sm:$0xff]  ;;  %v17439_v36 = vld [vmem:[#allocation76_spill] sm:$0xff] }
 0x3fc   :  { %v2623_v37 = vpop.f32.mrf.mxu1  ;;  %v8905_v14 = vpop.f32.mrf.mxu0  ;;  %9368 = vmatmul.mubr.f32.gmra.mxu0 %v17431_v43 }
 0x3fd   :  { %v2694_v11 = vadd.f32 %v2623_v37, %v12616_v39  ;;  %v13033_v22 = vadd.f32 %v8905_v14, %v2695_v60  ;;  %9370 = vmatprep.mubr.f32.mxu0 %v17437_v1  ;;  %v17440_v39 = vld [vmem:[#allocation155_spill] sm:$0xff]  ;;  %v17442_v14 = vld [vmem:[#allocation69_spill] sm:$0xff] }
 0x3fe   :  { %v3089_v34 = vpop.f32.mrf.mxu0  ;;  %v8940_v18 = vpop.f32.mrf.mxu1  ;;  %9243 = vmatmul.mubr.f32.gmra.mxu1 %v17438_v35 }
 0x3ff   :  { %v13037_v25 = vadd.f32 %v3089_v34, %v2694_v11  ;;  %v3565_v20 = vadd.f32 %v8940_v18, %v12622_v16  ;;  %9245 = vmatprep.mubr.msk.f32.mxu1 %vm11058_vm1, %v17439_v36  ;;  %v17443_v11 = vld [vmem:[#allocation79_spill] sm:$0xff]  ;;  %v17444_v18 = vld [vmem:[#allocation80_spill] sm:$0xff] }
 0x400   :  { %v3245_v61 = vpop.f32.mrf.mxu1  ;;  %v9068_v33 = vpop.f32.mrf.mxu0  ;;  %9371 = vmatmul.mubr.f32.gmra.mxu0 %v17271_v21 }
 0x401   :  { %v3564_v60 = vadd.f32 %v3245_v61, %v17440_v39  ;;  %v13045_v37 = vadd.f32 %v9068_v33, %v3565_v20  ;;  %9373 = vmatprep.mubr.f32.mxu0 %v17442_v14  ;;  %v17445_v20 = vld [vmem:[#allocation64_spill] sm:$0xff]  ;;  %v17446_v39 = vld [vmem:[#allocation73_spill] sm:$0xff] }
 0x402   :  { %v8943_v1 = vpop.f32.mrf.mxu1  ;;  %v3711_v35 = vpop.f32.mrf.mxu0  ;;  %9246 = vmatmul.mubr.f32.gmra.mxu1 %v17443_v11 }
 0x403   :  { %17441 = vst [vmem:[#allocation118_spill] sm:$0xff] %v13045_v37  ;;  %v3567_v16 = vadd.f32 %v8943_v1, %v12633_v8  ;;  %v13050_v34 = vadd.f32 %v3711_v35, %v3564_v60  ;;  %9248 = vmatprep.mubr.msk.f32.mxu1 %vm11058_vm1, %v17444_v18  ;;  %v17447_v37 = vld [vmem:[#allocation83_spill] sm:$0xff]  ;;  %v17448_v1 = vld [vmem:[#allocation84_spill] sm:$0xff] }
 0x404   :  { %v3255_v36 = vpop.f32.mrf.mxu1  ;;  %v9071_v21 = vpop.f32.mrf.mxu0  ;;  %9374 = vmatmul.mubr.f32.gmra.mxu0 %v17276_v4 }
 0x405   :  { %v3566_v61 = vadd.f32 %v3255_v36, %v17445_v20  ;;  %v13057_v33 = vadd.f32 %v9071_v21, %v3567_v16  ;;  %9376 = vmatprep.mubr.f32.mxu0 %v17446_v39  ;;  %v17449_v16 = vld [vmem:[#allocation157_spill] sm:$0xff]  ;;  %v17452_v39 = vld [vmem:[#allocation87_spill] sm:$0xff] }
 0x406   :  { %v8946_v14 = vpop.f32.mrf.mxu1  ;;  %v3721_v11 = vpop.f32.mrf.mxu0  ;;  %9249 = vmatmul.mubr.f32.gmra.mxu1 %v17447_v37  ;;  %v17451_v21 = vld [vmem:[#allocation77_spill] sm:$0xff] }
 0x407   :  { %v3569_v8 = vadd.f32 %v8946_v14, %v12644_v7  ;;  %v13062_v60 = vadd.f32 %v3721_v11, %v3566_v61  ;;  %9251 = vmatprep.mubr.msk.f32.mxu1 %vm11058_vm1, %v17448_v1  ;;  %v17453_v14 = vld [vmem:[#allocation88_spill] sm:$0xff]  ;;  %v17454_v1 = vld [vmem:[#allocation78_spill] sm:$0xff] }
 0x408   :  { %v3265_v35 = vpop.f32.mrf.mxu1  ;;  %v9074_v4 = vpop.f32.mrf.mxu0  ;;  %9377 = vmatmul.mubr.f32.gmra.mxu0 %v17281_v63 }
 0x409   :  { %v3568_v18 = vadd.f32 %v3265_v35, %v17449_v16  ;;  %v13069_v36 = vadd.f32 %v9074_v4, %v3569_v8  ;;  %9379 = vmatprep.mubr.f32.mxu0 %v17451_v21  ;;  %v17455_v8 = vld [vmem:[#allocation71_spill] sm:$0xff]  ;;  %v17456_v16 = vld [vmem:[#allocation81_spill] sm:$0xff] }
 0x40a   :  { %v8949_v20 = vpop.f32.mrf.mxu1  ;;  %v3731_v37 = vpop.f32.mrf.mxu0  ;;  %9252 = vmatmul.mubr.f32.gmra.mxu1 %v17452_v39 }
 0x40b   :  { %17450 = vst [vmem:[#allocation198_spill] sm:$0xff] %v13069_v36  ;;  %v3571_v7 = vadd.f32 %v8949_v20, %v12655_v24  ;;  %v13074_v61 = vadd.f32 %v3731_v37, %v3568_v18  ;;  %9254 = vmatprep.mubr.msk.f32.mxu1 %vm11058_vm1, %v17453_v14  ;;  %v17457_v36 = vld [vmem:[#allocation91_spill] sm:$0xff]  ;;  %v17458_v20 = vld [vmem:[#allocation92_spill] sm:$0xff] }
 0x40c   :  { %v3275_v11 = vpop.f32.mrf.mxu1  ;;  %v9077_v63 = vpop.f32.mrf.mxu0  ;;  %9380 = vmatmul.mubr.f32.gmra.mxu0 %v17454_v1  ;;  %v17460_v1 = vld [vmem:[#allocation85_spill] sm:$0xff] }
 0x40d   :  { %v3570_v35 = vadd.f32 %v3275_v11, %v17455_v8  ;;  %v13081_v4 = vadd.f32 %v9077_v63, %v3571_v7  ;;  %9382 = vmatprep.mubr.f32.mxu0 %v17456_v16  ;;  %v17459_v7 = vld [vmem:[#allocation66_spill] sm:$0xff]  ;;  %v17461_v16 = vld [vmem:[#allocation95_spill] sm:$0xff] }
 0x40e   :  { %v8952_v21 = vpop.f32.mrf.mxu1  ;;  %v3741_v39 = vpop.f32.mrf.mxu0  ;;  %9255 = vmatmul.mubr.f32.gmra.mxu1 %v17457_v36 }
 0x40f   :  { %v3573_v24 = vadd.f32 %v8952_v21, %v12666_v17  ;;  %v13086_v18 = vadd.f32 %v3741_v39, %v3570_v35  ;;  %9257 = vmatprep.mubr.msk.f32.mxu1 %vm11058_vm1, %v17458_v20  ;;  %v17462_v21 = vld [vmem:[#allocation96_spill] sm:$0xff] }
 0x410   :  { %v3285_v37 = vpop.f32.mrf.mxu1  ;;  %v9080_v14 = vpop.f32.mrf.mxu0  ;;  %9383 = vmatmul.mubr.f32.gmra.mxu0 %v17292_v32 }
 0x411   :  { %v3572_v11 = vadd.f32 %v3285_v37, %v17459_v7  ;;  %v13093_v63 = vadd.f32 %v9080_v14, %v3573_v24  ;;  %9385 = vmatprep.mubr.f32.mxu0 %v17460_v1  ;;  %v17463_v37 = vld [vmem:[#allocation89_spill] sm:$0xff]  ;;  %v17464_v1 = vld [vmem:[#allocation99_spill] sm:$0xff] }
 0x412   :  { %v8955_v8 = vpop.f32.mrf.mxu1  ;;  %v3751_v36 = vpop.f32.mrf.mxu0  ;;  %9258 = vmatmul.mubr.f32.gmra.mxu1 %v17461_v16  ;;  %v17466_v16 = vld [vmem:[#allocation90_spill] sm:$0xff] }
 0x413   :  { %v3575_v17 = vadd.f32 %v8955_v8, %v12677_v52  ;;  %v13098_v35 = vadd.f32 %v3751_v36, %v3572_v11  ;;  %9260 = vmatprep.mubr.msk.f32.mxu1 %vm11058_vm1, %v17462_v21  ;;  %v17465_v8 = vld [vmem:[#allocation100_spill] sm:$0xff] }
 0x414   :  { %v3295_v39 = vpop.f32.mrf.mxu1  ;;  %v9083_v32 = vpop.f32.mrf.mxu0  ;;  %9386 = vmatmul.mubr.f32.gmra.mxu0 %v17297_v0 }
 0x415   :  { %v3574_v24 = vadd.f32 %v3295_v39, %v12682_v55  ;;  %v13105_v20 = vadd.f32 %v9083_v32, %v3575_v17  ;;  %9388 = vmatprep.mubr.f32.mxu0 %v17463_v37  ;;  %v17467_v55 = vld [vmem:[#allocation153_spill] sm:$0xff] }
 0x416   :  { %v8958_v14 = vpop.f32.mrf.mxu1  ;;  %v3761_v7 = vpop.f32.mrf.mxu0  ;;  %9261 = vmatmul.mubr.f32.gmra.mxu1 %v17464_v1  ;;  %v17469_v39 = vld [vmem:[#allocation93_spill] sm:$0xff]  ;;  %v17470_v1 = vld [vmem:[#allocation103_spill] sm:$0xff] }
 0x417   :  { %v3577_v52 = vadd.f32 %v8958_v14, %v12688_v46  ;;  %v13110_v11 = vadd.f32 %v3761_v7, %v3574_v24  ;;  %9263 = vmatprep.mubr.msk.f32.mxu1 %vm11058_vm1, %v17465_v8  ;;  %v17471_v14 = vld [vmem:[#allocation104_spill] sm:$0xff] }
 0x418   :  { %v3305_v36 = vpop.f32.mrf.mxu1  ;;  %v9086_v0 = vpop.f32.mrf.mxu0  ;;  %9389 = vmatmul.mubr.f32.gmra.mxu0 %v17466_v16  ;;  %v17472_v16 = vld [vmem:[#allocation94_spill] sm:$0xff] }
 0x419   :  { %v3576_v17 = vadd.f32 %v3305_v36, %v17467_v55  ;;  %v13117_v21 = vadd.f32 %v9086_v0, %v3577_v52  ;;  %9391 = vmatprep.mubr.f32.mxu0 %v17469_v39  ;;  %v17473_v52 = vld [vmem:[#allocation68_spill] sm:$0xff]  ;;  %v17474_v55 = vld [vmem:[#allocation97_spill] sm:$0xff] }
 0x41a   :  { %v8961_v32 = vpop.f32.mrf.mxu1  ;;  %v3771_v37 = vpop.f32.mrf.mxu0  ;;  %9264 = vmatmul.mubr.f32.gmra.mxu1 %v17470_v1 }
 0x41b   :  { %17468 = vst [vmem:[#allocation12_spill] sm:$0xff] %v13117_v21  ;;  %v3579_v46 = vadd.f32 %v8961_v32, %v12699_v23  ;;  %v13122_v24 = vadd.f32 %v3771_v37, %v3576_v17  ;;  %9266 = vmatprep.mubr.msk.f32.mxu1 %vm11058_vm1, %v17471_v14  ;;  %v17475_v21 = vld [vmem:[#allocation107_spill] sm:$0xff]  ;;  %v17476_v32 = vld [vmem:[#allocation108_spill] sm:$0xff] }
 0x41c   :  { %v3315_v7 = vpop.f32.mrf.mxu1  ;;  %v9089_v8 = vpop.f32.mrf.mxu0  ;;  %9392 = vmatmul.mubr.f32.gmra.mxu0 %v17472_v16  ;;  %v17478_v16 = vld [vmem:[#allocation101_spill] sm:$0xff] }
 0x41d   :  { %v3578_v36 = vadd.f32 %v3315_v7, %v17473_v52  ;;  %v13129_v0 = vadd.f32 %v9089_v8, %v3579_v46  ;;  %9394 = vmatprep.mubr.f32.mxu0 %v17474_v55  ;;  %v17477_v46 = vld [vmem:[#allocation160_spill] sm:$0xff] }
 0x41e   :  { %v8964_v39 = vpop.f32.mrf.mxu1  ;;  %v3781_v1 = vpop.f32.mrf.mxu0  ;;  %9267 = vmatmul.mubr.f32.gmra.mxu1 %v17475_v21  ;;  %v17480_v55 = vld [vmem:[#allocation112_spill] sm:$0xff] }
 0x41f   :  { %v3581_v23 = vadd.f32 %v8964_v39, %v12710_v49  ;;  %v13134_v17 = vadd.f32 %v3781_v1, %v3578_v36  ;;  %9269 = vmatprep.mubr.msk.f32.mxu1 %vm11058_vm1, %v17476_v32  ;;  %v17479_v49 = vld [vmem:[#allocation111_spill] sm:$0xff]  ;;  %v17481_v1 = vld [vmem:[#allocation70_spill] sm:$0xff] }
 0x420   :  { %v3325_v37 = vpop.f32.mrf.mxu1  ;;  %v9092_v14 = vpop.f32.mrf.mxu0  ;;  %9395 = vmatmul.mubr.f32.gmra.mxu0 %v17312_v57 }
 0x421   :  { %v13141_v7 = vadd.f32 %v3325_v37, %v17477_v46  ;;  %v13143_v8 = vadd.f32 %v9092_v14, %v3581_v23  ;;  %9397 = vmatprep.mubr.f32.mxu0 %v17478_v16  ;;  %v17482_v37 = vld [vmem:[#allocation105_spill] sm:$0xff]  ;;  %v17483_v16 = vld [vmem:[#allocation115_spill] sm:$0xff] }
 0x422   :  { %v8967_v21 = vpop.f32.mrf.mxu1  ;;  %v13146_v52 = vpop.f32.mrf.mxu0  ;;  %9270 = vmatmul.mubr.f32.gmra.mxu1 %v17479_v49 }
 0x423   :  { %v3583_v36 = vadd.f32 %v8967_v21, %v12721_v26  ;;  %9272 = vmatprep.mubr.msk.f32.mxu1 %vm11058_vm1, %v17480_v55  ;;  %v17484_v21 = vld [vmem:[#allocation116_spill] sm:$0xff]  ;;  %v17485_v55 = vld [vmem:[#allocation163_spill] sm:$0xff] }
 0x424   :  { %v3335_v39 = vpop.f32.mrf.mxu1  ;;  %v9095_v57 = vpop.f32.mrf.mxu0  ;;  %9398 = vmatmul.mubr.f32.gmra.mxu0 %v17317_v58 }
 0x425   :  { %v13155_v23 = vadd.f32 %v3335_v39, %v17481_v1  ;;  %v13157_v32 = vadd.f32 %v9095_v57, %v3583_v36  ;;  %9400 = vmatprep.mubr.f32.mxu0 %v17482_v37  ;;  %v17486_v57 = vld [vmem:[#allocation109_spill] sm:$0xff] }
 0x426   :  { %v8970_v14 = vpop.f32.mrf.mxu1  ;;  %v13160_v46 = vpop.f32.mrf.mxu0  ;;  %9273 = vmatmul.mubr.f32.gmra.mxu1 %v17483_v16  ;;  %v17487_v16 = vld [vmem:[#allocation119_spill] sm:$0xff] }
 0x427   :  { %v3585_v26 = vadd.f32 %v8970_v14, %v12732_v15  ;;  %9275 = vmatprep.mubr.msk.f32.mxu1 %vm11058_vm1, %v17484_v21  ;;  %v17488_v14 = vld [vmem:[#allocation120_spill] sm:$0xff] }
 0x428   :  { %v3345_v49 = vpop.f32.mrf.mxu1  ;;  %v9098_v58 = vpop.f32.mrf.mxu0  ;;  %9401 = vmatmul.mubr.f32.gmra.mxu0 %v17322_v10 }
 0x429   :  { %v13169_v36 = vadd.f32 %v3345_v49, %v17485_v55  ;;  %v13171_v39 = vadd.f32 %v9098_v58, %v3585_v26  ;;  %9403 = vmatprep.mubr.f32.mxu0 %v17486_v57  ;;  %v17489_v57 = vld [vmem:[#allocation121_spill] sm:$0xff] }
 0x42a   :  { %v8973_v1 = vpop.f32.mrf.mxu1  ;;  %v13174_v37 = vpop.f32.mrf.mxu0  ;;  %9276 = vmatmul.mubr.f32.gmra.mxu1 %v17487_v16 }
 0x42b   :  { %v3587_v15 = vadd.f32 %v8973_v1, %v12743_v27  ;;  %9278 = vmatprep.mubr.msk.f32.mxu1 %vm11058_vm1, %v17488_v14  ;;  %v17490_v1 = vld [vmem:[#allocation122_spill] sm:$0xff] }
 0x42c   :  { %v3355_v21 = vpop.f32.mrf.mxu1  ;;  %v9101_v10 = vpop.f32.mrf.mxu0  ;;  %9404 = vmatmul.mubr.f32.gmra.mxu0 %v17327_v40 }
 0x42d   :  { %v13183_v26 = vadd.f32 %v3355_v21, %v12748_v5  ;;  %v13185_v49 = vadd.f32 %v9101_v10, %v3587_v15  ;;  %9406 = vmatprep.mubr.f32.mxu0 %v17329_v51  ;;  %v17491_v5 = vld [vmem:[#allocation74_spill] sm:$0xff]  ;;  %v17492_v51 = vld [vmem:[#allocation117_spill] sm:$0xff] }
 0x42e   :  { %v8976_v58 = vpop.f32.mrf.mxu1  ;;  %v13188_v55 = vpop.f32.mrf.mxu0  ;;  %9279 = vmatmul.mubr.f32.gmra.mxu1 %v17489_v57  ;;  %v17493_v57 = vld [vmem:[#allocation123_spill] sm:$0xff] }
 0x42f   :  { %v3589_v27 = vadd.f32 %v8976_v58, %v12754_v48  ;;  %9281 = vmatprep.mubr.msk.f32.mxu1 %vm11058_vm1, %v17490_v1  ;;  %v17494_v58 = vld [vmem:[#allocation197_spill] sm:$0xff] }
 0x430   :  { %v3365_v16 = vpop.f32.mrf.mxu1  ;;  %v9104_v40 = vpop.f32.mrf.mxu0  ;;  %9407 = vmatmul.mubr.f32.gmra.mxu0 %v17331_v9 }
 0x431   :  { %v13197_v15 = vadd.f32 %v3365_v16, %v17491_v5  ;;  %v13199_v14 = vadd.f32 %v9104_v40, %v3589_v27  ;;  %9409 = vmatprep.mubr.f32.mxu0 %v17492_v51  ;;  %v17495_v40 = vld [vmem:[#allocation3_spill] sm:$0xff] }
 0x432   :  { %v8979_v21 = vpop.f32.mrf.mxu1  ;;  %v13202_v10 = vpop.f32.mrf.mxu0  ;;  %9282 = vmatmul.mubr.f32.gmra.mxu1 %v17493_v57  ;;  %v17496_v57 = vld [vmem:[#allocation8_spill] sm:$0xff] }
 0x433   :  { %v3591_v48 = vadd.f32 %v8979_v21, %v12769_v41  ;;  %9284 = vmatprep.mubr.msk.f32.mxu1 %vm11058_vm1, %v17494_v58 }
 0x434   :  { %v3375_v1 = vpop.f32.mrf.mxu1  ;;  %v9107_v9 = vpop.f32.mrf.mxu0  ;;  %9410 = vmatmul.mubr.f32.gmra.mxu0 %v17337_v53 }
 0x435   :  { %v13211_v27 = vadd.f32 %v3375_v1, %v12774_v29  ;;  %v13213_v16 = vadd.f32 %v9107_v9, %v3591_v48  ;;  %9412 = vmatprep.mubr.f32.mxu0 %v17495_v40  ;;  %v17500_v1 = vld [vmem:[#allocation125_spill] sm:$0xff] }
 0x436   :  { %v8982_v5 = vpop.f32.mrf.mxu1  ;;  %v13216_v51 = vpop.f32.mrf.mxu0  ;;  %9285 = vmatmul.mubr.f32.gmra.mxu1 %v17496_v57 }
 0x437   :  { %v3593_v41 = vadd.f32 %v8982_v5, %v12784_v12  ;;  %9287 = vmatprep.mubr.f32.mxu1 %v17431_v43 }
 0x438   :  { %v3385_v3 = vpop.f32.mrf.mxu1  ;;  %v9110_v21 = vpop.f32.mrf.mxu0  ;;  %9413 = vmatmul.mubr.f32.gmra.mxu0 %v12320_v62 }
 0x439   :  { %v13223_v29 = vadd.f32 %v3385_v3, %v12789_v44  ;;  %v13225_v53 = vadd.f32 %v9110_v21, %v3593_v41  ;;  %9415 = vmatprep.mubr.f32.mxu0 %v17431_v43  ;;  %v17504_v41 = vld [vmem:[#allocation124_spill] sm:$0xff]  ;;  %v17505_v3 = vld [vmem:[#allocation82_spill] sm:$0xff] }
 0x43a   :  { %v8985_v48 = vpop.f32.mrf.mxu1  ;;  %v13228_v58 = vpop.f32.mrf.mxu0  ;;  %9288 = vmatmul.mubr.f32.gmra.mxu1 %v17431_v43 }
 0x43b   :  { %17497 = vst [vmem:[#allocation11_spill] sm:$0xff] %v13223_v29  ;;  %17498 = vst [vmem:[#allocation31_spill] sm:$0xff] %v13225_v53  ;;  %v3595_v12 = vadd.f32 %v8985_v48, %v12797_v30  ;;  %9450 = vmatprep.mubr.f32.mxu1 %v17500_v1  ;;  %v17506_v30 = vld [vmem:[#allocation127_spill] sm:$0xff]  ;;  %v17507_v53 = vld [vmem:[#allocation172_spill] sm:$0xff] }
 0x43c   :  { %17499 = vst [vmem:[#allocation32_spill] sm:$0xff] %v13228_v58  ;;  %v3395_v9 = vpop.f32.mrf.mxu1  ;;  %v9113_v40 = vpop.f32.mrf.mxu0  ;;  %9416 = vmatmul.mubr.f32.gmra.mxu0 %v17431_v43 }
 0x43d   :  { %v13235_v62 = vadd.f32 %v3395_v9, %v12805_v56  ;;  %v13237_v44 = vadd.f32 %v9113_v40, %v3595_v12  ;;  %v17511_v9 = vld [vmem:[#allocation126_spill] sm:$0xff] }
 0x43e   :  { %v8988_v5 = vpop.f32.mrf.mxu1  ;;  %v13239_v57 = vpop.f32.mrf.mxu0  ;;  %9451 = vmatmul.mubr.msk.f32.vlgmr.msra.gmra.mxu1 %vm1234_vm2, %v17504_v41  ;;  %v17512_v40 = vld [vmem:[#allocation86_spill] sm:$0xff]  ;;  %v17513_v41 = vld [vmem:[#allocation129_spill] sm:$0xff] }
 0x43f   :  { %17501 = vst [vmem:[#allocation7_spill] sm:$0xff] %v13235_v62  ;;  %17502 = vst [vmem:[#allocation10_spill] sm:$0xff] %v13237_v44  ;;  %v3597_v21 = vadd.f32 %v8988_v5, %v17505_v3  ;;  %9453 = vmatprep.mubr.f32.mxu1 %v17506_v30  ;;  %v17514_v30 = vld [vmem:[#allocation175_spill] sm:$0xff] }
 0x440   :  { %17503 = vst [vmem:[#allocation35_spill] sm:$0xff] %v13239_v57  ;;  %v3405_v48 = vpop.f32.mrf.mxu1  ;;  %v9116_v1 = vpop.f32.mrf.mxu0 }
 0x441   :  { %v13246_v58 = vadd.f32 %v3405_v48, %v17507_v53  ;;  %v13248_v29 = vadd.f32 %v9116_v1, %v3597_v21  ;;  %v17518_v48 = vld [vmem:[#allocation128_spill] sm:$0xff]  ;;  %v17519_v1 = vld [vmem:[#allocation178_spill] sm:$0xff] }
 0x442   :  { %v8991_v56 = vpop.f32.mrf.mxu1  ;;  %v13250_v12 = vpop.f32.mrf.mxu0  ;;  %9454 = vmatmul.mubr.msk.f32.gmra.mxu1 %vm1234_vm2, %v17511_v9  ;;  %v17520_v9 = vld [vmem:[#allocation131_spill] sm:$0xff] }
 0x443   :  { %17508 = vst [vmem:[#allocation9_spill] sm:$0xff] %v13246_v58  ;;  %17509 = vst [vmem:[#allocation36_spill] sm:$0xff] %v13248_v29  ;;  %v3599_v44 = vadd.f32 %v8991_v56, %v17512_v40  ;;  %9456 = vmatprep.mubr.f32.mxu1 %v17513_v41  ;;  %v17521_v41 = vld [vmem:[#allocation181_spill] sm:$0xff] }
 0x444   :  { %17510 = vst [vmem:[#allocation13_spill] sm:$0xff] %v13250_v12  ;;  %v3415_v5 = vpop.f32.mrf.mxu1  ;;  %v9119_v3 = vpop.f32.mrf.mxu0 }
 0x445   :  { %v13257_v57 = vadd.f32 %v3415_v5, %v17514_v30  ;;  %v13259_v62 = vadd.f32 %v9119_v3, %v3599_v44  ;;  %v17524_v3 = vld [vmem:[#allocation130_spill] sm:$0xff] }
 0x446   :  { %v8994_v53 = vpop.f32.mrf.mxu1  ;;  %v13261_v21 = vpop.f32.mrf.mxu0  ;;  %9457 = vmatmul.mubr.msk.f32.gmra.mxu1 %vm1234_vm2, %v17518_v48  ;;  %v17525_v30 = vld [vmem:[#allocation98_spill] sm:$0xff]  ;;  %v17526_v48 = vld [vmem:[#allocation133_spill] sm:$0xff] }
 0x447   :  { %17515 = vst [vmem:[#allocation199_spill] sm:$0xff] %v13257_v57  ;;  %17516 = vst [vmem:[#allocation29_spill] sm:$0xff] %v13259_v62  ;;  %v3601_v29 = vadd.f32 %v8994_v53, %v17519_v1  ;;  %9459 = vmatprep.mubr.f32.mxu1 %v17520_v9  ;;  %v17527_v9 = vld [vmem:[#allocation184_spill] sm:$0xff] }
 0x448   :  { %17517 = vst [vmem:[#allocation39_spill] sm:$0xff] %v13261_v21  ;;  %v3425_v56 = vpop.f32.mrf.mxu1  ;;  %v9122_v40 = vpop.f32.mrf.mxu0 }
 0x449   :  { %v13268_v12 = vadd.f32 %v3425_v56, %v17521_v41  ;;  %v13270_v58 = vadd.f32 %v9122_v40, %v3601_v29  ;;  %v17530_v40 = vld [vmem:[#allocation132_spill] sm:$0xff] }
 0x44a   :  { %v8997_v5 = vpop.f32.mrf.mxu1  ;;  %v13272_v44 = vpop.f32.mrf.mxu0  ;;  %9460 = vmatmul.mubr.msk.f32.gmra.mxu1 %vm1234_vm2, %v17524_v3  ;;  %v17531_v3 = vld [vmem:[#allocation135_spill] sm:$0xff] }
 0x44b   :  { %17522 = vst [vmem:[#allocation200_spill] sm:$0xff] %v13270_v58  ;;  %17523 = vst [vmem:[#allocation40_spill] sm:$0xff] %v13272_v44  ;;  %v3603_v62 = vadd.f32 %v8997_v5, %v17525_v30  ;;  %9462 = vmatprep.mubr.f32.mxu1 %v17526_v48  ;;  %v17532_v48 = vld [vmem:[#allocation102_spill] sm:$0xff] }
 0x44c   :  { %v3435_v53 = vpop.f32.mrf.mxu1  ;;  %v9125_v1 = vpop.f32.mrf.mxu0 }
 0x44d   :  { %v13279_v21 = vadd.f32 %v3435_v53, %v17527_v9  ;;  %v13281_v57 = vadd.f32 %v9125_v1, %v3603_v62  ;;  %v17534_v1 = vld [vmem:[#allocation134_spill] sm:$0xff] }
 0x44e   :  { %v9000_v56 = vpop.f32.mrf.mxu1  ;;  %v13283_v29 = vpop.f32.mrf.mxu0  ;;  %9463 = vmatmul.mubr.msk.f32.gmra.mxu1 %vm1234_vm2, %v17530_v40  ;;  %v17535_v40 = vld [vmem:[#allocation137_spill] sm:$0xff] }
 0x44f   :  { %17528 = vst [vmem:[#allocation30_spill] sm:$0xff] %v13281_v57  ;;  %17529 = vst [vmem:[#allocation201_spill] sm:$0xff] %v13283_v29  ;;  %v3605_v41 = vadd.f32 %v9000_v56, %v12888_v59  ;;  %9465 = vmatprep.mubr.f32.mxu1 %v17531_v3  ;;  %v17536_v3 = vld [vmem:[#allocation187_spill] sm:$0xff] }
 0x450   :  { %v3445_v5 = vpop.f32.mrf.mxu1  ;;  %v9128_v30 = vpop.f32.mrf.mxu0 }
 0x451   :  { %v13290_v58 = vadd.f32 %v3445_v5, %v17532_v48  ;;  %v13292_v44 = vadd.f32 %v9128_v30, %v3605_v41  ;;  %v17538_v30 = vld [vmem:[#allocation136_spill] sm:$0xff] }
 0x452   :  { %v9003_v53 = vpop.f32.mrf.mxu1  ;;  %v13294_v62 = vpop.f32.mrf.mxu0  ;;  %9466 = vmatmul.mubr.msk.f32.gmra.mxu1 %vm1234_vm2, %v17534_v1  ;;  %v17539_v1 = vld [vmem:[#allocation139_spill] sm:$0xff] }
 0x453   :  { %17533 = vst [vmem:[#allocation33_spill] sm:$0xff] %v13292_v44  ;;  %v3607_v9 = vadd.f32 %v9003_v53, %v12906_v13  ;;  %9468 = vmatprep.mubr.f32.mxu1 %v17535_v40 }
 0x454   :  { %v3455_v59 = vpop.f32.mrf.mxu1  ;;  %v9131_v56 = vpop.f32.mrf.mxu0 }
 0x455   :  { %v13301_v57 = vadd.f32 %v3455_v59, %v17536_v3  ;;  %v13303_v29 = vadd.f32 %v9131_v56, %v3607_v9  ;;  %v17541_v56 = vld [vmem:[#allocation138_spill] sm:$0xff] }
 0x456   :  { %v9006_v5 = vpop.f32.mrf.mxu1  ;;  %v13305_v41 = vpop.f32.mrf.mxu0  ;;  %9469 = vmatmul.mubr.msk.f32.gmra.mxu1 %vm1234_vm2, %v17538_v30  ;;  %v17542_v30 = vld [vmem:[#allocation141_spill] sm:$0xff] }
 0x457   :  { %17537 = vst [vmem:[#allocation41_spill] sm:$0xff] %v13303_v29  ;;  %v3609_v48 = vadd.f32 %v9006_v5, %v12924_v42  ;;  %9471 = vmatprep.mubr.f32.mxu1 %v17539_v1 }
 0x458   :  { %v3465_v13 = vpop.f32.mrf.mxu1  ;;  %v9134_v53 = vpop.f32.mrf.mxu0 }
 0x459   :  { %v13312_v40 = vadd.f32 %v3465_v13, %v12932_v47  ;;  %v13314_v44 = vadd.f32 %v9134_v53, %v3609_v48  ;;  %v17545_v13 = vld [vmem:[#allocation140_spill] sm:$0xff] }
 0x45a   :  { %v9009_v59 = vpop.f32.mrf.mxu1  ;;  %v13316_v9 = vpop.f32.mrf.mxu0  ;;  %9472 = vmatmul.mubr.msk.f32.gmra.mxu1 %vm1234_vm2, %v17541_v56  ;;  %v17546_v56 = vld [vmem:[#allocation143_spill] sm:$0xff] }
 0x45b   :  { %17540 = vst [vmem:[#allocation202_spill] sm:$0xff] %v13314_v44  ;;  %v3611_v3 = vadd.f32 %v9009_v59, %v12939_v2  ;;  %9474 = vmatprep.mubr.f32.mxu1 %v17542_v30 }
 0x45c   :  { %v3475_v42 = vpop.f32.mrf.mxu1  ;;  %v9137_v5 = vpop.f32.mrf.mxu0 }
 0x45d   :  { %v13323_v1 = vadd.f32 %v3475_v42, %v12944_v50  ;;  %v13325_v29 = vadd.f32 %v9137_v5, %v3611_v3  ;;  %v17549_v42 = vld [vmem:[#allocation142_spill] sm:$0xff] }
 0x45e   :  { %v9012_v47 = vpop.f32.mrf.mxu1  ;;  %v13327_v48 = vpop.f32.mrf.mxu0  ;;  %9475 = vmatmul.mubr.msk.f32.gmra.mxu1 %vm1234_vm2, %v17545_v13  ;;  %v17550_v5 = vld [vmem:[#allocation106_spill] sm:$0xff]  ;;  %v17551_v13 = vld [vmem:[#allocation145_spill] sm:$0xff] }
 0x45f   :  { %17543 = vst [vmem:[#allocation42_spill] sm:$0xff] %v13325_v29  ;;  %17544 = vst [vmem:[#allocation34_spill] sm:$0xff] %v13327_v48  ;;  %v3613_v53 = vadd.f32 %v9012_v47, %v12951_v19  ;;  %9477 = vmatprep.mubr.f32.mxu1 %v17546_v56 }
 0x460   :  { %v3485_v2 = vpop.f32.mrf.mxu1  ;;  %v9140_v59 = vpop.f32.mrf.mxu0 }
 0x461   :  { %v13334_v30 = vadd.f32 %v3485_v2, %v12956_v45  ;;  %v13336_v44 = vadd.f32 %v9140_v59, %v3613_v53  ;;  %v17555_v2 = vld [vmem:[#allocation144_spill] sm:$0xff] }
 0x462   :  { %v9015_v50 = vpop.f32.mrf.mxu1  ;;  %v13338_v3 = vpop.f32.mrf.mxu0  ;;  %9478 = vmatmul.mubr.msk.f32.gmra.mxu1 %vm1234_vm2, %v17549_v42  ;;  %v17556_v42 = vld [vmem:[#allocation147_spill] sm:$0xff] }
 0x463   :  { %17547 = vst [vmem:[#allocation203_spill] sm:$0xff] %v13336_v44  ;;  %17548 = vst [vmem:[#allocation37_spill] sm:$0xff] %v13338_v3  ;;  %v3615_v29 = vadd.f32 %v9015_v50, %v17550_v5  ;;  %9480 = vmatprep.mubr.f32.mxu1 %v17551_v13  ;;  %v17557_v13 = vld [vmem:[#allocation190_spill] sm:$0xff] }
 0x464   :  { %v3495_v19 = vpop.f32.mrf.mxu1  ;;  %v9143_v47 = vpop.f32.mrf.mxu0 }
 0x465   :  { %v13345_v56 = vadd.f32 %v3495_v19, %v12968_v54  ;;  %v13347_v48 = vadd.f32 %v9143_v47, %v3615_v29  ;;  %v17561_v19 = vld [vmem:[#allocation146_spill] sm:$0xff] }
 0x466   :  { %v9018_v45 = vpop.f32.mrf.mxu1  ;;  %v13349_v53 = vpop.f32.mrf.mxu0  ;;  %9481 = vmatmul.mubr.msk.f32.gmra.mxu1 %vm1234_vm2, %v17555_v2  ;;  %v17562_v47 = vld [vmem:[#allocation110_spill] sm:$0xff]  ;;  %v17563_v2 = vld [vmem:[#allocation149_spill] sm:$0xff] }
 0x467   :  { %17552 = vst [vmem:[#allocation43_spill] sm:$0xff] %v13345_v56  ;;  %17553 = vst [vmem:[#allocation204_spill] sm:$0xff] %v13347_v48  ;;  %v3617_v59 = vadd.f32 %v9018_v45, %v12975_v38  ;;  %9483 = vmatprep.mubr.f32.mxu1 %v17556_v42  ;;  %v17564_v42 = vld [vmem:[#allocation193_spill] sm:$0xff] }
 0x468   :  { %17554 = vst [vmem:[#allocation44_spill] sm:$0xff] %v13349_v53  ;;  %v3505_v50 = vpop.f32.mrf.mxu1  ;;  %v9146_v5 = vpop.f32.mrf.mxu0 }
 0x469   :  { %v13356_v44 = vadd.f32 %v3505_v50, %v17557_v13  ;;  %v13358_v3 = vadd.f32 %v9146_v5, %v3617_v59  ;;  %v17566_v5 = vld [vmem:[#allocation148_spill] sm:$0xff]  ;;  %v17567_v13 = vld [vmem:[#allocation113_spill] sm:$0xff] }
 0x46a   :  { %v9021_v54 = vpop.f32.mrf.mxu1  ;;  %v13360_v29 = vpop.f32.mrf.mxu0  ;;  %9484 = vmatmul.mubr.msk.f32.gmra.mxu1 %vm1234_vm2, %v17561_v19  ;;  %v17568_v19 = vld [vmem:[#allocation151_spill] sm:$0xff] }
 0x46b   :  { %17558 = vst [vmem:[#allocation38_spill] sm:$0xff] %v13356_v44  ;;  %17559 = vst [vmem:[#allocation205_spill] sm:$0xff] %v13358_v3  ;;  %v3619_v48 = vadd.f32 %v9021_v54, %v17562_v47  ;;  %9486 = vmatprep.mubr.f32.mxu1 %v17563_v2  ;;  %v17569_v2 = vld [vmem:[#allocation114_spill] sm:$0xff] }
 0x46c   :  { %17560 = vst [vmem:[#allocation14_spill] sm:$0xff] %v13360_v29  ;;  %v3515_v38 = vpop.f32.mrf.mxu1  ;;  %v9149_v45 = vpop.f32.mrf.mxu0 }
 0x46d   :  { %v13367_v53 = vadd.f32 %v3515_v38, %v17564_v42  ;;  %v13369_v56 = vadd.f32 %v9149_v45, %v3619_v48  ;;  %v17571_v45 = vld [vmem:[#allocation150_spill] sm:$0xff] }
 0x46e   :  { %v9024_v50 = vpop.f32.mrf.mxu1  ;;  %v13371_v59 = vpop.f32.mrf.mxu0  ;;  %9487 = vmatmul.mubr.msk.f32.gmra.mxu1 %vm1234_vm2, %v17566_v5  ;;  %v17572_v5 = vld [vmem:[#allocation214_spill] sm:$0xff] }
 0x46f   :  { %17565 = vst [vmem:[#allocation45_spill] sm:$0xff] %v13369_v56  ;;  %v3621_v3 = vadd.f32 %v9024_v50, %v17567_v13  ;;  %9489 = vmatprep.mubr.f32.mxu1 %v17568_v19 }
 0x470   :  { %v3525_v54 = vpop.f32.mrf.mxu1  ;;  %v9152_v47 = vpop.f32.mrf.mxu0 }
 0x471   :  { %v13378_v29 = vadd.f32 %v3525_v54, %v17569_v2  ;;  %v13380_v44 = vadd.f32 %v9152_v47, %v3621_v3  ;;  %v17574_v47 = vld [vmem:[#allocation211_spill] sm:$0xff]  ;;  %v17575_v2 = vld [vmem:[#allocation196_spill] sm:$0xff] }
 0x472   :  { %v9027_v38 = vpop.f32.mrf.mxu1  ;;  %v13382_v48 = vpop.f32.mrf.mxu0  ;;  %9490 = vmatmul.mubr.msk.f32.gmra.mxu1 %vm1234_vm2, %v17571_v45 }
 0x473   :  { %17570 = vst [vmem:[#allocation206_spill] sm:$0xff] %v13380_v44  ;;  %v3623_v42 = vadd.f32 %v9027_v38, %v13011_v6  ;;  %9492 = vmatprep.mubr.f32.mxu1 %v17572_v5 }
 0x474   :  { %v3535_v50 = vpop.f32.mrf.mxu1  ;;  %v9155_v13 = vpop.f32.mrf.mxu0 }
 0x475   :  { %v13389_v19 = vadd.f32 %v3535_v50, %v13016_v31  ;;  %v13391_v56 = vadd.f32 %v9155_v13, %v3623_v42  ;;  %v17578_v13 = vld [vmem:[#allocation158_spill] sm:$0xff] }
 0x476   :  { %v9030_v54 = vpop.f32.mrf.mxu1  ;;  %v13393_v3 = vpop.f32.mrf.mxu0  ;;  %9493 = vmatmul.mubr.msk.f32.gmra.mxu1 %vm1234_vm2, %v17574_v47 }
 0x477   :  { %17573 = vst [vmem:[#allocation46_spill] sm:$0xff] %v13391_v56  ;;  %v3625_v44 = vadd.f32 %v9030_v54, %v17575_v2  ;;  %9495 = vmatprep.mubr.f32.mxu1 %v17431_v43 }
 0x478   :  { %v3545_v6 = vpop.f32.mrf.mxu1  ;;  %v9158_v38 = vpop.f32.mrf.mxu0 }
 0x479   :  { %v13400_v45 = vadd.f32 %v3545_v6, %v13026_v28  ;;  %v13402_v5 = vadd.f32 %v9158_v38, %v3625_v44  ;;  %v17579_v6 = vld [vmem:[#allocation156_spill] sm:$0xff]  ;;  %v17580_v38 = vld [vmem:[#allocation118_spill] sm:$0xff] }
 0x47a   :  { %v9033_v31 = vpop.f32.mrf.mxu1  ;;  %v13404_v42 = vpop.f32.mrf.mxu0  ;;  %9496 = vmatmul.mubr.f32.gmra.mxu1 %v17431_v43 }
 0x47b   :  { %17576 = vst [vmem:[#allocation15_spill] sm:$0xff] %v13402_v5  ;;  %17577 = vst [vmem:[#allocation207_spill] sm:$0xff] %v13404_v42  ;;  %v3627_v50 = vadd.f32 %v9033_v31, %v13033_v22  ;;  %9498 = vmatprep.mubr.f32.mxu1 %v17578_v13  ;;  %v17582_v42 = vld [vmem:[#allocation161_spill] sm:$0xff] }
 0x47c   :  { %v3555_v47 = vpop.f32.mrf.mxu1  ;;  %v9161_v54 = vpop.f32.mrf.mxu0 }
 0x47d   :  { %v13410_v2 = vadd.f32 %v3555_v47, %v13037_v25  ;;  %v13412_v56 = vadd.f32 %v9161_v54, %v3627_v50  ;;  %v17585_v47 = vld [vmem:[#allocation159_spill] sm:$0xff] }
 0x47e   :  { %v13414_v28 = vpop.f32.mrf.mxu0  ;;  %v9196_v44 = vpop.f32.mrf.mxu1  ;;  %9499 = vmatmul.mubr.msk.f32.gmra.mxu1 %vm1234_vm2, %v17579_v6  ;;  %v17586_v6 = vld [vmem:[#allocation164_spill] sm:$0xff] }
 0x47f   :  { %v13419_v5 = vadd.f32 %v9196_v44, %v17580_v38  ;;  %9501 = vmatprep.mubr.f32.mxu1 %v17582_v42 }
 0x480   :  { %v4177_v22 = vpop.f32.mrf.mxu1  ;;  %v13422_v31 = vpop.f32.mrf.mxu0 }
 0x481   :  { %17581 = vst [vmem:[#allocation16_spill] sm:$0xff] %v13419_v5  ;;  %17583 = vst [vmem:[#allocation47_spill] sm:$0xff] %v13422_v31  ;;  %v13425_v13 = vadd.f32 %v4177_v22, %v13050_v34  ;;  %v17588_v34 = vld [vmem:[#allocation162_spill] sm:$0xff] }
 0x482   :  { %v9199_v25 = vpop.f32.mrf.mxu1  ;;  %v13427_v50 = vpop.f32.mrf.mxu0  ;;  %9502 = vmatmul.mubr.msk.f32.gmra.mxu1 %vm1234_vm2, %v17585_v47  ;;  %v17589_v22 = vld [vmem:[#allocation198_spill] sm:$0xff] }
 0x483   :  { %17584 = vst [vmem:[#allocation48_spill] sm:$0xff] %v13427_v50  ;;  %v13432_v54 = vadd.f32 %v9199_v25, %v13057_v33  ;;  %9504 = vmatprep.mubr.f32.mxu1 %v17586_v6  ;;  %v17591_v50 = vld [vmem:[#allocation167_spill] sm:$0xff] }
 0x484   :  { %v4187_v44 = vpop.f32.mrf.mxu1  ;;  %v13435_v38 = vpop.f32.mrf.mxu0 }
 0x485   :  { %17587 = vst [vmem:[#allocation17_spill] sm:$0xff] %v13435_v38  ;;  %v13438_v42 = vadd.f32 %v4187_v44, %v13062_v60  ;;  %v17592_v38 = vld [vmem:[#allocation165_spill] sm:$0xff]  ;;  %v17594_v44 = vld [vmem:[#allocation170_spill] sm:$0xff] }
 0x486   :  { %v9202_v31 = vpop.f32.mrf.mxu1  ;;  %9505 = vmatmul.mubr.msk.f32.gmra.mxu1 %vm1234_vm2, %v17588_v34  ;;  %v13446_v47 = vpop.f32.mrf.mxu0 }
 0x487   :  { %v13443_v5 = vadd.f32 %v9202_v31, %v17589_v22  ;;  %9507 = vmatprep.mubr.f32.mxu1 %v17591_v50 }
 0x488   :  { %v4197_v33 = vpop.f32.mrf.mxu1  ;;  %v13457_v34 = vpop.f32.mrf.mxu0 }
 0x489   :  { %17590 = vst [vmem:[#allocation208_spill] sm:$0xff] %v13443_v5  ;;  %v13449_v25 = vadd.f32 %v4197_v33, %v13074_v61  ;;  %v17595_v5 = vld [vmem:[#allocation168_spill] sm:$0xff]  ;;  %v17597_v33 = vld [vmem:[#allocation173_spill] sm:$0xff] }
 0x48a   :  { %v9205_v6 = vpop.f32.mrf.mxu1  ;;  %9508 = vmatmul.mubr.msk.f32.gmra.mxu1 %vm1234_vm2, %v17592_v38  ;;  %v13468_v38 = vpop.f32.mrf.mxu0 }
 0x48b   :  { %v13454_v60 = vadd.f32 %v9205_v6, %v13081_v4  ;;  %9510 = vmatprep.mubr.f32.mxu1 %v17594_v44 }
 0x48c   :  { %v4207_v31 = vpop.f32.mrf.mxu1 }
 0x48d   :  { %17593 = vst [vmem:[#allocation18_spill] sm:$0xff] %v13454_v60  ;;  %v13460_v50 = vadd.f32 %v4207_v31, %v13086_v18  ;;  %v17599_v60 = vld [vmem:[#allocation171_spill] sm:$0xff]  ;;  %v17601_v31 = vld [vmem:[#allocation176_spill] sm:$0xff] }
 0x48e   :  { %v9208_v22 = vpop.f32.mrf.mxu1  ;;  %9511 = vmatmul.mubr.msk.f32.gmra.mxu1 %vm1234_vm2, %v17595_v5  ;;  %v13479_v5 = vpop.f32.mrf.mxu0 }
 0x48f   :  { %v13465_v61 = vadd.f32 %v9208_v22, %v13093_v63  ;;  %9513 = vmatprep.mubr.f32.mxu1 %v17597_v33 }
 0x490   :  { %v4217_v4 = vpop.f32.mrf.mxu1 }
 0x491   :  { %17596 = vst [vmem:[#allocation49_spill] sm:$0xff] %v13465_v61  ;;  %v13471_v6 = vadd.f32 %v4217_v4, %v13098_v35  ;;  %v17602_v61 = vld [vmem:[#allocation174_spill] sm:$0xff]  ;;  %v17603_v35 = vld [vmem:[#allocation12_spill] sm:$0xff] }
 0x492   :  { %v9211_v44 = vpop.f32.mrf.mxu1  ;;  %9514 = vmatmul.mubr.msk.f32.gmra.mxu1 %vm1234_vm2, %v17599_v60  ;;  %v13490_v60 = vpop.f32.mrf.mxu0 }
 0x493   :  { %17598 = vst [vmem:[#allocation50_spill] sm:$0xff] %v13471_v6  ;;  %v13476_v18 = vadd.f32 %v9211_v44, %v13105_v20  ;;  %9516 = vmatprep.mubr.f32.mxu1 %v17601_v31  ;;  %v17605_v6 = vld [vmem:[#allocation179_spill] sm:$0xff] }
 0x494   :  { %v4227_v63 = vpop.f32.mrf.mxu1 }
 0x495   :  { %17600 = vst [vmem:[#allocation19_spill] sm:$0xff] %v13476_v18  ;;  %v13482_v22 = vadd.f32 %v4227_v63, %v13110_v11  ;;  %v17606_v18 = vld [vmem:[#allocation177_spill] sm:$0xff]  ;;  %v17608_v63 = vld [vmem:[#allocation182_spill] sm:$0xff] }
 0x496   :  { %v9214_v33 = vpop.f32.mrf.mxu1  ;;  %9517 = vmatmul.mubr.msk.f32.gmra.mxu1 %vm1234_vm2, %v17602_v61  ;;  %v13501_v61 = vpop.f32.mrf.mxu0 }
 0x497   :  { %v13487_v4 = vadd.f32 %v9214_v33, %v17603_v35  ;;  %9519 = vmatprep.mubr.f32.mxu1 %v17605_v6 }
 0x498   :  { %v4237_v20 = vpop.f32.mrf.mxu1 }
 0x499   :  { %17604 = vst [vmem:[#allocation20_spill] sm:$0xff] %v13487_v4  ;;  %v13493_v44 = vadd.f32 %v4237_v20, %v13122_v24  ;;  %v17609_v4 = vld [vmem:[#allocation180_spill] sm:$0xff]  ;;  %v4046_v24 = vadd.f32 %v13146_v52, %v13141_v7  ;;  %v13514_v20 = vpop.f32.mrf.mxu0 }
 0x49a   :  { %v9217_v31 = vpop.f32.mrf.mxu1  ;;  %9520 = vmatmul.mubr.msk.f32.gmra.mxu1 %vm1234_vm2, %v17606_v18  ;;  %v17612_v7 = vld [vmem:[#allocation188_spill] sm:$0xff] }
 0x49b   :  { %v13498_v11 = vadd.f32 %v9217_v31, %v13129_v0  ;;  %9522 = vmatprep.mubr.f32.mxu1 %v17608_v63  ;;  %v17610_v0 = vld [vmem:[#allocation185_spill] sm:$0xff] }
 0x49c   :  { %v4247_v33 = vpop.f32.mrf.mxu1 }
 0x49d   :  { %17607 = vst [vmem:[#allocation51_spill] sm:$0xff] %v13498_v11  ;;  %v13504_v6 = vadd.f32 %v4247_v33, %v13134_v17  ;;  %v17611_v17 = vld [vmem:[#allocation183_spill] sm:$0xff] }
 0x49e   :  { %v9220_v35 = vpop.f32.mrf.mxu1  ;;  %9523 = vmatmul.mubr.msk.f32.gmra.mxu1 %vm1234_vm2, %v17609_v4  ;;  %v4048_v4 = vadd.f32 %v13160_v46, %v13155_v23  ;;  %v17615_v23 = vld [vmem:[#allocation191_spill] sm:$0xff] }
 0x49f   :  { %v13511_v18 = vadd.f32 %v9220_v35, %v13143_v8  ;;  %9525 = vmatprep.mubr.f32.mxu1 %v17610_v0  ;;  %v13526_v8 = vpop.f32.mrf.mxu0 }
 0x4a0   :  { %v4257_v31 = vpop.f32.mrf.mxu1 }
 0x4a1   :  { %v13516_v63 = vadd.f32 %v4257_v31, %v4046_v24  ;;  %v17613_v24 = vld [vmem:[#allocation186_spill] sm:$0xff]  ;;  %v4050_v31 = vadd.f32 %v13174_v37, %v13169_v36 }
 0x4a2   :  { %v9223_v11 = vpop.f32.mrf.mxu1  ;;  %9526 = vmatmul.mubr.msk.f32.gmra.mxu1 %vm1234_vm2, %v17611_v17  ;;  %v17619_v36 = vld [vmem:[#allocation194_spill] sm:$0xff] }
 0x4a3   :  { %v13523_v33 = vadd.f32 %v9223_v11, %v13157_v32  ;;  %9528 = vmatprep.mubr.f32.mxu1 %v17612_v7  ;;  %v13538_v32 = vpop.f32.mrf.mxu0 }
 0x4a4   :  { %v4267_v52 = vpop.f32.mrf.mxu1 }
 0x4a5   :  { %v13528_v35 = vadd.f32 %v4267_v52, %v4048_v4  ;;  %v17617_v4 = vld [vmem:[#allocation189_spill] sm:$0xff]  ;;  %v4052_v52 = vadd.f32 %v13188_v55, %v13183_v26  ;;  %v17623_v26 = vld [vmem:[#allocation6_spill] sm:$0xff] }
 0x4a6   :  { %v9226_v0 = vpop.f32.mrf.mxu1  ;;  %9529 = vmatmul.mubr.msk.f32.gmra.mxu1 %vm1234_vm2, %v17613_v24 }
 0x4a7   :  { %v13535_v17 = vadd.f32 %v9226_v0, %v13171_v39  ;;  %9531 = vmatprep.mubr.f32.mxu1 %v17615_v23  ;;  %v13550_v39 = vpop.f32.mrf.mxu0 }
 0x4a8   :  { %v4277_v46 = vpop.f32.mrf.mxu1 }
 0x4a9   :  { %17614 = vst [vmem:[#allocation52_spill] sm:$0xff] %v13535_v17  ;;  %v13540_v11 = vadd.f32 %v4277_v46, %v4050_v31  ;;  %v17621_v31 = vld [vmem:[#allocation192_spill] sm:$0xff]  ;;  %v4054_v46 = vadd.f32 %v13202_v10, %v13197_v15  ;;  %v17627_v15 = vld [vmem:[#allocation169_spill] sm:$0xff] }
 0x4aa   :  { %v9229_v7 = vpop.f32.mrf.mxu1  ;;  %9532 = vmatmul.mubr.msk.f32.gmra.mxu1 %vm1234_vm2, %v17617_v4 }
 0x4ab   :  { %17616 = vst [vmem:[#allocation21_spill] sm:$0xff] %v13540_v11  ;;  %v13547_v24 = vadd.f32 %v9229_v7, %v13185_v49  ;;  %9534 = vmatprep.mubr.f32.mxu1 %v17619_v36  ;;  %v13562_v49 = vpop.f32.mrf.mxu0 }
 0x4ac   :  { %v4287_v37 = vpop.f32.mrf.mxu1 }
 0x4ad   :  { %17618 = vst [vmem:[#allocation22_spill] sm:$0xff] %v13547_v24  ;;  %v13552_v0 = vadd.f32 %v4287_v37, %v4052_v52  ;;  %v17625_v52 = vld [vmem:[#allocation195_spill] sm:$0xff]  ;;  %v4056_v37 = vadd.f32 %v13216_v51, %v13211_v27 }
 0x4ae   :  { %v9232_v23 = vpop.f32.mrf.mxu1  ;;  %9535 = vmatmul.mubr.msk.f32.gmra.mxu1 %vm1234_vm2, %v17621_v31 }
 0x4af   :  { %17620 = vst [vmem:[#allocation53_spill] sm:$0xff] %v13552_v0  ;;  %v13559_v4 = vadd.f32 %v9232_v23, %v13199_v14  ;;  %9537 = vmatprep.mubr.f32.mxu1 %v17623_v26  ;;  %v13574_v14 = vpop.f32.mrf.mxu0 }
 0x4b0   :  { %v4297_v55 = vpop.f32.mrf.mxu1 }
 0x4b1   :  { %17622 = vst [vmem:[#allocation54_spill] sm:$0xff] %v13559_v4  ;;  %v13564_v7 = vadd.f32 %v4297_v55, %v4054_v46  ;;  %v17629_v46 = vld [vmem:[#allocation166_spill] sm:$0xff]  ;;  %v17630_v55 = vld [vmem:[#allocation11_spill] sm:$0xff]  ;;  %v17631_v4 = vld [vmem:[#allocation32_spill] sm:$0xff]  ;;  %v13586_v27 = vpop.f32.mrf.mxu0 }
 0x4b2   :  { %v9235_v36 = vpop.f32.mrf.mxu1  ;;  %9538 = vmatmul.mubr.msk.f32.gmra.mxu1 %vm1234_vm2, %v17625_v52  ;;  %v4058_v52 = vadd.f32 %v17631_v4, %v17630_v55 }
 0x4b3   :  { %17624 = vst [vmem:[#allocation24_spill] sm:$0xff] %v13564_v7  ;;  %v13571_v31 = vadd.f32 %v9235_v36, %v13213_v16  ;;  %9540 = vmatprep.mubr.f32.mxu1 %v17627_v15  ;;  %v17632_v7 = vld [vmem:[#allocation31_spill] sm:$0xff]  ;;  %v13596_v4 = vpop.f32.mrf.mxu0 }
 0x4b4   :  { %v4307_v10 = vpop.f32.mrf.mxu1  ;;  %v17636_v15 = vld [vmem:[#allocation35_spill] sm:$0xff] }
 0x4b5   :  { %17626 = vst [vmem:[#allocation57_spill] sm:$0xff] %v13571_v31  ;;  %v13576_v23 = vadd.f32 %v4307_v10, %v4056_v37  ;;  %v17635_v37 = vld [vmem:[#allocation7_spill] sm:$0xff] }
 0x4b6   :  { %v9238_v26 = vpop.f32.mrf.mxu1  ;;  %9541 = vmatmul.mubr.msk.f32.gmra.mxu1 %vm1234_vm2, %v17629_v46  ;;  %v4060_v10 = vadd.f32 %v17636_v15, %v17635_v37  ;;  %v17637_v46 = vld [vmem:[#allocation10_spill] sm:$0xff]  ;;  %v17646_v15 = vld [vmem:[#allocation39_spill] sm:$0xff] }
 0x4b7   :  { %17628 = vst [vmem:[#allocation23_spill] sm:$0xff] %v13576_v23  ;;  %v13583_v24 = vadd.f32 %v9238_v26, %v17632_v7  ;;  %9543 = vmatprep.mubr.f32.mxu1 %v17431_v43  ;;  %v17641_v23 = vld [vmem:[#allocation13_spill] sm:$0xff] }
 0x4b8   :  { %v4317_v16 = vpop.f32.mrf.mxu1 }
 0x4b9   :  { %17633 = vst [vmem:[#allocation58_spill] sm:$0xff] %v13583_v24  ;;  %v13588_v51 = vadd.f32 %v4317_v16, %v4058_v52  ;;  %v17640_v24 = vld [vmem:[#allocation9_spill] sm:$0xff]  ;;  %v17642_v52 = vld [vmem:[#allocation36_spill] sm:$0xff] }
 0x4ba   :  { %v9241_v36 = vpop.f32.mrf.mxu1  ;;  %9544 = vmatmul.mubr.f32.gmra.mxu1 %v17431_v43  ;;  %v4062_v0 = vadd.f32 %v17641_v23, %v17640_v24  ;;  %v17650_v23 = vld [vmem:[#allocation40_spill] sm:$0xff] }
 0x4bb   :  { %17634 = vst [vmem:[#allocation25_spill] sm:$0xff] %v13588_v51  ;;  %v13594_v31 = vadd.f32 %v9241_v36, %v17637_v46  ;;  %v13605_v51 = vpop.f32.mrf.mxu0  ;;  %v17645_v36 = vld [vmem:[#allocation199_spill] sm:$0xff] }
 0x4bc   :  { %v4327_v7 = vpop.f32.mrf.mxu1  ;;  %v4064_v46 = vadd.f32 %v17646_v15, %v17645_v36  ;;  %v17654_v15 = vld [vmem:[#allocation30_spill] sm:$0xff] }
 0x4bd   :  { %17638 = vst [vmem:[#allocation209_spill] sm:$0xff] %v13594_v31  ;;  %v13598_v26 = vadd.f32 %v4327_v7, %v4060_v10  ;;  %v17647_v31 = vld [vmem:[#allocation29_spill] sm:$0xff]  ;;  %v13614_v10 = vpop.f32.mrf.mxu0 }
 0x4be   :  { %v9244_v55 = vpop.f32.mrf.mxu1 }
 0x4bf   :  { %17639 = vst [vmem:[#allocation26_spill] sm:$0xff] %v13598_v26  ;;  %v13603_v16 = vadd.f32 %v9244_v55, %v17642_v52  ;;  %v4066_v55 = vadd.f32 %v17650_v23, %v13268_v12  ;;  %v17651_v52 = vld [vmem:[#allocation200_spill] sm:$0xff]  ;;  %v17657_v23 = vld [vmem:[#allocation33_spill] sm:$0xff] }
 0x4c0   :  { %v4337_v43 = vpop.f32.mrf.mxu1 }
 0x4c1   :  { %17643 = vst [vmem:[#allocation60_spill] sm:$0xff] %v13603_v16  ;;  %v13607_v17 = vadd.f32 %v4337_v43, %v4062_v0  ;;  %v13623_v0 = vpop.f32.mrf.mxu0 }
 0x4c2   :  { %v9247_v37 = vpop.f32.mrf.mxu1 }
 0x4c3   :  { %17644 = vst [vmem:[#allocation61_spill] sm:$0xff] %v13607_v17  ;;  %v13612_v11 = vadd.f32 %v9247_v37, %v17647_v31  ;;  %v17653_v31 = vld [vmem:[#allocation201_spill] sm:$0xff] }
 0x4c4   :  { %v4347_v7 = vpop.f32.mrf.mxu1  ;;  %v4068_v37 = vadd.f32 %v17653_v31, %v13279_v21  ;;  %v17660_v31 = vld [vmem:[#allocation41_spill] sm:$0xff] }
 0x4c5   :  { %17648 = vst [vmem:[#allocation27_spill] sm:$0xff] %v13612_v11  ;;  %v13616_v26 = vadd.f32 %v4347_v7, %v4064_v46  ;;  %v13632_v46 = vpop.f32.mrf.mxu0 }
 0x4c6   :  { %v9250_v24 = vpop.f32.mrf.mxu1 }
 0x4c7   :  { %17649 = vst [vmem:[#allocation55_spill] sm:$0xff] %v13616_v26  ;;  %v13621_v16 = vadd.f32 %v9250_v24, %v17651_v52  ;;  %v4070_v24 = vadd.f32 %v13294_v62, %v13290_v58  ;;  %v4074_v62 = vadd.f32 %v13316_v9, %v13312_v40  ;;  %v17670_v9 = vld [vmem:[#allocation37_spill] sm:$0xff] }
 0x4c8   :  { %v4357_v43 = vpop.f32.mrf.mxu1 }
 0x4c9   :  { %17652 = vst [vmem:[#allocation62_spill] sm:$0xff] %v13621_v16  ;;  %v13625_v17 = vadd.f32 %v4357_v43, %v4066_v55  ;;  %v13641_v55 = vpop.f32.mrf.mxu0 }
 0x4ca   :  { %v9253_v36 = vpop.f32.mrf.mxu1 }
 0x4cb   :  { %v13630_v11 = vadd.f32 %v9253_v36, %v17654_v15  ;;  %v4072_v36 = vadd.f32 %v13305_v41, %v13301_v57  ;;  %v17666_v41 = vld [vmem:[#allocation34_spill] sm:$0xff] }
 0x4cc   :  { %v4367_v7 = vpop.f32.mrf.mxu1 }
 0x4cd   :  { %17655 = vst [vmem:[#allocation63_spill] sm:$0xff] %v13630_v11  ;;  %v13634_v26 = vadd.f32 %v4367_v7, %v4068_v37  ;;  %v13650_v37 = vpop.f32.mrf.mxu0 }
 0x4ce   :  { %v9256_v12 = vpop.f32.mrf.mxu1 }
 0x4cf   :  { %17656 = vst [vmem:[#allocation56_spill] sm:$0xff] %v13634_v26  ;;  %v13639_v52 = vadd.f32 %v9256_v12, %v17657_v23  ;;  %v17663_v12 = vld [vmem:[#allocation202_spill] sm:$0xff] }
 0x4d0   :  { %v4377_v43 = vpop.f32.mrf.mxu1 }
 0x4d1   :  { %17658 = vst [vmem:[#allocation210_spill] sm:$0xff] %v13639_v52  ;;  %v13643_v16 = vadd.f32 %v4377_v43, %v4070_v24  ;;  %v13659_v24 = vpop.f32.mrf.mxu0 }
 0x4d2   :  { %v9259_v21 = vpop.f32.mrf.mxu1 }
 0x4d3   :  { %17659 = vst [vmem:[#allocation28_spill] sm:$0xff] %v13643_v16  ;;  %v13648_v15 = vadd.f32 %v9259_v21, %v17660_v31  ;;  %v4076_v21 = vadd.f32 %v17666_v41, %v13323_v1  ;;  %v17667_v31 = vld [vmem:[#allocation42_spill] sm:$0xff]  ;;  %v17675_v41 = vld [vmem:[#allocation44_spill] sm:$0xff] }
 0x4d4   :  { %v4387_v7 = vpop.f32.mrf.mxu1 }
 0x4d5   :  { %17661 = vst [vmem:[#allocation65_spill] sm:$0xff] %v13648_v15  ;;  %v13652_v11 = vadd.f32 %v4387_v7, %v4072_v36  ;;  %v13668_v36 = vpop.f32.mrf.mxu0 }
 0x4d6   :  { %v9262_v58 = vpop.f32.mrf.mxu1 }
 0x4d7   :  { %17662 = vst [vmem:[#allocation212_spill] sm:$0xff] %v13652_v11  ;;  %v13657_v23 = vadd.f32 %v9262_v58, %v17663_v12  ;;  %v4078_v58 = vadd.f32 %v17670_v9, %v13334_v30  ;;  %v17671_v12 = vld [vmem:[#allocation203_spill] sm:$0xff]  ;;  %v17679_v9 = vld [vmem:[#allocation14_spill] sm:$0xff] }
 0x4d8   :  { %v4397_v43 = vpop.f32.mrf.mxu1 }
 0x4d9   :  { %17664 = vst [vmem:[#allocation152_spill] sm:$0xff] %v13657_v23  ;;  %v13661_v52 = vadd.f32 %v4397_v43, %v4074_v62  ;;  %v13677_v62 = vpop.f32.mrf.mxu0 }
 0x4da   :  { %v9265_v57 = vpop.f32.mrf.mxu1 }
 0x4db   :  { %17665 = vst [vmem:[#allocation59_spill] sm:$0xff] %v13661_v52  ;;  %v13666_v15 = vadd.f32 %v9265_v57, %v17667_v31  ;;  %v17674_v57 = vld [vmem:[#allocation43_spill] sm:$0xff] }
 0x4dc   :  { %v4407_v7 = vpop.f32.mrf.mxu1  ;;  %v4080_v31 = vadd.f32 %v17675_v41, %v17674_v57 }
 0x4dd   :  { %17668 = vst [vmem:[#allocation213_spill] sm:$0xff] %v13666_v15  ;;  %v13670_v11 = vadd.f32 %v4407_v7, %v4076_v21  ;;  %v17676_v15 = vld [vmem:[#allocation204_spill] sm:$0xff]  ;;  %v13686_v21 = vpop.f32.mrf.mxu0 }
 0x4de   :  { %v9268_v40 = vpop.f32.mrf.mxu1 }
 0x4df   :  { %17669 = vst [vmem:[#allocation4_spill] sm:$0xff] %v13670_v11  ;;  %v13675_v23 = vadd.f32 %v9268_v40, %v17671_v12  ;;  %v17678_v40 = vld [vmem:[#allocation38_spill] sm:$0xff] }
 0x4e0   :  { %v4417_v43 = vpop.f32.mrf.mxu1  ;;  %v4082_v12 = vadd.f32 %v17679_v9, %v17678_v40 }
 0x4e1   :  { %17672 = vst [vmem:[#allocation154_spill] sm:$0xff] %v13675_v23  ;;  %v13679_v52 = vadd.f32 %v4417_v43, %v4078_v58  ;;  %v17680_v23 = vld [vmem:[#allocation205_spill] sm:$0xff]  ;;  %v13695_v58 = vpop.f32.mrf.mxu0 }
 0x4e2   :  { %v9271_v1 = vpop.f32.mrf.mxu1 }
 0x4e3   :  { %17673 = vst [vmem:[#allocation215_spill] sm:$0xff] %v13679_v52  ;;  %v13684_v16 = vadd.f32 %v9271_v1, %v17676_v15  ;;  %v4084_v15 = vadd.f32 %v13371_v59, %v13367_v53  ;;  %v17682_v1 = vld [vmem:[#allocation45_spill] sm:$0xff]  ;;  %v4088_v59 = vadd.f32 %v13393_v3, %v13389_v19  ;;  %v4092_v3 = vadd.f32 %v13414_v28, %v13410_v2 }
 0x4e4   :  { %v4427_v7 = vpop.f32.mrf.mxu1 }
 0x4e5   :  { %17677 = vst [vmem:[#allocation5_spill] sm:$0xff] %v13684_v16  ;;  %v13688_v11 = vadd.f32 %v4427_v7, %v4080_v31  ;;  %v13704_v31 = vpop.f32.mrf.mxu0 }
 0x4e6   :  { %v9274_v30 = vpop.f32.mrf.mxu1 }
 0x4e7   :  { %v13693_v26 = vadd.f32 %v9274_v30, %v17680_v23  ;;  %v4086_v23 = vadd.f32 %v13382_v48, %v13378_v29  ;;  %v17684_v30 = vld [vmem:[#allocation206_spill] sm:$0xff]  ;;  %v17689_v48 = vld [vmem:[#allocation207_spill] sm:$0xff] }
 0x4e8   :  { %v4437_v43 = vpop.f32.mrf.mxu1 }
 0x4e9   :  { %17681 = vst [vmem:[#allocation216_spill] sm:$0xff] %v13693_v26  ;;  %v13697_v52 = vadd.f32 %v4437_v43, %v4082_v12  ;;  %v13713_v12 = vpop.f32.mrf.mxu0 }
 0x4ea   :  { %v9277_v57 = vpop.f32.mrf.mxu1 }
 0x4eb   :  { %v13702_v41 = vadd.f32 %v9277_v57, %v17682_v1  ;;  %v17687_v57 = vld [vmem:[#allocation46_spill] sm:$0xff] }
 0x4ec   :  { %v4447_v7 = vpop.f32.mrf.mxu1 }
 0x4ed   :  { %17683 = vst [vmem:[#allocation217_spill] sm:$0xff] %v13702_v41  ;;  %v13706_v16 = vadd.f32 %v4447_v7, %v4084_v15  ;;  %v13722_v15 = vpop.f32.mrf.mxu0 }
 0x4ee   :  { %v9280_v40 = vpop.f32.mrf.mxu1 }
 0x4ef   :  { %v13711_v9 = vadd.f32 %v9280_v40, %v17684_v30  ;;  %v4090_v40 = vadd.f32 %v17689_v48, %v13400_v45  ;;  %v17690_v30 = vld [vmem:[#allocation15_spill] sm:$0xff] }
 0x4f0   :  { %v4457_v43 = vpop.f32.mrf.mxu1 }
 0x4f1   :  { %17685 = vst [vmem:[#allocation72_spill] sm:$0xff] %v13711_v9  ;;  %v13715_v26 = vadd.f32 %v4457_v43, %v4086_v23  ;;  %v13731_v23 = vpop.f32.mrf.mxu0 }
 0x4f2   :  { %v9283_v53 = vpop.f32.mrf.mxu1 }
 0x4f3   :  { %17686 = vst [vmem:[#allocation67_spill] sm:$0xff] %v13715_v26  ;;  %v13720_v1 = vadd.f32 %v9283_v53, %v17687_v57 }
 0x4f4   :  { %v4467_v7 = vpop.f32.mrf.mxu1 }
 0x4f5   :  { %17688 = vst [vmem:[#allocation75_spill] sm:$0xff] %v13720_v1  ;;  %v13724_v41 = vadd.f32 %v4467_v7, %v4088_v59  ;;  %v13740_v59 = vpop.f32.mrf.mxu0 }
 0x4f6   :  { %v9286_v29 = vpop.f32.mrf.mxu1 }
 0x4f7   :  { %v13729_v9 = vadd.f32 %v9286_v29, %v17690_v30  ;;  %v17694_v29 = vld [vmem:[#allocation48_spill] sm:$0xff]  ;;  %v13746_v30 = vpop.f32.mrf.mxu0 }
 0x4f8   :  { %v4477_v43 = vpop.f32.mrf.mxu1  ;;  %v4962_v48 = vadd.f32 %v17694_v29, %v13425_v13 }
 0x4f9   :  { %17691 = vst [vmem:[#allocation76_spill] sm:$0xff] %v13729_v9  ;;  %v13733_v26 = vadd.f32 %v4477_v43, %v4090_v40  ;;  %v17695_v43 = vld [vmem:[#allocation16_spill] sm:$0xff]  ;;  %v17696_v9 = vld [vmem:[#allocation47_spill] sm:$0xff] }
 0x4fa   :  { %v9289_v19 = vpop.f32.mrf.mxu1 }
 0x4fb   :  { %17692 = vst [vmem:[#allocation155_spill] sm:$0xff] %v13733_v26  ;;  %v13738_v53 = vadd.f32 %v9289_v19, %v13412_v56  ;;  %v4963_v26 = vadd.f32 %v17696_v9, %v17695_v43  ;;  %v4964_v56 = vadd.f32 %v13446_v47, %v13438_v42  ;;  %v13756_v19 = vpop.f32.mrf.mxu0 }
 0x4fc   :  { %v4487_v57 = vpop.f32.mrf.mxu1 }
 0x4fd   :  { %17693 = vst [vmem:[#allocation69_spill] sm:$0xff] %v13738_v53  ;;  %v13742_v7 = vadd.f32 %v4487_v57, %v4092_v3  ;;  %v17698_v57 = vld [vmem:[#allocation17_spill] sm:$0xff]  ;;  %v13769_v47 = vpop.f32.mrf.mxu0 }
 0x4fe   :  { %v9452_v45 = vpop.f32.mrf.mxu1  ;;  %v4965_v13 = vadd.f32 %v17698_v57, %v13432_v54 }
 0x4ff   :  { %v13754_v28 = vadd.f32 %v9452_v45, %v4963_v26  ;;  %v17700_v45 = vld [vmem:[#allocation208_spill] sm:$0xff] }
 0x500   :  { %v5109_v40 = vpop.f32.mrf.mxu1  ;;  %v4967_v43 = vadd.f32 %v13457_v34, %v17700_v45 }
 0x501   :  { %v13750_v1 = vadd.f32 %v5109_v40, %v4962_v48  ;;  %17697 = vst [vmem:[#allocation79_spill] sm:$0xff] %v13754_v28  ;;  %v4966_v48 = vadd.f32 %v13468_v38, %v13449_v25  ;;  %v13781_v38 = vpop.f32.mrf.mxu0 }
 0x502   :  { %v9455_v2 = vpop.f32.mrf.mxu1 }
 0x503   :  { %v5494_v29 = vadd.f32 %v13754_v28, %v13750_v1  ;;  %v13766_v40 = vadd.f32 %v9455_v2, %v4965_v13  ;;  %v17702_v13 = vld [vmem:[#allocation18_spill] sm:$0xff] }
 0x504   :  { %v5119_v3 = vpop.f32.mrf.mxu1 }
 0x505   :  { %v13762_v53 = vadd.f32 %v5119_v3, %v4964_v56  ;;  %v4968_v3 = vadd.f32 %v13490_v60, %v13460_v50  ;;  %v13793_v60 = vpop.f32.mrf.mxu0 }
 0x506   :  { %v9458_v9 = vpop.f32.mrf.mxu1 }
 0x507   :  { %17699 = vst [vmem:[#allocation80_spill] sm:$0xff] %v13762_v53  ;;  %v5495_v42 = vadd.f32 %v5494_v29, %v13762_v53  ;;  %v13778_v28 = vadd.f32 %v9458_v9, %v4967_v43  ;;  %v4969_v29 = vadd.f32 %v13479_v5, %v17702_v13  ;;  %v17704_v43 = vld [vmem:[#allocation49_spill] sm:$0xff] }
 0x508   :  { %v5129_v26 = vpop.f32.mrf.mxu1 }
 0x509   :  { %v5496_v54 = vadd.f32 %v5495_v42, %v13766_v40  ;;  %v13774_v57 = vadd.f32 %v5129_v26, %v4966_v48  ;;  %v17703_v42 = vld [vmem:[#allocation50_spill] sm:$0xff] }
 0x50a   :  { %v9461_v56 = vpop.f32.mrf.mxu1  ;;  %v4970_v26 = vadd.f32 %v13514_v20, %v17703_v42 }
 0x50b   :  { %17701 = vst [vmem:[#allocation64_spill] sm:$0xff] %v13774_v57  ;;  %v5497_v25 = vadd.f32 %v5496_v54, %v13774_v57  ;;  %v13790_v45 = vadd.f32 %v9461_v56, %v4969_v29  ;;  %v4971_v54 = vadd.f32 %v13501_v61, %v17704_v43  ;;  %v13805_v56 = vpop.f32.mrf.mxu0  ;;  %v17705_v29 = vld [vmem:[#allocation19_spill] sm:$0xff]  ;;  %v17706_v43 = vld [vmem:[#allocation20_spill] sm:$0xff] }
 0x50c   :  { %v5139_v2 = vpop.f32.mrf.mxu1 }
 0x50d   :  { %v13785_v53 = vadd.f32 %v5139_v2, %v4968_v3  ;;  %v5498_v34 = vadd.f32 %v5497_v25, %v13778_v28  ;;  %v4972_v25 = vadd.f32 %v13538_v32, %v13482_v22  ;;  %v13817_v32 = vpop.f32.mrf.mxu0 }
 0x50e   :  { %v9464_v48 = vpop.f32.mrf.mxu1 }
 0x50f   :  { %v5499_v50 = vadd.f32 %v5498_v34, %v13785_v53  ;;  %v13802_v2 = vadd.f32 %v9464_v48, %v4971_v54  ;;  %v4973_v34 = vadd.f32 %v13526_v8, %v17705_v29  ;;  %v4975_v54 = vadd.f32 %v13550_v39, %v17706_v43  ;;  %v17707_v29 = vld [vmem:[#allocation51_spill] sm:$0xff] }
 0x510   :  { %v5149_v9 = vpop.f32.mrf.mxu1  ;;  %v4979_v43 = vadd.f32 %v13596_v4, %v13511_v18 }
 0x511   :  { %v13797_v57 = vadd.f32 %v5149_v9, %v4970_v26  ;;  %v5500_v5 = vadd.f32 %v5499_v50, %v13790_v45  ;;  %v4974_v50 = vadd.f32 %v13562_v49, %v13493_v44  ;;  %v13829_v49 = vpop.f32.mrf.mxu0 }
 0x512   :  { %v9467_v3 = vpop.f32.mrf.mxu1 }
 0x513   :  { %v5501_v20 = vadd.f32 %v5500_v5, %v13797_v57  ;;  %v13814_v9 = vadd.f32 %v9467_v3, %v4973_v34  ;;  %v4977_v34 = vadd.f32 %v13574_v14, %v17707_v29 }
 0x514   :  { %v5159_v13 = vpop.f32.mrf.mxu1 }
 0x515   :  { %v13809_v42 = vadd.f32 %v5159_v13, %v4972_v25  ;;  %v5502_v61 = vadd.f32 %v5501_v20, %v13802_v2  ;;  %v4976_v20 = vadd.f32 %v13586_v27, %v13504_v6  ;;  %v13841_v27 = vpop.f32.mrf.mxu0 }
 0x516   :  { %v9470_v26 = vpop.f32.mrf.mxu1 }
 0x517   :  { %v5503_v22 = vadd.f32 %v5502_v61, %v13809_v42  ;;  %v13826_v13 = vadd.f32 %v9470_v26, %v4975_v54 }
 0x518   :  { %v5169_v48 = vpop.f32.mrf.mxu1 }
 0x519   :  { %v13821_v5 = vadd.f32 %v5169_v48, %v4974_v50  ;;  %v5504_v8 = vadd.f32 %v5503_v22, %v13814_v9  ;;  %v4978_v22 = vadd.f32 %v13605_v51, %v13516_v63  ;;  %v13853_v51 = vpop.f32.mrf.mxu0 }
 0x51a   :  { %v9473_v25 = vpop.f32.mrf.mxu1 }
 0x51b   :  { %v5505_v44 = vadd.f32 %v5504_v8, %v13821_v5  ;;  %v13838_v48 = vadd.f32 %v9473_v25, %v4977_v34  ;;  %v17708_v34 = vld [vmem:[#allocation21_spill] sm:$0xff] }
 0x51c   :  { %v5179_v3 = vpop.f32.mrf.mxu1 }
 0x51d   :  { %v13833_v61 = vadd.f32 %v5179_v3, %v4976_v20  ;;  %v5506_v39 = vadd.f32 %v5505_v44, %v13826_v13  ;;  %v4980_v20 = vadd.f32 %v13623_v0, %v13528_v35  ;;  %v4981_v3 = vadd.f32 %v13614_v10, %v13523_v33  ;;  %v13865_v0 = vpop.f32.mrf.mxu0 }
 0x51e   :  { %v9476_v50 = vpop.f32.mrf.mxu1 }
 0x51f   :  { %v5507_v6 = vadd.f32 %v5506_v39, %v13833_v61  ;;  %v13850_v44 = vadd.f32 %v9476_v50, %v4979_v43  ;;  %v4982_v39 = vadd.f32 %v13641_v55, %v17708_v34 }
 0x520   :  { %v5189_v26 = vpop.f32.mrf.mxu1 }
 0x521   :  { %v13845_v54 = vadd.f32 %v5189_v26, %v4978_v22  ;;  %v5508_v14 = vadd.f32 %v5507_v6, %v13838_v48  ;;  %v17709_v6 = vld [vmem:[#allocation52_spill] sm:$0xff] }
 0x522   :  { %v9479_v8 = vpop.f32.mrf.mxu1  ;;  %v4983_v26 = vadd.f32 %v13632_v46, %v17709_v6 }
 0x523   :  { %v5509_v63 = vadd.f32 %v5508_v14, %v13845_v54  ;;  %v13862_v22 = vadd.f32 %v9479_v8, %v4981_v3  ;;  %v17711_v14 = vld [vmem:[#allocation53_spill] sm:$0xff]  ;;  %v13877_v8 = vpop.f32.mrf.mxu0  ;;  %v17712_v3 = vld [vmem:[#allocation22_spill] sm:$0xff] }
 0x524   :  { %v5199_v25 = vpop.f32.mrf.mxu1 }
 0x525   :  { %v13857_v29 = vadd.f32 %v5199_v25, %v4980_v20  ;;  %v5510_v18 = vadd.f32 %v5509_v63, %v13850_v44  ;;  %v4984_v20 = vadd.f32 %v13659_v24, %v17711_v14 }
 0x526   :  { %v9482_v4 = vpop.f32.mrf.mxu1 }
 0x527   :  { %v5511_v35 = vadd.f32 %v5510_v18, %v13857_v29  ;;  %v13874_v63 = vadd.f32 %v9482_v4, %v4983_v26  ;;  %v4985_v18 = vadd.f32 %v13650_v37, %v17712_v3  ;;  %v13889_v4 = vpop.f32.mrf.mxu0 }
 0x528   :  { %v5209_v50 = vpop.f32.mrf.mxu1 }
 0x529   :  { %v13869_v43 = vadd.f32 %v5209_v50, %v4982_v39  ;;  %v5512_v33 = vadd.f32 %v5511_v35, %v13862_v22  ;;  %v17714_v35 = vld [vmem:[#allocation24_spill] sm:$0xff] }
 0x52a   :  { %v9485_v10 = vpop.f32.mrf.mxu1  ;;  %v4986_v50 = vadd.f32 %v13677_v62, %v17714_v35 }
 0x52b   :  { %17710 = vst [vmem:[#allocation73_spill] sm:$0xff] %v13869_v43  ;;  %v5513_v55 = vadd.f32 %v5512_v33, %v13869_v43  ;;  %v13886_v6 = vadd.f32 %v9485_v10, %v4985_v18  ;;  %v17715_v33 = vld [vmem:[#allocation54_spill] sm:$0xff]  ;;  %v13901_v10 = vpop.f32.mrf.mxu0 }
 0x52c   :  { %v5219_v25 = vpop.f32.mrf.mxu1  ;;  %v4987_v14 = vadd.f32 %v13668_v36, %v17715_v33 }
 0x52d   :  { %v13881_v34 = vadd.f32 %v5219_v25, %v4984_v20  ;;  %v5514_v46 = vadd.f32 %v5513_v55, %v13874_v63  ;;  %v17717_v55 = vld [vmem:[#allocation23_spill] sm:$0xff] }
 0x52e   :  { %v9488_v39 = vpop.f32.mrf.mxu1  ;;  %v4988_v25 = vadd.f32 %v13695_v58, %v17717_v55 }
 0x52f   :  { %17713 = vst [vmem:[#allocation83_spill] sm:$0xff] %v13881_v34  ;;  %v5515_v24 = vadd.f32 %v5514_v46, %v13881_v34  ;;  %v13898_v3 = vadd.f32 %v9488_v39, %v4987_v14  ;;  %v17718_v46 = vld [vmem:[#allocation57_spill] sm:$0xff]  ;;  %v13913_v39 = vpop.f32.mrf.mxu0 }
 0x530   :  { %v5229_v26 = vpop.f32.mrf.mxu1  ;;  %v4989_v35 = vadd.f32 %v13686_v21, %v17718_v46 }
 0x531   :  { %v13893_v43 = vadd.f32 %v5229_v26, %v4986_v50  ;;  %v5516_v37 = vadd.f32 %v5515_v24, %v13886_v6  ;;  %v17720_v24 = vld [vmem:[#allocation25_spill] sm:$0xff] }
 0x532   :  { %v9491_v20 = vpop.f32.mrf.mxu1  ;;  %v4990_v26 = vadd.f32 %v13713_v12, %v17720_v24 }
 0x533   :  { %17716 = vst [vmem:[#allocation84_spill] sm:$0xff] %v13893_v43  ;;  %v5517_v62 = vadd.f32 %v5516_v37, %v13893_v43  ;;  %v13910_v33 = vadd.f32 %v9491_v20, %v4989_v35  ;;  %v17721_v37 = vld [vmem:[#allocation58_spill] sm:$0xff]  ;;  %v13925_v20 = vpop.f32.mrf.mxu0 }
 0x534   :  { %v5239_v18 = vpop.f32.mrf.mxu1  ;;  %v4991_v55 = vadd.f32 %v13704_v31, %v17721_v37 }
 0x535   :  { %v13905_v34 = vadd.f32 %v5239_v18, %v4988_v25  ;;  %v5518_v36 = vadd.f32 %v5517_v62, %v13898_v3  ;;  %v17723_v62 = vld [vmem:[#allocation26_spill] sm:$0xff] }
 0x536   :  { %v9494_v50 = vpop.f32.mrf.mxu1  ;;  %v4992_v18 = vadd.f32 %v13731_v23, %v17723_v62 }
 0x537   :  { %17719 = vst [vmem:[#allocation157_spill] sm:$0xff] %v13905_v34  ;;  %v5519_v58 = vadd.f32 %v5518_v36, %v13905_v34  ;;  %v13922_v46 = vadd.f32 %v9494_v50, %v4991_v55  ;;  %v17725_v36 = vld [vmem:[#allocation209_spill] sm:$0xff]  ;;  %v13937_v50 = vpop.f32.mrf.mxu0 }
 0x538   :  { %v5249_v14 = vpop.f32.mrf.mxu1  ;;  %v4993_v24 = vadd.f32 %v13722_v15, %v17725_v36 }
 0x539   :  { %v13917_v43 = vadd.f32 %v5249_v14, %v4990_v26  ;;  %v5520_v21 = vadd.f32 %v5519_v58, %v13910_v33  ;;  %17724 = vst [vmem:[#allocation87_spill] sm:$0xff] %v13922_v46  ;;  %v17727_v58 = vld [vmem:[#allocation61_spill] sm:$0xff] }
 0x53a   :  { %v9497_v25 = vpop.f32.mrf.mxu1  ;;  %v4994_v14 = vadd.f32 %v13746_v30, %v17727_v58 }
 0x53b   :  { %17722 = vst [vmem:[#allocation77_spill] sm:$0xff] %v13917_v43  ;;  %v5521_v12 = vadd.f32 %v5520_v21, %v13917_v43  ;;  %v13934_v37 = vadd.f32 %v9497_v25, %v4993_v24  ;;  %v17729_v21 = vld [vmem:[#allocation60_spill] sm:$0xff]  ;;  %v13949_v25 = vpop.f32.mrf.mxu0 }
 0x53c   :  { %v5259_v35 = vpop.f32.mrf.mxu1  ;;  %v4995_v62 = vadd.f32 %v13740_v59, %v17729_v21 }
 0x53d   :  { %v13929_v34 = vadd.f32 %v5259_v35, %v4992_v18  ;;  %v5522_v31 = vadd.f32 %v5521_v12, %v13922_v46  ;;  %17728 = vst [vmem:[#allocation78_spill] sm:$0xff] %v13934_v37  ;;  %v17731_v12 = vld [vmem:[#allocation55_spill] sm:$0xff] }
 0x53e   :  { %v9500_v26 = vpop.f32.mrf.mxu1  ;;  %v4996_v35 = vadd.f32 %v13769_v47, %v17731_v12 }
 0x53f   :  { %17726 = vst [vmem:[#allocation88_spill] sm:$0xff] %v13929_v34  ;;  %v5523_v23 = vadd.f32 %v5522_v31, %v13929_v34  ;;  %v13946_v36 = vadd.f32 %v9500_v26, %v4995_v62  ;;  %v17733_v31 = vld [vmem:[#allocation27_spill] sm:$0xff]  ;;  %v4893_v26 = vpop.f32.mrf.mxu0  ;;  %v17736_v62 = vld [vmem:[#allocation62_spill] sm:$0xff] }
 0x540   :  { %v5269_v55 = vpop.f32.mrf.mxu1  ;;  %v4997_v58 = vadd.f32 %v13756_v19, %v17733_v31 }
 0x541   :  { %v13941_v43 = vadd.f32 %v5269_v55, %v4994_v14  ;;  %v5524_v15 = vadd.f32 %v5523_v23, %v13934_v37  ;;  %17732 = vst [vmem:[#allocation81_spill] sm:$0xff] %v13946_v36  ;;  %v4998_v23 = vadd.f32 %v13793_v60, %v13625_v17  ;;  %v13971_v60 = vpop.f32.mrf.mxu0 }
 0x542   :  { %v9503_v18 = vpop.f32.mrf.mxu1 }
 0x543   :  { %17730 = vst [vmem:[#allocation71_spill] sm:$0xff] %v13941_v43  ;;  %v5525_v30 = vadd.f32 %v5524_v15, %v13941_v43  ;;  %v13958_v55 = vadd.f32 %v9503_v18, %v4997_v58  ;;  %v4999_v15 = vadd.f32 %v13781_v38, %v17736_v62  ;;  %v17740_v58 = vld [vmem:[#allocation63_spill] sm:$0xff] }
 0x544   :  { %v5279_v24 = vpop.f32.mrf.mxu1 }
 0x545   :  { %v13953_v34 = vadd.f32 %v5279_v24, %v4996_v35  ;;  %v5526_v59 = vadd.f32 %v5525_v30, %v13946_v36  ;;  %17735 = vst [vmem:[#allocation92_spill] sm:$0xff] %v13958_v55  ;;  %v17738_v24 = vld [vmem:[#allocation56_spill] sm:$0xff] }
 0x546   :  { %v9506_v14 = vpop.f32.mrf.mxu1  ;;  %v5000_v30 = vadd.f32 %v13817_v32, %v17738_v24 }
 0x547   :  { %17734 = vst [vmem:[#allocation91_spill] sm:$0xff] %v13953_v34  ;;  %v5527_v47 = vadd.f32 %v5526_v59, %v13953_v34  ;;  %v13968_v31 = vadd.f32 %v9506_v14, %v4999_v15  ;;  %v5001_v59 = vadd.f32 %v13805_v56, %v17740_v58  ;;  %v4903_v14 = vpop.f32.mrf.mxu0 }
 0x548   :  { %v5289_v21 = vpop.f32.mrf.mxu1 }
 0x549   :  { %v13963_v12 = vadd.f32 %v5289_v21, %v4998_v23  ;;  %v5528_v19 = vadd.f32 %v5527_v47, %v13958_v55  ;;  %17739 = vst [vmem:[#allocation85_spill] sm:$0xff] %v13968_v31  ;;  %v17742_v47 = vld [vmem:[#allocation28_spill] sm:$0xff] }
 0x54a   :  { %v9509_v35 = vpop.f32.mrf.mxu1  ;;  %v5002_v21 = vadd.f32 %v13841_v27, %v17742_v47 }
 0x54b   :  { %17737 = vst [vmem:[#allocation66_spill] sm:$0xff] %v13963_v12  ;;  %v5529_v17 = vadd.f32 %v5528_v19, %v13963_v12  ;;  %v13980_v62 = vadd.f32 %v9509_v35, %v5001_v59  ;;  %v17744_v19 = vld [vmem:[#allocation210_spill] sm:$0xff]  ;;  %v9405_v35 = vpop.f32.mrf.mxu0 }
 0x54c   :  { %v5299_v18 = vpop.f32.mrf.mxu1  ;;  %v5003_v24 = vadd.f32 %v13829_v49, %v17744_v19 }
 0x54d   :  { %v13975_v34 = vadd.f32 %v5299_v18, %v5000_v30  ;;  %v5530_v38 = vadd.f32 %v5529_v17, %v13968_v31  ;;  %17743 = vst [vmem:[#allocation96_spill] sm:$0xff] %v13980_v62  ;;  %v17746_v18 = vld [vmem:[#allocation212_spill] sm:$0xff] }
 0x54e   :  { %v9512_v23 = vpop.f32.mrf.mxu1  ;;  %v5004_v17 = vadd.f32 %v13865_v0, %v17746_v18 }
 0x54f   :  { %17741 = vst [vmem:[#allocation95_spill] sm:$0xff] %v13975_v34  ;;  %v5531_v32 = vadd.f32 %v5530_v38, %v13975_v34  ;;  %v13990_v58 = vadd.f32 %v9512_v23, %v5003_v24  ;;  %v17748_v38 = vld [vmem:[#allocation65_spill] sm:$0xff]  ;;  %v4913_v23 = vpop.f32.mrf.mxu0 }
 0x550   :  { %v5309_v15 = vpop.f32.mrf.mxu1  ;;  %v5005_v47 = vadd.f32 %v13853_v51, %v17748_v38 }
 0x551   :  { %v13985_v12 = vadd.f32 %v5309_v15, %v5002_v21  ;;  %v5532_v56 = vadd.f32 %v5531_v32, %v13980_v62  ;;  %17747 = vst [vmem:[#allocation99_spill] sm:$0xff] %v13990_v58  ;;  %v17750_v15 = vld [vmem:[#allocation59_spill] sm:$0xff] }
 0x552   :  { %v9515_v30 = vpop.f32.mrf.mxu1  ;;  %v5006_v32 = vadd.f32 %v13889_v4, %v17750_v15  ;;  %v17761_v62 = vld [vmem:[#allocation67_spill] sm:$0xff] }
 0x553   :  { %17745 = vst [vmem:[#allocation89_spill] sm:$0xff] %v13985_v12  ;;  %v5533_v27 = vadd.f32 %v5532_v56, %v13985_v12  ;;  %v14000_v19 = vadd.f32 %v9515_v30, %v5005_v47  ;;  %v17752_v56 = vld [vmem:[#allocation152_spill] sm:$0xff]  ;;  %v9408_v30 = vpop.f32.mrf.mxu0 }
 0x554   :  { %v5319_v59 = vpop.f32.mrf.mxu1  ;;  %v5007_v18 = vadd.f32 %v13877_v8, %v17752_v56 }
 0x555   :  { %v13995_v34 = vadd.f32 %v5319_v59, %v5004_v17  ;;  %v5534_v49 = vadd.f32 %v5533_v27, %v13990_v58  ;;  %17751 = vst [vmem:[#allocation90_spill] sm:$0xff] %v14000_v19  ;;  %v17754_v59 = vld [vmem:[#allocation4_spill] sm:$0xff] }
 0x556   :  { %v9518_v21 = vpop.f32.mrf.mxu1  ;;  %v5008_v27 = vadd.f32 %v13913_v39, %v17754_v59 }
 0x557   :  { %17749 = vst [vmem:[#allocation100_spill] sm:$0xff] %v13995_v34  ;;  %v5535_v0 = vadd.f32 %v5534_v49, %v13995_v34  ;;  %v14010_v38 = vadd.f32 %v9518_v21, %v5007_v18  ;;  %v17755_v49 = vld [vmem:[#allocation213_spill] sm:$0xff]  ;;  %v4923_v21 = vpop.f32.mrf.mxu0 }
 0x558   :  { %v5329_v24 = vpop.f32.mrf.mxu1  ;;  %v5009_v15 = vadd.f32 %v13901_v10, %v17755_v49  ;;  %v5018_v31 = vadd.f32 %v4923_v21, %v17761_v62  ;;  %v17764_v21 = vld [vmem:[#allocation155_spill] sm:$0xff] }
 0x559   :  { %v14005_v12 = vadd.f32 %v5329_v24, %v5006_v32  ;;  %v5536_v51 = vadd.f32 %v5535_v0, %v14000_v19  ;;  %v17756_v24 = vld [vmem:[#allocation215_spill] sm:$0xff] }
 0x55a   :  { %v9521_v17 = vpop.f32.mrf.mxu1  ;;  %v5010_v0 = vadd.f32 %v13937_v50, %v17756_v24 }
 0x55b   :  { %17753 = vst [vmem:[#allocation153_spill] sm:$0xff] %v14005_v12  ;;  %v5537_v4 = vadd.f32 %v5536_v51, %v14005_v12  ;;  %v14020_v56 = vadd.f32 %v9521_v17, %v5009_v15  ;;  %v17757_v51 = vld [vmem:[#allocation154_spill] sm:$0xff]  ;;  %v9411_v17 = vpop.f32.mrf.mxu0  ;;  %v17758_v15 = vld [vmem:[#allocation5_spill] sm:$0xff] }
 0x55c   :  { %v5339_v47 = vpop.f32.mrf.mxu1  ;;  %v5011_v59 = vadd.f32 %v13925_v20, %v17757_v51  ;;  %v17759_v51 = vld [vmem:[#allocation216_spill] sm:$0xff] }
 0x55d   :  { %v14015_v34 = vadd.f32 %v5339_v47, %v5008_v27  ;;  %v5538_v8 = vadd.f32 %v5537_v4, %v14010_v38  ;;  %v5012_v4 = vadd.f32 %v4893_v26, %v13688_v11  ;;  %v4933_v26 = vpop.f32.mrf.mxu0 }
 0x55e   :  { %v9524_v32 = vpop.f32.mrf.mxu1 }
 0x55f   :  { %v5539_v39 = vadd.f32 %v5538_v8, %v14015_v34  ;;  %v14029_v47 = vadd.f32 %v9524_v32, %v5011_v59  ;;  %v5013_v8 = vadd.f32 %v13949_v25, %v17758_v15  ;;  %v5015_v59 = vadd.f32 %v13971_v60, %v17759_v51 }
 0x560   :  { %v5349_v18 = vpop.f32.mrf.mxu1 }
 0x561   :  { %v14025_v12 = vadd.f32 %v5349_v18, %v5010_v0  ;;  %v5540_v10 = vadd.f32 %v5539_v39, %v14020_v56  ;;  %v5014_v18 = vadd.f32 %v4903_v14, %v13697_v52  ;;  %v9414_v52 = vpop.f32.mrf.mxu0 }
 0x562   :  { %v9527_v27 = vpop.f32.mrf.mxu1 }
 0x563   :  { %v5541_v50 = vadd.f32 %v5540_v10, %v14025_v12  ;;  %v14038_v39 = vadd.f32 %v9527_v27, %v5013_v8  ;;  %v17760_v27 = vld [vmem:[#allocation217_spill] sm:$0xff] }
 0x564   :  { %v5359_v49 = vpop.f32.mrf.mxu1  ;;  %v5017_v8 = vadd.f32 %v9405_v35, %v17760_v27 }
 0x565   :  { %v14034_v24 = vadd.f32 %v5359_v49, %v5012_v4  ;;  %v5542_v20 = vadd.f32 %v5541_v50, %v14029_v47  ;;  %v5016_v49 = vadd.f32 %v4913_v23, %v13706_v16 }
 0x566   :  { %v9530_v0 = vpop.f32.mrf.mxu1 }
 0x567   :  { %v5543_v11 = vadd.f32 %v5542_v20, %v14034_v24  ;;  %v5481_v50 = vadd.f32 %v9530_v0, %v5015_v59  ;;  %v5020_v0 = vadd.f32 %v4933_v26, %v13724_v41 }
 0x568   :  { %v5369_v32 = vpop.f32.mrf.mxu1 }
 0x569   :  { %v14043_v10 = vadd.f32 %v5369_v32, %v5014_v18  ;;  %v5544_v25 = vadd.f32 %v5543_v11, %v14038_v39  ;;  %v4943_v32 = vpop.f32.mrf.mxu0  ;;  %v17762_v11 = vld [vmem:[#allocation72_spill] sm:$0xff] }
 0x56a   :  { %v9533_v4 = vpop.f32.mrf.mxu1  ;;  %v5019_v55 = vadd.f32 %v9408_v30, %v17762_v11 }
 0x56b   :  { %v5545_v15 = vadd.f32 %v5544_v25, %v14043_v10  ;;  %v5483_v60 = vadd.f32 %v9533_v4, %v5017_v8  ;;  %v9417_v43 = vpop.f32.mrf.mxu0 }
 0x56c   :  { %v5379_v14 = vpop.f32.mrf.mxu1 }
 0x56d   :  { %v5482_v20 = vadd.f32 %v5379_v14, %v5016_v49  ;;  %v5546_v19 = vadd.f32 %v5545_v15, %v5481_v50  ;;  %v17763_v49 = vld [vmem:[#allocation75_spill] sm:$0xff]  ;;  %v4953_v37 = vpop.f32.mrf.mxu0 }
 0x56e   :  { %v9536_v58 = vpop.f32.mrf.mxu1  ;;  %v5021_v15 = vadd.f32 %v9411_v17, %v17763_v49  ;;  %v17766_v17 = vld [vmem:[#allocation69_spill] sm:$0xff] }
 0x56f   :  { %v5547_v18 = vadd.f32 %v5546_v19, %v5482_v20  ;;  %v5485_v59 = vadd.f32 %v9536_v58, %v5019_v55  ;;  %v5022_v19 = vadd.f32 %v4943_v32, %v17764_v21  ;;  %v5024_v55 = vadd.f32 %v4953_v37, %v13742_v7 }
 0x570   :  { %v5389_v51 = vpop.f32.mrf.mxu1 }
 0x571   :  { %v5484_v36 = vadd.f32 %v5389_v51, %v5018_v31  ;;  %v5548_v16 = vadd.f32 %v5547_v18, %v5483_v60  ;;  %v17765_v31 = vld [vmem:[#allocation76_spill] sm:$0xff] }
 0x572   :  { %v9539_v23 = vpop.f32.mrf.mxu1  ;;  %v5023_v18 = vadd.f32 %v9414_v52, %v17765_v31 }
 0x573   :  { %v5549_v25 = vadd.f32 %v5548_v16, %v5484_v36  ;;  %v5487_v4 = vadd.f32 %v9539_v23, %v5021_v15 }
 0x574   :  { %v5399_v35 = vpop.f32.mrf.mxu1 }
 0x575   :  { %v5486_v14 = vadd.f32 %v5399_v35, %v5020_v0  ;;  %v5550_v27 = vadd.f32 %v5549_v25, %v5485_v59  ;;  %v5025_v0 = vadd.f32 %v9417_v43, %v17766_v17 }
 0x576   :  { %v9542_v62 = vpop.f32.mrf.mxu1 }
 0x577   :  { %v5551_v8 = vadd.f32 %v5550_v27, %v5486_v14  ;;  %v5489_v58 = vadd.f32 %v9542_v62, %v5023_v18  ;;  %v17768_v18 = vld [vmem:[#allocation80_spill] sm:$0xff] }
 0x578   :  { %v5409_v30 = vpop.f32.mrf.mxu1 }
 0x579   :  { %v5488_v51 = vadd.f32 %v5409_v30, %v5022_v19  ;;  %v5552_v11 = vadd.f32 %v5551_v8, %v5487_v4 }
 0x57a   :  { %v9545_v41 = vpop.f32.mrf.mxu1 }
 0x57b   :  { %v5553_v26 = vadd.f32 %v5552_v11, %v5488_v51  ;;  %v5491_v49 = vadd.f32 %v9545_v41, %v5025_v0 }
 0x57c   :  { %v5419_v16 = vpop.f32.mrf.mxu1 }
 0x57d   :  { %v5490_v25 = vadd.f32 %v5419_v16, %v5024_v55  ;;  %v5554_v35 = vadd.f32 %v5553_v26, %v5489_v58 }
 0x57f   :  { %v5555_v32 = vadd.f32 %v5554_v35, %v5490_v25 }
 0x581   :  { %v5556_v23 = vadd.f32 %v5555_v32, %v5491_v49 }
 0x583   :  { %v5557_v15 = vrot.slane %v5556_v23, 4 }
 0x585   :  { %v5558_v27 = vadd.f32 %v5557_v15, %v5556_v23 }
 0x587   :  { %v5559_v21 = vrot.slane %v5558_v27, 2 }
 0x589   :  { %v5560_v46 = vadd.f32 %v5559_v21, %v5558_v27 }
 0x58b   :  { %v5561_v52 = vrot.slane %v5560_v46, 1 }
 0x58d   :  { %v5562_v19 = vadd.f32 %v5561_v52, %v5560_v46 }
 0x58f   :  { %v14057_v8 = vmul.f32 0.001953125, %v5562_v19 }
 0x591   :  { %v14061_v7 = vsub.f32 %v14010_v38, %v14057_v8  ;;  %v14065_v43 = vsub.f32 %v14015_v34, %v14057_v8  ;;  %v14069_v37 = vsub.f32 %v14020_v56, %v14057_v8  ;;  %v14073_v62 = vsub.f32 %v14025_v12, %v14057_v8 }
 0x592   :  { %v14077_v46 = vsub.f32 %v14029_v47, %v14057_v8  ;;  %v14081_v38 = vsub.f32 %v14034_v24, %v14057_v8  ;;  %v14085_v34 = vsub.f32 %v14038_v39, %v14057_v8  ;;  %v14089_v56 = vsub.f32 %v14043_v10, %v14057_v8 }
 0x593   :  { %v14092_v30 = vsub.f32 %v5481_v50, %v14057_v8  ;;  %v14095_v12 = vsub.f32 %v5482_v20, %v14057_v8  ;;  %v14098_v47 = vsub.f32 %v5483_v60, %v14057_v8  ;;  %v14101_v24 = vsub.f32 %v5484_v36, %v14057_v8 }
 0x594   :  { %v14104_v31 = vsub.f32 %v5485_v59, %v14057_v8  ;;  %v14107_v39 = vsub.f32 %v5486_v14, %v14057_v8  ;;  %v14110_v10 = vsub.f32 %v5487_v4, %v14057_v8  ;;  %v14113_v50 = vsub.f32 %v5488_v51, %v14057_v8  ;;  %v17767_v14 = vld [vmem:[#allocation79_spill] sm:$0xff] }
 0x595   :  { %v14116_v20 = vsub.f32 %v5489_v58, %v14057_v8  ;;  %v14119_v60 = vsub.f32 %v5490_v25, %v14057_v8  ;;  %v14122_v36 = vsub.f32 %v5491_v49, %v14057_v8  ;;  %v14126_v59 = vsub.f32 %v13750_v1, %v14057_v8  ;;  %v17769_v1 = vld [vmem:[#allocation64_spill] sm:$0xff] }
 0x596   :  { %v14130_v4 = vsub.f32 %v17767_v14, %v14057_v8  ;;  %v14134_v51 = vsub.f32 %v17768_v18, %v14057_v8  ;;  %v14142_v55 = vsub.f32 %v13766_v40, %v14057_v8  ;;  %v14146_v58 = vsub.f32 %v17769_v1, %v14057_v8 }
 0x597   :  { %v5628_v11 = vmul.f32 %v14126_v59, %v14126_v59  ;;  %v14152_v17 = vsub.f32 %v13778_v28, %v14057_v8  ;;  %v14158_v40 = vsub.f32 %v13785_v53, %v14057_v8  ;;  %v14164_v32 = vsub.f32 %v13790_v45, %v14057_v8 }
 0x598   :  { %v5629_v41 = vmul.f32 %v14130_v4, %v14130_v4  ;;  %v5630_v26 = vmul.f32 %v14134_v51, %v14134_v51  ;;  %v5631_v0 = vmul.f32 %v14142_v55, %v14142_v55  ;;  %v5632_v35 = vmul.f32 %v14146_v58, %v14146_v58 }
 0x599   :  { %v5633_v28 = vmul.f32 %v14152_v17, %v14152_v17  ;;  %v14170_v15 = vsub.f32 %v13797_v57, %v14057_v8  ;;  %v5634_v53 = vmul.f32 %v14158_v40, %v14158_v40  ;;  %v14176_v21 = vsub.f32 %v13802_v2, %v14057_v8 }
 0x59a   :  { %v5692_v16 = vadd.f32 %v5629_v41, %v5628_v11  ;;  %v5635_v45 = vmul.f32 %v14164_v32, %v14164_v32  ;;  %v14182_v19 = vsub.f32 %v13809_v42, %v14057_v8  ;;  %v14188_v18 = vsub.f32 %v13814_v9, %v14057_v8 }
 0x59b   :  { %v5636_v57 = vmul.f32 %v14170_v15, %v14170_v15  ;;  %v5637_v2 = vmul.f32 %v14176_v21, %v14176_v21  ;;  %v14194_v41 = vsub.f32 %v13821_v5, %v14057_v8 }
 0x59c   :  { %v5693_v25 = vadd.f32 %v5692_v16, %v5630_v26  ;;  %v5638_v42 = vmul.f32 %v14182_v19, %v14182_v19  ;;  %v14200_v26 = vsub.f32 %v13826_v13, %v14057_v8  ;;  %v5639_v9 = vmul.f32 %v14188_v18, %v14188_v18 }
 0x59d   :  { %v5640_v5 = vmul.f32 %v14194_v41, %v14194_v41 }
 0x59e   :  { %v5694_v49 = vadd.f32 %v5693_v25, %v5631_v0  ;;  %v14206_v0 = vsub.f32 %v13833_v61, %v14057_v8  ;;  %v5641_v13 = vmul.f32 %v14200_v26, %v14200_v26 }
 0x5a0   :  { %v5695_v23 = vadd.f32 %v5694_v49, %v5632_v35  ;;  %v14212_v35 = vsub.f32 %v13838_v48, %v14057_v8  ;;  %v5642_v61 = vmul.f32 %v14206_v0, %v14206_v0 }
 0x5a2   :  { %v5696_v27 = vadd.f32 %v5695_v23, %v5633_v28  ;;  %17770 = vst [vmem:[#allocation93_spill] sm:$0xff] %v14212_v35  ;;  %v14218_v28 = vsub.f32 %v13845_v54, %v14057_v8  ;;  %v5643_v48 = vmul.f32 %v14212_v35, %v14212_v35 }
 0x5a4   :  { %v5697_v52 = vadd.f32 %v5696_v27, %v5634_v53  ;;  %17771 = vst [vmem:[#allocation103_spill] sm:$0xff] %v14218_v28  ;;  %v14224_v53 = vsub.f32 %v13850_v44, %v14057_v8  ;;  %v5644_v54 = vmul.f32 %v14218_v28, %v14218_v28 }
 0x5a6   :  { %v5698_v14 = vadd.f32 %v5697_v52, %v5635_v45  ;;  %17772 = vst [vmem:[#allocation104_spill] sm:$0xff] %v14224_v53  ;;  %v14230_v45 = vsub.f32 %v13857_v29, %v14057_v8  ;;  %v5645_v44 = vmul.f32 %v14224_v53, %v14224_v53 }
 0x5a8   :  { %v5699_v11 = vadd.f32 %v5698_v14, %v5636_v57  ;;  %17773 = vst [vmem:[#allocation94_spill] sm:$0xff] %v14230_v45  ;;  %v14236_v57 = vsub.f32 %v13862_v22, %v14057_v8  ;;  %v5646_v29 = vmul.f32 %v14230_v45, %v14230_v45  ;;  %v14251_v22 = vsub.f32 %v13874_v63, %v14057_v8  ;;  %v5982_v63 = vld [vmem:[%s16450_s3 + $0x68] sm:$0xff] }
 0x5aa   :  { %v5700_v1 = vadd.f32 %v5699_v11, %v5637_v2  ;;  %17774 = vst [vmem:[#allocation68_spill] sm:$0xff] %v14236_v57  ;;  %v17775_v2 = vld [vmem:[#allocation73_spill] sm:$0xff]  ;;  %17777 = vst [vmem:[#allocation107_spill] sm:$0xff] %v14251_v22 }
 0x5ab   :  { %v14242_v11 = vsub.f32 %v17775_v2, %v14057_v8 }
 0x5ac   :  { %v5701_v16 = vadd.f32 %v5700_v1, %v5638_v42  ;;  %v5984_v1 = vld [vmem:[%s16450_s3 + $0x78] sm:$0xff] }
 0x5ad   :  { %17776 = vst [vmem:[#allocation97_spill] sm:$0xff] %v14242_v11  ;;  %9546 = vmatprep.subr.mxu0 %v5984_v1 }
 0x5ae   :  { %v5702_v25 = vadd.f32 %v5701_v16, %v5639_v9  ;;  %v5647_v9 = vmul.f32 %v14236_v57, %v14236_v57  ;;  %9547 = vmatpush3.msra.mxu0 %v5984_v1 }
 0x5b0   :  { %v5703_v49 = vadd.f32 %v5702_v25, %v5640_v5  ;;  %v5983_v5 = vld [vmem:[%s16450_s3 + $0x70] sm:$0xff]  ;;  %v17778_v25 = vld [vmem:[#allocation83_spill] sm:$0xff] }
 0x5b1   :  { %9548 = vmatprep.subr.mxu0 %v5983_v5 }
 0x5b2   :  { %v5704_v23 = vadd.f32 %v5703_v49, %v5641_v13  ;;  %v14260_v13 = vsub.f32 %v17778_v25, %v14057_v8  ;;  %v5648_v49 = vmul.f32 %v14242_v11, %v14242_v11  ;;  %9549 = vmatpush3.msra.mxu0 %v5983_v5  ;;  %v5673_v11 = vmul.f32 %v14061_v7, %v14061_v7 }
 0x5b3   :  { %9550 = vmatprep.subr.mxu0 %v5982_v63 }
 0x5b4   :  { %v5705_v27 = vadd.f32 %v5704_v23, %v5642_v61  ;;  %17779 = vst [vmem:[#allocation108_spill] sm:$0xff] %v14260_v13  ;;  %v14269_v23 = vsub.f32 %v13886_v6, %v14057_v8  ;;  %9551 = vmatpush3.msra.mxu0 %v5982_v63  ;;  %v5980_v6 = vld [vmem:[%s16450_s3 + $0x58] sm:$0xff] }
 0x5b6   :  { %v5706_v52 = vadd.f32 %v5705_v27, %v5643_v48  ;;  %17780 = vst [vmem:[#allocation160_spill] sm:$0xff] %v14269_v23  ;;  %v5649_v48 = vmul.f32 %v14251_v22, %v14251_v22 }
 0x5b8   :  { %v5707_v14 = vadd.f32 %v5706_v52, %v5644_v54  ;;  %v5981_v54 = vld [vmem:[%s16450_s3 + $0x60] sm:$0xff]  ;;  %v17781_v52 = vld [vmem:[#allocation84_spill] sm:$0xff] }
 0x5b9   :  { %9552 = vmatprep.subr.mxu0 %v5981_v54 }
 0x5ba   :  { %v5708_v42 = vadd.f32 %v5707_v14, %v5645_v44  ;;  %v14278_v44 = vsub.f32 %v17781_v52, %v14057_v8  ;;  %v5650_v14 = vmul.f32 %v14260_v13, %v14260_v13  ;;  %9553 = vmatpush3.msra.mxu0 %v5981_v54  ;;  %v17787_v54 = vld [vmem:[#allocation77_spill] sm:$0xff] }
 0x5bb   :  { %9554 = vmatprep.subr.mxu0 %v5980_v6  ;;  %v14314_v52 = vsub.f32 %v17787_v54, %v14057_v8 }
 0x5bc   :  { %v5709_v16 = vadd.f32 %v5708_v42, %v5646_v29  ;;  %17782 = vst [vmem:[#allocation101_spill] sm:$0xff] %v14278_v44  ;;  %v14287_v29 = vsub.f32 %v13898_v3, %v14057_v8  ;;  %v5651_v42 = vmul.f32 %v14269_v23, %v14269_v23  ;;  %9555 = vmatpush3.msra.mxu0 %v5980_v6  ;;  %v5978_v3 = vld [vmem:[%s16450_s3 + $0x48] sm:$0xff] }
 0x5bd   :  { %v5652_v25 = vmul.f32 %v14278_v44, %v14278_v44  ;;  %17788 = vst [vmem:[#allocation105_spill] sm:$0xff] %v14314_v52  ;;  %v17789_v6 = vld [vmem:[#allocation87_spill] sm:$0xff] }
 0x5be   :  { %v5710_v61 = vadd.f32 %v5709_v16, %v5647_v9  ;;  %17783 = vst [vmem:[#allocation111_spill] sm:$0xff] %v14287_v29  ;;  %v5979_v9 = vld [vmem:[%s16450_s3 + $0x50] sm:$0xff]  ;;  %v17784_v16 = vld [vmem:[#allocation157_spill] sm:$0xff]  ;;  %v5653_v63 = vmul.f32 %v14287_v29, %v14287_v29 }
 0x5bf   :  { %v14296_v5 = vsub.f32 %v17784_v16, %v14057_v8  ;;  %9556 = vmatprep.subr.mxu0 %v5979_v9  ;;  %v5975_v16 = vld [vmem:[%s16450_s3 + $0x30] sm:$0xff] }
 0x5c0   :  { %v5711_v27 = vadd.f32 %v5710_v61, %v5648_v49  ;;  %9557 = vmatpush3.msra.mxu0 %v5979_v9  ;;  %v14305_v61 = vsub.f32 %v13910_v33, %v14057_v8  ;;  %v5976_v33 = vld [vmem:[%s16450_s3 + $0x38] sm:$0xff] }
 0x5c1   :  { %17785 = vst [vmem:[#allocation112_spill] sm:$0xff] %v14296_v5  ;;  %9558 = vmatprep.subr.mxu0 %v5978_v3 }
 0x5c2   :  { %v5712_v2 = vadd.f32 %v5711_v27, %v5649_v48  ;;  %17786 = vst [vmem:[#allocation70_spill] sm:$0xff] %v14305_v61  ;;  %9559 = vmatpush3.msra.mxu0 %v5978_v3  ;;  %v5977_v27 = vld [vmem:[%s16450_s3 + $0x40] sm:$0xff]  ;;  %v5656_v3 = vmul.f32 %v14314_v52, %v14314_v52 }
 0x5c3   :  { %9560 = vmatprep.subr.mxu0 %v5977_v27 }
 0x5c4   :  { %v5713_v1 = vadd.f32 %v5712_v2, %v5650_v14  ;;  %v5654_v14 = vmul.f32 %v14296_v5, %v14296_v5  ;;  %9561 = vmatpush3.msra.mxu0 %v5977_v27  ;;  %v17793_v27 = vld [vmem:[#allocation78_spill] sm:$0xff]  ;;  %v17804_v5 = vld [vmem:[#allocation89_spill] sm:$0xff] }
 0x5c5   :  { %9562 = vmatprep.subr.mxu0 %v5976_v33  ;;  %v14341_v54 = vsub.f32 %v17793_v27, %v14057_v8  ;;  %v14410_v29 = vsub.f32 %v17804_v5, %v14057_v8 }
 0x5c6   :  { %v5714_v49 = vadd.f32 %v5713_v1, %v5651_v42  ;;  %v14323_v42 = vsub.f32 %v17789_v6, %v14057_v8  ;;  %v5655_v1 = vmul.f32 %v14305_v61, %v14305_v61  ;;  %9563 = vmatpush3.msra.mxu0 %v5976_v33  ;;  %v5973_v33 = vld [vmem:[%s16450_s3 + $0x20] sm:$0xff]  ;;  %v17795_v6 = vld [vmem:[#allocation71_spill] sm:$0xff] }
 0x5c7   :  { %9564 = vmatprep.subr.mxu0 %v5975_v16  ;;  %17794 = vst [vmem:[#allocation163_spill] sm:$0xff] %v14341_v54  ;;  %v5668_v5 = vmul.f32 %v14410_v29, %v14410_v29 }
 0x5c8   :  { %v5715_v48 = vadd.f32 %v5714_v49, %v5652_v25  ;;  %17790 = vst [vmem:[#allocation115_spill] sm:$0xff] %v14323_v42  ;;  %v17791_v25 = vld [vmem:[#allocation88_spill] sm:$0xff]  ;;  %9565 = vmatpush3.msra.mxu0 %v5975_v16 }
 0x5c9   :  { %v14332_v49 = vsub.f32 %v17791_v25, %v14057_v8  ;;  %v5972_v25 = vld [vmem:[%s16450_s3 + $0x18] sm:$0xff] }
 0x5ca   :  { %v5716_v2 = vadd.f32 %v5715_v48, %v5653_v63  ;;  %v5974_v48 = vld [vmem:[%s16450_s3 + $0x28] sm:$0xff] }
 0x5cb   :  { %17792 = vst [vmem:[#allocation116_spill] sm:$0xff] %v14332_v49  ;;  %9566 = vmatprep.subr.mxu0 %v5974_v48 }
 0x5cc   :  { %v5717_v9 = vadd.f32 %v5716_v2, %v5654_v14  ;;  %v5657_v14 = vmul.f32 %v14323_v42, %v14323_v42  ;;  %9567 = vmatpush3.msra.mxu0 %v5974_v48  ;;  %v5659_v48 = vmul.f32 %v14341_v54, %v14341_v54 }
 0x5cd   :  { %9568 = vmatprep.subr.mxu0 %v5973_v33 }
 0x5ce   :  { %v5718_v63 = vadd.f32 %v5717_v9, %v5655_v1  ;;  %v14350_v1 = vsub.f32 %v17795_v6, %v14057_v8  ;;  %v5658_v9 = vmul.f32 %v14332_v49, %v14332_v49  ;;  %9569 = vmatpush3.msra.mxu0 %v5973_v33 }
 0x5cf   :  { %9570 = vmatprep.subr.mxu0 %v5972_v25 }
 0x5d0   :  { %v5719_v2 = vadd.f32 %v5718_v63, %v5656_v3  ;;  %17796 = vst [vmem:[#allocation109_spill] sm:$0xff] %v14350_v1  ;;  %v17797_v3 = vld [vmem:[#allocation81_spill] sm:$0xff]  ;;  %9571 = vmatpush3.msra.mxu0 %v5972_v25  ;;  %v5660_v6 = vmul.f32 %v14350_v1, %v14350_v1 }
 0x5d1   :  { %v14359_v63 = vsub.f32 %v17797_v3, %v14057_v8 }
 0x5d2   :  { %v5720_v16 = vadd.f32 %v5719_v2, %v5657_v14  ;;  %v5971_v14 = vld [vmem:[%s16450_s3 + $0x10] sm:$0xff]  ;;  %v17798_v2 = vld [vmem:[#allocation91_spill] sm:$0xff] }
 0x5d3   :  { %v14368_v33 = vsub.f32 %v17798_v2, %v14057_v8  ;;  %9572 = vmatprep.subr.mxu0 %v5971_v14  ;;  %v5661_v3 = vmul.f32 %v14359_v63, %v14359_v63 }
 0x5d4   :  { %v5721_v27 = vadd.f32 %v5720_v16, %v5658_v9  ;;  %9573 = vmatpush3.msra.mxu0 %v5971_v14  ;;  %v5970_v9 = vld [vmem:[%s16450_s3 + $0x8] sm:$0xff]  ;;  %v17799_v16 = vld [vmem:[#allocation92_spill] sm:$0xff] }
 0x5d5   :  { %v14377_v25 = vsub.f32 %v17799_v16, %v14057_v8  ;;  %9574 = vmatprep.subr.mxu0 %v5970_v9  ;;  %v5662_v2 = vmul.f32 %v14368_v33, %v14368_v33  ;;  %v17801_v16 = vld [vmem:[#allocation85_spill] sm:$0xff] }
 0x5d6   :  { %v5722_v49 = vadd.f32 %v5721_v27, %v5659_v48  ;;  %9575 = vmatpush3.msra.mxu0 %v5970_v9  ;;  %v5969_v48 = vld [vmem:[%s16450_s3] sm:$0xff]  ;;  %v14392_v42 = vsub.f32 %v17801_v16, %v14057_v8  ;;  %v17802_v9 = vld [vmem:[#allocation95_spill] sm:$0xff] }
 0x5d7   :  { %v17800_v27 = vld [vmem:[#allocation66_spill] sm:$0xff]  ;;  %9576 = vmatprep.subr.mxu0 %v5969_v48  ;;  %v14398_v52 = vsub.f32 %v17802_v9, %v14057_v8  ;;  %v17805_v9 = vld [vmem:[#allocation99_spill] sm:$0xff] }
 0x5d8   :  { %v5723_v54 = vadd.f32 %v5722_v49, %v5660_v6  ;;  %v14386_v14 = vsub.f32 %v17800_v27, %v14057_v8  ;;  %9577 = vmatpush3.msra.mxu0 %v5969_v48  ;;  %v5663_v49 = vmul.f32 %v14377_v25, %v14377_v25  ;;  %v5665_v48 = vmul.f32 %v14392_v42, %v14392_v42 }
 0x5d9   :  { %v14416_v44 = vsub.f32 %v17805_v9, %v14057_v8  ;;  %v17808_v9 = vld [vmem:[#allocation153_spill] sm:$0xff] }
 0x5da   :  { %v5724_v1 = vadd.f32 %v5723_v54, %v5661_v3  ;;  %v5664_v27 = vmul.f32 %v14386_v14, %v14386_v14  ;;  %v17803_v54 = vld [vmem:[#allocation96_spill] sm:$0xff]  ;;  %v14434_v22 = vsub.f32 %v17808_v9, %v14057_v8  ;;  %v5675_v9 = vmul.f32 %v14069_v37, %v14069_v37 }
 0x5db   :  { %v14404_v3 = vsub.f32 %v17803_v54, %v14057_v8  ;;  %v17806_v54 = vld [vmem:[#allocation100_spill] sm:$0xff] }
 0x5dc   :  { %v5725_v6 = vadd.f32 %v5724_v1, %v5662_v2  ;;  %v5666_v1 = vmul.f32 %v14398_v52, %v14398_v52  ;;  %v14422_v23 = vsub.f32 %v17806_v54, %v14057_v8 }
 0x5de   :  { %v5726_v61 = vadd.f32 %v5725_v6, %v5663_v49  ;;  %v5667_v49 = vmul.f32 %v14404_v3, %v14404_v3 }
 0x5e0   :  { %v5727_v16 = vadd.f32 %v5726_v61, %v5664_v27  ;;  %v17807_v27 = vld [vmem:[#allocation90_spill] sm:$0xff] }
 0x5e1   :  { %v14428_v13 = vsub.f32 %v17807_v27, %v14057_v8  ;;  %v5674_v8 = vmul.f32 %v14065_v43, %v14065_v43 }
 0x5e2   :  { %v5728_v2 = vadd.f32 %v5727_v16, %v5665_v48  ;;  %v5669_v48 = vmul.f32 %v14416_v44, %v14416_v44 }
 0x5e3   :  { %v5671_v54 = vmul.f32 %v14428_v13, %v14428_v13 }
 0x5e4   :  { %v5729_v6 = vadd.f32 %v5728_v2, %v5666_v1  ;;  %v5670_v1 = vmul.f32 %v14422_v23, %v14422_v23 }
 0x5e6   :  { %v5730_v61 = vadd.f32 %v5729_v6, %v5667_v49  ;;  %v5672_v6 = vmul.f32 %v14434_v22, %v14434_v22 }
 0x5e8   :  { %v5731_v16 = vadd.f32 %v5730_v61, %v5668_v5 }
 0x5ea   :  { %v5732_v2 = vadd.f32 %v5731_v16, %v5669_v48  ;;  %v5676_v16 = vmul.f32 %v14073_v62, %v14073_v62 }
 0x5ec   :  { %v5733_v49 = vadd.f32 %v5732_v2, %v5670_v1  ;;  %v5677_v2 = vmul.f32 %v14077_v46, %v14077_v46 }
 0x5ee   :  { %v5734_v27 = vadd.f32 %v5733_v49, %v5671_v54  ;;  %v5678_v49 = vmul.f32 %v14081_v38, %v14081_v38 }
 0x5f0   :  { %v5735_v5 = vadd.f32 %v5734_v27, %v5672_v6  ;;  %v5679_v27 = vmul.f32 %v14085_v34, %v14085_v34 }
 0x5f2   :  { %v5736_v61 = vadd.f32 %v5735_v5, %v5673_v11  ;;  %v5680_v5 = vmul.f32 %v14089_v56, %v14089_v56 }
 0x5f4   :  { %v5737_v48 = vadd.f32 %v5736_v61, %v5674_v8  ;;  %v5681_v61 = vmul.f32 %v14092_v30, %v14092_v30 }
 0x5f6   :  { %v5738_v1 = vadd.f32 %v5737_v48, %v5675_v9  ;;  %v5682_v48 = vmul.f32 %v14095_v12, %v14095_v12 }
 0x5f8   :  { %v5739_v54 = vadd.f32 %v5738_v1, %v5676_v16  ;;  %v5683_v1 = vmul.f32 %v14098_v47, %v14098_v47 }
 0x5fa   :  { %v5740_v6 = vadd.f32 %v5739_v54, %v5677_v2  ;;  %v5684_v54 = vmul.f32 %v14101_v24, %v14101_v24 }
 0x5fc   :  { %v5741_v11 = vadd.f32 %v5740_v6, %v5678_v49  ;;  %v5685_v6 = vmul.f32 %v14104_v31, %v14104_v31 }
 0x5fe   :  { %v5742_v8 = vadd.f32 %v5741_v11, %v5679_v27  ;;  %v5686_v11 = vmul.f32 %v14107_v39, %v14107_v39 }
 0x600   :  { %v5743_v9 = vadd.f32 %v5742_v8, %v5680_v5  ;;  %v5687_v8 = vmul.f32 %v14110_v10, %v14110_v10 }
 0x602   :  { %v5744_v16 = vadd.f32 %v5743_v9, %v5681_v61  ;;  %v5688_v9 = vmul.f32 %v14113_v50, %v14113_v50 }
 0x604   :  { %v5745_v2 = vadd.f32 %v5744_v16, %v5682_v48  ;;  %v5689_v16 = vmul.f32 %v14116_v20, %v14116_v20 }
 0x606   :  { %v5746_v49 = vadd.f32 %v5745_v2, %v5683_v1  ;;  %v5690_v2 = vmul.f32 %v14119_v60, %v14119_v60 }
 0x608   :  { %v5747_v27 = vadd.f32 %v5746_v49, %v5684_v54  ;;  %v5691_v49 = vmul.f32 %v14122_v36, %v14122_v36 }
 0x60a   :  { %v5748_v5 = vadd.f32 %v5747_v27, %v5685_v6 }
 0x60c   :  { %v5749_v61 = vadd.f32 %v5748_v5, %v5686_v11 }
 0x60e   :  { %v5750_v48 = vadd.f32 %v5749_v61, %v5687_v8 }
 0x610   :  { %v5751_v1 = vadd.f32 %v5750_v48, %v5688_v9  ;;  %v5492_v9 = vld [vmem:[%s16451_s6] sm:$0x1] }
 0x612   :  { %v5752_v54 = vadd.f32 %v5751_v1, %v5689_v16  ;;  %v17809_v16 = vld [vmem:[#allocation2_spill] sm:$0xff] }
 0x614   :  { %v5753_v6 = vadd.f32 %v5752_v54, %v5690_v2 }
 0x616   :  { %v5754_v27 = vadd.f32 %v5753_v6, %v5691_v49 }
 0x618   :  { %v5755_v57 = vrot.slane %v5754_v27, 4 }
 0x61a   :  { %v5756_v45 = vadd.f32 %v5755_v57, %v5754_v27  ;;  %v14497_v57 = vld [vmem:[%s16452_s7] ss:$0 sm:$0xff] }
 0x61c   :  { %v5757_v11 = vrot.slane %v5756_v45, 2 }
 0x61e   :  { %v5758_v5 = vadd.f32 %v5757_v11, %v5756_v45 }
 0x620   :  { %v5759_v53 = vrot.slane %v5758_v5, 1 }
 0x622   :  { %v5760_v28 = vadd.f32 %v5759_v53, %v5758_v5 }
 0x624   :  { %v5761_v8 = vmul.f32 0.001953125, %v5760_v28 }
 0x626   :  { %v5762_v61 = vadd.f32 1e-05, %v5761_v8 }
 0x628   :  { %9709 = vrsqrt.f32 %v5762_v61 }
 0x635   :  { %v9710_v35 = vpop.eup %9709 }
 0x636   :  { %v5764_v48 = vmul.f32 %v9710_v35, %v5492_v9 }
 0x638   :  { %v14484_v1 = vrot.slane %v5764_v48, %v17809_v16 }
 0x63a   :  { %v5804_v2 = vmul.f32 %v14484_v1, %v14359_v63  ;;  %v5806_v45 = vmul.f32 %v14484_v1, %v14377_v25  ;;  %v5808_v28 = vmul.f32 %v14484_v1, %v14392_v42  ;;  %v5810_v53 = vmul.f32 %v14484_v1, %v14404_v3 }
 0x63b   :  { %v5812_v35 = vmul.f32 %v14484_v1, %v14416_v44  ;;  %v5814_v63 = vmul.f32 %v14484_v1, %v14428_v13  ;;  %v5816_v25 = vmul.f32 %v14484_v1, %v14061_v7  ;;  %v5818_v42 = vmul.f32 %v14484_v1, %v14069_v37 }
 0x63c   :  { %v5820_v3 = vmul.f32 %v14484_v1, %v14077_v46  ;;  %v5822_v54 = vmul.f32 %v14484_v1, %v14085_v34  ;;  %v5824_v49 = vmul.f32 %v14484_v1, %v14092_v30  ;;  %v5826_v44 = vmul.f32 %v14484_v1, %v14098_v47 }
 0x63d   :  { %v5828_v13 = vmul.f32 %v14484_v1, %v14104_v31  ;;  %v5830_v7 = vmul.f32 %v14484_v1, %v14110_v10  ;;  %v5832_v37 = vmul.f32 %v14484_v1, %v14116_v20  ;;  %v5834_v46 = vmul.f32 %v14484_v1, %v14122_v36 }
 0x63e   :  { %v14524_v34 = vadd.f32 %v14497_v57, %v5804_v2  ;;  %v14527_v30 = vadd.f32 %v14497_v57, %v5806_v45  ;;  %v14530_v47 = vadd.f32 %v14497_v57, %v5808_v28  ;;  %v14533_v31 = vadd.f32 %v14497_v57, %v5810_v53 }
 0x63f   :  { %v14536_v10 = vadd.f32 %v14497_v57, %v5812_v35  ;;  %v14539_v20 = vadd.f32 %v14497_v57, %v5814_v63  ;;  %v14542_v36 = vadd.f32 %v14497_v57, %v5816_v25  ;;  %v14545_v6 = vadd.f32 %v14497_v57, %v5818_v42 }
 0x640   :  { %v14548_v27 = vadd.f32 %v14497_v57, %v5820_v3  ;;  %v14551_v11 = vadd.f32 %v14497_v57, %v5822_v54  ;;  %v14554_v5 = vadd.f32 %v14497_v57, %v5824_v49  ;;  %v14557_v8 = vadd.f32 %v14497_v57, %v5826_v44 }
 0x641   :  { %v14560_v61 = vadd.f32 %v14497_v57, %v5828_v13  ;;  %v14563_v9 = vadd.f32 %v14497_v57, %v5830_v7  ;;  %v14566_v48 = vadd.f32 %v14497_v57, %v5832_v37  ;;  %v14569_v2 = vadd.f32 %v14497_v57, %v5834_v46 }
 0x642   :  { %v5772_v45 = vmul.f32 %v14484_v1, %v14130_v4  ;;  %v5771_v28 = vmul.f32 %v14484_v1, %v14126_v59  ;;  %v5773_v53 = vmul.f32 %v14484_v1, %v14134_v51  ;;  %v5774_v63 = vmul.f32 %v14484_v1, %v14142_v55 }
 0x643   :  { %v5775_v25 = vmul.f32 %v14484_v1, %v14146_v58  ;;  %v5833_v4 = vmul.f32 %v14484_v1, %v14119_v60  ;;  %v5776_v59 = vmul.f32 %v14484_v1, %v14152_v17  ;;  %v5777_v51 = vmul.f32 %v14484_v1, %v14158_v40 }
 0x644   :  { %v5842_v35 = vadd.f32 %v14497_v57, %v5772_v45  ;;  %v5841_v42 = vadd.f32 %v14497_v57, %v5771_v28  ;;  %v5843_v3 = vadd.f32 %v14497_v57, %v5773_v53  ;;  %v5778_v55 = vmul.f32 %v14484_v1, %v14164_v32 }
 0x645   :  { %v5779_v58 = vmul.f32 %v14484_v1, %v14170_v15  ;;  %v5805_v44 = vmul.f32 %v14484_v1, %v14368_v33  ;;  %v5807_v60 = vmul.f32 %v14484_v1, %v14386_v14  ;;  %v5809_v17 = vmul.f32 %v14484_v1, %v14398_v52 }
 0x646   :  { %v5906_v54 = vmax.f32 %v5842_v35, 0.0  ;;  %v5905_v49 = vmax.f32 %v5841_v42, 0.0  ;;  %v5844_v13 = vadd.f32 %v14497_v57, %v5774_v63  ;;  %v5811_v40 = vmul.f32 %v14484_v1, %v14410_v29 }
 0x647   :  { %v5813_v32 = vmul.f32 %v14484_v1, %v14422_v23  ;;  %v5907_v15 = vmax.f32 %v5843_v3, 0.0  ;;  %v5845_v7 = vadd.f32 %v14497_v57, %v5775_v25  ;;  %v5815_v33 = vmul.f32 %v14484_v1, %v14434_v22 }
 0x648   :  { %9578 = vmatprep.mubr.f32.mxu0 %v5905_v49  ;;  %v5817_v14 = vmul.f32 %v14484_v1, %v14065_v43  ;;  %v5819_v52 = vmul.f32 %v14484_v1, %v14073_v62  ;;  %v5821_v37 = vmul.f32 %v14484_v1, %v14081_v38  ;;  %v5823_v23 = vmul.f32 %v14484_v1, %v14089_v56 }
 0x649   :  { %9579 = vmatmul.mubr.f32.vlgmr.msra.gmra.mxu0 %v5906_v54  ;;  %v5825_v29 = vmul.f32 %v14484_v1, %v14095_v12  ;;  %v5827_v46 = vmul.f32 %v14484_v1, %v14101_v24  ;;  %v5829_v22 = vmul.f32 %v14484_v1, %v14107_v39  ;;  %v5831_v43 = vmul.f32 %v14484_v1, %v14113_v50 }
 0x64a   :  { %9581 = vmatprep.mubr.f32.mxu0 %v5907_v15  ;;  %v5846_v62 = vadd.f32 %v14497_v57, %v5776_v59  ;;  %v5908_v38 = vmax.f32 %v5844_v13, 0.0  ;;  %v5847_v45 = vadd.f32 %v14497_v57, %v5777_v51  ;;  %v5909_v28 = vmax.f32 %v5845_v7, 0.0 }
 0x64b   :  { %v14627_v56 = vadd.f32 %v14497_v57, %v5805_v44  ;;  %v14630_v12 = vadd.f32 %v14497_v57, %v5807_v60  ;;  %v14633_v24 = vadd.f32 %v14497_v57, %v5809_v17  ;;  %v14636_v39 = vadd.f32 %v14497_v57, %v5811_v40 }
 0x64c   :  { %v14639_v50 = vadd.f32 %v14497_v57, %v5813_v32  ;;  %v14642_v53 = vadd.f32 %v14497_v57, %v5815_v33  ;;  %v14645_v35 = vadd.f32 %v14497_v57, %v5817_v14  ;;  %v5780_v63 = vmul.f32 %v14484_v1, %v14176_v21 }
 0x64d   :  { %9582 = vmatmul.mubr.f32.gmra.mxu0 %v5908_v38  ;;  %v5781_v25 = vmul.f32 %v14484_v1, %v14182_v19  ;;  %v5848_v42 = vadd.f32 %v14497_v57, %v5778_v55  ;;  %v5910_v3 = vmax.f32 %v5846_v62, 0.0  ;;  %v5911_v59 = vmax.f32 %v5847_v45, 0.0 }
 0x64e   :  { %9584 = vmatprep.mubr.f32.mxu0 %v5909_v28  ;;  %v5849_v54 = vadd.f32 %v14497_v57, %v5779_v58  ;;  %v14654_v51 = vadd.f32 %v14497_v57, %v5819_v52  ;;  %v14657_v49 = vadd.f32 %v14497_v57, %v5821_v37  ;;  %v14660_v44 = vadd.f32 %v14497_v57, %v5823_v23 }
 0x64f   :  { %v14663_v21 = vadd.f32 %v14497_v57, %v5825_v29  ;;  %v14666_v19 = vadd.f32 %v14497_v57, %v5827_v46  ;;  %v14669_v55 = vadd.f32 %v14497_v57, %v5829_v22  ;;  %v14672_v58 = vadd.f32 %v14497_v57, %v5831_v43  ;;  %v17811_v22 = vld [vmem:[#allocation103_spill] sm:$0xff] }
 0x650   :  { %v14675_v60 = vadd.f32 %v14497_v57, %v5833_v4  ;;  %v5782_v17 = vmul.f32 %v14484_v1, %v14188_v18  ;;  %v5850_v13 = vadd.f32 %v14497_v57, %v5780_v63  ;;  %v5912_v40 = vmax.f32 %v5848_v42, 0.0  ;;  %v17813_v63 = vld [vmem:[#allocation94_spill] sm:$0xff] }
 0x651   :  { %9585 = vmatmul.mubr.f32.gmra.mxu0 %v5910_v3  ;;  %v5783_v32 = vmul.f32 %v14484_v1, %v14194_v41  ;;  %v5913_v15 = vmax.f32 %v5849_v54, 0.0  ;;  %v5851_v7 = vadd.f32 %v14497_v57, %v5781_v25  ;;  %v5784_v33 = vmul.f32 %v14484_v1, %v14200_v26  ;;  %v17810_v41 = vld [vmem:[#allocation93_spill] sm:$0xff] }
 0x652   :  { %9587 = vmatprep.mubr.f32.mxu0 %v5911_v59  ;;  %v5852_v4 = vadd.f32 %v14497_v57, %v5782_v17  ;;  %v5914_v14 = vmax.f32 %v5850_v13, 0.0  ;;  %v5785_v18 = vmul.f32 %v14484_v1, %v14206_v0  ;;  %v5786_v23 = vmul.f32 %v14484_v1, %v17810_v41  ;;  %v17812_v0 = vld [vmem:[#allocation104_spill] sm:$0xff] }
 0x653   :  { %v5915_v52 = vmax.f32 %v5851_v7, 0.0  ;;  %v5853_v37 = vadd.f32 %v14497_v57, %v5783_v32  ;;  %v5854_v29 = vadd.f32 %v14497_v57, %v5784_v33  ;;  %v5787_v26 = vmul.f32 %v14484_v1, %v17811_v22  ;;  %v17814_v59 = vld [vmem:[#allocation68_spill] sm:$0xff]  ;;  %v17816_v33 = vld [vmem:[#allocation107_spill] sm:$0xff] }
 0x654   :  { %v5916_v46 = vmax.f32 %v5852_v4, 0.0  ;;  %v5855_v62 = vadd.f32 %v14497_v57, %v5785_v18  ;;  %v5788_v38 = vmul.f32 %v14484_v1, %v17812_v0  ;;  %v5856_v45 = vadd.f32 %v14497_v57, %v5786_v23 }
 0x655   :  { %9588 = vmatmul.mubr.f32.gmra.mxu0 %v5912_v40  ;;  %v5917_v43 = vmax.f32 %v5853_v37, 0.0  ;;  %v5918_v28 = vmax.f32 %v5854_v29, 0.0  ;;  %v5789_v25 = vmul.f32 %v14484_v1, %v17813_v63  ;;  %v5857_v3 = vadd.f32 %v14497_v57, %v5787_v26  ;;  %v17815_v40 = vld [vmem:[#allocation97_spill] sm:$0xff]  ;;  %v17818_v29 = vld [vmem:[#allocation160_spill] sm:$0xff] }
 0x656   :  { %9590 = vmatprep.mubr.f32.mxu0 %v5913_v15  ;;  %v5919_v42 = vmax.f32 %v5855_v62, 0.0  ;;  %v5790_v54 = vmul.f32 %v14484_v1, %v17814_v59  ;;  %v5858_v17 = vadd.f32 %v14497_v57, %v5788_v38  ;;  %v5920_v13 = vmax.f32 %v5856_v45, 0.0  ;;  %v17820_v45 = vld [vmem:[#allocation111_spill] sm:$0xff] }
 0x657   :  { %v5791_v32 = vmul.f32 %v14484_v1, %v17815_v40  ;;  %v5921_v15 = vmax.f32 %v5857_v3, 0.0  ;;  %v5859_v7 = vadd.f32 %v14497_v57, %v5789_v25  ;;  %v5792_v4 = vmul.f32 %v14484_v1, %v17816_v33 }
 0x658   :  { %v5922_v18 = vmax.f32 %v5858_v17, 0.0  ;;  %v17822_v17 = vld [vmem:[#allocation70_spill] sm:$0xff] }
 0x659   :  { %9591 = vmatmul.mubr.f32.gmra.mxu0 %v5914_v14  ;;  %v5860_v14 = vadd.f32 %v14497_v57, %v5790_v54  ;;  %v5923_v41 = vmax.f32 %v5859_v7, 0.0  ;;  %v5861_v23 = vadd.f32 %v14497_v57, %v5791_v32  ;;  %v5862_v22 = vadd.f32 %v14497_v57, %v5792_v4 }
 0x65a   :  { %9593 = vmatprep.mubr.f32.mxu0 %v5915_v52  ;;  %v17817_v52 = vld [vmem:[#allocation108_spill] sm:$0xff] }
 0x65b   :  { %v5793_v37 = vmul.f32 %v14484_v1, %v17817_v52  ;;  %v5924_v26 = vmax.f32 %v5860_v14, 0.0  ;;  %v5925_v0 = vmax.f32 %v5861_v23, 0.0  ;;  %v5926_v25 = vmax.f32 %v5862_v22, 0.0  ;;  %v17824_v14 = vld [vmem:[#allocation115_spill] sm:$0xff] }
 0x65c   :  { %v17826_v22 = vld [vmem:[#allocation163_spill] sm:$0xff] }
 0x65d   :  { %9594 = vmatmul.mubr.f32.gmra.mxu0 %v5916_v46  ;;  %v5794_v46 = vmul.f32 %v14484_v1, %v17818_v29  ;;  %v5863_v38 = vadd.f32 %v14497_v57, %v5793_v37 }
 0x65e   :  { %9596 = vmatprep.mubr.f32.mxu0 %v5917_v43  ;;  %v17819_v43 = vld [vmem:[#allocation101_spill] sm:$0xff] }
 0x65f   :  { %v5795_v62 = vmul.f32 %v14484_v1, %v17819_v43  ;;  %v5864_v63 = vadd.f32 %v14497_v57, %v5794_v46  ;;  %v5927_v59 = vmax.f32 %v5863_v38, 0.0 }
 0x661   :  { %9597 = vmatmul.mubr.f32.gmra.mxu0 %v5918_v28  ;;  %v5796_v28 = vmul.f32 %v14484_v1, %v17820_v45  ;;  %v5865_v54 = vadd.f32 %v14497_v57, %v5795_v62  ;;  %v5928_v32 = vmax.f32 %v5864_v63, 0.0 }
 0x662   :  { %9599 = vmatprep.mubr.f32.mxu0 %v5919_v42  ;;  %v17821_v42 = vld [vmem:[#allocation112_spill] sm:$0xff] }
 0x663   :  { %v5797_v3 = vmul.f32 %v14484_v1, %v17821_v42  ;;  %v5866_v40 = vadd.f32 %v14497_v57, %v5796_v28  ;;  %v5929_v33 = vmax.f32 %v5865_v54, 0.0 }
 0x665   :  { %9600 = vmatmul.mubr.f32.gmra.mxu0 %v5920_v13  ;;  %v5798_v13 = vmul.f32 %v14484_v1, %v17822_v17  ;;  %v5867_v4 = vadd.f32 %v14497_v57, %v5797_v3  ;;  %v5930_v37 = vmax.f32 %v5866_v40, 0.0  ;;  %v5938_v17 = vmax.f32 %v14524_v34, 0.0 }
 0x666   :  { %9602 = vmatprep.mubr.f32.mxu0 %v5921_v15  ;;  %v17823_v15 = vld [vmem:[#allocation105_spill] sm:$0xff]  ;;  %v5941_v40 = vmax.f32 %v14630_v12, 0.0  ;;  %v5945_v34 = vmax.f32 %v14636_v39, 0.0  ;;  %v5948_v12 = vmax.f32 %v14539_v20, 0.0  ;;  %v5952_v39 = vmax.f32 %v14545_v6, 0.0 }
 0x667   :  { %v5799_v7 = vmul.f32 %v14484_v1, %v17823_v15  ;;  %v5868_v52 = vadd.f32 %v14497_v57, %v5798_v13  ;;  %v5931_v29 = vmax.f32 %v5867_v4, 0.0  ;;  %v5940_v13 = vmax.f32 %v14527_v30, 0.0 }
 0x668   :  { %v5944_v15 = vmax.f32 %v14533_v31, 0.0  ;;  %v5947_v30 = vmax.f32 %v14639_v50, 0.0  ;;  %v5951_v31 = vmax.f32 %v14645_v35, 0.0  ;;  %v5954_v50 = vmax.f32 %v14548_v27, 0.0 }
 0x669   :  { %9603 = vmatmul.mubr.f32.gmra.mxu0 %v5922_v18  ;;  %v5800_v18 = vmul.f32 %v14484_v1, %v17824_v14  ;;  %v5869_v46 = vadd.f32 %v14497_v57, %v5799_v7  ;;  %v5932_v62 = vmax.f32 %v5868_v52, 0.0  ;;  %v5955_v20 = vmax.f32 %v14657_v49, 0.0 }
 0x66a   :  { %9605 = vmatprep.mubr.f32.mxu0 %v5923_v41  ;;  %v17825_v41 = vld [vmem:[#allocation116_spill] sm:$0xff]  ;;  %v5958_v35 = vmax.f32 %v14554_v5, 0.0  ;;  %v5959_v6 = vmax.f32 %v14663_v21, 0.0  ;;  %v5961_v27 = vmax.f32 %v14666_v19, 0.0  ;;  %v5962_v49 = vmax.f32 %v14560_v61, 0.0 }
 0x66b   :  { %v5801_v23 = vmul.f32 %v14484_v1, %v17825_v41  ;;  %v5870_v43 = vadd.f32 %v14497_v57, %v5800_v18  ;;  %v5933_v45 = vmax.f32 %v5869_v46, 0.0  ;;  %v5965_v5 = vmax.f32 %v14672_v58, 0.0 }
 0x66c   :  { %v5966_v21 = vmax.f32 %v14566_v48, 0.0  ;;  %v5968_v19 = vmax.f32 %v14569_v2, 0.0 }
 0x66d   :  { %9606 = vmatmul.mubr.f32.gmra.mxu0 %v5924_v26  ;;  %v5802_v26 = vmul.f32 %v14484_v1, %v17826_v22  ;;  %v5871_v28 = vadd.f32 %v14497_v57, %v5801_v23 }
 0x66e   :  { %9608 = vmatprep.mubr.f32.mxu0 %v5925_v0  ;;  %v17827_v0 = vld [vmem:[#allocation109_spill] sm:$0xff] }
 0x66f   :  { %v5803_v38 = vmul.f32 %v14484_v1, %v17827_v0  ;;  %v5872_v63 = vadd.f32 %v14497_v57, %v5802_v26  ;;  %v5935_v42 = vmax.f32 %v5871_v28, 0.0  ;;  %v5939_v1 = vmax.f32 %v14627_v56, 0.0 }
 0x670   :  { %v5946_v56 = vmax.f32 %v14536_v10, 0.0  ;;  %v5953_v10 = vmax.f32 %v14654_v51, 0.0  ;;  %v5960_v51 = vmax.f32 %v14557_v8, 0.0  ;;  %v5967_v8 = vmax.f32 %v14675_v60, 0.0 }
 0x671   :  { %9609 = vmatmul.mubr.f32.gmra.mxu0 %v5926_v25  ;;  %v5934_v25 = vmax.f32 %v5870_v43, 0.0  ;;  %v5873_v3 = vadd.f32 %v14497_v57, %v5803_v38  ;;  %v5942_v57 = vmax.f32 %v14530_v47, 0.0  ;;  %v5949_v47 = vmax.f32 %v14642_v53, 0.0 }
 0x672   :  { %9611 = vmatprep.mubr.f32.mxu0 %v5927_v59  ;;  %v5936_v59 = vmax.f32 %v5872_v63, 0.0  ;;  %v5956_v53 = vmax.f32 %v14551_v11, 0.0  ;;  %v5963_v11 = vmax.f32 %v14669_v55, 0.0 }
 0x673   :  { %v5937_v54 = vmax.f32 %v5873_v3, 0.0 }
 0x675   :  { %9612 = vmatmul.mubr.f32.gmra.mxu0 %v5928_v32  ;;  %v5943_v32 = vmax.f32 %v14633_v24, 0.0  ;;  %v5950_v24 = vmax.f32 %v14542_v36, 0.0  ;;  %v5957_v36 = vmax.f32 %v14660_v44, 0.0  ;;  %v5964_v44 = vmax.f32 %v14563_v9, 0.0 }
 0x676   :  { %9614 = vmatprep.mubr.f32.mxu0 %v5929_v33 }
 0x679   :  { %9615 = vmatmul.mubr.f32.gmra.mxu0 %v5930_v37 }
 0x67a   :  { %9617 = vmatprep.mubr.f32.mxu0 %v5931_v29 }
 0x67d   :  { %9618 = vmatmul.mubr.f32.gmra.mxu0 %v5932_v62 }
 0x67e   :  { %9620 = vmatprep.mubr.f32.mxu0 %v5933_v45 }
 0x681   :  { %9621 = vmatmul.mubr.f32.gmra.mxu0 %v5934_v25 }
 0x682   :  { %9623 = vmatprep.mubr.f32.mxu0 %v5935_v42 }
 0x685   :  { %9624 = vmatmul.mubr.f32.gmra.mxu0 %v5936_v59 }
 0x686   :  { %9626 = vmatprep.mubr.f32.mxu0 %v5937_v54 }
 0x689   :  { %9627 = vmatmul.mubr.f32.gmra.mxu0 %v5938_v17 }
 0x68a   :  { %9629 = vmatprep.mubr.f32.mxu0 %v5939_v1 }
 0x68d   :  { %9630 = vmatmul.mubr.f32.gmra.mxu0 %v5940_v13 }
 0x68e   :  { %9632 = vmatprep.mubr.f32.mxu0 %v5941_v40 }
 0x691   :  { %9633 = vmatmul.mubr.f32.gmra.mxu0 %v5942_v57 }
 0x692   :  { %9635 = vmatprep.mubr.f32.mxu0 %v5943_v32 }
 0x695   :  { %9636 = vmatmul.mubr.f32.gmra.mxu0 %v5944_v15 }
 0x696   :  { %9638 = vmatprep.mubr.f32.mxu0 %v5945_v34 }
 0x699   :  { %9639 = vmatmul.mubr.f32.gmra.mxu0 %v5946_v56 }
 0x69a   :  { %9641 = vmatprep.mubr.f32.mxu0 %v5947_v30 }
 0x69d   :  { %9642 = vmatmul.mubr.f32.gmra.mxu0 %v5948_v12 }
 0x69e   :  { %9644 = vmatprep.mubr.f32.mxu0 %v5949_v47 }
 0x6a1   :  { %9645 = vmatmul.mubr.f32.gmra.mxu0 %v5950_v24 }
 0x6a2   :  { %9647 = vmatprep.mubr.f32.mxu0 %v5951_v31 }
 0x6a5   :  { %9648 = vmatmul.mubr.f32.gmra.mxu0 %v5952_v39 }
 0x6a6   :  { %9650 = vmatprep.mubr.f32.mxu0 %v5953_v10 }
 0x6a9   :  { %9651 = vmatmul.mubr.f32.gmra.mxu0 %v5954_v50 }
 0x6aa   :  { %9653 = vmatprep.mubr.f32.mxu0 %v5955_v20 }
 0x6ad   :  { %9654 = vmatmul.mubr.f32.gmra.mxu0 %v5956_v53 }
 0x6ae   :  { %9656 = vmatprep.mubr.f32.mxu0 %v5957_v36 }
 0x6b1   :  { %9657 = vmatmul.mubr.f32.gmra.mxu0 %v5958_v35 }
 0x6b2   :  { %9659 = vmatprep.mubr.f32.mxu0 %v5959_v6 }
 0x6b5   :  { %9660 = vmatmul.mubr.f32.gmra.mxu0 %v5960_v51 }
 0x6b6   :  { %9662 = vmatprep.mubr.f32.mxu0 %v5961_v27 }
 0x6b9   :  { %9663 = vmatmul.mubr.f32.gmra.mxu0 %v5962_v49 }
 0x6ba   :  { %9665 = vmatprep.mubr.f32.mxu0 %v5963_v11 }
 0x6bd   :  { %9666 = vmatmul.mubr.f32.gmra.mxu0 %v5964_v44 }
 0x6be   :  { %9668 = vmatprep.mubr.f32.mxu0 %v5965_v5 }
 0x6c1   :  { %9669 = vmatmul.mubr.f32.gmra.mxu0 %v5966_v21 }
 0x6c2   :  { %9671 = vmatprep.mubr.f32.mxu0 %v5967_v8 }
 0x6c5   :  { %9672 = vmatmul.mubr.f32.gmra.mxu0 %v5968_v19 }
 0x709   :  { %v14776_v61 = vpop.f32.mrf.mxu0 }
 0x70b   :  { %v14778_v55 = vpop.f32.mrf.mxu0 }
 0x70c   :  { %v6372_v9 = vadd.f32 %v14776_v61, %v14778_v55 }
 0x70d   :  { %v14780_v7 = vpop.f32.mrf.mxu0 }
 0x70f   :  { %v14784_v58 = vpop.f32.mrf.mxu0 }
 0x710   :  { %v6373_v48 = vadd.f32 %v6372_v9, %v14784_v58 }
 0x711   :  { %v14787_v33 = vpop.f32.mrf.mxu0 }
 0x712   :  { %v6374_v60 = vadd.f32 %v14780_v7, %v6373_v48 }
 0x713   :  { %v14790_v4 = vpop.f32.mrf.mxu0 }
 0x714   :  { %v6375_v2 = vadd.f32 %v6374_v60, %v14790_v4 }
 0x715   :  { %v14793_v14 = vpop.f32.mrf.mxu0 }
 0x716   :  { %v6376_v18 = vadd.f32 %v14787_v33, %v6375_v2 }
 0x717   :  { %v14796_v52 = vpop.f32.mrf.mxu0 }
 0x718   :  { %v6377_v37 = vadd.f32 %v6376_v18, %v14796_v52 }
 0x719   :  { %v14799_v41 = vpop.f32.mrf.mxu0 }
 0x71a   :  { %v6378_v23 = vadd.f32 %v14793_v14, %v6377_v37 }
 0x71b   :  { %v14802_v29 = vpop.f32.mrf.mxu0 }
 0x71c   :  { %v6379_v46 = vadd.f32 %v6378_v23, %v14802_v29 }
 0x71d   :  { %v14805_v22 = vpop.f32.mrf.mxu0 }
 0x71e   :  { %v6380_v26 = vadd.f32 %v14799_v41, %v6379_v46 }
 0x71f   :  { %v14808_v43 = vpop.f32.mrf.mxu0 }
 0x720   :  { %v6381_v62 = vadd.f32 %v6380_v26, %v14808_v43 }
 0x721   :  { %v14811_v0 = vpop.f32.mrf.mxu0 }
 0x722   :  { %v6382_v38 = vadd.f32 %v14805_v22, %v6381_v62 }
 0x723   :  { %v14814_v45 = vpop.f32.mrf.mxu0 }
 0x724   :  { %v6383_v28 = vadd.f32 %v6382_v38, %v14814_v45 }
 0x725   :  { %v14817_v63 = vpop.f32.mrf.mxu0 }
 0x726   :  { %v6384_v25 = vadd.f32 %v14811_v0, %v6383_v28 }
 0x727   :  { %v14820_v42 = vpop.f32.mrf.mxu0 }
 0x728   :  { %v6385_v3 = vadd.f32 %v6384_v25, %v14820_v42 }
 0x729   :  { %v14823_v59 = vpop.f32.mrf.mxu0 }
 0x72a   :  { %v6386_v54 = vadd.f32 %v14817_v63, %v6385_v3 }
 0x72b   :  { %v14826_v17 = vpop.f32.mrf.mxu0 }
 0x72c   :  { %v6387_v1 = vadd.f32 %v6386_v54, %v14826_v17 }
 0x72d   :  { %v14829_v13 = vpop.f32.mrf.mxu0 }
 0x72e   :  { %v6388_v40 = vadd.f32 %v14823_v59, %v6387_v1 }
 0x72f   :  { %v14832_v57 = vpop.f32.mrf.mxu0 }
 0x730   :  { %v6389_v32 = vadd.f32 %v6388_v40, %v14832_v57 }
 0x731   :  { %v14835_v15 = vpop.f32.mrf.mxu0 }
 0x732   :  { %v6390_v34 = vadd.f32 %v14829_v13, %v6389_v32 }
 0x733   :  { %v14838_v56 = vpop.f32.mrf.mxu0 }
 0x734   :  { %v6391_v30 = vadd.f32 %v6390_v34, %v14838_v56 }
 0x735   :  { %v14841_v12 = vpop.f32.mrf.mxu0 }
 0x736   :  { %v6392_v47 = vadd.f32 %v14835_v15, %v6391_v30 }
 0x737   :  { %v14844_v24 = vpop.f32.mrf.mxu0 }
 0x738   :  { %v6393_v31 = vadd.f32 %v6392_v47, %v14844_v24 }
 0x739   :  { %v14847_v39 = vpop.f32.mrf.mxu0 }
 0x73a   :  { %v6394_v10 = vadd.f32 %v14841_v12, %v6393_v31 }
 0x73b   :  { %v14850_v50 = vpop.f32.mrf.mxu0 }
 0x73c   :  { %v6395_v20 = vadd.f32 %v6394_v10, %v14850_v50 }
 0x73d   :  { %v14853_v53 = vpop.f32.mrf.mxu0 }
 0x73e   :  { %v6396_v36 = vadd.f32 %v14847_v39, %v6395_v20 }
 0x73f   :  { %v14856_v35 = vpop.f32.mrf.mxu0 }
 0x740   :  { %v6397_v6 = vadd.f32 %v6396_v36, %v14856_v35 }
 0x741   :  { %v14859_v51 = vpop.f32.mrf.mxu0 }
 0x742   :  { %v6398_v27 = vadd.f32 %v14853_v53, %v6397_v6 }
 0x743   :  { %v14862_v49 = vpop.f32.mrf.mxu0 }
 0x744   :  { %v6399_v11 = vadd.f32 %v6398_v27, %v14862_v49 }
 0x745   :  { %v14865_v44 = vpop.f32.mrf.mxu0 }
 0x746   :  { %17828 = vst [vmem:[#allocation119_spill] sm:$0xff] %v14865_v44  ;;  %v6400_v5 = vadd.f32 %v14859_v51, %v6399_v11 }
 0x747   :  { %v14868_v21 = vpop.f32.mrf.mxu0 }
 0x748   :  { %v6401_v8 = vadd.f32 %v6400_v5, %v14868_v21 }
 0x749   :  { %v14871_v19 = vpop.f32.mrf.mxu0 }
 0x74a   :  { %17829 = vst [vmem:[#allocation120_spill] sm:$0xff] %v14871_v19  ;;  %v6402_v9 = vadd.f32 %v14865_v44, %v6401_v8 }
 0x74b   :  { %v14874_v48 = vpop.f32.mrf.mxu0 }
 0x74c   :  { %17830 = vst [vmem:[#allocation121_spill] sm:$0xff] %v14874_v48  ;;  %v6403_v60 = vadd.f32 %v6402_v9, %v14874_v48 }
 0x74d   :  { %v14877_v2 = vpop.f32.mrf.mxu0 }
 0x74e   :  { %17831 = vst [vmem:[#allocation122_spill] sm:$0xff] %v14877_v2  ;;  %v6404_v18 = vadd.f32 %v14871_v19, %v6403_v60 }
 0x74f   :  { %v14880_v37 = vpop.f32.mrf.mxu0 }
 0x750   :  { %17832 = vst [vmem:[#allocation74_spill] sm:$0xff] %v14880_v37  ;;  %v6405_v23 = vadd.f32 %v6404_v18, %v14880_v37 }
 0x751   :  { %v14883_v46 = vpop.f32.mrf.mxu0 }
 0x752   :  { %17833 = vst [vmem:[#allocation117_spill] sm:$0xff] %v14883_v46  ;;  %v6406_v26 = vadd.f32 %v14877_v2, %v6405_v23 }
 0x753   :  { %v14886_v62 = vpop.f32.mrf.mxu0 }
 0x754   :  { %17834 = vst [vmem:[#allocation123_spill] sm:$0xff] %v14886_v62  ;;  %v6407_v38 = vadd.f32 %v6406_v26, %v14886_v62 }
 0x755   :  { %v14889_v28 = vpop.f32.mrf.mxu0 }
 0x756   :  { %17835 = vst [vmem:[#allocation197_spill] sm:$0xff] %v14889_v28  ;;  %v6408_v25 = vadd.f32 %v14883_v46, %v6407_v38 }
 0x757   :  { %v14892_v3 = vpop.f32.mrf.mxu0 }
 0x758   :  { %17836 = vst [vmem:[#allocation3_spill] sm:$0xff] %v14892_v3  ;;  %v6409_v54 = vadd.f32 %v6408_v25, %v14892_v3 }
 0x759   :  { %v14895_v1 = vpop.f32.mrf.mxu0 }
 0x75a   :  { %17837 = vst [vmem:[#allocation8_spill] sm:$0xff] %v14895_v1  ;;  %v6410_v40 = vadd.f32 %v14889_v28, %v6409_v54 }
 0x75b   :  { %v14898_v32 = vpop.f32.mrf.mxu0 }
 0x75c   :  { %17838 = vst [vmem:[#allocation125_spill] sm:$0xff] %v14898_v32  ;;  %v6411_v34 = vadd.f32 %v6410_v40, %v14898_v32 }
 0x75d   :  { %v14901_v30 = vpop.f32.mrf.mxu0 }
 0x75e   :  { %17839 = vst [vmem:[#allocation124_spill] sm:$0xff] %v14901_v30  ;;  %v6412_v47 = vadd.f32 %v14895_v1, %v6411_v34 }
 0x75f   :  { %v14904_v31 = vpop.f32.mrf.mxu0 }
 0x760   :  { %17840 = vst [vmem:[#allocation82_spill] sm:$0xff] %v14904_v31  ;;  %v6413_v10 = vadd.f32 %v6412_v47, %v14904_v31 }
 0x761   :  { %v14907_v20 = vpop.f32.mrf.mxu0 }
 0x762   :  { %17841 = vst [vmem:[#allocation127_spill] sm:$0xff] %v14907_v20  ;;  %v6414_v36 = vadd.f32 %v14901_v30, %v6413_v10 }
 0x763   :  { %v14910_v6 = vpop.f32.mrf.mxu0 }
 0x764   :  { %17842 = vst [vmem:[#allocation172_spill] sm:$0xff] %v14910_v6  ;;  %v6415_v27 = vadd.f32 %v6414_v36, %v14910_v6 }
 0x765   :  { %v9649_v11 = vpop.f32.mrf.mxu0 }
 0x766   :  { %v6416_v5 = vadd.f32 %v14907_v20, %v6415_v27 }
 0x767   :  { %v6281_v8 = vpop.f32.mrf.mxu0 }
 0x768   :  { %v6417_v9 = vadd.f32 %v6416_v5, %v6281_v8 }
 0x769   :  { %v9652_v60 = vpop.f32.mrf.mxu0 }
 0x76a   :  { %v6418_v18 = vadd.f32 %v9649_v11, %v6417_v9 }
 0x76b   :  { %v6291_v23 = vpop.f32.mrf.mxu0 }
 0x76c   :  { %v6419_v26 = vadd.f32 %v6418_v18, %v6291_v23 }
 0x76d   :  { %v9655_v38 = vpop.f32.mrf.mxu0 }
 0x76e   :  { %v6420_v25 = vadd.f32 %v9652_v60, %v6419_v26 }
 0x76f   :  { %v6301_v54 = vpop.f32.mrf.mxu0 }
 0x770   :  { %v6421_v40 = vadd.f32 %v6420_v25, %v6301_v54 }
 0x771   :  { %v9658_v34 = vpop.f32.mrf.mxu0 }
 0x772   :  { %v6422_v47 = vadd.f32 %v9655_v38, %v6421_v40 }
 0x773   :  { %v6311_v10 = vpop.f32.mrf.mxu0 }
 0x774   :  { %v6423_v16 = vadd.f32 %v6422_v47, %v6311_v10 }
 0x775   :  { %v9661_v30 = vpop.f32.mrf.mxu0 }
 0x776   :  { %v6424_v31 = vadd.f32 %v9658_v34, %v6423_v16 }
 0x777   :  { %v6321_v36 = vpop.f32.mrf.mxu0 }
 0x778   :  { %v6425_v6 = vadd.f32 %v6424_v31, %v6321_v36 }
 0x779   :  { %v9664_v1 = vpop.f32.mrf.mxu0 }
 0x77a   :  { %v6426_v27 = vadd.f32 %v9661_v30, %v6425_v6 }
 0x77b   :  { %v6331_v20 = vpop.f32.mrf.mxu0 }
 0x77c   :  { %v6427_v5 = vadd.f32 %v6426_v27, %v6331_v20 }
 0x77d   :  { %v9667_v32 = vpop.f32.mrf.mxu0 }
 0x77e   :  { %v6428_v9 = vadd.f32 %v9664_v1, %v6427_v5 }
 0x77f   :  { %v6341_v28 = vpop.f32.mrf.mxu0 }
 0x780   :  { %v6429_v18 = vadd.f32 %v6428_v9, %v6341_v28 }
 0x781   :  { %v9670_v3 = vpop.f32.mrf.mxu0 }
 0x782   :  { %v6430_v26 = vadd.f32 %v9667_v32, %v6429_v18 }
 0x783   :  { %v6351_v46 = vpop.f32.mrf.mxu0 }
 0x784   :  { %v6431_v25 = vadd.f32 %v6430_v26, %v6351_v46 }
 0x785   :  { %v9673_v62 = vpop.f32.mrf.mxu0 }
 0x786   :  { %v6432_v40 = vadd.f32 %v9670_v3, %v6431_v25 }
 0x787   :  { %v6361_v2 = vpop.f32.mrf.mxu0 }
 0x788   :  { %v6433_v47 = vadd.f32 %v6432_v40, %v6361_v2 }
 0x78a   :  { %v6434_v37 = vadd.f32 %v9673_v62, %v6433_v47 }
 0x78c   :  { %v6435_v16 = vrot.slane %v6434_v37, 4 }
 0x78e   :  { %v6436_v19 = vadd.f32 %v6435_v16, %v6434_v37 }
 0x790   :  { %v6437_v31 = vrot.slane %v6436_v19, 2 }
 0x792   :  { %v6438_v48 = vadd.f32 %v6437_v31, %v6436_v19 }
 0x794   :  { %v6439_v6 = vrot.slane %v6438_v48, 1 }
 0x796   :  { %v6440_v44 = vadd.f32 %v6439_v6, %v6438_v48 }
 0x798   :  { %v14914_v27 = vmul.f32 0.001953125, %v6440_v44 }
 0x79a   :  { %v14917_v5 = vsub.f32 %v6281_v8, %v14914_v27  ;;  %v14920_v9 = vsub.f32 %v9649_v11, %v14914_v27  ;;  %v14923_v18 = vsub.f32 %v6291_v23, %v14914_v27  ;;  %v14926_v26 = vsub.f32 %v9652_v60, %v14914_v27 }
 0x79b   :  { %v14929_v37 = vsub.f32 %v6301_v54, %v14914_v27  ;;  %v14932_v19 = vsub.f32 %v9655_v38, %v14914_v27  ;;  %v14935_v44 = vsub.f32 %v6311_v10, %v14914_v27  ;;  %v14938_v48 = vsub.f32 %v9658_v34, %v14914_v27 }
 0x79c   :  { %v14941_v11 = vsub.f32 %v6321_v36, %v14914_v27  ;;  %v14944_v8 = vsub.f32 %v9661_v30, %v14914_v27  ;;  %v14947_v60 = vsub.f32 %v6331_v20, %v14914_v27  ;;  %v14950_v23 = vsub.f32 %v9664_v1, %v14914_v27 }
 0x79d   :  { %v14953_v38 = vsub.f32 %v6341_v28, %v14914_v27  ;;  %v14956_v54 = vsub.f32 %v9667_v32, %v14914_v27  ;;  %v14959_v34 = vsub.f32 %v6351_v46, %v14914_v27  ;;  %v14962_v10 = vsub.f32 %v9670_v3, %v14914_v27 }
 0x79e   :  { %17843 = vst [vmem:[#allocation126_spill] sm:$0xff] %v14950_v23  ;;  %v14965_v30 = vsub.f32 %v6361_v2, %v14914_v27  ;;  %v14968_v20 = vsub.f32 %v9673_v62, %v14914_v27  ;;  %v14972_v1 = vsub.f32 %v14778_v55, %v14914_v27  ;;  %v14976_v28 = vsub.f32 %v14776_v61, %v14914_v27 }
 0x79f   :  { %17844 = vst [vmem:[#allocation86_spill] sm:$0xff] %v14953_v38  ;;  %17845 = vst [vmem:[#allocation129_spill] sm:$0xff] %v14956_v54  ;;  %v14980_v46 = vsub.f32 %v14784_v58, %v14914_v27  ;;  %v14988_v62 = vsub.f32 %v14780_v7, %v14914_v27  ;;  %v14992_v55 = vsub.f32 %v14790_v4, %v14914_v27 }
 0x7a0   :  { %17846 = vst [vmem:[#allocation175_spill] sm:$0xff] %v14959_v34  ;;  %17847 = vst [vmem:[#allocation128_spill] sm:$0xff] %v14965_v30  ;;  %v6506_v3 = vmul.f32 %v14972_v1, %v14972_v1  ;;  %v6507_v2 = vmul.f32 %v14976_v28, %v14976_v28  ;;  %v14998_v58 = vsub.f32 %v14787_v33, %v14914_v27 }
 0x7a1   :  { %v6508_v61 = vmul.f32 %v14980_v46, %v14980_v46  ;;  %v6509_v36 = vmul.f32 %v14988_v62, %v14988_v62  ;;  %v15004_v7 = vsub.f32 %v14796_v52, %v14914_v27  ;;  %v6510_v4 = vmul.f32 %v14992_v55, %v14992_v55 }
 0x7a2   :  { %v6570_v32 = vadd.f32 %v6507_v2, %v6506_v3  ;;  %v15010_v47 = vsub.f32 %v14793_v14, %v14914_v27  ;;  %v6511_v33 = vmul.f32 %v14998_v58, %v14998_v58  ;;  %v15016_v31 = vsub.f32 %v14802_v29, %v14914_v27 }
 0x7a3   :  { %v6512_v52 = vmul.f32 %v15004_v7, %v15004_v7  ;;  %v15022_v3 = vsub.f32 %v14799_v41, %v14914_v27 }
 0x7a4   :  { %v6571_v25 = vadd.f32 %v6570_v32, %v6508_v61  ;;  %v6513_v14 = vmul.f32 %v15010_v47, %v15010_v47  ;;  %v15028_v61 = vsub.f32 %v14808_v43, %v14914_v27  ;;  %v6514_v29 = vmul.f32 %v15016_v31, %v15016_v31 }
 0x7a5   :  { %v6515_v41 = vmul.f32 %v15022_v3, %v15022_v3 }
 0x7a6   :  { %v6572_v40 = vadd.f32 %v6571_v25, %v6509_v36  ;;  %v15034_v36 = vsub.f32 %v14805_v22, %v14914_v27  ;;  %v6516_v43 = vmul.f32 %v15028_v61, %v15028_v61 }
 0x7a8   :  { %v6573_v16 = vadd.f32 %v6572_v40, %v6510_v4  ;;  %v15040_v4 = vsub.f32 %v14814_v45, %v14914_v27  ;;  %v6517_v22 = vmul.f32 %v15034_v36, %v15034_v36 }
 0x7aa   :  { %v6574_v6 = vadd.f32 %v6573_v16, %v6511_v33  ;;  %v15046_v33 = vsub.f32 %v14811_v0, %v14914_v27  ;;  %v6518_v45 = vmul.f32 %v15040_v4, %v15040_v4 }
 0x7ac   :  { %v6575_v2 = vadd.f32 %v6574_v6, %v6512_v52  ;;  %v15052_v52 = vsub.f32 %v14820_v42, %v14914_v27  ;;  %v6519_v0 = vmul.f32 %v15046_v33, %v15046_v33 }
 0x7ae   :  { %v6576_v32 = vadd.f32 %v6575_v2, %v6513_v14  ;;  %v15058_v14 = vsub.f32 %v14817_v63, %v14914_v27  ;;  %v6520_v42 = vmul.f32 %v15052_v52, %v15052_v52 }
 0x7b0   :  { %v6577_v25 = vadd.f32 %v6576_v32, %v6514_v29  ;;  %v15064_v29 = vsub.f32 %v14826_v17, %v14914_v27  ;;  %v6521_v63 = vmul.f32 %v15058_v14, %v15058_v14 }
 0x7b2   :  { %v6578_v40 = vadd.f32 %v6577_v25, %v6515_v41  ;;  %v15070_v41 = vsub.f32 %v14823_v59, %v14914_v27  ;;  %v6522_v17 = vmul.f32 %v15064_v29, %v15064_v29 }
 0x7b4   :  { %v6579_v16 = vadd.f32 %v6578_v40, %v6516_v43  ;;  %v15076_v43 = vsub.f32 %v14832_v57, %v14914_v27  ;;  %v6523_v59 = vmul.f32 %v15070_v41, %v15070_v41 }
 0x7b6   :  { %v6580_v6 = vadd.f32 %v6579_v16, %v6517_v22  ;;  %v15082_v22 = vsub.f32 %v14829_v13, %v14914_v27  ;;  %v6524_v57 = vmul.f32 %v15076_v43, %v15076_v43 }
 0x7b8   :  { %v6581_v2 = vadd.f32 %v6580_v6, %v6518_v45  ;;  %v15088_v45 = vsub.f32 %v14838_v56, %v14914_v27  ;;  %v6525_v13 = vmul.f32 %v15082_v22, %v15082_v22 }
 0x7ba   :  { %v6582_v32 = vadd.f32 %v6581_v2, %v6519_v0  ;;  %v15094_v0 = vsub.f32 %v14835_v15, %v14914_v27  ;;  %v6526_v56 = vmul.f32 %v15088_v45, %v15088_v45 }
 0x7bc   :  { %v6583_v25 = vadd.f32 %v6582_v32, %v6520_v42  ;;  %v15100_v42 = vsub.f32 %v14844_v24, %v14914_v27  ;;  %v6527_v15 = vmul.f32 %v15094_v0, %v15094_v0 }
 0x7be   :  { %v6584_v40 = vadd.f32 %v6583_v25, %v6521_v63  ;;  %v15106_v63 = vsub.f32 %v14841_v12, %v14914_v27  ;;  %v6528_v24 = vmul.f32 %v15100_v42, %v15100_v42 }
 0x7c0   :  { %v6585_v16 = vadd.f32 %v6584_v40, %v6522_v17  ;;  %v15112_v17 = vsub.f32 %v14850_v50, %v14914_v27  ;;  %v6529_v12 = vmul.f32 %v15106_v63, %v15106_v63 }
 0x7c2   :  { %v6586_v6 = vadd.f32 %v6585_v16, %v6523_v59  ;;  %v15118_v59 = vsub.f32 %v14847_v39, %v14914_v27  ;;  %v6530_v50 = vmul.f32 %v15112_v17, %v15112_v17 }
 0x7c4   :  { %v6587_v2 = vadd.f32 %v6586_v6, %v6524_v57  ;;  %v15124_v57 = vsub.f32 %v14856_v35, %v14914_v27  ;;  %v6531_v39 = vmul.f32 %v15118_v59, %v15118_v59 }
 0x7c6   :  { %v6588_v32 = vadd.f32 %v6587_v2, %v6525_v13  ;;  %v15130_v13 = vsub.f32 %v14853_v53, %v14914_v27  ;;  %v6532_v35 = vmul.f32 %v15124_v57, %v15124_v57 }
 0x7c8   :  { %v6589_v25 = vadd.f32 %v6588_v32, %v6526_v56  ;;  %v15136_v56 = vsub.f32 %v14862_v49, %v14914_v27  ;;  %v6533_v53 = vmul.f32 %v15130_v13, %v15130_v13 }
 0x7ca   :  { %v6590_v40 = vadd.f32 %v6589_v25, %v6527_v15  ;;  %v15142_v15 = vsub.f32 %v14859_v51, %v14914_v27  ;;  %v6534_v49 = vmul.f32 %v15136_v56, %v15136_v56 }
 0x7cc   :  { %v6591_v16 = vadd.f32 %v6590_v40, %v6528_v24  ;;  %17848 = vst [vmem:[#allocation178_spill] sm:$0xff] %v15142_v15  ;;  %v15148_v24 = vsub.f32 %v14868_v21, %v14914_v27  ;;  %v6535_v51 = vmul.f32 %v15142_v15, %v15142_v15 }
 0x7ce   :  { %v6592_v6 = vadd.f32 %v6591_v16, %v6529_v12  ;;  %17849 = vst [vmem:[#allocation131_spill] sm:$0xff] %v15148_v24  ;;  %v17850_v12 = vld [vmem:[#allocation119_spill] sm:$0xff]  ;;  %v6536_v21 = vmul.f32 %v15148_v24, %v15148_v24 }
 0x7cf   :  { %v15154_v16 = vsub.f32 %v17850_v12, %v14914_v27  ;;  %v17856_v12 = vld [vmem:[#allocation74_spill] sm:$0xff] }
 0x7d0   :  { %v6593_v2 = vadd.f32 %v6592_v6, %v6530_v50  ;;  %v17852_v6 = vld [vmem:[#allocation121_spill] sm:$0xff]  ;;  %v15172_v15 = vsub.f32 %v17856_v12, %v14914_v27 }
 0x7d1   :  { %17851 = vst [vmem:[#allocation181_spill] sm:$0xff] %v15154_v16  ;;  %v17862_v12 = vld [vmem:[#allocation117_spill] sm:$0xff] }
 0x7d2   :  { %v6594_v32 = vadd.f32 %v6593_v2, %v6531_v39  ;;  %v15160_v39 = vsub.f32 %v17852_v6, %v14914_v27  ;;  %17857 = vst [vmem:[#allocation133_spill] sm:$0xff] %v15172_v15  ;;  %v17858_v6 = vld [vmem:[#allocation122_spill] sm:$0xff] }
 0x7d3   :  { %v15178_v24 = vsub.f32 %v17858_v6, %v14914_v27  ;;  %v17864_v6 = vld [vmem:[#allocation3_spill] sm:$0xff] }
 0x7d4   :  { %v6595_v25 = vadd.f32 %v6594_v32, %v6532_v35  ;;  %17853 = vst [vmem:[#allocation130_spill] sm:$0xff] %v15160_v39  ;;  %v17854_v35 = vld [vmem:[#allocation120_spill] sm:$0xff] }
 0x7d5   :  { %v15166_v32 = vsub.f32 %v17854_v35, %v14914_v27  ;;  %17859 = vst [vmem:[#allocation184_spill] sm:$0xff] %v15178_v24  ;;  %v17860_v35 = vld [vmem:[#allocation123_spill] sm:$0xff] }
 0x7d6   :  { %v6596_v40 = vadd.f32 %v6595_v25, %v6533_v53  ;;  %v6537_v53 = vmul.f32 %v15154_v16, %v15154_v16  ;;  %v15184_v16 = vsub.f32 %v17860_v35, %v14914_v27  ;;  %v17866_v35 = vld [vmem:[#allocation197_spill] sm:$0xff] }
 0x7d7   :  { %17855 = vst [vmem:[#allocation98_spill] sm:$0xff] %v15166_v32 }
 0x7d8   :  { %v6597_v50 = vadd.f32 %v6596_v40, %v6534_v49  ;;  %v6538_v49 = vmul.f32 %v15160_v39, %v15160_v39  ;;  %17861 = vst [vmem:[#allocation132_spill] sm:$0xff] %v15184_v16  ;;  %v15190_v39 = vsub.f32 %v17862_v12, %v14914_v27  ;;  %v17868_v12 = vld [vmem:[#allocation125_spill] sm:$0xff] }
 0x7da   :  { %v6598_v2 = vadd.f32 %v6597_v50, %v6535_v51  ;;  %v6539_v51 = vmul.f32 %v15166_v32, %v15166_v32  ;;  %17863 = vst [vmem:[#allocation135_spill] sm:$0xff] %v15190_v39  ;;  %v15196_v32 = vsub.f32 %v17864_v6, %v14914_v27  ;;  %v17870_v6 = vld [vmem:[#allocation8_spill] sm:$0xff] }
 0x7dc   :  { %v6599_v25 = vadd.f32 %v6598_v2, %v6536_v21  ;;  %v6540_v21 = vmul.f32 %v15172_v15, %v15172_v15  ;;  %17865 = vst [vmem:[#allocation102_spill] sm:$0xff] %v15196_v32  ;;  %v15202_v15 = vsub.f32 %v17866_v35, %v14914_v27  ;;  %v17871_v35 = vld [vmem:[#allocation82_spill] sm:$0xff] }
 0x7de   :  { %v6600_v40 = vadd.f32 %v6599_v25, %v6537_v53  ;;  %v6541_v53 = vmul.f32 %v15178_v24, %v15178_v24  ;;  %17867 = vst [vmem:[#allocation134_spill] sm:$0xff] %v15202_v15  ;;  %v15208_v24 = vsub.f32 %v17868_v12, %v14914_v27  ;;  %v17873_v12 = vld [vmem:[#allocation124_spill] sm:$0xff] }
 0x7e0   :  { %v6601_v50 = vadd.f32 %v6600_v40, %v6538_v49  ;;  %v6542_v49 = vmul.f32 %v15184_v16, %v15184_v16  ;;  %17869 = vst [vmem:[#allocation137_spill] sm:$0xff] %v15208_v24  ;;  %v15214_v16 = vsub.f32 %v17870_v6, %v14914_v27  ;;  %v17874_v6 = vld [vmem:[#allocation172_spill] sm:$0xff] }
 0x7e2   :  { %v6602_v2 = vadd.f32 %v6601_v50, %v6539_v51  ;;  %v6543_v51 = vmul.f32 %v15190_v39, %v15190_v39  ;;  %v15220_v39 = vsub.f32 %v17871_v35, %v14914_v27  ;;  %v17875_v35 = vld [vmem:[#allocation127_spill] sm:$0xff] }
 0x7e4   :  { %v6603_v25 = vadd.f32 %v6602_v2, %v6540_v21  ;;  %v6544_v21 = vmul.f32 %v15196_v32, %v15196_v32  ;;  %17872 = vst [vmem:[#allocation187_spill] sm:$0xff] %v15220_v39  ;;  %v15226_v32 = vsub.f32 %v17873_v12, %v14914_v27 }
 0x7e6   :  { %v6604_v40 = vadd.f32 %v6603_v25, %v6541_v53  ;;  %v6545_v53 = vmul.f32 %v15202_v15, %v15202_v15  ;;  %v15232_v15 = vsub.f32 %v17874_v6, %v14914_v27 }
 0x7e8   :  { %v6605_v50 = vadd.f32 %v6604_v40, %v6542_v49  ;;  %v6546_v49 = vmul.f32 %v15208_v24, %v15208_v24  ;;  %v15238_v24 = vsub.f32 %v17875_v35, %v14914_v27  ;;  %v6550_v12 = vmul.f32 %v15232_v15, %v15232_v15 }
 0x7e9   :  { %v6553_v27 = vmul.f32 %v14920_v9, %v14920_v9  ;;  %v6554_v35 = vmul.f32 %v14923_v18, %v14923_v18 }
 0x7ea   :  { %v6606_v2 = vadd.f32 %v6605_v50, %v6543_v51  ;;  %v6547_v51 = vmul.f32 %v15214_v16, %v15214_v16 }
 0x7ec   :  { %v6607_v25 = vadd.f32 %v6606_v2, %v6544_v21  ;;  %v6548_v21 = vmul.f32 %v15220_v39, %v15220_v39  ;;  %v6552_v39 = vmul.f32 %v14917_v5, %v14917_v5 }
 0x7ee   :  { %v6608_v40 = vadd.f32 %v6607_v25, %v6545_v53  ;;  %v6549_v53 = vmul.f32 %v15226_v32, %v15226_v32 }
 0x7f0   :  { %v6609_v50 = vadd.f32 %v6608_v40, %v6546_v49  ;;  %v6551_v40 = vmul.f32 %v15238_v24, %v15238_v24 }
 0x7f2   :  { %v6610_v2 = vadd.f32 %v6609_v50, %v6547_v51 }
 0x7f4   :  { %v6611_v25 = vadd.f32 %v6610_v2, %v6548_v21  ;;  %v6555_v2 = vmul.f32 %v14926_v26, %v14926_v26 }
 0x7f6   :  { %v6612_v49 = vadd.f32 %v6611_v25, %v6549_v53  ;;  %v6556_v25 = vmul.f32 %v14929_v37, %v14929_v37 }
 0x7f8   :  { %v6613_v6 = vadd.f32 %v6612_v49, %v6550_v12  ;;  %v6557_v49 = vmul.f32 %v14932_v19, %v14932_v19 }
 0x7fa   :  { %v6614_v51 = vadd.f32 %v6613_v6, %v6551_v40  ;;  %v6558_v6 = vmul.f32 %v14935_v44, %v14935_v44 }
 0x7fc   :  { %v6615_v50 = vadd.f32 %v6614_v51, %v6552_v39  ;;  %v6559_v51 = vmul.f32 %v14938_v48, %v14938_v48 }
 0x7fe   :  { %v6616_v21 = vadd.f32 %v6615_v50, %v6553_v27  ;;  %v6560_v50 = vmul.f32 %v14941_v11, %v14941_v11 }
 0x800   :  { %v6617_v53 = vadd.f32 %v6616_v21, %v6554_v35  ;;  %v6561_v21 = vmul.f32 %v14944_v8, %v14944_v8 }
 0x802   :  { %v6618_v12 = vadd.f32 %v6617_v53, %v6555_v2  ;;  %v6562_v53 = vmul.f32 %v14947_v60, %v14947_v60 }
 0x804   :  { %v6619_v40 = vadd.f32 %v6618_v12, %v6556_v25  ;;  %v6563_v12 = vmul.f32 %v14950_v23, %v14950_v23 }
 0x806   :  { %v6620_v39 = vadd.f32 %v6619_v40, %v6557_v49  ;;  %v6564_v40 = vmul.f32 %v14953_v38, %v14953_v38 }
 0x808   :  { %v6621_v27 = vadd.f32 %v6620_v39, %v6558_v6  ;;  %v6565_v39 = vmul.f32 %v14956_v54, %v14956_v54 }
 0x80a   :  { %v6622_v35 = vadd.f32 %v6621_v27, %v6559_v51  ;;  %v6566_v27 = vmul.f32 %v14959_v34, %v14959_v34 }
 0x80c   :  { %v6623_v2 = vadd.f32 %v6622_v35, %v6560_v50  ;;  %v6567_v35 = vmul.f32 %v14962_v10, %v14962_v10 }
 0x80e   :  { %v6624_v25 = vadd.f32 %v6623_v2, %v6561_v21  ;;  %v6568_v2 = vmul.f32 %v14965_v30, %v14965_v30 }
 0x810   :  { %v6625_v49 = vadd.f32 %v6624_v25, %v6562_v53  ;;  %v6569_v25 = vmul.f32 %v14968_v20, %v14968_v20 }
 0x812   :  { %v6626_v6 = vadd.f32 %v6625_v49, %v6563_v12 }
 0x814   :  { %v6627_v51 = vadd.f32 %v6626_v6, %v6564_v40 }
 0x816   :  { %v6628_v50 = vadd.f32 %v6627_v51, %v6565_v39 }
 0x818   :  { %v6629_v21 = vadd.f32 %v6628_v50, %v6566_v27  ;;  %v6370_v27 = vld [vmem:[%s16453_s8] sm:$0x1] }
 0x81a   :  { %v6630_v53 = vadd.f32 %v6629_v21, %v6567_v35  ;;  %v17876_v21 = vld [vmem:[#allocation2_spill] sm:$0xff] }
 0x81c   :  { %v6631_v12 = vadd.f32 %v6630_v53, %v6568_v2  ;;  %v17877_v53 = vld [vmem:[#allocation178_spill] sm:$0xff] }
 0x81e   :  { %v6632_v49 = vadd.f32 %v6631_v12, %v6569_v25  ;;  %v17878_v25 = vld [vmem:[#allocation131_spill] sm:$0xff]  ;;  %v17879_v12 = vld [vmem:[#allocation181_spill] sm:$0xff] }
 0x820   :  { %v6633_v38 = vrot.slane %v6632_v49, 4 }
 0x822   :  { %v6634_v54 = vadd.f32 %v6633_v38, %v6632_v49  ;;  %v17880_v49 = vld [vmem:[#allocation130_spill] sm:$0xff] }
 0x824   :  { %v6635_v40 = vrot.slane %v6634_v54, 2 }
 0x826   :  { %v6636_v6 = vadd.f32 %v6635_v40, %v6634_v54  ;;  %v17881_v40 = vld [vmem:[#allocation98_spill] sm:$0xff] }
 0x828   :  { %v6637_v23 = vrot.slane %v6636_v6, 1 }
 0x82a   :  { %v6638_v34 = vadd.f32 %v6637_v23, %v6636_v6  ;;  %v17882_v6 = vld [vmem:[#allocation133_spill] sm:$0xff] }
 0x82c   :  { %v6639_v39 = vmul.f32 0.001953125, %v6638_v34 }
 0x82e   :  { %v6640_v51 = vadd.f32 1e-05, %v6639_v39 }
 0x830   :  { %9711 = vrsqrt.f32 %v6640_v51  ;;  %v17883_v51 = vld [vmem:[#allocation184_spill] sm:$0xff] }
 0x83d   :  { %v9712_v50 = vpop.eup %9711 }
 0x83e   :  { %v6642_v35 = vmul.f32 %v9712_v50, %v6370_v27  ;;  %v17884_v50 = vld [vmem:[#allocation132_spill] sm:$0xff] }
 0x840   :  { %v15286_v30 = vrot.slane %v6642_v35, %v17876_v21  ;;  %v17886_v21 = vld [vmem:[#allocation135_spill] sm:$0xff] }
 0x842   :  { %v15290_v2 = vmul.f32 %v15286_v30, %v14972_v1  ;;  %v15294_v38 = vmul.f32 %v15286_v30, %v14976_v28  ;;  %v15298_v23 = vmul.f32 %v15286_v30, %v14980_v46  ;;  %v15302_v54 = vmul.f32 %v15286_v30, %v14988_v62 }
 0x843   :  { %v15306_v34 = vmul.f32 %v15286_v30, %v14992_v55  ;;  %v15310_v1 = vmul.f32 %v15286_v30, %v14998_v58  ;;  %v15314_v28 = vmul.f32 %v15286_v30, %v15004_v7  ;;  %v15318_v46 = vmul.f32 %v15286_v30, %v15010_v47 }
 0x844   :  { %v15322_v62 = vmul.f32 %v15286_v30, %v15016_v31  ;;  %v15326_v55 = vmul.f32 %v15286_v30, %v15022_v3  ;;  %v15330_v58 = vmul.f32 %v15286_v30, %v15028_v61  ;;  %v15334_v7 = vmul.f32 %v15286_v30, %v15034_v36 }
 0x845   :  { %v15338_v47 = vmul.f32 %v15286_v30, %v15040_v4  ;;  %v15342_v31 = vmul.f32 %v15286_v30, %v15046_v33  ;;  %v15346_v3 = vmul.f32 %v15286_v30, %v15052_v52  ;;  %v15350_v61 = vmul.f32 %v15286_v30, %v15058_v14 }
 0x846   :  { %v15354_v36 = vmul.f32 %v15286_v30, %v15064_v29  ;;  %v15358_v4 = vmul.f32 %v15286_v30, %v15070_v41  ;;  %v15362_v33 = vmul.f32 %v15286_v30, %v15076_v43  ;;  %v15366_v52 = vmul.f32 %v15286_v30, %v15082_v22 }
 0x847   :  { %v15370_v14 = vmul.f32 %v15286_v30, %v15088_v45  ;;  %v15374_v29 = vmul.f32 %v15286_v30, %v15094_v0  ;;  %v15378_v41 = vmul.f32 %v15286_v30, %v15100_v42  ;;  %v15382_v43 = vmul.f32 %v15286_v30, %v15106_v63 }
 0x848   :  { %v15386_v22 = vmul.f32 %v15286_v30, %v15112_v17  ;;  %v15390_v45 = vmul.f32 %v15286_v30, %v15118_v59  ;;  %v15394_v0 = vmul.f32 %v15286_v30, %v15124_v57  ;;  %v15398_v42 = vmul.f32 %v15286_v30, %v15130_v13 }
 0x849   :  { %v15402_v63 = vmul.f32 %v15286_v30, %v15136_v56  ;;  %v15406_v17 = vmul.f32 %v15286_v30, %v17877_v53  ;;  %v15410_v59 = vmul.f32 %v15286_v30, %v17878_v25  ;;  %v15414_v57 = vmul.f32 %v15286_v30, %v17879_v12  ;;  %v17887_v25 = vld [vmem:[#allocation102_spill] sm:$0xff] }
 0x84a   :  { %v15418_v13 = vmul.f32 %v15286_v30, %v17880_v49  ;;  %v15422_v56 = vmul.f32 %v15286_v30, %v17881_v40  ;;  %v15426_v39 = vmul.f32 %v15286_v30, %v17882_v6  ;;  %v15430_v27 = vmul.f32 %v15286_v30, %v17883_v51  ;;  %v17888_v49 = vld [vmem:[#allocation134_spill] sm:$0xff]  ;;  %v17889_v6 = vld [vmem:[#allocation137_spill] sm:$0xff] }
 0x84b   :  { %v15434_v35 = vmul.f32 %v15286_v30, %v17884_v50  ;;  %v15438_v53 = vmul.f32 %v15286_v30, %v17886_v21  ;;  %v15442_v12 = vmul.f32 %v15286_v30, %v17887_v25  ;;  %v15446_v40 = vmul.f32 %v15286_v30, %v17888_v49 }
 0x84c   :  { %v15450_v51 = vmul.f32 %v15286_v30, %v17889_v6  ;;  %v15454_v50 = vmul.f32 %v15286_v30, %v15214_v16  ;;  %v15462_v25 = vmul.f32 %v15286_v30, %v15226_v32  ;;  %v15466_v49 = vmul.f32 %v15286_v30, %v15232_v15 }
 0x84d   :  { %17885 = vst [vmem:[#allocation136_spill] sm:$0xff] %v15434_v35  ;;  %v17890_v35 = vld [vmem:[#allocation187_spill] sm:$0xff]  ;;  %v15470_v6 = vmul.f32 %v15286_v30, %v15238_v24  ;;  %v15474_v16 = vmul.f32 %v15286_v30, %v14917_v5  ;;  %v15482_v32 = vmul.f32 %v15286_v30, %v14923_v18  ;;  %v15486_v15 = vmul.f32 %v15286_v30, %v14926_v26 }
 0x84e   :  { %v15458_v21 = vmul.f32 %v15286_v30, %v17890_v35  ;;  %v15478_v35 = vmul.f32 %v15286_v30, %v14920_v9  ;;  %v15490_v24 = vmul.f32 %v15286_v30, %v14929_v37  ;;  %v15494_v5 = vmul.f32 %v15286_v30, %v14932_v19  ;;  %v15499_v9 = vld [vmem:[%s16454_s9] ss:$0 sm:$0xff] }
 0x84f   :  { %v15503_v18 = vmul.f32 %v15286_v30, %v14935_v44  ;;  %v15507_v26 = vmul.f32 %v15286_v30, %v14938_v48  ;;  %v15511_v37 = vmul.f32 %v15286_v30, %v14941_v11  ;;  %v15515_v19 = vmul.f32 %v15286_v30, %v14944_v8 }
 0x850   :  { %17891 = vst [vmem:[#allocation139_spill] sm:$0xff] %v15490_v24  ;;  %17892 = vst [vmem:[#allocation138_spill] sm:$0xff] %v15494_v5  ;;  %v15519_v5 = vmul.f32 %v15286_v30, %v14947_v60  ;;  %v17897_v24 = vld [vmem:[#allocation126_spill] sm:$0xff]  ;;  %v15539_v60 = vmul.f32 %v15286_v30, %v14962_v10  ;;  %v15559_v10 = vadd.f32 %v15499_v9, %v15298_v23 }
 0x851   :  { %17893 = vst [vmem:[#allocation141_spill] sm:$0xff] %v15503_v18  ;;  %17894 = vst [vmem:[#allocation140_spill] sm:$0xff] %v15507_v26  ;;  %v15523_v44 = vmul.f32 %v15286_v30, %v17897_v24  ;;  %v17898_v18 = vld [vmem:[#allocation86_spill] sm:$0xff]  ;;  %v17899_v26 = vld [vmem:[#allocation129_spill] sm:$0xff]  ;;  %v15583_v23 = vadd.f32 %v15499_v9, %v15322_v62  ;;  %v15607_v62 = vadd.f32 %v15499_v9, %v15346_v3 }
 0x852   :  { %17895 = vst [vmem:[#allocation143_spill] sm:$0xff] %v15511_v37  ;;  %17896 = vst [vmem:[#allocation142_spill] sm:$0xff] %v15519_v5  ;;  %v15527_v48 = vmul.f32 %v15286_v30, %v17898_v18  ;;  %v15531_v11 = vmul.f32 %v15286_v30, %v17899_v26  ;;  %v17900_v37 = vld [vmem:[#allocation175_spill] sm:$0xff]  ;;  %v17901_v5 = vld [vmem:[#allocation128_spill] sm:$0xff]  ;;  %v15547_v18 = vmul.f32 %v15286_v30, %v14968_v20 }
 0x853   :  { %v15535_v8 = vmul.f32 %v15286_v30, %v17900_v37  ;;  %v15543_v24 = vmul.f32 %v15286_v30, %v17901_v5  ;;  %v15551_v26 = vadd.f32 %v15499_v9, %v15290_v2  ;;  %v15555_v37 = vadd.f32 %v15499_v9, %v15294_v38 }
 0x854   :  { %v15563_v5 = vadd.f32 %v15499_v9, %v15302_v54  ;;  %v15567_v30 = vadd.f32 %v15499_v9, %v15306_v34  ;;  %v15571_v20 = vadd.f32 %v15499_v9, %v15310_v1  ;;  %v15575_v2 = vadd.f32 %v15499_v9, %v15314_v28 }
 0x855   :  { %v15579_v38 = vadd.f32 %v15499_v9, %v15318_v46  ;;  %v15587_v54 = vadd.f32 %v15499_v9, %v15326_v55  ;;  %v15591_v34 = vadd.f32 %v15499_v9, %v15330_v58  ;;  %v15595_v1 = vadd.f32 %v15499_v9, %v15334_v7 }
 0x856   :  { %v15599_v28 = vadd.f32 %v15499_v9, %v15338_v47  ;;  %v15603_v46 = vadd.f32 %v15499_v9, %v15342_v31  ;;  %v15611_v55 = vadd.f32 %v15499_v9, %v15350_v61  ;;  %v15615_v58 = vadd.f32 %v15499_v9, %v15354_v36 }
 0x857   :  { %v15619_v7 = vadd.f32 %v15499_v9, %v15358_v4  ;;  %v15623_v47 = vadd.f32 %v15499_v9, %v15362_v33  ;;  %v15627_v31 = vadd.f32 %v15499_v9, %v15366_v52  ;;  %v15631_v3 = vadd.f32 %v15499_v9, %v15370_v14 }
 0x858   :  { %v15635_v61 = vadd.f32 %v15499_v9, %v15374_v29  ;;  %v15639_v36 = vadd.f32 %v15499_v9, %v15378_v41  ;;  %v15643_v4 = vadd.f32 %v15499_v9, %v15382_v43  ;;  %v15647_v33 = vadd.f32 %v15499_v9, %v15386_v22 }
 0x859   :  { %v15651_v52 = vadd.f32 %v15499_v9, %v15390_v45  ;;  %v15655_v14 = vadd.f32 %v15499_v9, %v15394_v0  ;;  %v15659_v29 = vadd.f32 %v15499_v9, %v15398_v42  ;;  %v15663_v41 = vadd.f32 %v15499_v9, %v15402_v63 }
 0x85a   :  { %v15667_v43 = vadd.f32 %v15499_v9, %v15406_v17  ;;  %v15671_v22 = vadd.f32 %v15499_v9, %v15410_v59  ;;  %v15675_v45 = vadd.f32 %v15499_v9, %v15414_v57  ;;  %v15679_v0 = vadd.f32 %v15499_v9, %v15418_v13  ;;  %v17902_v59 = vld [vmem:[#allocation136_spill] sm:$0xff] }
 0x85b   :  { %v15683_v42 = vadd.f32 %v15499_v9, %v15422_v56  ;;  %v15687_v63 = vadd.f32 %v15499_v9, %v15426_v39  ;;  %v15691_v17 = vadd.f32 %v15499_v9, %v15430_v27  ;;  %v15695_v57 = vadd.f32 %v15499_v9, %v17902_v59 }
 0x85c   :  { %v15699_v13 = vadd.f32 %v15499_v9, %v15438_v53  ;;  %v15703_v56 = vadd.f32 %v15499_v9, %v15442_v12  ;;  %v15707_v39 = vadd.f32 %v15499_v9, %v15446_v40  ;;  %v15711_v27 = vadd.f32 %v15499_v9, %v15450_v51 }
 0x85d   :  { %v15715_v59 = vadd.f32 %v15499_v9, %v15454_v50  ;;  %v15719_v53 = vadd.f32 %v15499_v9, %v15458_v21  ;;  %v15723_v12 = vadd.f32 %v15499_v9, %v15462_v25  ;;  %v15727_v40 = vadd.f32 %v15499_v9, %v15466_v49 }
 0x85e   :  { %v15731_v51 = vadd.f32 %v15499_v9, %v15470_v6  ;;  %v15735_v50 = vadd.f32 %v15499_v9, %v15474_v16  ;;  %v15739_v21 = vadd.f32 %v15499_v9, %v15478_v35  ;;  %v15743_v25 = vadd.f32 %v15499_v9, %v15482_v32 }
 0x85f   :  { %17903 = vst [vmem:[#allocation106_spill] sm:$0xff] %v15727_v40  ;;  %v15747_v49 = vadd.f32 %v15499_v9, %v15486_v15  ;;  %v17908_v40 = vld [vmem:[#allocation139_spill] sm:$0xff] }
 0x860   :  { %17904 = vst [vmem:[#allocation145_spill] sm:$0xff] %v15731_v51  ;;  %17905 = vst [vmem:[#allocation144_spill] sm:$0xff] %v15735_v50  ;;  %v15751_v6 = vadd.f32 %v15499_v9, %v17908_v40  ;;  %v17910_v51 = vld [vmem:[#allocation138_spill] sm:$0xff]  ;;  %v17911_v50 = vld [vmem:[#allocation141_spill] sm:$0xff]  ;;  %v15771_v40 = vadd.f32 %v15499_v9, %v15515_v19  ;;  %v15791_v19 = vadd.f32 %v15499_v9, %v15535_v8 }
 0x861   :  { %17906 = vst [vmem:[#allocation147_spill] sm:$0xff] %v15739_v21  ;;  %17907 = vst [vmem:[#allocation190_spill] sm:$0xff] %v15743_v25  ;;  %v15755_v16 = vadd.f32 %v15499_v9, %v17910_v51  ;;  %v15759_v35 = vadd.f32 %v15499_v9, %v17911_v50  ;;  %v17912_v21 = vld [vmem:[#allocation140_spill] sm:$0xff]  ;;  %v17913_v25 = vld [vmem:[#allocation143_spill] sm:$0xff]  ;;  %v15779_v50 = vadd.f32 %v15499_v9, %v15523_v44 }
 0x862   :  { %17909 = vst [vmem:[#allocation146_spill] sm:$0xff] %v15751_v6  ;;  %v15763_v32 = vadd.f32 %v15499_v9, %v17912_v21  ;;  %v15767_v15 = vadd.f32 %v15499_v9, %v17913_v25  ;;  %v17914_v6 = vld [vmem:[#allocation142_spill] sm:$0xff]  ;;  %v15783_v21 = vadd.f32 %v15499_v9, %v15527_v48  ;;  %v15787_v25 = vadd.f32 %v15499_v9, %v15531_v11  ;;  %v9714_v8 = vld [vmem:[%s16446_s0 + $0x8] sm:$0xff] }
 0x863   :  { %v15775_v51 = vadd.f32 %v15499_v9, %v17914_v6  ;;  %v15795_v6 = vadd.f32 %v15499_v9, %v15539_v60  ;;  %v15799_v44 = vadd.f32 %v15499_v9, %v15543_v24  ;;  %v15803_v48 = vadd.f32 %v15499_v9, %v15547_v18  ;;  %v9713_v11 = vld [vmem:[%s16446_s0] sm:$0xff]  ;;  %v9715_v24 = vld [vmem:[%s16446_s0 + $0x10] sm:$0xff]  ;;  %v9716_v18 = vld [vmem:[%s16446_s0 + $0x18] sm:$0xff] }
 0x864   :  { %17915 = vst [vmem:[#allocation110_spill] sm:$0xff] %v15787_v25  ;;  %v15809_v25 = vadd.f32 %v9713_v11, %v15551_v26  ;;  %v15815_v60 = vadd.f32 %v9714_v8, %v15555_v37  ;;  %v15821_v9 = vadd.f32 %v9715_v24, %v15559_v10  ;;  %v15827_v26 = vadd.f32 %v9716_v18, %v15563_v5  ;;  %v9717_v11 = vld [vmem:[%s16446_s0 + $0x20] sm:$0xff]  ;;  %v9718_v8 = vld [vmem:[%s16446_s0 + $0x28] sm:$0xff]  ;;  %v9719_v24 = vld [vmem:[%s16446_s0 + $0x30] sm:$0xff] }
 0x865   :  { %v15833_v37 = vadd.f32 %v9717_v11, %v15567_v30  ;;  %v15839_v10 = vadd.f32 %v9718_v8, %v15571_v20  ;;  %v15845_v5 = vadd.f32 %v9719_v24, %v15575_v2  ;;  %v9720_v18 = vld [vmem:[%s16446_s0 + $0x38] sm:$0xff]  ;;  %v9721_v11 = vld [vmem:[%s16446_s0 + $0x40] sm:$0xff]  ;;  %v9722_v8 = vld [vmem:[%s16446_s0 + $0x48] sm:$0xff] }
 0x866   :  { %v15851_v30 = vadd.f32 %v9720_v18, %v15579_v38  ;;  %v15857_v20 = vadd.f32 %v9721_v11, %v15583_v23  ;;  %v15863_v2 = vadd.f32 %v9722_v8, %v15587_v54  ;;  %v9723_v24 = vld [vmem:[%s16446_s0 + $0x50] sm:$0xff]  ;;  %v9724_v18 = vld [vmem:[%s16446_s0 + $0x58] sm:$0xff]  ;;  %v9725_v11 = vld [vmem:[%s16446_s0 + $0x60] sm:$0xff] }
 0x867   :  { %v15869_v38 = vadd.f32 %v9723_v24, %v15591_v34  ;;  %v15875_v23 = vadd.f32 %v9724_v18, %v15595_v1  ;;  %v15881_v54 = vadd.f32 %v9725_v11, %v15599_v28  ;;  %v9726_v8 = vld [vmem:[%s16446_s0 + $0x68] sm:$0xff]  ;;  %v9727_v24 = vld [vmem:[%s16446_s0 + $0x70] sm:$0xff]  ;;  %v9728_v18 = vld [vmem:[%s16446_s0 + $0x78] sm:$0xff] }
 0x868   :  { %v15887_v34 = vadd.f32 %v9726_v8, %v15603_v46  ;;  %v15893_v1 = vadd.f32 %v9727_v24, %v15607_v62  ;;  %v15899_v28 = vadd.f32 %v9728_v18, %v15611_v55  ;;  %v9729_v11 = vld [vmem:[%s16446_s0 + $0x80] sm:$0xff]  ;;  %v9730_v8 = vld [vmem:[%s16446_s0 + $0x88] sm:$0xff]  ;;  %v9731_v24 = vld [vmem:[%s16446_s0 + $0x90] sm:$0xff] }
 0x869   :  { %v15905_v46 = vadd.f32 %v9729_v11, %v15615_v58  ;;  %v15911_v62 = vadd.f32 %v9730_v8, %v15619_v7  ;;  %v15917_v55 = vadd.f32 %v9731_v24, %v15623_v47  ;;  %v9732_v18 = vld [vmem:[%s16446_s0 + $0x98] sm:$0xff]  ;;  %v9733_v11 = vld [vmem:[%s16446_s0 + $0xa0] sm:$0xff]  ;;  %v9734_v8 = vld [vmem:[%s16446_s0 + $0xa8] sm:$0xff] }
 0x86a   :  { %v15923_v58 = vadd.f32 %v9732_v18, %v15627_v31  ;;  %v15929_v7 = vadd.f32 %v9733_v11, %v15631_v3  ;;  %v15935_v47 = vadd.f32 %v9734_v8, %v15635_v61  ;;  %v9735_v24 = vld [vmem:[%s16446_s0 + $0xb0] sm:$0xff]  ;;  %v9736_v18 = vld [vmem:[%s16446_s0 + $0xb8] sm:$0xff]  ;;  %v9737_v11 = vld [vmem:[%s16446_s0 + $0xc0] sm:$0xff] }
 0x86b   :  { %v15941_v31 = vadd.f32 %v9735_v24, %v15639_v36  ;;  %v15947_v3 = vadd.f32 %v9736_v18, %v15643_v4  ;;  %v15953_v61 = vadd.f32 %v9737_v11, %v15647_v33  ;;  %v9738_v8 = vld [vmem:[%s16446_s0 + $0xc8] sm:$0xff]  ;;  %v9739_v24 = vld [vmem:[%s16446_s0 + $0xd0] sm:$0xff]  ;;  %v9740_v18 = vld [vmem:[%s16446_s0 + $0xd8] sm:$0xff] }
 0x86c   :  { %v15959_v36 = vadd.f32 %v9738_v8, %v15651_v52  ;;  %v15965_v4 = vadd.f32 %v9739_v24, %v15655_v14  ;;  %v15971_v33 = vadd.f32 %v9740_v18, %v15659_v29  ;;  %v9741_v11 = vld [vmem:[%s16446_s0 + $0xe0] sm:$0xff]  ;;  %v9742_v8 = vld [vmem:[%s16446_s0 + $0xe8] sm:$0xff]  ;;  %v9743_v24 = vld [vmem:[%s16446_s0 + $0xf0] sm:$0xff] }
 0x86d   :  { %v15977_v52 = vadd.f32 %v9741_v11, %v15663_v41  ;;  %v15983_v14 = vadd.f32 %v9742_v8, %v15667_v43  ;;  %v15989_v29 = vadd.f32 %v9743_v24, %v15671_v22  ;;  %v9744_v18 = vld [vmem:[%s16446_s0 + $0xf8] sm:$0xff]  ;;  %v9745_v11 = vld [vmem:[%s16446_s0 + $0x100] sm:$0xff]  ;;  %v9746_v8 = vld [vmem:[%s16446_s0 + $0x108] sm:$0xff] }
 0x86e   :  { %v15995_v41 = vadd.f32 %v9744_v18, %v15675_v45  ;;  %v16001_v43 = vadd.f32 %v9745_v11, %v15679_v0  ;;  %v16007_v22 = vadd.f32 %v9746_v8, %v15683_v42  ;;  %v9747_v24 = vld [vmem:[%s16446_s0 + $0x110] sm:$0xff]  ;;  %v9748_v18 = vld [vmem:[%s16446_s0 + $0x118] sm:$0xff]  ;;  %v9749_v11 = vld [vmem:[%s16446_s0 + $0x120] sm:$0xff] }
 0x86f   :  { %v16013_v45 = vadd.f32 %v9747_v24, %v15687_v63  ;;  %v16019_v0 = vadd.f32 %v9748_v18, %v15691_v17  ;;  %v16025_v42 = vadd.f32 %v9749_v11, %v15695_v57  ;;  %v9750_v8 = vld [vmem:[%s16446_s0 + $0x128] sm:$0xff]  ;;  %v9751_v24 = vld [vmem:[%s16446_s0 + $0x130] sm:$0xff]  ;;  %v9752_v18 = vld [vmem:[%s16446_s0 + $0x138] sm:$0xff] }
 0x870   :  { %v16031_v63 = vadd.f32 %v9750_v8, %v15699_v13  ;;  %v16037_v17 = vadd.f32 %v9751_v24, %v15703_v56  ;;  %v16043_v57 = vadd.f32 %v9752_v18, %v15707_v39  ;;  %v9753_v11 = vld [vmem:[%s16446_s0 + $0x140] sm:$0xff]  ;;  %v9754_v8 = vld [vmem:[%s16446_s0 + $0x148] sm:$0xff]  ;;  %v9755_v24 = vld [vmem:[%s16446_s0 + $0x150] sm:$0xff] }
 0x871   :  { %v16049_v13 = vadd.f32 %v9753_v11, %v15711_v27  ;;  %v16055_v56 = vadd.f32 %v9754_v8, %v15715_v59  ;;  %v16061_v39 = vadd.f32 %v9755_v24, %v15719_v53  ;;  %v9756_v18 = vld [vmem:[%s16446_s0 + $0x158] sm:$0xff]  ;;  %v9757_v11 = vld [vmem:[%s16446_s0 + $0x160] sm:$0xff] }
 0x872   :  { %v16067_v27 = vadd.f32 %v9756_v18, %v15723_v12  ;;  %v17919_v59 = vld [vmem:[#allocation106_spill] sm:$0xff]  ;;  %v17921_v53 = vld [vmem:[#allocation145_spill] sm:$0xff]  ;;  %v17923_v12 = vld [vmem:[#allocation144_spill] sm:$0xff] }
 0x873   :  { %17916 = vst [vmem:[#allocation149_spill] sm:$0xff] %v16055_v56  ;;  %17917 = vst [vmem:[#allocation193_spill] sm:$0xff] %v16061_v39  ;;  %v16073_v8 = vadd.f32 %v9757_v11, %v17919_v59  ;;  %v9758_v56 = vld [vmem:[%s16446_s0 + $0x168] sm:$0xff]  ;;  %v9759_v39 = vld [vmem:[%s16446_s0 + $0x170] sm:$0xff] }
 0x874   :  { %17918 = vst [vmem:[#allocation148_spill] sm:$0xff] %v16067_v27  ;;  %v16079_v24 = vadd.f32 %v9758_v56, %v17921_v53  ;;  %v16085_v18 = vadd.f32 %v9759_v39, %v17923_v12  ;;  %v9760_v27 = vld [vmem:[%s16446_s0 + $0x178] sm:$0xff]  ;;  %v17924_v11 = vld [vmem:[#allocation147_spill] sm:$0xff]  ;;  %v17926_v56 = vld [vmem:[#allocation190_spill] sm:$0xff] }
 0x875   :  { %17920 = vst [vmem:[#allocation113_spill] sm:$0xff] %v16073_v8  ;;  %v16091_v59 = vadd.f32 %v9760_v27, %v17924_v11  ;;  %v9761_v8 = vld [vmem:[%s16446_s0 + $0x180] sm:$0xff]  ;;  %v9763_v12 = vld [vmem:[%s16446_s0 + $0x190] sm:$0xff] }
 0x876   :  { %17922 = vst [vmem:[#allocation151_spill] sm:$0xff] %v16079_v24  ;;  %v16097_v53 = vadd.f32 %v9761_v8, %v17926_v56  ;;  %v9762_v24 = vld [vmem:[%s16446_s0 + $0x188] sm:$0xff]  ;;  %v17927_v27 = vld [vmem:[#allocation146_spill] sm:$0xff] }
 0x877   :  { %17925 = vst [vmem:[#allocation114_spill] sm:$0xff] %v16091_v59  ;;  %v16103_v39 = vadd.f32 %v9762_v24, %v15747_v49  ;;  %v16109_v11 = vadd.f32 %v9763_v12, %v17927_v27  ;;  %v9764_v59 = vld [vmem:[%s16446_s0 + $0x198] sm:$0xff]  ;;  %v9765_v56 = vld [vmem:[%s16446_s0 + $0x1a0] sm:$0xff]  ;;  %v9766_v24 = vld [vmem:[%s16446_s0 + $0x1a8] sm:$0xff] }
 0x878   :  { %v16115_v8 = vadd.f32 %v9764_v59, %v15755_v16  ;;  %v16121_v49 = vadd.f32 %v9765_v56, %v15759_v35  ;;  %v16127_v12 = vadd.f32 %v9766_v24, %v15763_v32  ;;  %v9767_v27 = vld [vmem:[%s16446_s0 + $0x1b0] sm:$0xff]  ;;  %v9768_v59 = vld [vmem:[%s16446_s0 + $0x1b8] sm:$0xff]  ;;  %v9769_v56 = vld [vmem:[%s16446_s0 + $0x1c0] sm:$0xff] }
 0x879   :  { %v16133_v16 = vadd.f32 %v9767_v27, %v15767_v15  ;;  %v16139_v35 = vadd.f32 %v9768_v59, %v15771_v40  ;;  %v16145_v32 = vadd.f32 %v9769_v56, %v15775_v51  ;;  %v9770_v24 = vld [vmem:[%s16446_s0 + $0x1c8] sm:$0xff]  ;;  %v9771_v27 = vld [vmem:[%s16446_s0 + $0x1d0] sm:$0xff]  ;;  %v9772_v59 = vld [vmem:[%s16446_s0 + $0x1d8] sm:$0xff] }
 0x87a   :  { %v16151_v15 = vadd.f32 %v9770_v24, %v15779_v50  ;;  %v16157_v40 = vadd.f32 %v9771_v27, %v15783_v21  ;;  %v17929_v51 = vld [vmem:[#allocation110_spill] sm:$0xff]  ;;  %v9774_v24 = vld [vmem:[%s16446_s0 + $0x1e8] sm:$0xff]  ;;  %v9775_v27 = vld [vmem:[%s16446_s0 + $0x1f0] sm:$0xff] }
 0x87b   :  { %17928 = vst [vmem:[#allocation150_spill] sm:$0xff] %v16145_v32  ;;  %v16163_v56 = vadd.f32 %v9772_v59, %v17929_v51  ;;  %v9773_v32 = vld [vmem:[%s16446_s0 + $0x1e0] sm:$0xff]  ;;  %v16175_v21 = vadd.f32 %v9774_v24, %v15795_v6  ;;  %v16181_v59 = vadd.f32 %v9775_v27, %v15799_v44  ;;  %v9776_v51 = vld [vmem:[%s16446_s0 + $0x1f8] sm:$0xff]  ;;  %v6849_v6 = vmax.f32 %v15821_v9, 0.0 }
 0x87c   :  { %v16169_v50 = vadd.f32 %v9773_v32, %v15791_v19  ;;  %v16187_v19 = vadd.f32 %v9776_v51, %v15803_v48  ;;  %v6847_v32 = vmax.f32 %v15809_v25, 0.0  ;;  %v6850_v24 = vmax.f32 %v15827_v26, 0.0 }
 0x87d   :  { %17930 = vst [vmem:[#allocation214_spill] sm:$0xff] %v16163_v56  ;;  %17932 = vst [vmem:[#allocation196_spill] sm:$0xff] %v16175_v21  ;;  %v6851_v21 = vmax.f32 %v15833_v37, 0.0  ;;  %v6852_v44 = vmax.f32 %v15839_v10, 0.0  ;;  %v6853_v27 = vmax.f32 %v15845_v5, 0.0  ;;  %v6855_v56 = vmax.f32 %v15857_v20, 0.0 }
 0x87e   :  { %17931 = vst [vmem:[#allocation211_spill] sm:$0xff] %v16169_v50  ;;  %17933 = vst [vmem:[#allocation158_spill] sm:$0xff] %v16181_v59  ;;  %v6848_v50 = vmax.f32 %v15815_v60, 0.0  ;;  %v6854_v59 = vmax.f32 %v15851_v30, 0.0  ;;  %v6856_v48 = vmax.f32 %v15863_v2, 0.0  ;;  %v6857_v25 = vmax.f32 %v15869_v38, 0.0 }
 0x87f   :  { %v6858_v60 = vmax.f32 %v15875_v23, 0.0  ;;  %6911 = vst [vmem:[%s16455_s10] sm:$0xff] %v6847_v32  ;;  %6913 = vst [vmem:[%s16455_s10 + $0x10] sm:$0xff] %v6849_v6  ;;  %v6859_v9 = vmax.f32 %v15881_v54, 0.0  ;;  %v6860_v26 = vmax.f32 %v15887_v34, 0.0  ;;  %v6861_v37 = vmax.f32 %v15893_v1, 0.0 }
 0x880   :  { %6912 = vst [vmem:[%s16455_s10 + $0x8] sm:$0xff] %v6848_v50  ;;  %6914 = vst [vmem:[%s16455_s10 + $0x18] sm:$0xff] %v6850_v24  ;;  %v6862_v10 = vmax.f32 %v15899_v28, 0.0  ;;  %v6863_v5 = vmax.f32 %v15905_v46, 0.0  ;;  %v6864_v30 = vmax.f32 %v15911_v62, 0.0  ;;  %v6865_v20 = vmax.f32 %v15917_v55, 0.0 }
 0x881   :  { %6915 = vst [vmem:[%s16455_s10 + $0x20] sm:$0xff] %v6851_v21  ;;  %6916 = vst [vmem:[%s16455_s10 + $0x28] sm:$0xff] %v6852_v44  ;;  %v6866_v2 = vmax.f32 %v15923_v58, 0.0  ;;  %v6867_v38 = vmax.f32 %v15929_v7, 0.0  ;;  %v6868_v23 = vmax.f32 %v15935_v47, 0.0  ;;  %v6869_v54 = vmax.f32 %v15941_v31, 0.0 }
 0x882   :  { %6917 = vst [vmem:[%s16455_s10 + $0x30] sm:$0xff] %v6853_v27  ;;  %6918 = vst [vmem:[%s16455_s10 + $0x38] sm:$0xff] %v6854_v59  ;;  %v6870_v34 = vmax.f32 %v15947_v3, 0.0  ;;  %v6871_v1 = vmax.f32 %v15953_v61, 0.0  ;;  %v6872_v28 = vmax.f32 %v15959_v36, 0.0  ;;  %v6873_v46 = vmax.f32 %v15965_v4, 0.0 }
 0x883   :  { %6919 = vst [vmem:[%s16455_s10 + $0x40] sm:$0xff] %v6855_v56  ;;  %6920 = vst [vmem:[%s16455_s10 + $0x48] sm:$0xff] %v6856_v48  ;;  %v6874_v62 = vmax.f32 %v15971_v33, 0.0  ;;  %v6875_v55 = vmax.f32 %v15977_v52, 0.0  ;;  %v6876_v58 = vmax.f32 %v15983_v14, 0.0  ;;  %v6877_v7 = vmax.f32 %v15989_v29, 0.0 }
 0x884   :  { %6921 = vst [vmem:[%s16455_s10 + $0x50] sm:$0xff] %v6857_v25  ;;  %6922 = vst [vmem:[%s16455_s10 + $0x58] sm:$0xff] %v6858_v60  ;;  %v6878_v47 = vmax.f32 %v15995_v41, 0.0  ;;  %v6879_v31 = vmax.f32 %v16001_v43, 0.0  ;;  %v6880_v3 = vmax.f32 %v16007_v22, 0.0  ;;  %v6881_v61 = vmax.f32 %v16013_v45, 0.0 }
 0x885   :  { %6923 = vst [vmem:[%s16455_s10 + $0x60] sm:$0xff] %v6859_v9  ;;  %6924 = vst [vmem:[%s16455_s10 + $0x68] sm:$0xff] %v6860_v26  ;;  %v6882_v36 = vmax.f32 %v16019_v0, 0.0  ;;  %v6883_v4 = vmax.f32 %v16025_v42, 0.0  ;;  %v6884_v33 = vmax.f32 %v16031_v63, 0.0  ;;  %v6885_v52 = vmax.f32 %v16037_v17, 0.0 }
 0x886   :  { %6925 = vst [vmem:[%s16455_s10 + $0x70] sm:$0xff] %v6861_v37  ;;  %6926 = vst [vmem:[%s16455_s10 + $0x78] sm:$0xff] %v6862_v10  ;;  %v6886_v14 = vmax.f32 %v16043_v57, 0.0  ;;  %v6887_v29 = vmax.f32 %v16049_v13, 0.0  ;;  %v17934_v41 = vld [vmem:[#allocation149_spill] sm:$0xff]  ;;  %v17936_v0 = vld [vmem:[#allocation148_spill] sm:$0xff] }
 0x887   :  { %6927 = vst [vmem:[%s16455_s10 + $0x80] sm:$0xff] %v6863_v5  ;;  %6928 = vst [vmem:[%s16455_s10 + $0x88] sm:$0xff] %v6864_v30  ;;  %v6888_v43 = vmax.f32 %v17934_v41, 0.0  ;;  %v17935_v22 = vld [vmem:[#allocation193_spill] sm:$0xff]  ;;  %v6890_v42 = vmax.f32 %v17936_v0, 0.0  ;;  %v17938_v57 = vld [vmem:[#allocation151_spill] sm:$0xff] }
 0x888   :  { %6929 = vst [vmem:[%s16455_s10 + $0x90] sm:$0xff] %v6865_v20  ;;  %6930 = vst [vmem:[%s16455_s10 + $0x98] sm:$0xff] %v6866_v2  ;;  %v6889_v45 = vmax.f32 %v17935_v22, 0.0  ;;  %v17937_v63 = vld [vmem:[#allocation113_spill] sm:$0xff]  ;;  %v6892_v13 = vmax.f32 %v17938_v57, 0.0  ;;  %v6893_v56 = vmax.f32 %v16085_v18, 0.0 }
 0x889   :  { %6931 = vst [vmem:[%s16455_s10 + $0xa0] sm:$0xff] %v6867_v38  ;;  %6932 = vst [vmem:[%s16455_s10 + $0xa8] sm:$0xff] %v6868_v23  ;;  %v6891_v17 = vmax.f32 %v17937_v63, 0.0  ;;  %v17939_v50 = vld [vmem:[#allocation114_spill] sm:$0xff]  ;;  %v6895_v18 = vmax.f32 %v16097_v53, 0.0  ;;  %v6896_v59 = vmax.f32 %v16103_v39, 0.0 }
 0x88a   :  { %6933 = vst [vmem:[%s16455_s10 + $0xb0] sm:$0xff] %v6869_v54  ;;  %6934 = vst [vmem:[%s16455_s10 + $0xb8] sm:$0xff] %v6870_v34  ;;  %v6894_v21 = vmax.f32 %v17939_v50, 0.0  ;;  %v6897_v51 = vmax.f32 %v16109_v11, 0.0  ;;  %v6898_v32 = vmax.f32 %v16115_v8, 0.0  ;;  %v6899_v53 = vmax.f32 %v16121_v49, 0.0 }
 0x88b   :  { %6935 = vst [vmem:[%s16455_s10 + $0xc0] sm:$0xff] %v6871_v1  ;;  %6936 = vst [vmem:[%s16455_s10 + $0xc8] sm:$0xff] %v6872_v28  ;;  %v6900_v39 = vmax.f32 %v16127_v12, 0.0  ;;  %v6901_v11 = vmax.f32 %v16133_v16, 0.0  ;;  %v6902_v8 = vmax.f32 %v16139_v35, 0.0  ;;  %v17940_v49 = vld [vmem:[#allocation150_spill] sm:$0xff] }
 0x88c   :  { %6937 = vst [vmem:[%s16455_s10 + $0xd0] sm:$0xff] %v6873_v46  ;;  %6938 = vst [vmem:[%s16455_s10 + $0xd8] sm:$0xff] %v6874_v62  ;;  %v6903_v12 = vmax.f32 %v17940_v49, 0.0  ;;  %v6904_v16 = vmax.f32 %v16151_v15, 0.0  ;;  %v6905_v35 = vmax.f32 %v16157_v40, 0.0  ;;  %v17941_v6 = vld [vmem:[#allocation214_spill] sm:$0xff] }
 0x88d   :  { %6939 = vst [vmem:[%s16455_s10 + $0xe0] sm:$0xff] %v6875_v55  ;;  %6940 = vst [vmem:[%s16455_s10 + $0xe8] sm:$0xff] %v6876_v58  ;;  %v6906_v24 = vmax.f32 %v17941_v6, 0.0  ;;  %v17942_v15 = vld [vmem:[#allocation211_spill] sm:$0xff]  ;;  %v17943_v44 = vld [vmem:[#allocation196_spill] sm:$0xff]  ;;  %v6910_v60 = vmax.f32 %v16187_v19, 0.0 }
 0x88e   :  { %6941 = vst [vmem:[%s16455_s10 + $0xf0] sm:$0xff] %v6877_v7  ;;  %6942 = vst [vmem:[%s16455_s10 + $0xf8] sm:$0xff] %v6878_v47  ;;  %v6907_v40 = vmax.f32 %v17942_v15, 0.0  ;;  %v6908_v27 = vmax.f32 %v17943_v44, 0.0  ;;  %v17944_v48 = vld [vmem:[#allocation158_spill] sm:$0xff] }
 0x88f   :  { %6943 = vst [vmem:[%s16455_s10 + $0x100] sm:$0xff] %v6879_v31  ;;  %6944 = vst [vmem:[%s16455_s10 + $0x108] sm:$0xff] %v6880_v3  ;;  %v6909_v25 = vmax.f32 %v17944_v48, 0.0 }
 0x890   :  { %6945 = vst [vmem:[%s16455_s10 + $0x110] sm:$0xff] %v6881_v61  ;;  %6946 = vst [vmem:[%s16455_s10 + $0x118] sm:$0xff] %v6882_v36 }
 0x891   :  { %6947 = vst [vmem:[%s16455_s10 + $0x120] sm:$0xff] %v6883_v4  ;;  %6948 = vst [vmem:[%s16455_s10 + $0x128] sm:$0xff] %v6884_v33 }
 0x892   :  { %6949 = vst [vmem:[%s16455_s10 + $0x130] sm:$0xff] %v6885_v52  ;;  %6950 = vst [vmem:[%s16455_s10 + $0x138] sm:$0xff] %v6886_v14 }
 0x893   :  { %6951 = vst [vmem:[%s16455_s10 + $0x140] sm:$0xff] %v6887_v29  ;;  %6952 = vst [vmem:[%s16455_s10 + $0x148] sm:$0xff] %v6888_v43 }
 0x894   :  { %6953 = vst [vmem:[%s16455_s10 + $0x150] sm:$0xff] %v6889_v45  ;;  %6954 = vst [vmem:[%s16455_s10 + $0x158] sm:$0xff] %v6890_v42 }
 0x895   :  { %6955 = vst [vmem:[%s16455_s10 + $0x160] sm:$0xff] %v6891_v17  ;;  %6956 = vst [vmem:[%s16455_s10 + $0x168] sm:$0xff] %v6892_v13 }
 0x896   :  { %6957 = vst [vmem:[%s16455_s10 + $0x170] sm:$0xff] %v6893_v56  ;;  %6958 = vst [vmem:[%s16455_s10 + $0x178] sm:$0xff] %v6894_v21 }
 0x897   :  { %6959 = vst [vmem:[%s16455_s10 + $0x180] sm:$0xff] %v6895_v18  ;;  %6960 = vst [vmem:[%s16455_s10 + $0x188] sm:$0xff] %v6896_v59 }
 0x898   :  { %6961 = vst [vmem:[%s16455_s10 + $0x190] sm:$0xff] %v6897_v51  ;;  %6962 = vst [vmem:[%s16455_s10 + $0x198] sm:$0xff] %v6898_v32 }
 0x899   :  { %6963 = vst [vmem:[%s16455_s10 + $0x1a0] sm:$0xff] %v6899_v53  ;;  %6964 = vst [vmem:[%s16455_s10 + $0x1a8] sm:$0xff] %v6900_v39 }
 0x89a   :  { %6965 = vst [vmem:[%s16455_s10 + $0x1b0] sm:$0xff] %v6901_v11  ;;  %6966 = vst [vmem:[%s16455_s10 + $0x1b8] sm:$0xff] %v6902_v8 }
 0x89b   :  { %6967 = vst [vmem:[%s16455_s10 + $0x1c0] sm:$0xff] %v6903_v12  ;;  %6968 = vst [vmem:[%s16455_s10 + $0x1c8] sm:$0xff] %v6904_v16 }
 0x89c   :  { %6969 = vst [vmem:[%s16455_s10 + $0x1d0] sm:$0xff] %v6905_v35  ;;  %6970 = vst [vmem:[%s16455_s10 + $0x1d8] sm:$0xff] %v6906_v24 }
 0x89d   :  { %6971 = vst [vmem:[%s16455_s10 + $0x1e0] sm:$0xff] %v6907_v40  ;;  %6972 = vst [vmem:[%s16455_s10 + $0x1e8] sm:$0xff] %v6908_v27 }
 0x89e   :  { %6973 = vst [vmem:[%s16455_s10 + $0x1f0] sm:$0xff] %v6909_v25  ;;  %6974 = vst [vmem:[%s16455_s10 + $0x1f8] sm:$0xff] %v6910_v60 }

</bundles_post_ra>
